<compile_context>
chip_gen: v5e
topology: v5e:2x2
jax: 0.10.0
libtpu: 0.0.40
codegen_flags: <defaults>
</compile_context>

<pallas_src>
import functools

import jax
import jax.numpy as jnp
from jax.experimental import pallas as pl
from jax.experimental.pallas import tpu as pltpu

_FC_K = 64 * 7 * 7      # 3136 flattened features (forces 84x84 input, as in the module)
_FC_K_PAD = 3200        # padded to a multiple of 128 for clean K-tiling of the fc weight
_FC_K_TILE = 640        # 5 grid steps stream the (3200, 512) weight


# ---------------------------------------------------------------------------
# Fused stride-1 NHWC conv + bias + ReLU (im2col fused in VMEM).
# ---------------------------------------------------------------------------
def _conv_s1_relu_kernel(x_ref, w_ref, b_ref, o_ref, *, kh, kw):
    """x_ref: (1, Hi, Wi, Cin) bf16; w_ref: (kh, kw, Cin, Cout) bf16;
    b_ref: (1, Cout) f32; o_ref: (1, Ho, Wo, Cout).

    out[oh, ow, :] = relu(b + sum_{ki,kj} x[oh+ki, ow+kj, :] @ w[ki, kj])
    Each tap is a contiguous VMEM slice feeding a batched MXU matmul (batch = Ho),
    accumulated in f32."""
    Ho, Wo, Cout = o_ref.shape[1], o_ref.shape[2], o_ref.shape[3]
    Cin = x_ref.shape[3]

    acc = jnp.zeros((Ho, Wo, Cout), jnp.float32)
    for ki in range(kh):
        for kj in range(kw):
            xt = x_ref[0, pl.ds(ki, Ho), pl.ds(kj, Wo), :]            # (Ho, Wo, Cin)
            wt = w_ref[ki, kj, :, :]                                  # (Cin, Cout)
            wb = jnp.broadcast_to(wt[None, :, :], (Ho, Cin, Cout))
            acc = acc + jnp.einsum("hwc,hcn->hwn", xt, wb,
                                   preferred_element_type=jnp.float32)
    acc = acc + b_ref[...]                                            # (1, Cout) bcast
    o_ref[0] = jnp.maximum(acc, 0.0).astype(o_ref.dtype)


def conv_s1_relu(x, w, b, out_dtype=jnp.bfloat16):
    """Valid stride-1 conv + bias + ReLU.  x: (B,Hi,Wi,Cin) bf16, w: (kh,kw,Cin,Cout)
    bf16, b: (1,Cout) f32.  Grid over batch; weights/bias stay resident in VMEM."""
    B, Hi, Wi, Cin = x.shape
    kh, kw, _, Cout = w.shape
    Ho, Wo = Hi - kh + 1, Wi - kw + 1
    return pl.pallas_call(
        functools.partial(_conv_s1_relu_kernel, kh=kh, kw=kw),
        out_shape=jax.ShapeDtypeStruct((B, Ho, Wo, Cout), out_dtype),
        grid=(B,),
        in_specs=[
            pl.BlockSpec((1, Hi, Wi, Cin), lambda bi: (bi, 0, 0, 0)),
            pl.BlockSpec((kh, kw, Cin, Cout), lambda bi: (0, 0, 0, 0)),
            pl.BlockSpec((1, Cout), lambda bi: (0, 0)),
        ],
        out_specs=pl.BlockSpec((1, Ho, Wo, Cout), lambda bi: (bi, 0, 0, 0)),
        compiler_params=pltpu.CompilerParams(dimension_semantics=("parallel",)),
    )(x, w, b)


# ---------------------------------------------------------------------------
# Fused value head: Linear(3136->512) + ReLU + Linear(512->1), K-tiled grid.
# ---------------------------------------------------------------------------
def _value_head_kernel(x_ref, w4_ref, b4_ref, w5_ref, b5_ref, o_ref, acc_ref):
    k = pl.program_id(0)

    @pl.when(k == 0)
    def _init():
        acc_ref[...] = jnp.zeros_like(acc_ref)

    acc_ref[...] += jnp.dot(x_ref[...], w4_ref[...],
                            preferred_element_type=jnp.float32)

    @pl.when(k == pl.num_programs(0) - 1)
    def _finalize():
        h = jnp.maximum(acc_ref[...] + b4_ref[...], 0.0)              # (B, 512) f32
        v = jnp.sum(h * w5_ref[...].astype(jnp.float32), axis=1, keepdims=True)
        o_ref[...] = (v + b5_ref[...]).astype(o_ref.dtype)


def value_head(x, w4, b4, w5, b5):
    """x: (B, 3200) bf16; w4: (3200, 512) bf16 (zero-padded rows); b4: (1, 512) f32;
    w5: (1, 512) bf16; b5: (1, 1) f32 -> (B, 1) f32."""
    B, Kp = x.shape
    n_hidden = w4.shape[1]
    kt = _FC_K_TILE
    return pl.pallas_call(
        _value_head_kernel,
        out_shape=jax.ShapeDtypeStruct((B, 1), jnp.float32),
        grid=(Kp // kt,),
        in_specs=[
            pl.BlockSpec((B, kt), lambda k: (0, k)),
            pl.BlockSpec((kt, n_hidden), lambda k: (k, 0)),
            pl.BlockSpec((1, n_hidden), lambda k: (0, 0)),
            pl.BlockSpec((1, n_hidden), lambda k: (0, 0)),
            pl.BlockSpec((1, 1), lambda k: (0, 0)),
        ],
        out_specs=pl.BlockSpec((B, 1), lambda k: (0, 0)),
        scratch_shapes=[pltpu.VMEM((B, n_hidden), jnp.float32)],
        compiler_params=pltpu.CompilerParams(dimension_semantics=("arbitrary",)),
    )(x, w4, b4, w5, b5)


# ---------------------------------------------------------------------------
# Parameters: PyTorch-layout init + one-time conversion to kernel layout.
# ---------------------------------------------------------------------------
def init_params(nS, key):
    """PyTorch-layout params with PyTorch-default uniform(-1/sqrt(fan_in), +)."""
    ks = jax.random.split(key, 10)

    def u(k, shape, fan_in):
        bound = 1.0 / jnp.sqrt(jnp.float32(fan_in))
        return jax.random.uniform(k, shape, jnp.float32, -bound, bound)

    return {
        "w1": u(ks[0], (32, nS, 8, 8), nS * 8 * 8),
        "b1": u(ks[1], (32,), nS * 8 * 8),
        "w2": u(ks[2], (64, 32, 4, 4), 32 * 4 * 4),
        "b2": u(ks[3], (64,), 32 * 4 * 4),
        "w3": u(ks[4], (64, 64, 3, 3), 64 * 3 * 3),
        "b3": u(ks[5], (64,), 64 * 3 * 3),
        "w4": u(ks[6], (_FC_K, 512), _FC_K),   # rows in PyTorch NCHW (c,h,w) flatten order
        "b4": u(ks[7], (512,), _FC_K),
        "w5": u(ks[8], (512, 1), 512),
        "b5": u(ks[9], (1,), 512),
    }


def _prep_conv_weight(w, s):
    """(Cout, Cin, KH, KW) stride-s torch conv weight -> (KH//s, KW//s, s*s*Cin, Cout)
    bf16 weight of the equivalent stride-1 conv on space-to-depth(s) input.
    With ki = s*kqi + kri, the tap-channel order is (kri, krj, ci), matching
    _space_to_depth's channel order (h%s, w%s, c)."""
    Cout, Cin, KH, KW = w.shape
    assert KH % s == 0 and KW % s == 0
    w = w.reshape(Cout, Cin, KH // s, s, KW // s, s)      # (co, ci, kqi, kri, kqj, krj)
    w = w.transpose(2, 4, 3, 5, 1, 0)                      # (kqi, kqj, kri, krj, ci, co)
    return w.reshape(KH // s, KW // s, s * s * Cin, Cout).astype(jnp.bfloat16)


def prepare_params(p):
    """One-time layout prep: conv weights to stride-1/NHWC tap layout, fc4 rows permuted
    from (c,h,w) to our (h,w,c) flatten order and zero-padded to K=3200, matmul weights
    cast to bf16, biases kept f32 as (1, N)."""
    w4 = p["w4"].reshape(64, 7, 7, 512).transpose(1, 2, 0, 3).reshape(_FC_K, 512)
    w4 = jnp.pad(w4, ((0, _FC_K_PAD - _FC_K), (0, 0)))
    return {
        "w1": _prep_conv_weight(p["w1"], 4), "b1": p["b1"].reshape(1, -1),
        "w2": _prep_conv_weight(p["w2"], 2), "b2": p["b2"].reshape(1, -1),
        "w3": _prep_conv_weight(p["w3"], 1), "b3": p["b3"].reshape(1, -1),
        "w4": w4.astype(jnp.bfloat16),       "b4": p["b4"].reshape(1, -1),
        "w5": p["w5"].reshape(1, -1).astype(jnp.bfloat16),
        "b5": p["b5"].reshape(1, 1),
    }


# ---------------------------------------------------------------------------
# Forward pass.
# ---------------------------------------------------------------------------
def _space_to_depth(x, s):
    """(B, H, W, C) -> (B, H//s, W//s, s*s*C); channel order (h%s, w%s, c).
    Turns a stride-s conv into a stride-1 conv (single cheap layout pass, no im2col)."""
    if s == 1:
        return x
    B, H, W, C = x.shape
    x = x.reshape(B, H // s, s, W // s, s, C)
    x = x.transpose(0, 1, 3, 2, 4, 5)
    return x.reshape(B, H // s, W // s, s * s * C)


def critic_net_forward(params, state):
    """state: (B, nS, 84, 84) f32 NCHW (84x84 is required by Linear(3136, 512))."""
    B = state.shape[0]
    # Single entry layout change: NCHW -> NHWC, space-to-depth(4), cast once to bf16.
    x = jnp.transpose(state, (0, 2, 3, 1))
    x = _space_to_depth(x, 4).astype(jnp.bfloat16)          # (B, 21, 21, 16*nS)
    x = conv_s1_relu(x, params["w1"], params["b1"])          # (B, 20, 20, 32)  == Conv(8, s4)+ReLU
    x = _space_to_depth(x, 2)                                # (B, 10, 10, 128)
    x = conv_s1_relu(x, params["w2"], params["b2"])          # (B, 9, 9, 64)    == Conv(4, s2)+ReLU
    x = conv_s1_relu(x, params["w3"], params["b3"])          # (B, 7, 7, 64)    == Conv(3, s1)+ReLU
    # Flatten in (h, w, c) order (fc4 rows were permuted to match torch's (c, h, w)),
    # zero-pad K 3136 -> 3200 so the head's K-grid uses 128-aligned tiles.
    x = x.reshape(B, _FC_K)
    x = jnp.pad(x, ((0, 0), (0, _FC_K_PAD - _FC_K)))
    return value_head(x, params["w4"], params["b4"], params["w5"], params["b5"])


if __name__ == "__main__":
    key = jax.random.PRNGKey(0)
    k_param, k_in = jax.random.split(key)
    nS, B = 4, 2
    state = jax.random.uniform(k_in, (B, nS, 84, 84), dtype=jnp.float32)
    params = prepare_params(init_params(nS, k_param))

    out = jax.jit(critic_net_forward)(params, state)
    out = jax.block_until_ready(out)
    assert out.shape == (B, 1) and out.dtype == jnp.float32
    print("KERNEL_OK")
</pallas_src>

<mosaic_0001>
module attributes {stable_mosaic.version = 11 : i64} {
  func.func @_conv_s1_relu_kernel(%arg0: i32, %arg1: memref<1x21x21x64xbf16, #tpu.memory_space<vmem>>, %arg2: memref<2x2x64x32xbf16, #tpu.memory_space<vmem>>, %arg3: memref<1x32xf32, #tpu.memory_space<vmem>>, %arg4: memref<1x20x20x32xbf16, #tpu.memory_space<vmem>>) attributes {dimension_semantics = [#tpu.dimension_semantics<parallel>], iteration_bounds = array<i64: 2>, scalar_prefetch = 0 : i64, scratch_operands = 0 : i64, tpu.core_type = #tpu.core_type<tc>, window_params = [{transform_indices = @transform_0, window_bounds = array<i64: 1, 21, 21, 64>}, {pipeline_mode = #tpu.pipeline_mode<synchronous>, transform_indices = @transform_1, window_bounds = array<i64: 2, 2, 64, 32>}, {pipeline_mode = #tpu.pipeline_mode<synchronous>, transform_indices = @transform_2, window_bounds = array<i64: 1, 32>}, {transform_indices = @transform_3, window_bounds = array<i64: 1, 20, 20, 32>}]} {
    %cst = arith.constant 0.000000e+00 : f32
    %0 = vector.broadcast %cst : f32 to vector<20x20x32xf32>
    %c0 = arith.constant 0 : index
    %c0_0 = arith.constant 0 : index
    %c0_1 = arith.constant 0 : index
    %c0_2 = arith.constant 0 : index
    %1 = vector.load %arg1[%c0, %c0_0, %c0_1, %c0_2] : memref<1x21x21x64xbf16, #tpu.memory_space<vmem>>, vector<1x20x20x64xbf16>
    %2 = vector.shape_cast %1 : vector<1x20x20x64xbf16> to vector<20x20x64xbf16>
    %c0_3 = arith.constant 0 : index
    %c0_4 = arith.constant 0 : index
    %c0_5 = arith.constant 0 : index
    %c0_6 = arith.constant 0 : index
    %3 = vector.load %arg2[%c0_3, %c0_4, %c0_5, %c0_6] : memref<2x2x64x32xbf16, #tpu.memory_space<vmem>>, vector<1x1x64x32xbf16>
    %4 = vector.shape_cast %3 : vector<1x1x64x32xbf16> to vector<64x32xbf16>
    %5 = vector.shape_cast %4 : vector<64x32xbf16> to vector<1x64x32xbf16>
    %6 = vector.shape_cast %5 : vector<1x64x32xbf16> to vector<1x64x32xbf16>
    %7 = vector.broadcast %6 : vector<1x64x32xbf16> to vector<20x64x32xbf16>
    "tpu.trace_start"() <{level = 10 : i32, message = "hwc,hcn->hwn"}> : () -> ()
    %cst_7 = arith.constant dense<0.000000e+00> : vector<20x20x32xf32>
    %8 = tpu.matmul %2, %7, %cst_7 {dimension_numbers = #tpu.dot_dimension_numbers<[2], [1], [1], [2], [0, 0, 0, 1, 1, 2], [0], [0]>} : vector<20x20x64xbf16>, vector<20x64x32xbf16>, vector<20x20x32xf32> -> vector<20x20x32xf32>
    "tpu.trace_stop"() : () -> ()
    %9 = arith.addf %0, %8 : vector<20x20x32xf32>
    %c0_8 = arith.constant 0 : index
    %c0_9 = arith.constant 0 : index
    %c1 = arith.constant 1 : index
    %c0_10 = arith.constant 0 : index
    %10 = vector.load %arg1[%c0_8, %c0_9, %c1, %c0_10] : memref<1x21x21x64xbf16, #tpu.memory_space<vmem>>, vector<1x20x20x64xbf16>
    %11 = vector.shape_cast %10 : vector<1x20x20x64xbf16> to vector<20x20x64xbf16>
    %c0_11 = arith.constant 0 : index
    %c1_12 = arith.constant 1 : index
    %c0_13 = arith.constant 0 : index
    %c0_14 = arith.constant 0 : index
    %12 = vector.load %arg2[%c0_11, %c1_12, %c0_13, %c0_14] : memref<2x2x64x32xbf16, #tpu.memory_space<vmem>>, vector<1x1x64x32xbf16>
    %13 = vector.shape_cast %12 : vector<1x1x64x32xbf16> to vector<64x32xbf16>
    %14 = vector.shape_cast %13 : vector<64x32xbf16> to vector<1x64x32xbf16>
    %15 = vector.shape_cast %14 : vector<1x64x32xbf16> to vector<1x64x32xbf16>
    %16 = vector.broadcast %15 : vector<1x64x32xbf16> to vector<20x64x32xbf16>
    "tpu.trace_start"() <{level = 10 : i32, message = "hwc,hcn->hwn"}> : () -> ()
    %cst_15 = arith.constant dense<0.000000e+00> : vector<20x20x32xf32>
    %17 = tpu.matmul %11, %16, %cst_15 {dimension_numbers = #tpu.dot_dimension_numbers<[2], [1], [1], [2], [0, 0, 0, 1, 1, 2], [0], [0]>} : vector<20x20x64xbf16>, vector<20x64x32xbf16>, vector<20x20x32xf32> -> vector<20x20x32xf32>
    "tpu.trace_stop"() : () -> ()
    %18 = arith.addf %9, %17 : vector<20x20x32xf32>
    %c0_16 = arith.constant 0 : index
    %c1_17 = arith.constant 1 : index
    %c0_18 = arith.constant 0 : index
    %c0_19 = arith.constant 0 : index
    %19 = vector.load %arg1[%c0_16, %c1_17, %c0_18, %c0_19] : memref<1x21x21x64xbf16, #tpu.memory_space<vmem>>, vector<1x20x20x64xbf16>
    %20 = vector.shape_cast %19 : vector<1x20x20x64xbf16> to vector<20x20x64xbf16>
    %c1_20 = arith.constant 1 : index
    %c0_21 = arith.constant 0 : index
    %c0_22 = arith.constant 0 : index
    %c0_23 = arith.constant 0 : index
    %21 = vector.load %arg2[%c1_20, %c0_21, %c0_22, %c0_23] : memref<2x2x64x32xbf16, #tpu.memory_space<vmem>>, vector<1x1x64x32xbf16>
    %22 = vector.shape_cast %21 : vector<1x1x64x32xbf16> to vector<64x32xbf16>
    %23 = vector.shape_cast %22 : vector<64x32xbf16> to vector<1x64x32xbf16>
    %24 = vector.shape_cast %23 : vector<1x64x32xbf16> to vector<1x64x32xbf16>
    %25 = vector.broadcast %24 : vector<1x64x32xbf16> to vector<20x64x32xbf16>
    "tpu.trace_start"() <{level = 10 : i32, message = "hwc,hcn->hwn"}> : () -> ()
    %cst_24 = arith.constant dense<0.000000e+00> : vector<20x20x32xf32>
    %26 = tpu.matmul %20, %25, %cst_24 {dimension_numbers = #tpu.dot_dimension_numbers<[2], [1], [1], [2], [0, 0, 0, 1, 1, 2], [0], [0]>} : vector<20x20x64xbf16>, vector<20x64x32xbf16>, vector<20x20x32xf32> -> vector<20x20x32xf32>
    "tpu.trace_stop"() : () -> ()
    %27 = arith.addf %18, %26 : vector<20x20x32xf32>
    %c0_25 = arith.constant 0 : index
    %c1_26 = arith.constant 1 : index
    %c1_27 = arith.constant 1 : index
    %c0_28 = arith.constant 0 : index
    %28 = vector.load %arg1[%c0_25, %c1_26, %c1_27, %c0_28] : memref<1x21x21x64xbf16, #tpu.memory_space<vmem>>, vector<1x20x20x64xbf16>
    %29 = vector.shape_cast %28 : vector<1x20x20x64xbf16> to vector<20x20x64xbf16>
    %c1_29 = arith.constant 1 : index
    %c1_30 = arith.constant 1 : index
    %c0_31 = arith.constant 0 : index
    %c0_32 = arith.constant 0 : index
    %30 = vector.load %arg2[%c1_29, %c1_30, %c0_31, %c0_32] : memref<2x2x64x32xbf16, #tpu.memory_space<vmem>>, vector<1x1x64x32xbf16>
    %31 = vector.shape_cast %30 : vector<1x1x64x32xbf16> to vector<64x32xbf16>
    %32 = vector.shape_cast %31 : vector<64x32xbf16> to vector<1x64x32xbf16>
    %33 = vector.shape_cast %32 : vector<1x64x32xbf16> to vector<1x64x32xbf16>
    %34 = vector.broadcast %33 : vector<1x64x32xbf16> to vector<20x64x32xbf16>
    "tpu.trace_start"() <{level = 10 : i32, message = "hwc,hcn->hwn"}> : () -> ()
    %cst_33 = arith.constant dense<0.000000e+00> : vector<20x20x32xf32>
    %35 = tpu.matmul %29, %34, %cst_33 {dimension_numbers = #tpu.dot_dimension_numbers<[2], [1], [1], [2], [0, 0, 0, 1, 1, 2], [0], [0]>} : vector<20x20x64xbf16>, vector<20x64x32xbf16>, vector<20x20x32xf32> -> vector<20x20x32xf32>
    "tpu.trace_stop"() : () -> ()
    %36 = arith.addf %27, %35 : vector<20x20x32xf32>
    %c0_34 = arith.constant 0 : index
    %c0_35 = arith.constant 0 : index
    %37 = vector.load %arg3[%c0_34, %c0_35] : memref<1x32xf32, #tpu.memory_space<vmem>>, vector<1x32xf32>
    %38 = vector.shape_cast %37 : vector<1x32xf32> to vector<1x1x32xf32>
    %39 = vector.broadcast %38 : vector<1x1x32xf32> to vector<20x20x32xf32>
    %40 = arith.addf %36, %39 : vector<20x20x32xf32>
    %cst_36 = arith.constant 0.000000e+00 : f32
    %41 = vector.broadcast %cst_36 : f32 to vector<20x20x32xf32>
    %42 = arith.maximumf %40, %41 : vector<20x20x32xf32>
    %43 = arith.truncf %42 : vector<20x20x32xf32> to vector<20x20x32xbf16>
    %c0_37 = arith.constant 0 : index
    %c0_38 = arith.constant 0 : index
    %c0_39 = arith.constant 0 : index
    %c0_40 = arith.constant 0 : index
    %44 = vector.load %arg4[%c0_37, %c0_38, %c0_39, %c0_40] : memref<1x20x20x32xbf16, #tpu.memory_space<vmem>>, vector<1x20x20x32xbf16>
    %45 = vector.shape_cast %44 : vector<1x20x20x32xbf16> to vector<20x20x32xbf16>
    %46 = vector.shape_cast %43 : vector<20x20x32xbf16> to vector<1x20x20x32xbf16>
    tpu.vector_store %arg4[%c0_37, %c0_38, %c0_39, %c0_40], %46 {strides = array<i32>} : memref<1x20x20x32xbf16, #tpu.memory_space<vmem>>, vector<1x20x20x32xbf16>,
    return
  }
  func.func @transform_0(%arg0: i32) -> (i32, i32, i32, i32) {
    %c0_i32 = arith.constant 0 : i32
    %c0_i32_0 = arith.constant 0 : i32
    %c0_i32_1 = arith.constant 0 : i32
    %c0_i32_2 = arith.constant 0 : i32
    return %arg0, %c0_i32, %c0_i32_0, %c0_i32_1 : i32, i32, i32, i32
  }
  func.func @transform_1(%arg0: i32) -> (i32, i32, i32, i32) {
    %c0_i32 = arith.constant 0 : i32
    %c0_i32_0 = arith.constant 0 : i32
    %c0_i32_1 = arith.constant 0 : i32
    %c0_i32_2 = arith.constant 0 : i32
    %c0_i32_3 = arith.constant 0 : i32
    return %c0_i32, %c0_i32_0, %c0_i32_1, %c0_i32_2 : i32, i32, i32, i32
  }
  func.func @transform_2(%arg0: i32) -> (i32, i32) {
    %c0_i32 = arith.constant 0 : i32
    %c0_i32_0 = arith.constant 0 : i32
    %c0_i32_1 = arith.constant 0 : i32
    return %c0_i32, %c0_i32_0 : i32, i32
  }
  func.func @transform_3(%arg0: i32) -> (i32, i32, i32, i32) {
    %c0_i32 = arith.constant 0 : i32
    %c0_i32_0 = arith.constant 0 : i32
    %c0_i32_1 = arith.constant 0 : i32
    %c0_i32_2 = arith.constant 0 : i32
    return %arg0, %c0_i32, %c0_i32_0, %c0_i32_1 : i32, i32, i32, i32
  }
}

module attributes {stable_mosaic.version = 11 : i64} {
  func.func @_conv_s1_relu_kernel(%arg0: i32, %arg1: memref<1x9x9x64xbf16, #tpu.memory_space<vmem>>, %arg2: memref<3x3x64x64xbf16, #tpu.memory_space<vmem>>, %arg3: memref<1x64xf32, #tpu.memory_space<vmem>>, %arg4: memref<1x7x7x64xbf16, #tpu.memory_space<vmem>>) attributes {dimension_semantics = [#tpu.dimension_semantics<parallel>], iteration_bounds = array<i64: 2>, scalar_prefetch = 0 : i64, scratch_operands = 0 : i64, tpu.core_type = #tpu.core_type<tc>, window_params = [{transform_indices = @transform_0, window_bounds = array<i64: 1, 9, 9, 64>}, {pipeline_mode = #tpu.pipeline_mode<synchronous>, transform_indices = @transform_1, window_bounds = array<i64: 3, 3, 64, 64>}, {pipeline_mode = #tpu.pipeline_mode<synchronous>, transform_indices = @transform_2, window_bounds = array<i64: 1, 64>}, {transform_indices = @transform_3, window_bounds = array<i64: 1, 7, 7, 64>}]} {
    %cst = arith.constant 0.000000e+00 : f32
    %0 = vector.broadcast %cst : f32 to vector<7x7x64xf32>
    %c0 = arith.constant 0 : index
    %c0_0 = arith.constant 0 : index
    %c0_1 = arith.constant 0 : index
    %c0_2 = arith.constant 0 : index
    %1 = vector.load %arg1[%c0, %c0_0, %c0_1, %c0_2] : memref<1x9x9x64xbf16, #tpu.memory_space<vmem>>, vector<1x7x7x64xbf16>
    %2 = vector.shape_cast %1 : vector<1x7x7x64xbf16> to vector<7x7x64xbf16>
    %c0_3 = arith.constant 0 : index
    %c0_4 = arith.constant 0 : index
    %c0_5 = arith.constant 0 : index
    %c0_6 = arith.constant 0 : index
    %3 = vector.load %arg2[%c0_3, %c0_4, %c0_5, %c0_6] : memref<3x3x64x64xbf16, #tpu.memory_space<vmem>>, vector<1x1x64x64xbf16>
    %4 = vector.shape_cast %3 : vector<1x1x64x64xbf16> to vector<64x64xbf16>
    %5 = vector.shape_cast %4 : vector<64x64xbf16> to vector<1x64x64xbf16>
    %6 = vector.shape_cast %5 : vector<1x64x64xbf16> to vector<1x64x64xbf16>
    %7 = vector.broadcast %6 : vector<1x64x64xbf16> to vector<7x64x64xbf16>
    "tpu.trace_start"() <{level = 10 : i32, message = "hwc,hcn->hwn"}> : () -> ()
    %cst_7 = arith.constant dense<0.000000e+00> : vector<7x7x64xf32>
    %8 = tpu.matmul %2, %7, %cst_7 {dimension_numbers = #tpu.dot_dimension_numbers<[2], [1], [1], [2], [0, 0, 0, 1, 1, 2], [0], [0]>} : vector<7x7x64xbf16>, vector<7x64x64xbf16>, vector<7x7x64xf32> -> vector<7x7x64xf32>
    "tpu.trace_stop"() : () -> ()
    %9 = arith.addf %0, %8 : vector<7x7x64xf32>
    %c0_8 = arith.constant 0 : index
    %c0_9 = arith.constant 0 : index
    %c1 = arith.constant 1 : index
    %c0_10 = arith.constant 0 : index
    %10 = vector.load %arg1[%c0_8, %c0_9, %c1, %c0_10] : memref<1x9x9x64xbf16, #tpu.memory_space<vmem>>, vector<1x7x7x64xbf16>
    %11 = vector.shape_cast %10 : vector<1x7x7x64xbf16> to vector<7x7x64xbf16>
    %c0_11 = arith.constant 0 : index
    %c1_12 = arith.constant 1 : index
    %c0_13 = arith.constant 0 : index
    %c0_14 = arith.constant 0 : index
    %12 = vector.load %arg2[%c0_11, %c1_12, %c0_13, %c0_14] : memref<3x3x64x64xbf16, #tpu.memory_space<vmem>>, vector<1x1x64x64xbf16>
    %13 = vector.shape_cast %12 : vector<1x1x64x64xbf16> to vector<64x64xbf16>
    %14 = vector.shape_cast %13 : vector<64x64xbf16> to vector<1x64x64xbf16>
    %15 = vector.shape_cast %14 : vector<1x64x64xbf16> to vector<1x64x64xbf16>
    %16 = vector.broadcast %15 : vector<1x64x64xbf16> to vector<7x64x64xbf16>
    "tpu.trace_start"() <{level = 10 : i32, message = "hwc,hcn->hwn"}> : () -> ()
    %cst_15 = arith.constant dense<0.000000e+00> : vector<7x7x64xf32>
    %17 = tpu.matmul %11, %16, %cst_15 {dimension_numbers = #tpu.dot_dimension_numbers<[2], [1], [1], [2], [0, 0, 0, 1, 1, 2], [0], [0]>} : vector<7x7x64xbf16>, vector<7x64x64xbf16>, vector<7x7x64xf32> -> vector<7x7x64xf32>
    "tpu.trace_stop"() : () -> ()
    %18 = arith.addf %9, %17 : vector<7x7x64xf32>
    %c0_16 = arith.constant 0 : index
    %c0_17 = arith.constant 0 : index
    %c2 = arith.constant 2 : index
    %c0_18 = arith.constant 0 : index
    %19 = vector.load %arg1[%c0_16, %c0_17, %c2, %c0_18] : memref<1x9x9x64xbf16, #tpu.memory_space<vmem>>, vector<1x7x7x64xbf16>
    %20 = vector.shape_cast %19 : vector<1x7x7x64xbf16> to vector<7x7x64xbf16>
    %c0_19 = arith.constant 0 : index
    %c2_20 = arith.constant 2 : index
    %c0_21 = arith.constant 0 : index
    %c0_22 = arith.constant 0 : index
    %21 = vector.load %arg2[%c0_19, %c2_20, %c0_21, %c0_22] : memref<3x3x64x64xbf16, #tpu.memory_space<vmem>>, vector<1x1x64x64xbf16>
    %22 = vector.shape_cast %21 : vector<1x1x64x64xbf16> to vector<64x64xbf16>
    %23 = vector.shape_cast %22 : vector<64x64xbf16> to vector<1x64x64xbf16>
    %24 = vector.shape_cast %23 : vector<1x64x64xbf16> to vector<1x64x64xbf16>
    %25 = vector.broadcast %24 : vector<1x64x64xbf16> to vector<7x64x64xbf16>
    "tpu.trace_start"() <{level = 10 : i32, message = "hwc,hcn->hwn"}> : () -> ()
    %cst_23 = arith.constant dense<0.000000e+00> : vector<7x7x64xf32>
    %26 = tpu.matmul %20, %25, %cst_23 {dimension_numbers = #tpu.dot_dimension_numbers<[2], [1], [1], [2], [0, 0, 0, 1, 1, 2], [0], [0]>} : vector<7x7x64xbf16>, vector<7x64x64xbf16>, vector<7x7x64xf32> -> vector<7x7x64xf32>
    "tpu.trace_stop"() : () -> ()
    %27 = arith.addf %18, %26 : vector<7x7x64xf32>
    %c0_24 = arith.constant 0 : index
    %c1_25 = arith.constant 1 : index
    %c0_26 = arith.constant 0 : index
    %c0_27 = arith.constant 0 : index
    %28 = vector.load %arg1[%c0_24, %c1_25, %c0_26, %c0_27] : memref<1x9x9x64xbf16, #tpu.memory_space<vmem>>, vector<1x7x7x64xbf16>
    %29 = vector.shape_cast %28 : vector<1x7x7x64xbf16> to vector<7x7x64xbf16>
    %c1_28 = arith.constant 1 : index
    %c0_29 = arith.constant 0 : index
    %c0_30 = arith.constant 0 : index
    %c0_31 = arith.constant 0 : index
    %30 = vector.load %arg2[%c1_28, %c0_29, %c0_30, %c0_31] : memref<3x3x64x64xbf16, #tpu.memory_space<vmem>>, vector<1x1x64x64xbf16>
    %31 = vector.shape_cast %30 : vector<1x1x64x64xbf16> to vector<64x64xbf16>
    %32 = vector.shape_cast %31 : vector<64x64xbf16> to vector<1x64x64xbf16>
    %33 = vector.shape_cast %32 : vector<1x64x64xbf16> to vector<1x64x64xbf16>
    %34 = vector.broadcast %33 : vector<1x64x64xbf16> to vector<7x64x64xbf16>
    "tpu.trace_start"() <{level = 10 : i32, message = "hwc,hcn->hwn"}> : () -> ()
    %cst_32 = arith.constant dense<0.000000e+00> : vector<7x7x64xf32>
    %35 = tpu.matmul %29, %34, %cst_32 {dimension_numbers = #tpu.dot_dimension_numbers<[2], [1], [1], [2], [0, 0, 0, 1, 1, 2], [0], [0]>} : vector<7x7x64xbf16>, vector<7x64x64xbf16>, vector<7x7x64xf32> -> vector<7x7x64xf32>
    "tpu.trace_stop"() : () -> ()
    %36 = arith.addf %27, %35 : vector<7x7x64xf32>
    %c0_33 = arith.constant 0 : index
    %c1_34 = arith.constant 1 : index
    %c1_35 = arith.constant 1 : index
    %c0_36 = arith.constant 0 : index
    %37 = vector.load %arg1[%c0_33, %c1_34, %c1_35, %c0_36] : memref<1x9x9x64xbf16, #tpu.memory_space<vmem>>, vector<1x7x7x64xbf16>
    %38 = vector.shape_cast %37 : vector<1x7x7x64xbf16> to vector<7x7x64xbf16>
    %c1_37 = arith.constant 1 : index
    %c1_38 = arith.constant 1 : index
    %c0_39 = arith.constant 0 : index
    %c0_40 = arith.constant 0 : index
    %39 = vector.load %arg2[%c1_37, %c1_38, %c0_39, %c0_40] : memref<3x3x64x64xbf16, #tpu.memory_space<vmem>>, vector<1x1x64x64xbf16>
    %40 = vector.shape_cast %39 : vector<1x1x64x64xbf16> to vector<64x64xbf16>
    %41 = vector.shape_cast %40 : vector<64x64xbf16> to vector<1x64x64xbf16>
    %42 = vector.shape_cast %41 : vector<1x64x64xbf16> to vector<1x64x64xbf16>
    %43 = vector.broadcast %42 : vector<1x64x64xbf16> to vector<7x64x64xbf16>
    "tpu.trace_start"() <{level = 10 : i32, message = "hwc,hcn->hwn"}> : () -> ()
    %cst_41 = arith.constant dense<0.000000e+00> : vector<7x7x64xf32>
    %44 = tpu.matmul %38, %43, %cst_41 {dimension_numbers = #tpu.dot_dimension_numbers<[2], [1], [1], [2], [0, 0, 0, 1, 1, 2], [0], [0]>} : vector<7x7x64xbf16>, vector<7x64x64xbf16>, vector<7x7x64xf32> -> vector<7x7x64xf32>
    "tpu.trace_stop"() : () -> ()
    %45 = arith.addf %36, %44 : vector<7x7x64xf32>
    %c0_42 = arith.constant 0 : index
    %c1_43 = arith.constant 1 : index
    %c2_44 = arith.constant 2 : index
    %c0_45 = arith.constant 0 : index
    %46 = vector.load %arg1[%c0_42, %c1_43, %c2_44, %c0_45] : memref<1x9x9x64xbf16, #tpu.memory_space<vmem>>, vector<1x7x7x64xbf16>
    %47 = vector.shape_cast %46 : vector<1x7x7x64xbf16> to vector<7x7x64xbf16>
    %c1_46 = arith.constant 1 : index
    %c2_47 = arith.constant 2 : index
    %c0_48 = arith.constant 0 : index
    %c0_49 = arith.constant 0 : index
    %48 = vector.load %arg2[%c1_46, %c2_47, %c0_48, %c0_49] : memref<3x3x64x64xbf16, #tpu.memory_space<vmem>>, vector<1x1x64x64xbf16>
    %49 = vector.shape_cast %48 : vector<1x1x64x64xbf16> to vector<64x64xbf16>
    %50 = vector.shape_cast %49 : vector<64x64xbf16> to vector<1x64x64xbf16>
    %51 = vector.shape_cast %50 : vector<1x64x64xbf16> to vector<1x64x64xbf16>
    %52 = vector.broadcast %51 : vector<1x64x64xbf16> to vector<7x64x64xbf16>
    "tpu.trace_start"() <{level = 10 : i32, message = "hwc,hcn->hwn"}> : () -> ()
    %cst_50 = arith.constant dense<0.000000e+00> : vector<7x7x64xf32>
    %53 = tpu.matmul %47, %52, %cst_50 {dimension_numbers = #tpu.dot_dimension_numbers<[2], [1], [1], [2], [0, 0, 0, 1, 1, 2], [0], [0]>} : vector<7x7x64xbf16>, vector<7x64x64xbf16>, vector<7x7x64xf32> -> vector<7x7x64xf32>
    "tpu.trace_stop"() : () -> ()
    %54 = arith.addf %45, %53 : vector<7x7x64xf32>
    %c0_51 = arith.constant 0 : index
    %c2_52 = arith.constant 2 : index
    %c0_53 = arith.constant 0 : index
    %c0_54 = arith.constant 0 : index
    %55 = vector.load %arg1[%c0_51, %c2_52, %c0_53, %c0_54] : memref<1x9x9x64xbf16, #tpu.memory_space<vmem>>, vector<1x7x7x64xbf16>
    %56 = vector.shape_cast %55 : vector<1x7x7x64xbf16> to vector<7x7x64xbf16>
    %c2_55 = arith.constant 2 : index
    %c0_56 = arith.constant 0 : index
    %c0_57 = arith.constant 0 : index
    %c0_58 = arith.constant 0 : index
    %57 = vector.load %arg2[%c2_55, %c0_56, %c0_57, %c0_58] : memref<3x3x64x64xbf16, #tpu.memory_space<vmem>>, vector<1x1x64x64xbf16>
    %58 = vector.shape_cast %57 : vector<1x1x64x64xbf16> to vector<64x64xbf16>
    %59 = vector.shape_cast %58 : vector<64x64xbf16> to vector<1x64x64xbf16>
    %60 = vector.shape_cast %59 : vector<1x64x64xbf16> to vector<1x64x64xbf16>
    %61 = vector.broadcast %60 : vector<1x64x64xbf16> to vector<7x64x64xbf16>
    "tpu.trace_start"() <{level = 10 : i32, message = "hwc,hcn->hwn"}> : () -> ()
    %cst_59 = arith.constant dense<0.000000e+00> : vector<7x7x64xf32>
    %62 = tpu.matmul %56, %61, %cst_59 {dimension_numbers = #tpu.dot_dimension_numbers<[2], [1], [1], [2], [0, 0, 0, 1, 1, 2], [0], [0]>} : vector<7x7x64xbf16>, vector<7x64x64xbf16>, vector<7x7x64xf32> -> vector<7x7x64xf32>
    "tpu.trace_stop"() : () -> ()
    %63 = arith.addf %54, %62 : vector<7x7x64xf32>
    %c0_60 = arith.constant 0 : index
    %c2_61 = arith.constant 2 : index
    %c1_62 = arith.constant 1 : index
    %c0_63 = arith.constant 0 : index
    %64 = vector.load %arg1[%c0_60, %c2_61, %c1_62, %c0_63] : memref<1x9x9x64xbf16, #tpu.memory_space<vmem>>, vector<1x7x7x64xbf16>
    %65 = vector.shape_cast %64 : vector<1x7x7x64xbf16> to vector<7x7x64xbf16>
    %c2_64 = arith.constant 2 : index
    %c1_65 = arith.constant 1 : index
    %c0_66 = arith.constant 0 : index
    %c0_67 = arith.constant 0 : index
    %66 = vector.load %arg2[%c2_64, %c1_65, %c0_66, %c0_67] : memref<3x3x64x64xbf16, #tpu.memory_space<vmem>>, vector<1x1x64x64xbf16>
    %67 = vector.shape_cast %66 : vector<1x1x64x64xbf16> to vector<64x64xbf16>
    %68 = vector.shape_cast %67 : vector<64x64xbf16> to vector<1x64x64xbf16>
    %69 = vector.shape_cast %68 : vector<1x64x64xbf16> to vector<1x64x64xbf16>
    %70 = vector.broadcast %69 : vector<1x64x64xbf16> to vector<7x64x64xbf16>
    "tpu.trace_start"() <{level = 10 : i32, message = "hwc,hcn->hwn"}> : () -> ()
    %cst_68 = arith.constant dense<0.000000e+00> : vector<7x7x64xf32>
    %71 = tpu.matmul %65, %70, %cst_68 {dimension_numbers = #tpu.dot_dimension_numbers<[2], [1], [1], [2], [0, 0, 0, 1, 1, 2], [0], [0]>} : vector<7x7x64xbf16>, vector<7x64x64xbf16>, vector<7x7x64xf32> -> vector<7x7x64xf32>
    "tpu.trace_stop"() : () -> ()
    %72 = arith.addf %63, %71 : vector<7x7x64xf32>
    %c0_69 = arith.constant 0 : index
    %c2_70 = arith.constant 2 : index
    %c2_71 = arith.constant 2 : index
    %c0_72 = arith.constant 0 : index
    %73 = vector.load %arg1[%c0_69, %c2_70, %c2_71, %c0_72] : memref<1x9x9x64xbf16, #tpu.memory_space<vmem>>, vector<1x7x7x64xbf16>
    %74 = vector.shape_cast %73 : vector<1x7x7x64xbf16> to vector<7x7x64xbf16>
    %c2_73 = arith.constant 2 : index
    %c2_74 = arith.constant 2 : index
    %c0_75 = arith.constant 0 : index
    %c0_76 = arith.constant 0 : index
    %75 = vector.load %arg2[%c2_73, %c2_74, %c0_75, %c0_76] : memref<3x3x64x64xbf16, #tpu.memory_space<vmem>>, vector<1x1x64x64xbf16>
    %76 = vector.shape_cast %75 : vector<1x1x64x64xbf16> to vector<64x64xbf16>
    %77 = vector.shape_cast %76 : vector<64x64xbf16> to vector<1x64x64xbf16>
    %78 = vector.shape_cast %77 : vector<1x64x64xbf16> to vector<1x64x64xbf16>
    %79 = vector.broadcast %78 : vector<1x64x64xbf16> to vector<7x64x64xbf16>
    "tpu.trace_start"() <{level = 10 : i32, message = "hwc,hcn->hwn"}> : () -> ()
    %cst_77 = arith.constant dense<0.000000e+00> : vector<7x7x64xf32>
    %80 = tpu.matmul %74, %79, %cst_77 {dimension_numbers = #tpu.dot_dimension_numbers<[2], [1], [1], [2], [0, 0, 0, 1, 1, 2], [0], [0]>} : vector<7x7x64xbf16>, vector<7x64x64xbf16>, vector<7x7x64xf32> -> vector<7x7x64xf32>
    "tpu.trace_stop"() : () -> ()
    %81 = arith.addf %72, %80 : vector<7x7x64xf32>
    %c0_78 = arith.constant 0 : index
    %c0_79 = arith.constant 0 : index
    %82 = vector.load %arg3[%c0_78, %c0_79] : memref<1x64xf32, #tpu.memory_space<vmem>>, vector<1x64xf32>
    %83 = vector.shape_cast %82 : vector<1x64xf32> to vector<1x1x64xf32>
    %84 = vector.broadcast %83 : vector<1x1x64xf32> to vector<7x7x64xf32>
    %85 = arith.addf %81, %84 : vector<7x7x64xf32>
    %cst_80 = arith.constant 0.000000e+00 : f32
    %86 = vector.broadcast %cst_80 : f32 to vector<7x7x64xf32>
    %87 = arith.maximumf %85, %86 : vector<7x7x64xf32>
    %88 = arith.truncf %87 : vector<7x7x64xf32> to vector<7x7x64xbf16>
    %c0_81 = arith.constant 0 : index
    %c0_82 = arith.constant 0 : index
    %c0_83 = arith.constant 0 : index
    %c0_84 = arith.constant 0 : index
    %89 = vector.load %arg4[%c0_81, %c0_82, %c0_83, %c0_84] : memref<1x7x7x64xbf16, #tpu.memory_space<vmem>>, vector<1x7x7x64xbf16>
    %90 = vector.shape_cast %89 : vector<1x7x7x64xbf16> to vector<7x7x64xbf16>
    %91 = vector.shape_cast %88 : vector<7x7x64xbf16> to vector<1x7x7x64xbf16>
    tpu.vector_store %arg4[%c0_81, %c0_82, %c0_83, %c0_84], %91 {strides = array<i32>} : memref<1x7x7x64xbf16, #tpu.memory_space<vmem>>, vector<1x7x7x64xbf16>,
    return
  }
  func.func @transform_0(%arg0: i32) -> (i32, i32, i32, i32) {
    %c0_i32 = arith.constant 0 : i32
    %c0_i32_0 = arith.constant 0 : i32
    %c0_i32_1 = arith.constant 0 : i32
    %c0_i32_2 = arith.constant 0 : i32
    return %arg0, %c0_i32, %c0_i32_0, %c0_i32_1 : i32, i32, i32, i32
  }
  func.func @transform_1(%arg0: i32) -> (i32, i32, i32, i32) {
    %c0_i32 = arith.constant 0 : i32
    %c0_i32_0 = arith.constant 0 : i32
    %c0_i32_1 = arith.constant 0 : i32
    %c0_i32_2 = arith.constant 0 : i32
    %c0_i32_3 = arith.constant 0 : i32
    return %c0_i32, %c0_i32_0, %c0_i32_1, %c0_i32_2 : i32, i32, i32, i32
  }
  func.func @transform_2(%arg0: i32) -> (i32, i32) {
    %c0_i32 = arith.constant 0 : i32
    %c0_i32_0 = arith.constant 0 : i32
    %c0_i32_1 = arith.constant 0 : i32
    return %c0_i32, %c0_i32_0 : i32, i32
  }
  func.func @transform_3(%arg0: i32) -> (i32, i32, i32, i32) {
    %c0_i32 = arith.constant 0 : i32
    %c0_i32_0 = arith.constant 0 : i32
    %c0_i32_1 = arith.constant 0 : i32
    %c0_i32_2 = arith.constant 0 : i32
    return %arg0, %c0_i32, %c0_i32_0, %c0_i32_1 : i32, i32, i32, i32
  }
}

module attributes {stable_mosaic.version = 11 : i64} {
  func.func @_conv_s1_relu_kernel(%arg0: i32, %arg1: memref<1x10x10x128xbf16, #tpu.memory_space<vmem>>, %arg2: memref<2x2x128x64xbf16, #tpu.memory_space<vmem>>, %arg3: memref<1x64xf32, #tpu.memory_space<vmem>>, %arg4: memref<1x9x9x64xbf16, #tpu.memory_space<vmem>>) attributes {dimension_semantics = [#tpu.dimension_semantics<parallel>], iteration_bounds = array<i64: 2>, scalar_prefetch = 0 : i64, scratch_operands = 0 : i64, tpu.core_type = #tpu.core_type<tc>, window_params = [{transform_indices = @transform_0, window_bounds = array<i64: 1, 10, 10, 128>}, {pipeline_mode = #tpu.pipeline_mode<synchronous>, transform_indices = @transform_1, window_bounds = array<i64: 2, 2, 128, 64>}, {pipeline_mode = #tpu.pipeline_mode<synchronous>, transform_indices = @transform_2, window_bounds = array<i64: 1, 64>}, {transform_indices = @transform_3, window_bounds = array<i64: 1, 9, 9, 64>}]} {
    %cst = arith.constant 0.000000e+00 : f32
    %0 = vector.broadcast %cst : f32 to vector<9x9x64xf32>
    %c0 = arith.constant 0 : index
    %c0_0 = arith.constant 0 : index
    %c0_1 = arith.constant 0 : index
    %c0_2 = arith.constant 0 : index
    %1 = vector.load %arg1[%c0, %c0_0, %c0_1, %c0_2] : memref<1x10x10x128xbf16, #tpu.memory_space<vmem>>, vector<1x9x9x128xbf16>
    %2 = vector.shape_cast %1 : vector<1x9x9x128xbf16> to vector<9x9x128xbf16>
    %c0_3 = arith.constant 0 : index
    %c0_4 = arith.constant 0 : index
    %c0_5 = arith.constant 0 : index
    %c0_6 = arith.constant 0 : index
    %3 = vector.load %arg2[%c0_3, %c0_4, %c0_5, %c0_6] : memref<2x2x128x64xbf16, #tpu.memory_space<vmem>>, vector<1x1x128x64xbf16>
    %4 = vector.shape_cast %3 : vector<1x1x128x64xbf16> to vector<128x64xbf16>
    %5 = vector.shape_cast %4 : vector<128x64xbf16> to vector<1x128x64xbf16>
    %6 = vector.shape_cast %5 : vector<1x128x64xbf16> to vector<1x128x64xbf16>
    %7 = vector.broadcast %6 : vector<1x128x64xbf16> to vector<9x128x64xbf16>
    "tpu.trace_start"() <{level = 10 : i32, message = "hwc,hcn->hwn"}> : () -> ()
    %cst_7 = arith.constant dense<0.000000e+00> : vector<9x9x64xf32>
    %8 = tpu.matmul %2, %7, %cst_7 {dimension_numbers = #tpu.dot_dimension_numbers<[2], [1], [1], [2], [0, 0, 0, 1, 1, 2], [0], [0]>} : vector<9x9x128xbf16>, vector<9x128x64xbf16>, vector<9x9x64xf32> -> vector<9x9x64xf32>
    "tpu.trace_stop"() : () -> ()
    %9 = arith.addf %0, %8 : vector<9x9x64xf32>
    %c0_8 = arith.constant 0 : index
    %c0_9 = arith.constant 0 : index
    %c1 = arith.constant 1 : index
    %c0_10 = arith.constant 0 : index
    %10 = vector.load %arg1[%c0_8, %c0_9, %c1, %c0_10] : memref<1x10x10x128xbf16, #tpu.memory_space<vmem>>, vector<1x9x9x128xbf16>
    %11 = vector.shape_cast %10 : vector<1x9x9x128xbf16> to vector<9x9x128xbf16>
    %c0_11 = arith.constant 0 : index
    %c1_12 = arith.constant 1 : index
    %c0_13 = arith.constant 0 : index
    %c0_14 = arith.constant 0 : index
    %12 = vector.load %arg2[%c0_11, %c1_12, %c0_13, %c0_14] : memref<2x2x128x64xbf16, #tpu.memory_space<vmem>>, vector<1x1x128x64xbf16>
    %13 = vector.shape_cast %12 : vector<1x1x128x64xbf16> to vector<128x64xbf16>
    %14 = vector.shape_cast %13 : vector<128x64xbf16> to vector<1x128x64xbf16>
    %15 = vector.shape_cast %14 : vector<1x128x64xbf16> to vector<1x128x64xbf16>
    %16 = vector.broadcast %15 : vector<1x128x64xbf16> to vector<9x128x64xbf16>
    "tpu.trace_start"() <{level = 10 : i32, message = "hwc,hcn->hwn"}> : () -> ()
    %cst_15 = arith.constant dense<0.000000e+00> : vector<9x9x64xf32>
    %17 = tpu.matmul %11, %16, %cst_15 {dimension_numbers = #tpu.dot_dimension_numbers<[2], [1], [1], [2], [0, 0, 0, 1, 1, 2], [0], [0]>} : vector<9x9x128xbf16>, vector<9x128x64xbf16>, vector<9x9x64xf32> -> vector<9x9x64xf32>
    "tpu.trace_stop"() : () -> ()
    %18 = arith.addf %9, %17 : vector<9x9x64xf32>
    %c0_16 = arith.constant 0 : index
    %c1_17 = arith.constant 1 : index
    %c0_18 = arith.constant 0 : index
    %c0_19 = arith.constant 0 : index
    %19 = vector.load %arg1[%c0_16, %c1_17, %c0_18, %c0_19] : memref<1x10x10x128xbf16, #tpu.memory_space<vmem>>, vector<1x9x9x128xbf16>
    %20 = vector.shape_cast %19 : vector<1x9x9x128xbf16> to vector<9x9x128xbf16>
    %c1_20 = arith.constant 1 : index
    %c0_21 = arith.constant 0 : index
    %c0_22 = arith.constant 0 : index
    %c0_23 = arith.constant 0 : index
    %21 = vector.load %arg2[%c1_20, %c0_21, %c0_22, %c0_23] : memref<2x2x128x64xbf16, #tpu.memory_space<vmem>>, vector<1x1x128x64xbf16>
    %22 = vector.shape_cast %21 : vector<1x1x128x64xbf16> to vector<128x64xbf16>
    %23 = vector.shape_cast %22 : vector<128x64xbf16> to vector<1x128x64xbf16>
    %24 = vector.shape_cast %23 : vector<1x128x64xbf16> to vector<1x128x64xbf16>
    %25 = vector.broadcast %24 : vector<1x128x64xbf16> to vector<9x128x64xbf16>
    "tpu.trace_start"() <{level = 10 : i32, message = "hwc,hcn->hwn"}> : () -> ()
    %cst_24 = arith.constant dense<0.000000e+00> : vector<9x9x64xf32>
    %26 = tpu.matmul %20, %25, %cst_24 {dimension_numbers = #tpu.dot_dimension_numbers<[2], [1], [1], [2], [0, 0, 0, 1, 1, 2], [0], [0]>} : vector<9x9x128xbf16>, vector<9x128x64xbf16>, vector<9x9x64xf32> -> vector<9x9x64xf32>
    "tpu.trace_stop"() : () -> ()
    %27 = arith.addf %18, %26 : vector<9x9x64xf32>
    %c0_25 = arith.constant 0 : index
    %c1_26 = arith.constant 1 : index
    %c1_27 = arith.constant 1 : index
    %c0_28 = arith.constant 0 : index
    %28 = vector.load %arg1[%c0_25, %c1_26, %c1_27, %c0_28] : memref<1x10x10x128xbf16, #tpu.memory_space<vmem>>, vector<1x9x9x128xbf16>
    %29 = vector.shape_cast %28 : vector<1x9x9x128xbf16> to vector<9x9x128xbf16>
    %c1_29 = arith.constant 1 : index
    %c1_30 = arith.constant 1 : index
    %c0_31 = arith.constant 0 : index
    %c0_32 = arith.constant 0 : index
    %30 = vector.load %arg2[%c1_29, %c1_30, %c0_31, %c0_32] : memref<2x2x128x64xbf16, #tpu.memory_space<vmem>>, vector<1x1x128x64xbf16>
    %31 = vector.shape_cast %30 : vector<1x1x128x64xbf16> to vector<128x64xbf16>
    %32 = vector.shape_cast %31 : vector<128x64xbf16> to vector<1x128x64xbf16>
    %33 = vector.shape_cast %32 : vector<1x128x64xbf16> to vector<1x128x64xbf16>
    %34 = vector.broadcast %33 : vector<1x128x64xbf16> to vector<9x128x64xbf16>
    "tpu.trace_start"() <{level = 10 : i32, message = "hwc,hcn->hwn"}> : () -> ()
    %cst_33 = arith.constant dense<0.000000e+00> : vector<9x9x64xf32>
    %35 = tpu.matmul %29, %34, %cst_33 {dimension_numbers = #tpu.dot_dimension_numbers<[2], [1], [1], [2], [0, 0, 0, 1, 1, 2], [0], [0]>} : vector<9x9x128xbf16>, vector<9x128x64xbf16>, vector<9x9x64xf32> -> vector<9x9x64xf32>
    "tpu.trace_stop"() : () -> ()
    %36 = arith.addf %27, %35 : vector<9x9x64xf32>
    %c0_34 = arith.constant 0 : index
    %c0_35 = arith.constant 0 : index
    %37 = vector.load %arg3[%c0_34, %c0_35] : memref<1x64xf32, #tpu.memory_space<vmem>>, vector<1x64xf32>
    %38 = vector.shape_cast %37 : vector<1x64xf32> to vector<1x1x64xf32>
    %39 = vector.broadcast %38 : vector<1x1x64xf32> to vector<9x9x64xf32>
    %40 = arith.addf %36, %39 : vector<9x9x64xf32>
    %cst_36 = arith.constant 0.000000e+00 : f32
    %41 = vector.broadcast %cst_36 : f32 to vector<9x9x64xf32>
    %42 = arith.maximumf %40, %41 : vector<9x9x64xf32>
    %43 = arith.truncf %42 : vector<9x9x64xf32> to vector<9x9x64xbf16>
    %c0_37 = arith.constant 0 : index
    %c0_38 = arith.constant 0 : index
    %c0_39 = arith.constant 0 : index
    %c0_40 = arith.constant 0 : index
    %44 = vector.load %arg4[%c0_37, %c0_38, %c0_39, %c0_40] : memref<1x9x9x64xbf16, #tpu.memory_space<vmem>>, vector<1x9x9x64xbf16>
    %45 = vector.shape_cast %44 : vector<1x9x9x64xbf16> to vector<9x9x64xbf16>
    %46 = vector.shape_cast %43 : vector<9x9x64xbf16> to vector<1x9x9x64xbf16>
    tpu.vector_store %arg4[%c0_37, %c0_38, %c0_39, %c0_40], %46 {strides = array<i32>} : memref<1x9x9x64xbf16, #tpu.memory_space<vmem>>, vector<1x9x9x64xbf16>,
    return
  }
  func.func @transform_0(%arg0: i32) -> (i32, i32, i32, i32) {
    %c0_i32 = arith.constant 0 : i32
    %c0_i32_0 = arith.constant 0 : i32
    %c0_i32_1 = arith.constant 0 : i32
    %c0_i32_2 = arith.constant 0 : i32
    return %arg0, %c0_i32, %c0_i32_0, %c0_i32_1 : i32, i32, i32, i32
  }
  func.func @transform_1(%arg0: i32) -> (i32, i32, i32, i32) {
    %c0_i32 = arith.constant 0 : i32
    %c0_i32_0 = arith.constant 0 : i32
    %c0_i32_1 = arith.constant 0 : i32
    %c0_i32_2 = arith.constant 0 : i32
    %c0_i32_3 = arith.constant 0 : i32
    return %c0_i32, %c0_i32_0, %c0_i32_1, %c0_i32_2 : i32, i32, i32, i32
  }
  func.func @transform_2(%arg0: i32) -> (i32, i32) {
    %c0_i32 = arith.constant 0 : i32
    %c0_i32_0 = arith.constant 0 : i32
    %c0_i32_1 = arith.constant 0 : i32
    return %c0_i32, %c0_i32_0 : i32, i32
  }
  func.func @transform_3(%arg0: i32) -> (i32, i32, i32, i32) {
    %c0_i32 = arith.constant 0 : i32
    %c0_i32_0 = arith.constant 0 : i32
    %c0_i32_1 = arith.constant 0 : i32
    %c0_i32_2 = arith.constant 0 : i32
    return %arg0, %c0_i32, %c0_i32_0, %c0_i32_1 : i32, i32, i32, i32
  }
}

module attributes {stable_mosaic.version = 11 : i64} {
  func.func @_value_head_kernel(%arg0: i32, %arg1: memref<2x640xbf16, #tpu.memory_space<vmem>>, %arg2: memref<640x512xbf16, #tpu.memory_space<vmem>>, %arg3: memref<1x512xf32, #tpu.memory_space<vmem>>, %arg4: memref<1x512xbf16, #tpu.memory_space<vmem>>, %arg5: memref<1x1xf32, #tpu.memory_space<vmem>>, %arg6: memref<2x1xf32, #tpu.memory_space<vmem>>, %arg7: memref<2x512xf32, #tpu.memory_space<vmem>>) attributes {dimension_semantics = [#tpu.dimension_semantics<arbitrary>], iteration_bounds = array<i64: 5>, scalar_prefetch = 0 : i64, scratch_operands = 1 : i64, tpu.core_type = #tpu.core_type<tc>, window_params = [{transform_indices = @transform_0, window_bounds = array<i64: 2, 640>}, {transform_indices = @transform_1, window_bounds = array<i64: 640, 512>}, {pipeline_mode = #tpu.pipeline_mode<synchronous>, transform_indices = @transform_2, window_bounds = array<i64: 1, 512>}, {pipeline_mode = #tpu.pipeline_mode<synchronous>, transform_indices = @transform_3, window_bounds = array<i64: 1, 512>}, {pipeline_mode = #tpu.pipeline_mode<synchronous>, transform_indices = @transform_4, window_bounds = array<i64: 1, 1>}, {pipeline_mode = #tpu.pipeline_mode<synchronous>, transform_indices = @transform_5, window_bounds = array<i64: 2, 1>}]} {
    %c0_i32 = arith.constant 0 : i32
    %0 = arith.cmpi eq, %arg0, %c0_i32 : i32
    %1 = arith.extui %0 : i1 to i32
    %c0_i32_0 = arith.constant 0 : i32
    %2 = arith.cmpi ne, %1, %c0_i32_0 : i32
    scf.if %2 {
      %cst_9 = arith.constant 0.000000e+00 : f32
      %12 = vector.broadcast %cst_9 : f32 to vector<2x512xf32>
      %c0_10 = arith.constant 0 : index
      %c0_11 = arith.constant 0 : index
      %13 = vector.load %arg7[%c0_10, %c0_11] : memref<2x512xf32, #tpu.memory_space<vmem>>, vector<2x512xf32>
      tpu.vector_store %arg7[%c0_10, %c0_11], %12 {strides = array<i32>} : memref<2x512xf32, #tpu.memory_space<vmem>>, vector<2x512xf32>,
    } else {
    }
    %c0 = arith.constant 0 : index
    %c0_1 = arith.constant 0 : index
    %3 = vector.load %arg7[%c0, %c0_1] : memref<2x512xf32, #tpu.memory_space<vmem>>, vector<2x512xf32>
    %c0_2 = arith.constant 0 : index
    %c0_3 = arith.constant 0 : index
    %4 = vector.load %arg1[%c0_2, %c0_3] : memref<2x640xbf16, #tpu.memory_space<vmem>>, vector<2x640xbf16>
    %c0_4 = arith.constant 0 : index
    %c0_5 = arith.constant 0 : index
    %5 = vector.load %arg2[%c0_4, %c0_5] : memref<640x512xbf16, #tpu.memory_space<vmem>>, vector<640x512xbf16>
    %cst = arith.constant dense<0.000000e+00> : vector<2x512xf32>
    %6 = tpu.matmul %4, %5, %cst {dimension_numbers = #tpu.dot_dimension_numbers<[1], [0], [0], [1], [0, 0, 1, 1], [], []>} : vector<2x640xbf16>, vector<640x512xbf16>, vector<2x512xf32> -> vector<2x512xf32>
    %7 = arith.addf %3, %6 : vector<2x512xf32>
    %c0_6 = arith.constant 0 : index
    %c0_7 = arith.constant 0 : index
    %8 = vector.load %arg7[%c0_6, %c0_7] : memref<2x512xf32, #tpu.memory_space<vmem>>, vector<2x512xf32>
    tpu.vector_store %arg7[%c0_6, %c0_7], %7 {strides = array<i32>} : memref<2x512xf32, #tpu.memory_space<vmem>>, vector<2x512xf32>,
    %c4_i32 = arith.constant 4 : i32
    %9 = arith.cmpi eq, %arg0, %c4_i32 : i32
    %10 = arith.extui %9 : i1 to i32
    %c0_i32_8 = arith.constant 0 : i32
    %11 = arith.cmpi ne, %10, %c0_i32_8 : i32
    scf.if %11 {
      %c0_9 = arith.constant 0 : index
      %c0_10 = arith.constant 0 : index
      %12 = vector.load %arg7[%c0_9, %c0_10] : memref<2x512xf32, #tpu.memory_space<vmem>>, vector<2x512xf32>
      %c0_11 = arith.constant 0 : index
      %c0_12 = arith.constant 0 : index
      %13 = vector.load %arg3[%c0_11, %c0_12] : memref<1x512xf32, #tpu.memory_space<vmem>>, vector<1x512xf32>
      %14 = vector.broadcast %13 : vector<1x512xf32> to vector<2x512xf32>
      %15 = arith.addf %12, %14 : vector<2x512xf32>
      %cst_13 = arith.constant 0.000000e+00 : f32
      %16 = vector.broadcast %cst_13 : f32 to vector<2x512xf32>
      %17 = arith.maximumf %15, %16 : vector<2x512xf32>
      %c0_14 = arith.constant 0 : index
      %c0_15 = arith.constant 0 : index
      %18 = vector.load %arg4[%c0_14, %c0_15] : memref<1x512xbf16, #tpu.memory_space<vmem>>, vector<1x512xbf16>
      %19 = arith.extf %18 : vector<1x512xbf16> to vector<1x512xf32>
      %20 = vector.broadcast %19 : vector<1x512xf32> to vector<2x512xf32>
      %21 = arith.mulf %17, %20 : vector<2x512xf32>
      %cst_16 = arith.constant dense<0.000000e+00> : vector<2xf32>
      %22 = vector.multi_reduction <add>, %21, %cst_16 [1] : vector<2x512xf32> to vector<2xf32>
      %23 = vector.shape_cast %22 : vector<2xf32> to vector<2x1xf32>
      %c0_17 = arith.constant 0 : index
      %c0_18 = arith.constant 0 : index
      %24 = vector.load %arg5[%c0_17, %c0_18] : memref<1x1xf32, #tpu.memory_space<vmem>>, vector<1x1xf32>
      %25 = vector.broadcast %24 : vector<1x1xf32> to vector<2x1xf32>
      %26 = arith.addf %23, %25 : vector<2x1xf32>
      %c0_19 = arith.constant 0 : index
      %c0_20 = arith.constant 0 : index
      %27 = vector.load %arg6[%c0_19, %c0_20] : memref<2x1xf32, #tpu.memory_space<vmem>>, vector<2x1xf32>
      tpu.vector_store %arg6[%c0_19, %c0_20], %26 {strides = array<i32>} : memref<2x1xf32, #tpu.memory_space<vmem>>, vector<2x1xf32>,
    } else {
    }
    return
  }
  func.func @transform_0(%arg0: i32) -> (i32, i32) {
    %c0_i32 = arith.constant 0 : i32
    %c0_i32_0 = arith.constant 0 : i32
    return %c0_i32, %arg0 : i32, i32
  }
  func.func @transform_1(%arg0: i32) -> (i32, i32) {
    %c0_i32 = arith.constant 0 : i32
    %c0_i32_0 = arith.constant 0 : i32
    return %arg0, %c0_i32 : i32, i32
  }
  func.func @transform_2(%arg0: i32) -> (i32, i32) {
    %c0_i32 = arith.constant 0 : i32
    %c0_i32_0 = arith.constant 0 : i32
    %c0_i32_1 = arith.constant 0 : i32
    return %c0_i32, %c0_i32_0 : i32, i32
  }
  func.func @transform_3(%arg0: i32) -> (i32, i32) {
    %c0_i32 = arith.constant 0 : i32
    %c0_i32_0 = arith.constant 0 : i32
    %c0_i32_1 = arith.constant 0 : i32
    return %c0_i32, %c0_i32_0 : i32, i32
  }
  func.func @transform_4(%arg0: i32) -> (i32, i32) {
    %c0_i32 = arith.constant 0 : i32
    %c0_i32_0 = arith.constant 0 : i32
    %c0_i32_1 = arith.constant 0 : i32
    return %c0_i32, %c0_i32_0 : i32, i32
  }
  func.func @transform_5(%arg0: i32) -> (i32, i32) {
    %c0_i32 = arith.constant 0 : i32
    %c0_i32_0 = arith.constant 0 : i32
    %c0_i32_1 = arith.constant 0 : i32
    return %c0_i32, %c0_i32_0 : i32, i32
  }
}

</mosaic_0001>

<bundles_post_ra>
// kernel: critic_net_forward.4
= control target key start
LH: loop header
LB: loop body
LE: loop exit
PB: predicated region body
PF: predicated region fallthrough
CT: control target
= control target key end

     0   :  { %s4959_s12 = smov 0   ;;  %s6609_s0 = inlined_call_operand.vmem [shape: bf16[2,21,21,64], index: 0, kind: input, shape index: {}]   ;;  %s6610_s1 = inlined_call_operand.vmem [shape: bf16[2,2,64,32], index: 1, kind: input, shape index: {}]   ;;  %s6611_s2 = inlined_call_operand.vmem [shape: f32[1,32], index: 2, kind: input, shape index: {}]   ;;  %s6612_s3 = inlined_call_operand.vmem [shape: bf16[2,20,20,32], index: 3, kind: output, shape index: {}]  }
   0x1 LB: > { %s4127_s13 = sadd.s32 4294967295, %s4937_s12   ;;  %p4131_p0 = scmp.ge.s32.totalorder %s4937_s12, 1  ;;  %s4937_s12 = sphi %s4959_s12, %s13_s12  }
   0x2   : > { %p137_p1 = scmp.lt.s32.totalorder %s4937_s12, 3 }
   0x4   : > { %p138_p2 = pnand %p4131_p0, %p137_p1 }
   0x6   : > { %141 = sbr.rel (%p138_p2) target bundleno = 797 (0x31d), region = 32 }
   0xb   : > { %v4970_v0 = vld [vmem:[%s6610_s1 + $0x38] sm:$0xff]  ;;  %p161_p3 = scmp.lt.s32.totalorder %s4127_s13, 1  ;;  %v4977_v1 = vld [vmem:[%s6610_s1 + $0x30] sm:$0xff]  ;;  %v4989_v2 = vld [vmem:[%s6610_s1 + $0x28] sm:$0xff]  ;;  %vm317_vm0 = vsmask.f32 7424 }
   0xc   : > { %368 = vmatpush.bf16.msra.mxu0 %v4970_v0  ;;  %415 = vmatpush.bf16.msra.mxu1 %v4970_v0  ;;  %vm357_vm1 = vcmask 523264   ;;  %v5010_v15 = vld [vmem:[%s6610_s1 + $0x20] sm:$0xff]  ;;  %vm4010_vm2 = vcmask 257024   ;;  %vm4013_vm3 = vcmask 254976  }
   0xd   : > { %s6808_s13 = smov (!%p161_p3, %s4127_s13), 1  ;;  %462 = vmatpush.bf16.msra.mxu2 %v4970_v0  ;;  %509 = vmatpush.bf16.msra.mxu3 %v4970_v0 }
   0xe   : > { %s4920_s18 = smul.u32 252, %s6808_s13 }
   0xf   : > { %s4921_s27 = smul.u32 240, %s6808_s13 }
  0x10   : > { %369 = vmatpush.bf16.msra.mxu0 %v4977_v1  ;;  %416 = vmatpush.bf16.msra.mxu1 %v4977_v1  ;;  %s4994_s23 = scalar_lea.vmem %s6609_s0, %s4920_s18 }
  0x11   : > { %463 = vmatpush.bf16.msra.mxu2 %v4977_v1  ;;  %510 = vmatpush.bf16.msra.mxu3 %v4977_v1  ;;  %v4848_v3 = vld [vmem:[%s4994_s23] sm:$0xff]  ;;  %v242_v4 = vld [vmem:[%s4994_s23 + $0x8] sm:$0x7]  ;;  %v4849_v5 = vld [vmem:[%s4994_s23 + $0xc] sm:$0xff]  ;;  %s6359_s13 = scalar_lea.vmem %s6612_s3, %s4921_s27 }
  0x12   : > { %v314_v6 = vunpack.c.l.b16 %v242_v4  ;;  %v245_v7 = vld [vmem:[%s4994_s23 + $0x14] sm:$0x7]  ;;  %v4850_v8 = vld [vmem:[%s4994_s23 + $0x18] sm:$0xff]  ;;  %v248_v9 = vld [vmem:[%s4994_s23 + $0x20] sm:$0x7]  ;;  %v319_v10 = vshrl.u32 %v4848_v3, 16 }
  0x13   : > { %v321_v11 = vshll.u32 %v4848_v3, 16  ;;  %v387_v12 = vunpack.c.l.b16 %v245_v7  ;;  %v391_v13 = vshrl.u32 %v4849_v5, 16  ;;  %v251_v14 = vld [vmem:[%s4994_s23 + $0x2c] sm:$0x7]  ;;  %v393_v17 = vshll.u32 %v4849_v5, 16  ;;  %v4851_v20 = vld [vmem:[%s4994_s23 + $0x24] sm:$0xff] }
  0x14   : > { %370 = vmatpush.bf16.msra.mxu0 %v4989_v2  ;;  %417 = vmatpush.bf16.msra.mxu1 %v4989_v2  ;;  %v316_v16 = vpack.c.b16 %v314_v6, %v314_v6  ;;  %v434_v18 = vunpack.c.l.b16 %v248_v9  ;;  %v438_v19 = vshrl.u32 %v4850_v8, 16  ;;  %v440_v23 = vshll.u32 %v4850_v8, 16  ;;  %v254_v51 = vld [vmem:[%s4994_s23 + $0x38] sm:$0x7]  ;;  %v257_v52 = vld [vmem:[%s4994_s23 + $0x44] sm:$0x7] }
  0x15   : > { %464 = vmatpush.bf16.msra.mxu2 %v4989_v2  ;;  %511 = vmatpush.bf16.msra.mxu3 %v4989_v2  ;;  %v323_v21 = vrot.slane %v321_v11, 1  ;;  %v389_v22 = vpack.c.b16 %v387_v12, %v387_v12  ;;  %v481_v24 = vunpack.c.l.b16 %v251_v14  ;;  %v395_v26 = vrot.slane %v393_v17, 1  ;;  %v4852_v55 = vld [vmem:[%s4994_s23 + $0x30] sm:$0xff]  ;;  %v4853_v60 = vld [vmem:[%s4994_s23 + $0x3c] sm:$0xff]  ;;  %v4854_v63 = vld [vmem:[%s4994_s23 + $0x48] sm:$0xff] }
  0x16   : > { %v326_v25 = vshll.u32 %v316_v16, 16  ;;  %v436_v27 = vpack.c.b16 %v434_v18, %v434_v18  ;;  %v485_v28 = vshrl.u32 %v4851_v20, 16  ;;  %v442_v31 = vrot.slane %v440_v23, 1  ;;  %v260_v56 = vld [vmem:[%s4994_s23 + $0x50] sm:$0x7]  ;;  %v4855_v7 = vld [vmem:[%s4994_s23 + $0x54] sm:$0xff] }
  0x17   : > { %v324_v29 = vor.u32 %v323_v21, %v319_v10  ;;  %v398_v30 = vshll.u32 %v389_v22, 16  ;;  %v5015_v32 = vpack.c.b16 %v481_v24, %v481_v24  ;;  %v396_v34 = vor.u32 %v395_v26, %v391_v13  ;;  %v263_v62 = vld [vmem:[%s4994_s23 + $0x5c] sm:$0x7] }
  0x18   : > { %371 = vmatpush.bf16.msra.mxu0 %v5010_v15  ;;  %418 = vmatpush.bf16.msra.mxu1 %v5010_v15  ;;  %v328_v33 = vrot.slane %v326_v25, 1  ;;  %v445_v35 = vshll.u32 %v436_v27, 16  ;;  %v487_v36 = vshll.u32 %v4851_v20, 16  ;;  %v443_v38 = vor.u32 %v442_v31, %v438_v19 }
  0x19   : > { %465 = vmatpush.bf16.msra.mxu2 %v5010_v15  ;;  %512 = vmatpush.bf16.msra.mxu3 %v5010_v15  ;;  %v400_v37 = vrot.slane %v398_v30, 1  ;;  %v492_v39 = vshll.u32 %v5015_v32, 16  ;;  %v330_v48 = vshrl.u32 %v316_v16, 16  ;;  %v402_v49 = vshrl.u32 %v389_v22, 16 }
  0x1a   : > { %v329_v40 = vsel %vm317_vm0, %v324_v29, %v328_v33  ;;  %v447_v41 = vrot.slane %v445_v35, 1  ;;  %v489_v42 = vrot.slane %v487_v36, 1  ;;  %v449_v50 = vshrl.u32 %v436_v27, 16 }
  0x1b   : > { %4162 = vmatmul.msk.bf16.vlgmr.msra.gmra.mxu0 %vm357_vm1, %v329_v40  ;;  %v401_v43 = vsel %vm317_vm0, %v396_v34, %v400_v37  ;;  %v494_v44 = vrot.slane %v492_v39, 1  ;;  %v332_v53 = vor.u32 %v330_v48, %v328_v33  ;;  %v496_v54 = vshrl.u32 %v5015_v32, 16  ;;  %v272_v48 = vld [vmem:[%s4994_s23 + $0x80] sm:$0x7] }
  0x1c   : > { %603 = vmatpush.bf16.msrb.mxu1 %v4970_v0  ;;  %v448_v45 = vsel %vm317_vm0, %v443_v38, %v447_v41  ;;  %v490_v46 = vor.u32 %v489_v42, %v485_v28  ;;  %556 = vmatpush.bf16.msrb.mxu0 %v4970_v0  ;;  %v404_v57 = vor.u32 %v402_v49, %v400_v37  ;;  %v528_v58 = vunpack.c.l.b16 %v254_v51 }
  0x1d   : > { %650 = vmatpush.bf16.msrb.mxu2 %v4970_v0  ;;  %697 = vmatpush.bf16.msrb.mxu3 %v4970_v0  ;;  %v451_v59 = vor.u32 %v449_v50, %v447_v41  ;;  %v575_v61 = vunpack.c.l.b16 %v257_v52  ;;  %v622_v3 = vunpack.c.l.b16 %v260_v56  ;;  %v498_v4 = vor.u32 %v496_v54, %v494_v44  ;;  %v4857_v52 = vld [vmem:[%s4994_s23 + $0x6c] sm:$0xff] }
  0x1e   : > { %4168 = vmatmul.msk.bf16.vlgmr.msra.gmra.mxu1 %vm357_vm1, %v401_v43  ;;  %4174 = vmatmul.msk.bf16.vlgmr.msra.gmra.mxu2 %vm357_vm1, %v448_v45  ;;  %v495_v47 = vsel %vm317_vm0, %v490_v46, %v494_v44  ;;  %v534_v5 = vshll.u32 %v4852_v55, 16  ;;  %v5061_v6 = vpack.c.b16 %v528_v58, %v528_v58  ;;  %v669_v8 = vunpack.c.l.b16 %v263_v62  ;;  %v266_v43 = vld [vmem:[%s4994_s23 + $0x68] sm:$0x7]  ;;  %v269_v44 = vld [vmem:[%s4994_s23 + $0x74] sm:$0x7] }
  0x1f   : > { %4180 = vmatmul.msk.bf16.vlgmr.msra.gmra.mxu3 %vm357_vm1, %v495_v47  ;;  %v5066_v9 = vpack.c.b16 %v575_v61, %v575_v61  ;;  %v581_v10 = vshll.u32 %v4853_v60, 16  ;;  %v5069_v11 = vpack.c.b16 %v622_v3, %v622_v3  ;;  %v628_v12 = vshll.u32 %v4854_v63, 16  ;;  %v4856_v47 = vld [vmem:[%s4994_s23 + $0x60] sm:$0xff]  ;;  %v275_v54 = vld [vmem:[%s4994_s23 + $0x8c] sm:$0x7] }
  0x20   : > { %604 = vmatpush.bf16.msrb.mxu1 %v4977_v1  ;;  %557 = vmatpush.bf16.msrb.mxu0 %v4977_v1  ;;  %v532_v13 = vshrl.u32 %v4852_v55, 16  ;;  %v536_v14 = vrot.slane %v534_v5, 1  ;;  %v539_v16 = vshll.u32 %v5061_v6, 16  ;;  %v5075_v17 = vpack.c.b16 %v669_v8, %v669_v8  ;;  %v4858_v55 = vld [vmem:[%s4994_s23 + $0x78] sm:$0xff] }
  0x21   : > { %651 = vmatpush.bf16.msrb.mxu2 %v4977_v1  ;;  %698 = vmatpush.bf16.msrb.mxu3 %v4977_v1  ;;  %v675_v18 = vshll.u32 %v4855_v7, 16  ;;  %v579_v19 = vshrl.u32 %v4853_v60, 16  ;;  %v583_v20 = vrot.slane %v581_v10, 1  ;;  %v586_v21 = vshll.u32 %v5066_v9, 16  ;;  %v4859_v60 = vld [vmem:[%s4994_s23 + $0x84] sm:$0xff] }
  0x22   : > { %v626_v22 = vshrl.u32 %v4854_v63, 16  ;;  %v630_v23 = vrot.slane %v628_v12, 1  ;;  %v633_v24 = vshll.u32 %v5069_v11, 16  ;;  %v537_v25 = vor.u32 %v536_v14, %v532_v13 }
  0x23   : > { %v541_v26 = vrot.slane %v539_v16, 1  ;;  %v673_v27 = vshrl.u32 %v4855_v7, 16  ;;  %v677_v28 = vrot.slane %v675_v18, 1  ;;  %v680_v29 = vshll.u32 %v5075_v17, 16 }
  0x24   : > { %605 = vmatpush.bf16.msrb.mxu1 %v4989_v2  ;;  %558 = vmatpush.bf16.msrb.mxu0 %v4989_v2  ;;  %v584_v30 = vor.u32 %v583_v20, %v579_v19  ;;  %v588_v31 = vrot.slane %v586_v21, 1  ;;  %v631_v32 = vor.u32 %v630_v23, %v626_v22  ;;  %v635_v33 = vrot.slane %v633_v24, 1 }
  0x25   : > { %652 = vmatpush.bf16.msrb.mxu2 %v4989_v2  ;;  %699 = vmatpush.bf16.msrb.mxu3 %v4989_v2  ;;  %v542_v34 = vsel %vm317_vm0, %v537_v25, %v541_v26  ;;  %v678_v35 = vor.u32 %v677_v28, %v673_v27  ;;  %v682_v36 = vrot.slane %v680_v29, 1  ;;  %v543_v40 = vshrl.u32 %v5061_v6, 16 }
  0x26   : > { %v589_v37 = vsel %vm317_vm0, %v584_v30, %v588_v31  ;;  %v636_v38 = vsel %vm317_vm0, %v631_v32, %v635_v33  ;;  %v590_v41 = vshrl.u32 %v5066_v9, 16  ;;  %v637_v42 = vshrl.u32 %v5069_v11, 16 }
  0x27   : > { %v683_v39 = vsel %vm317_vm0, %v678_v35, %v682_v36  ;;  %v545_v45 = vor.u32 %v543_v40, %v541_v26  ;;  %v684_v46 = vshrl.u32 %v5075_v17, 16  ;;  %v716_v50 = vunpack.c.l.b16 %v266_v43  ;;  %v278_v35 = vld [vmem:[%s4994_s23 + $0x98] sm:$0x7] }
  0x28   : > { %606 = vmatpush.bf16.msrb.mxu1 %v5010_v15  ;;  %559 = vmatpush.bf16.msrb.mxu0 %v5010_v15  ;;  %v592_v49 = vor.u32 %v590_v41, %v588_v31  ;;  %v639_v51 = vor.u32 %v637_v42, %v635_v33  ;;  %v810_v56 = vunpack.c.l.b16 %v272_v48  ;;  %v722_v58 = vshll.u32 %v4856_v47, 16  ;;  %v4861_v42 = vld [vmem:[%s4994_s23 + $0x9c] sm:$0xff] }
  0x29   : > { %653 = vmatpush.bf16.msrb.mxu2 %v5010_v15  ;;  %700 = vmatpush.bf16.msrb.mxu3 %v5010_v15  ;;  %v857_v61 = vunpack.c.l.b16 %v275_v54  ;;  %v769_v63 = vshll.u32 %v4857_v52, 16  ;;  %v720_v5 = vshrl.u32 %v4856_v47, 16  ;;  %v863_v9 = vshll.u32 %v4859_v60, 16 }
  0x2a   : > { %v812_v3 = vpack.c.b16 %v810_v56, %v810_v56  ;;  %v724_v6 = vrot.slane %v722_v58, 1  ;;  %v767_v10 = vshrl.u32 %v4857_v52, 16  ;;  %v814_v13 = vshrl.u32 %v4858_v55, 16 }
  0x2b   : > { %4163 = vmatmul.msk.bf16.gmra.mxu0 %vm357_vm1, %v332_v53  ;;  %v763_v53 = vunpack.c.l.b16 %v269_v44  ;;  %v859_v8 = vpack.c.b16 %v857_v61, %v857_v61  ;;  %v771_v11 = vrot.slane %v769_v63, 1  ;;  %v861_v19 = vshrl.u32 %v4859_v60, 16  ;;  %v287_v44 = vld [vmem:[%s4994_s23 + $0xbc] sm:$0x7] }
  0x2c   : > { %744 = vmatpush.bf16.msra.mxu0 %v4970_v0  ;;  %791 = vmatpush.bf16.msra.mxu1 %v4970_v0  ;;  %v821_v16 = vshll.u32 %v812_v3, 16  ;;  %v725_v17 = vor.u32 %v724_v6, %v720_v5  ;;  %v865_v20 = vrot.slane %v863_v9, 1  ;;  %v904_v41 = vunpack.c.l.b16 %v278_v35 }
  0x2d   : > { %838 = vmatpush.bf16.msra.mxu2 %v4970_v0  ;;  %885 = vmatpush.bf16.msra.mxu3 %v4970_v0  ;;  %v765_v62 = vpack.c.b16 %v763_v53, %v763_v53  ;;  %v868_v21 = vshll.u32 %v859_v8, 16  ;;  %v772_v22 = vor.u32 %v771_v11, %v767_v10  ;;  %v957_v52 = vshll.u32 %v4861_v42, 16 }
  0x2e   : > { %4169 = vmatmul.msk.bf16.gmra.mxu1 %vm357_vm1, %v404_v57  ;;  %4175 = vmatmul.msk.bf16.gmra.mxu2 %vm357_vm1, %v451_v59  ;;  %v686_v57 = vor.u32 %v684_v46, %v682_v36  ;;  %v718_v59 = vpack.c.b16 %v716_v50, %v716_v50  ;;  %v823_v25 = vrot.slane %v821_v16, 1  ;;  %v866_v27 = vor.u32 %v865_v20, %v861_v19  ;;  %v5174_v20 = vld [vmem:[%s6610_s1 + $0x18] sm:$0xff] }
  0x2f   : > { %4181 = vmatmul.msk.bf16.gmra.mxu3 %vm357_vm1, %v498_v4  ;;  %v816_v4 = vshll.u32 %v4858_v55, 16  ;;  %v774_v12 = vshll.u32 %v765_v62, 16  ;;  %v870_v28 = vrot.slane %v868_v21, 1  ;;  %v778_v33 = vshrl.u32 %v765_v62, 16  ;;  %v5183_v21 = vld [vmem:[%s6610_s1 + $0x10] sm:$0xff] }
  0x30   : > { %745 = vmatpush.bf16.msra.mxu0 %v4977_v1  ;;  %792 = vmatpush.bf16.msra.mxu1 %v4977_v1  ;;  %v727_v7 = vshll.u32 %v718_v59, 16  ;;  %v731_v32 = vshrl.u32 %v718_v59, 16  ;;  %v1045_v50 = vunpack.c.l.b16 %v287_v44  ;;  %v955_v60 = vshrl.u32 %v4861_v42, 16 }
  0x31   : > { %839 = vmatpush.bf16.msra.mxu2 %v4977_v1  ;;  %886 = vmatpush.bf16.msra.mxu3 %v4977_v1  ;;  %v818_v14 = vrot.slane %v816_v4, 1  ;;  %v776_v23 = vrot.slane %v774_v12, 1  ;;  %v871_v31 = vsel %vm317_vm0, %v866_v27, %v870_v28  ;;  %v959_v61 = vrot.slane %v957_v52, 1 }
  0x32   : > { %v729_v18 = vrot.slane %v727_v7, 1  ;;  %v1047_v58 = vpack.c.b16 %v1045_v50, %v1045_v50 }
  0x33   : > { %v819_v24 = vor.u32 %v818_v14, %v814_v13  ;;  %v777_v29 = vsel %vm317_vm0, %v772_v22, %v776_v23  ;;  %v780_v40 = vor.u32 %v778_v33, %v776_v23  ;;  %v960_v9 = vor.u32 %v959_v61, %v955_v60 }
  0x34   : > { %746 = vmatpush.bf16.msra.mxu0 %v4989_v2  ;;  %793 = vmatpush.bf16.msra.mxu1 %v4989_v2  ;;  %v730_v26 = vsel %vm317_vm0, %v725_v17, %v729_v18  ;;  %v733_v36 = vor.u32 %v731_v32, %v729_v18 }
  0x35   : > { %840 = vmatpush.bf16.msra.mxu2 %v4989_v2  ;;  %887 = vmatpush.bf16.msra.mxu3 %v4989_v2  ;;  %v824_v30 = vsel %vm317_vm0, %v819_v24, %v823_v25 }
  0x38   : > { %747 = vmatpush.bf16.msra.mxu0 %v5010_v15  ;;  %794 = vmatpush.bf16.msra.mxu1 %v5010_v15 }
  0x39   : > { %841 = vmatpush.bf16.msra.mxu2 %v5010_v15  ;;  %888 = vmatpush.bf16.msra.mxu3 %v5010_v15 }
  0x3b   : > { %4186 = vmatmul.msk.bf16.vlgmr.msrb.gmra.mxu0 %vm357_vm1, %v542_v34  ;;  %v825_v34 = vshrl.u32 %v812_v3, 16 }
  0x3c   : > { %932 = vmatpush.bf16.msrb.mxu0 %v4970_v0 }
  0x3e   : > { %4192 = vmatmul.msk.bf16.vlgmr.msrb.gmra.mxu1 %vm357_vm1, %v589_v37  ;;  %4198 = vmatmul.msk.bf16.vlgmr.msrb.gmra.mxu2 %vm357_vm1, %v636_v38  ;;  %v872_v37 = vshrl.u32 %v859_v8, 16  ;;  %v4860_v38 = vld [vmem:[%s4994_s23 + $0x90] sm:$0xff]  ;;  %v1056_v8 = vshll.u32 %v1047_v58, 16 }
  0x3f   : > { %979 = vmatpush.bf16.msrb.mxu1 %v4970_v0  ;;  %1026 = vmatpush.bf16.msrb.mxu2 %v4970_v0  ;;  %v910_v48 = vshll.u32 %v4860_v38, 16  ;;  %v908_v55 = vshrl.u32 %v4860_v38, 16 }
  0x40   : > { %4204 = vmatmul.msk.bf16.vlgmr.msrb.gmra.mxu3 %vm357_vm1, %v683_v39  ;;  %933 = vmatpush.bf16.msrb.mxu0 %v4977_v1  ;;  %v284_v39 = vld [vmem:[%s4994_s23 + $0xb0] sm:$0x7]  ;;  %v874_v47 = vor.u32 %v872_v37, %v870_v28  ;;  %v1058_v16 = vrot.slane %v1056_v8, 1  ;;  %v1060_v28 = vshrl.u32 %v1047_v58, 16 }
  0x41   : > { %1073 = vmatpush.bf16.msrb.mxu3 %v4970_v0  ;;  %v998_v46 = vunpack.c.l.b16 %v284_v39  ;;  %v912_v56 = vrot.slane %v910_v48, 1  ;;  %v5210_v48 = vld [vmem:[%s6610_s1 + $0x8] sm:$0xff] }
  0x42   : > { %v1062_v38 = vor.u32 %v1060_v28, %v1058_v16 }
  0x43   : > { %980 = vmatpush.bf16.msrb.mxu1 %v4977_v1  ;;  %1027 = vmatpush.bf16.msrb.mxu2 %v4977_v1  ;;  %v1000_v53 = vpack.c.b16 %v998_v46, %v998_v46 }
  0x44   : > { %934 = vmatpush.bf16.msrb.mxu0 %v4989_v2 }
  0x45   : > { %1074 = vmatpush.bf16.msrb.mxu3 %v4977_v1  ;;  %v1009_v4 = vshll.u32 %v1000_v53, 16  ;;  %v1013_v24 = vshrl.u32 %v1000_v53, 16 }
  0x47   : > { %981 = vmatpush.bf16.msrb.mxu1 %v4989_v2  ;;  %1028 = vmatpush.bf16.msrb.mxu2 %v4989_v2  ;;  %v1011_v12 = vrot.slane %v1009_v4, 1 }
  0x48   : > { %935 = vmatpush.bf16.msrb.mxu0 %v5010_v15 }
  0x49   : > { %1075 = vmatpush.bf16.msrb.mxu3 %v4989_v2  ;;  %v1015_v33 = vor.u32 %v1013_v24, %v1011_v12 }
  0x4b   : > { %982 = vmatpush.bf16.msrb.mxu1 %v5010_v15  ;;  %1029 = vmatpush.bf16.msrb.mxu2 %v5010_v15 }
  0x4c   : > { %4187 = vmatmul.msk.bf16.gmra.mxu0 %vm357_vm1, %v545_v45  ;;  %v4862_v45 = vld [vmem:[%s4994_s23 + $0xa8] sm:$0xff] }
  0x4d   : > { %1076 = vmatpush.bf16.msrb.mxu3 %v5010_v15  ;;  %v1004_v54 = vshll.u32 %v4862_v45, 16  ;;  %v1002_v63 = vshrl.u32 %v4862_v45, 16 }
  0x4e   : > { %4193 = vmatmul.msk.bf16.gmra.mxu1 %vm357_vm1, %v592_v49  ;;  %4199 = vmatmul.msk.bf16.gmra.mxu2 %vm357_vm1, %v639_v51  ;;  %v906_v49 = vpack.c.b16 %v904_v41, %v904_v41  ;;  %v4867_v41 = vld [vmem:[%s4994_s23 + $0xe4] sm:$0xff] }
  0x4f   : > { %v1006_v3 = vrot.slane %v1004_v54, 1  ;;  %v1239_v50 = vshll.u32 %v4867_v41, 16  ;;  %v1237_v60 = vshrl.u32 %v4867_v41, 16 }
  0x50   : > { %4205 = vmatmul.msk.bf16.gmra.mxu3 %vm357_vm1, %v686_v57  ;;  %v915_v57 = vshll.u32 %v906_v49, 16  ;;  %v919_v22 = vshrl.u32 %v906_v49, 16 }
  0x51   : > { %v1007_v11 = vor.u32 %v1006_v3, %v1002_v63  ;;  %v1241_v61 = vrot.slane %v1239_v50, 1 }
  0x52   : > { %v917_v5 = vrot.slane %v915_v57, 1  ;;  %v5224_v57 = vld [vmem:[%s6610_s1] sm:$0xff] }
  0x53   : > { %v1012_v18 = vsel %vm317_vm0, %v1007_v11, %v1011_v12 }
  0x54   : > { %v921_v27 = vor.u32 %v919_v22, %v917_v5 }
  0x5c   : > { %4210 = vmatmul.msk.bf16.vlgmr.msra.gmra.mxu0 %vm357_vm1, %v730_v26  ;;  %v293_v26 = vld [vmem:[%s4994_s23 + $0xd4] sm:$0x7] }
  0x5d   : > { %1120 = vmatpush.bf16.msra.mxu0 %v4970_v0  ;;  %v1139_v35 = vunpack.c.l.b16 %v293_v26 }
  0x5e   : > { %4216 = vmatmul.msk.bf16.vlgmr.msra.gmra.mxu1 %vm357_vm1, %v777_v29  ;;  %4222 = vmatmul.msk.bf16.vlgmr.msra.gmra.mxu2 %vm357_vm1, %v824_v30  ;;  %v4864_v29 = vld [vmem:[%s4994_s23 + $0xc0] sm:$0xff] }
  0x5f   : > { %1167 = vmatpush.bf16.msra.mxu1 %v4970_v0  ;;  %1214 = vmatpush.bf16.msra.mxu2 %v4970_v0  ;;  %v296_v30 = vld [vmem:[%s4994_s23 + $0xe0] sm:$0x7]  ;;  %v1098_v39 = vshll.u32 %v4864_v29, 16  ;;  %v5202_v42 = vpack.c.b16 %v1139_v35, %v1139_v35  ;;  %v1096_v46 = vshrl.u32 %v4864_v29, 16 }
  0x60   : > { %4228 = vmatmul.msk.bf16.vlgmr.msra.gmra.mxu3 %vm357_vm1, %v871_v31  ;;  %v1186_v37 = vunpack.c.l.b16 %v296_v30 }
  0x61   : > { %1261 = vmatpush.bf16.msra.mxu3 %v4970_v0  ;;  %1121 = vmatpush.bf16.msra.mxu0 %v4977_v1  ;;  %v281_v0 = vld [vmem:[%s4994_s23 + $0xa4] sm:$0x7]  ;;  %v1150_v53 = vshll.u32 %v5202_v42, 16 }
  0x62   : > { %v951_v43 = vunpack.c.l.b16 %v281_v0  ;;  %v299_v0 = vld [vmem:[%s4994_s23 + $0xec] sm:$0x7]  ;;  %v5204_v44 = vpack.c.b16 %v1186_v37, %v1186_v37 }
  0x63   : > { %1168 = vmatpush.bf16.msra.mxu1 %v4977_v1  ;;  %1215 = vmatpush.bf16.msra.mxu2 %v4977_v1  ;;  %v1152_v3 = vrot.slane %v1150_v53, 1 }
  0x64   : > { %v953_v51 = vpack.c.b16 %v951_v43, %v951_v43  ;;  %v1201_v22 = vshrl.u32 %v5204_v44, 16 }
  0x65   : > { %1262 = vmatpush.bf16.msra.mxu3 %v4977_v1  ;;  %1122 = vmatpush.bf16.msra.mxu0 %v4989_v2  ;;  %v827_v1 = vor.u32 %v825_v34, %v823_v25  ;;  %v290_v25 = vld [vmem:[%s4994_s23 + $0xc8] sm:$0x7]  ;;  %v4865_v34 = vld [vmem:[%s4994_s23 + $0xcc] sm:$0xff] }
  0x66   : > { %v962_v62 = vshll.u32 %v953_v51, 16  ;;  %v966_v23 = vshrl.u32 %v953_v51, 16  ;;  %v1092_v32 = vunpack.c.l.b16 %v290_v25  ;;  %v1145_v43 = vshll.u32 %v4865_v34, 16 }
  0x67   : > { %1169 = vmatpush.bf16.msra.mxu1 %v4989_v2  ;;  %1216 = vmatpush.bf16.msra.mxu2 %v4989_v2  ;;  %v1143_v51 = vshrl.u32 %v4865_v34, 16 }
  0x68   : > { %v964_v10 = vrot.slane %v962_v62, 1  ;;  %v1147_v52 = vrot.slane %v1145_v43, 1 }
  0x69   : > { %1263 = vmatpush.bf16.msra.mxu3 %v4989_v2  ;;  %1123 = vmatpush.bf16.msra.mxu0 %v5010_v15  ;;  %v4863_v2 = vld [vmem:[%s4994_s23 + $0xb4] sm:$0xff] }
  0x6a   : > { %v1051_v59 = vshll.u32 %v4863_v2, 16  ;;  %v1049_v6 = vshrl.u32 %v4863_v2, 16  ;;  %v965_v17 = vsel %vm317_vm0, %v960_v9, %v964_v10  ;;  %v968_v31 = vor.u32 %v966_v23, %v964_v10 }
  0x6b   : > { %1170 = vmatpush.bf16.msra.mxu1 %v5010_v15  ;;  %1217 = vmatpush.bf16.msra.mxu2 %v5010_v15  ;;  %v1148_v63 = vor.u32 %v1147_v52, %v1143_v51  ;;  %v183_v51 = vld [vmem:[%s4994_s23 + $0x2c] sm:$0x3] }
  0x6c   : > { %4211 = vmatmul.msk.bf16.gmra.mxu0 %vm357_vm1, %v733_v36  ;;  %v1053_v7 = vrot.slane %v1051_v59, 1  ;;  %v4866_v36 = vld [vmem:[%s4994_s23 + $0xd8] sm:$0xff] }
  0x6d   : > { %1264 = vmatpush.bf16.msra.mxu3 %v5010_v15  ;;  %v913_v15 = vor.u32 %v912_v56, %v908_v55  ;;  %v1192_v45 = vshll.u32 %v4866_v36, 16  ;;  %v1190_v54 = vshrl.u32 %v4866_v36, 16  ;;  %v1197_v56 = vshll.u32 %v5204_v44, 16  ;;  %v174_v44 = vld [vmem:[%s4994_s23 + $0x8] sm:$0x3] }
  0x6e   : > { %4217 = vmatmul.msk.bf16.gmra.mxu1 %vm357_vm1, %v780_v40  ;;  %4223 = vmatmul.msk.bf16.gmra.mxu2 %vm357_vm1, %v827_v1  ;;  %v1054_v14 = vor.u32 %v1053_v7, %v1049_v6  ;;  %v5198_v40 = vpack.c.b16 %v1092_v32, %v1092_v32  ;;  %v1233_v1 = vunpack.c.l.b16 %v299_v0  ;;  %v1242_v7 = vor.u32 %v1241_v61, %v1237_v60  ;;  %v4824_v0 = vld [vmem:[%s4994_s23] sm:$0xff] }
  0x6f   : > { %v918_v13 = vsel %vm317_vm0, %v913_v15, %v917_v5  ;;  %v1194_v55 = vrot.slane %v1192_v45, 1  ;;  %v1199_v15 = vrot.slane %v1197_v56, 1  ;;  %v1153_v10 = vsel %vm317_vm0, %v1148_v63, %v1152_v3 }
  0x70   : > { %4229 = vmatmul.msk.bf16.gmra.mxu3 %vm357_vm1, %v874_v47  ;;  %v1059_v19 = vsel %vm317_vm0, %v1054_v14, %v1058_v16  ;;  %v1100_v47 = vrot.slane %v1098_v39, 1  ;;  %v1103_v49 = vshll.u32 %v5198_v40, 16  ;;  %v5213_v2 = vpack.c.b16 %v1233_v1, %v1233_v1  ;;  %v4827_v1 = vld [vmem:[%s4994_s23 + $0x24] sm:$0xff] }
  0x71   : > { %v1195_v4 = vor.u32 %v1194_v55, %v1190_v54  ;;  %v1203_v29 = vor.u32 %v1201_v22, %v1199_v15  ;;  %v1400_v54 = vunpack.c.l.b16 %v183_v51 }
  0x72   : > { %v1101_v58 = vor.u32 %v1100_v47, %v1096_v46  ;;  %v1105_v59 = vrot.slane %v1103_v49, 1  ;;  %v1244_v62 = vshll.u32 %v5213_v2, 16  ;;  %v1248_v24 = vshrl.u32 %v5213_v2, 16  ;;  %v177_v46 = vld [vmem:[%s4994_s23 + $0x14] sm:$0x3] }
  0x73   : > { %v1200_v11 = vsel %vm317_vm0, %v1195_v4, %v1199_v15  ;;  %v180_v49 = vld [vmem:[%s4994_s23 + $0x20] sm:$0x3]  ;;  %v1280_v2 = vunpack.c.l.b16 %v174_v44  ;;  %v1336_v50 = vunpack.c.l.b16 %v177_v46 }
  0x74   : > { %v1106_v6 = vsel %vm317_vm0, %v1101_v58, %v1105_v59  ;;  %v1246_v8 = vrot.slane %v1244_v62, 1  ;;  %v1368_v52 = vunpack.c.l.b16 %v180_v49  ;;  %v1402_v62 = vpack.c.b16 %v1400_v54, %v1400_v54 }
  0x75   : > { %v1282_v53 = vpack.c.b16 %v1280_v2, %v1280_v2  ;;  %v1338_v58 = vpack.c.b16 %v1336_v50, %v1336_v50 }
  0x76   : > { %v1247_v12 = vsel %vm317_vm0, %v1242_v7, %v1246_v8  ;;  %v1370_v60 = vpack.c.b16 %v1368_v52, %v1368_v52 }
  0x7c   : > { %4234 = vmatmul.msk.bf16.vlgmr.msrb.gmra.mxu0 %vm357_vm1, %v918_v13 }
  0x7d   : > { %1317 = vmatpush.bf16.msrb.mxu0 %v5174_v20 }
  0x7e   : > { %4240 = vmatmul.msk.bf16.vlgmr.msrb.gmra.mxu1 %vm357_vm1, %v965_v17  ;;  %4246 = vmatmul.msk.bf16.vlgmr.msrb.gmra.mxu2 %vm357_vm1, %v1012_v18  ;;  %v1107_v18 = vshrl.u32 %v5198_v40, 16  ;;  %v4826_v40 = vld [vmem:[%s4994_s23 + $0x18] sm:$0xff] }
  0x7f   : > { %1381 = vmatpush.bf16.msrb.mxu2 %v5174_v20  ;;  %1349 = vmatpush.bf16.msrb.mxu1 %v5174_v20 }
  0x80   : > { %4252 = vmatmul.msk.bf16.vlgmr.msrb.gmra.mxu3 %vm357_vm1, %v1059_v19  ;;  %v1154_v19 = vshrl.u32 %v5202_v42, 16  ;;  %v1109_v23 = vor.u32 %v1107_v18, %v1105_v59 }
  0x81   : > { %1413 = vmatpush.bf16.msrb.mxu3 %v5174_v20  ;;  %1318 = vmatpush.bf16.msrb.mxu0 %v5183_v21 }
  0x83   : > { %1382 = vmatpush.bf16.msrb.mxu2 %v5183_v21  ;;  %1350 = vmatpush.bf16.msrb.mxu1 %v5183_v21 }
  0x85   : > { %1414 = vmatpush.bf16.msrb.mxu3 %v5183_v21  ;;  %1319 = vmatpush.bf16.msrb.mxu0 %v5210_v48 }
  0x87   : > { %1383 = vmatpush.bf16.msrb.mxu2 %v5210_v48  ;;  %1351 = vmatpush.bf16.msrb.mxu1 %v5210_v48 }
  0x89   : > { %1415 = vmatpush.bf16.msrb.mxu3 %v5210_v48  ;;  %1320 = vmatpush.bf16.msrb.mxu0 %v5224_v57 }
  0x8b   : > { %1384 = vmatpush.bf16.msrb.mxu2 %v5224_v57  ;;  %1352 = vmatpush.bf16.msrb.mxu1 %v5224_v57 }
  0x8c   : > { %4235 = vmatmul.msk.bf16.gmra.mxu0 %vm357_vm1, %v921_v27  ;;  %v1156_v27 = vor.u32 %v1154_v19, %v1152_v3  ;;  %v4831_v19 = vld [vmem:[%s4994_s23 + $0x54] sm:$0xff] }
  0x8d   : > { %1416 = vmatpush.bf16.msrb.mxu3 %v5224_v57 }
  0x8e   : > { %4241 = vmatmul.msk.bf16.gmra.mxu1 %vm357_vm1, %v968_v31  ;;  %4247 = vmatmul.msk.bf16.gmra.mxu2 %vm357_vm1, %v1015_v33  ;;  %v1250_v31 = vor.u32 %v1248_v24, %v1246_v8  ;;  %v186_v24 = vld [vmem:[%s4994_s23 + $0x38] sm:$0x3] }
  0x90   : > { %4253 = vmatmul.msk.bf16.gmra.mxu3 %vm357_vm1, %v1062_v38  ;;  %v4825_v38 = vld [vmem:[%s4994_s23 + $0xc] sm:$0xff] }
  0x98   : > { %v5231_v5 = vpop.f32.mrf.mxu0 }
  0x9b   : > { %v5234_v9 = vpop.f32.mrf.mxu1 }
  0x9c   : > { %4258 = vmatmul.msk.bf16.vlgmr.msra.gmra.mxu0 %vm357_vm1, %v1106_v6  ;;  %v4828_v6 = vld [vmem:[%s4994_s23 + $0x30] sm:$0xff] }
  0x9d   : > { %1445 = vmatpush.bf16.msra.mxu0 %v5174_v20 }
  0x9e   : > { %4264 = vmatmul.msk.bf16.vlgmr.msra.gmra.mxu1 %vm357_vm1, %v1153_v10  ;;  %4270 = vmatmul.msk.bf16.vlgmr.msra.gmra.mxu2 %vm357_vm1, %v1200_v11  ;;  %v4829_v10 = vld [vmem:[%s4994_s23 + $0x3c] sm:$0xff] }
  0x9f   : > { %1477 = vmatpush.bf16.msra.mxu1 %v5174_v20  ;;  %1509 = vmatpush.bf16.msra.mxu2 %v5174_v20 }
  0xa0   : > { %4276 = vmatmul.msk.bf16.vlgmr.msra.gmra.mxu3 %vm357_vm1, %v1247_v12  ;;  %v5248_v14 = vpop.f32.mrf.mxu0  ;;  %v4830_v12 = vld [vmem:[%s4994_s23 + $0x48] sm:$0xff] }
  0xa1   : > { %v5246_v13 = vpop.f32.mrf.mxu2  ;;  %1541 = vmatpush.bf16.msra.mxu3 %v5174_v20  ;;  %1446 = vmatpush.bf16.msra.mxu0 %v5183_v21 }
  0xa2   : > { %v5255_v17 = vpop.f32.mrf.mxu3 }
  0xa3   : > { %v5252_v16 = vpop.f32.mrf.mxu1  ;;  %1478 = vmatpush.bf16.msra.mxu1 %v5183_v21  ;;  %1510 = vmatpush.bf16.msra.mxu2 %v5183_v21 }
  0xa5   : > { %1542 = vmatpush.bf16.msra.mxu3 %v5183_v21  ;;  %1447 = vmatpush.bf16.msra.mxu0 %v5210_v48 }
  0xa7   : > { %1479 = vmatpush.bf16.msra.mxu1 %v5210_v48  ;;  %1511 = vmatpush.bf16.msra.mxu2 %v5210_v48 }
  0xa8   : > { %v5268_v26 = vpop.f32.mrf.mxu0 }
  0xa9   : > { %v5266_v25 = vpop.f32.mrf.mxu2  ;;  %1543 = vmatpush.bf16.msra.mxu3 %v5210_v48  ;;  %1448 = vmatpush.bf16.msra.mxu0 %v5224_v57 }
  0xaa   : > { %v5275_v30 = vpop.f32.mrf.mxu3 }
  0xab   : > { %v5272_v28 = vpop.f32.mrf.mxu1  ;;  %1480 = vmatpush.bf16.msra.mxu1 %v5224_v57  ;;  %1512 = vmatpush.bf16.msra.mxu2 %v5224_v57 }
  0xac   : > { %4259 = vmatmul.msk.bf16.gmra.mxu0 %vm357_vm1, %v1109_v23 }
  0xad   : > { %1544 = vmatpush.bf16.msra.mxu3 %v5224_v57 }
  0xae   : > { %4265 = vmatmul.msk.bf16.gmra.mxu1 %vm357_vm1, %v1156_v27  ;;  %4271 = vmatmul.msk.bf16.gmra.mxu2 %vm357_vm1, %v1203_v29  ;;  %v189_v29 = vld [vmem:[%s4994_s23 + $0x44] sm:$0x3] }
  0xb0   : > { %4277 = vmatmul.msk.bf16.gmra.mxu3 %vm357_vm1, %v1250_v31  ;;  %v380_v33 = vpop.f32.mrf.mxu0 }
  0xb1   : > { %v5283_v32 = vpop.f32.mrf.mxu2  ;;  %v192_v33 = vld [vmem:[%s4994_s23 + $0x50] sm:$0x3] }
  0xb2   : > { %v5285_v35 = vpop.f32.mrf.mxu3 }
  0xb3   : > { %v427_v34 = vpop.f32.mrf.mxu1 }
  0xb4   : > { %v1432_v34 = vunpack.c.l.b16 %v186_v24  ;;  %v198_v24 = vld [vmem:[%s4994_s23 + $0x68] sm:$0x3] }
  0xb8   : > { %v5288_v37 = vpop.f32.mrf.mxu0 }
  0xb9   : > { %v474_v36 = vpop.f32.mrf.mxu2 }
  0xba   : > { %v521_v41 = vpop.f32.mrf.mxu3  ;;  %v195_v36 = vld [vmem:[%s4994_s23 + $0x5c] sm:$0x3] }
  0xbb   : > { %v5291_v39 = vpop.f32.mrf.mxu1  ;;  %v1528_v41 = vunpack.c.l.b16 %v195_v36  ;;  %v1560_v36 = vunpack.c.l.b16 %v198_v24 }
  0xbc   : > { %4298 = vmatmul.msk.bf16.vlgmr.msrb.gmra.mxu0 %vm357_vm1, %v4824_v0  ;;  %v1464_v0 = vunpack.c.l.b16 %v189_v29 }
  0xbd   : > { %1573 = vmatpush.bf16.msrb.mxu0 %v5174_v20  ;;  %v1530_v51 = vpack.c.b16 %v1528_v41, %v1528_v41  ;;  %v1562_v41 = vpack.c.b16 %v1560_v36, %v1560_v36 }
  0xbe   : > { %4304 = vmatmul.msk.bf16.vlgmr.msrb.gmra.mxu1 %vm357_vm1, %v4825_v38  ;;  %4310 = vmatmul.msk.bf16.vlgmr.msrb.gmra.mxu2 %vm357_vm1, %v4826_v40  ;;  %v1496_v38 = vunpack.c.l.b16 %v192_v33  ;;  %v1434_v40 = vpack.c.b16 %v1432_v34, %v1432_v34  ;;  %v1466_v46 = vpack.c.b16 %v1464_v0, %v1464_v0  ;;  %v201_v33 = vld [vmem:[%s4994_s23 + $0x74] sm:$0x3]  ;;  %v204_v0 = vld [vmem:[%s4994_s23 + $0x80] sm:$0x3] }
  0xbf   : > { %1605 = vmatpush.bf16.msrb.mxu1 %v5174_v20  ;;  %1637 = vmatpush.bf16.msrb.mxu2 %v5174_v20 }
  0xc0   : > { %4316 = vmatmul.msk.bf16.vlgmr.msrb.gmra.mxu3 %vm357_vm1, %v4827_v1  ;;  %v5304_v43 = vpop.f32.mrf.mxu0  ;;  %v1498_v2 = vpack.c.b16 %v1496_v38, %v1496_v38  ;;  %v1592_v38 = vunpack.c.l.b16 %v201_v33 }
  0xc1   : > { %v5302_v42 = vpop.f32.mrf.mxu2  ;;  %1669 = vmatpush.bf16.msrb.mxu3 %v5174_v20  ;;  %1574 = vmatpush.bf16.msrb.mxu0 %v5183_v21 }
  0xc3   : > { %v5309_v45 = vpop.f32.mrf.mxu1  ;;  %1606 = vmatpush.bf16.msrb.mxu1 %v5183_v21  ;;  %v5313_v47 = vpop.f32.mrf.mxu3  ;;  %1638 = vmatpush.bf16.msrb.mxu2 %v5183_v21 }
  0xc5   : > { %1670 = vmatpush.bf16.msrb.mxu3 %v5183_v21  ;;  %1575 = vmatpush.bf16.msrb.mxu0 %v5210_v48 }
  0xc7   : > { %1607 = vmatpush.bf16.msrb.mxu1 %v5210_v48  ;;  %1639 = vmatpush.bf16.msrb.mxu2 %v5210_v48 }
  0xc9   : > { %v5322_v55 = vpop.f32.mrf.mxu2  ;;  %v5324_v56 = vpop.f32.mrf.mxu0  ;;  %1671 = vmatpush.bf16.msrb.mxu3 %v5210_v48  ;;  %1576 = vmatpush.bf16.msrb.mxu0 %v5224_v57 }
  0xcb   : > { %v5328_v59 = vpop.f32.mrf.mxu1  ;;  %1608 = vmatpush.bf16.msrb.mxu1 %v5224_v57  ;;  %v5331_v61 = vpop.f32.mrf.mxu3  ;;  %1640 = vmatpush.bf16.msrb.mxu2 %v5224_v57 }
  0xcc   : > { %4299 = vmatmul.msk.bf16.gmra.mxu0 %vm357_vm1, %v1282_v53 }
  0xcd   : > { %1672 = vmatpush.bf16.msrb.mxu3 %v5224_v57 }
  0xce   : > { %4305 = vmatmul.msk.bf16.gmra.mxu1 %vm357_vm1, %v1338_v58  ;;  %4311 = vmatmul.msk.bf16.gmra.mxu2 %vm357_vm1, %v1370_v60  ;;  %v4832_v60 = vld [vmem:[%s4994_s23 + $0x60] sm:$0xff] }
  0xd0   : > { %4317 = vmatmul.msk.bf16.gmra.mxu3 %vm357_vm1, %v1402_v62 }
  0xd1   : > { %v5339_v63 = vpop.f32.mrf.mxu2  ;;  %v568_v3 = vpop.f32.mrf.mxu0 }
  0xd3   : > { %v615_v4 = vpop.f32.mrf.mxu1  ;;  %v5341_v15 = vpop.f32.mrf.mxu3 }
  0xd4   : > { %v4833_v4 = vld [vmem:[%s4994_s23 + $0x6c] sm:$0xff] }
  0xd9   : > { %v662_v7 = vpop.f32.mrf.mxu2  ;;  %v5344_v8 = vpop.f32.mrf.mxu0 }
  0xda   : > { %6613 = vst [vmem:[#allocation2_spill] sm:$0xff] %v5344_v8  ;;  %v4834_v7 = vld [vmem:[%s4994_s23 + $0x78] sm:$0xff] }
  0xdb   : > { %v5347_v11 = vpop.f32.mrf.mxu1  ;;  %v709_v18 = vpop.f32.mrf.mxu3 }
  0xdc   : > { %6614 = vst [vmem:[#allocation3_spill] sm:$0xff] %v5347_v11  ;;  %4322 = vmatmul.msk.bf16.vlgmr.msra.gmra.mxu0 %vm357_vm1, %v4828_v6 }
  0xdd   : > { %1701 = vmatpush.bf16.msra.mxu0 %v5174_v20 }
  0xde   : > { %4328 = vmatmul.msk.bf16.vlgmr.msra.gmra.mxu1 %vm357_vm1, %v4829_v10  ;;  %4334 = vmatmul.msk.bf16.vlgmr.msra.gmra.mxu2 %vm357_vm1, %v4830_v12  ;;  %v4835_v12 = vld [vmem:[%s4994_s23 + $0x84] sm:$0xff] }
  0xdf   : > { %1733 = vmatpush.bf16.msra.mxu1 %v5174_v20  ;;  %1765 = vmatpush.bf16.msra.mxu2 %v5174_v20 }
  0xe0   : > { %4340 = vmatmul.msk.bf16.vlgmr.msra.gmra.mxu3 %vm357_vm1, %v4831_v19 }
  0xe1   : > { %v5358_v22 = vpop.f32.mrf.mxu2  ;;  %v5360_v23 = vpop.f32.mrf.mxu0  ;;  %1797 = vmatpush.bf16.msra.mxu3 %v5174_v20  ;;  %1702 = vmatpush.bf16.msra.mxu0 %v5183_v21 }
  0xe2   : > { %6615 = vst [vmem:[#allocation4_spill] sm:$0xff] %v5358_v22  ;;  %v4878_v22 = vld [vmem:[%s4994_s23 + $0x54] sm:$0xff] }
  0xe3   : > { %6616 = vst [vmem:[#allocation5_spill] sm:$0xff] %v5360_v23  ;;  %v5365_v27 = vpop.f32.mrf.mxu1  ;;  %1734 = vmatpush.bf16.msra.mxu1 %v5183_v21  ;;  %v5369_v31 = vpop.f32.mrf.mxu3  ;;  %1766 = vmatpush.bf16.msra.mxu2 %v5183_v21 }
  0xe4   : > { %6617 = vst [vmem:[#allocation6_spill] sm:$0xff] %v5365_v27  ;;  %v4876_v27 = vld [vmem:[%s4994_s23 + $0x3c] sm:$0xff] }
  0xe5   : > { %6618 = vst [vmem:[#allocation7_spill] sm:$0xff] %v5369_v31  ;;  %1798 = vmatpush.bf16.msra.mxu3 %v5183_v21  ;;  %1703 = vmatpush.bf16.msra.mxu0 %v5210_v48 }
  0xe7   : > { %1735 = vmatpush.bf16.msra.mxu1 %v5210_v48  ;;  %1767 = vmatpush.bf16.msra.mxu2 %v5210_v48 }
  0xe9   : > { %v5378_v1 = vpop.f32.mrf.mxu2  ;;  %v5380_v44 = vpop.f32.mrf.mxu0  ;;  %1799 = vmatpush.bf16.msra.mxu3 %v5210_v48  ;;  %1704 = vmatpush.bf16.msra.mxu0 %v5224_v57 }
  0xea   : > { %6619 = vst [vmem:[#allocation8_spill] sm:$0xff] %v5378_v1 }
  0xeb   : > { %6620 = vst [vmem:[#allocation9_spill] sm:$0xff] %v5380_v44  ;;  %v5384_v49 = vpop.f32.mrf.mxu1  ;;  %1736 = vmatpush.bf16.msra.mxu1 %v5224_v57  ;;  %v5387_v50 = vpop.f32.mrf.mxu3  ;;  %1768 = vmatpush.bf16.msra.mxu2 %v5224_v57 }
  0xec   : > { %6621 = vst [vmem:[#allocation10_spill] sm:$0xff] %v5384_v49  ;;  %4323 = vmatmul.msk.bf16.gmra.mxu0 %vm357_vm1, %v1434_v40  ;;  %v207_v40 = vld [vmem:[%s4994_s23 + $0x8c] sm:$0x3] }
  0xed   : > { %6622 = vst [vmem:[#allocation11_spill] sm:$0xff] %v5387_v50  ;;  %1800 = vmatpush.bf16.msra.mxu3 %v5224_v57 }
  0xee   : > { %4329 = vmatmul.msk.bf16.gmra.mxu1 %vm357_vm1, %v1466_v46  ;;  %4335 = vmatmul.msk.bf16.gmra.mxu2 %vm357_vm1, %v1498_v2  ;;  %v1656_v46 = vunpack.c.l.b16 %v207_v40  ;;  %v4839_v40 = vld [vmem:[%s4994_s23 + $0xb4] sm:$0xff] }
  0xf0   : > { %4341 = vmatmul.msk.bf16.gmra.mxu3 %vm357_vm1, %v1530_v51 }
  0xf1   : > { %v5395_v52 = vpop.f32.mrf.mxu2  ;;  %v756_v53 = vpop.f32.mrf.mxu0 }
  0xf2   : > { %6623 = vst [vmem:[#allocation12_spill] sm:$0xff] %v5395_v52  ;;  %v1594_v53 = vpack.c.b16 %v1592_v38, %v1592_v38 }
  0xf3   : > { %v803_v54 = vpop.f32.mrf.mxu1  ;;  %v5397_v58 = vpop.f32.mrf.mxu3 }
  0xf4   : > { %6624 = vst [vmem:[#allocation13_spill] sm:$0xff] %v5397_v58 }
  0xf9   : > { %v850_v62 = vpop.f32.mrf.mxu2  ;;  %v5400_v3 = vpop.f32.mrf.mxu0 }
  0xfa   : > { %6625 = vst [vmem:[#allocation14_spill] sm:$0xff] %v5400_v3  ;;  %v1658_v62 = vpack.c.b16 %v1656_v46, %v1656_v46  ;;  %v4425_v3 = vld [vmem:[%s4994_s23 + $0x38] sm:$0x3] }
  0xfb   : > { %v5403_v6 = vpop.f32.mrf.mxu1  ;;  %v897_v10 = vpop.f32.mrf.mxu3  ;;  %v2134_v49 = vunpack.c.l.b16 %v4425_v3 }
  0xfc   : > { %6626 = vst [vmem:[#allocation15_spill] sm:$0xff] %v5403_v6  ;;  %4346 = vmatmul.msk.bf16.vlgmr.msrb.gmra.mxu0 %vm357_vm1, %v4832_v60 }
  0xfd   : > { %1829 = vmatpush.bf16.msrb.mxu0 %v5174_v20  ;;  %v2136_v3 = vpack.c.b16 %v2134_v49, %v2134_v49  ;;  %v4877_v49 = vld [vmem:[%s4994_s23 + $0x48] sm:$0xff] }
  0xfe   : > { %4352 = vmatmul.msk.bf16.vlgmr.msrb.gmra.mxu1 %vm357_vm1, %v4833_v4  ;;  %4358 = vmatmul.msk.bf16.vlgmr.msrb.gmra.mxu2 %vm357_vm1, %v4834_v7 }
  0xff   : > { %1861 = vmatpush.bf16.msrb.mxu1 %v5174_v20  ;;  %1893 = vmatpush.bf16.msrb.mxu2 %v5174_v20 }
 0x100   : > { %4364 = vmatmul.msk.bf16.vlgmr.msrb.gmra.mxu3 %vm357_vm1, %v4835_v12  ;;  %v4836_v12 = vld [vmem:[%s4994_s23 + $0x90] sm:$0xff] }
 0x101   : > { %v5414_v18 = vpop.f32.mrf.mxu2  ;;  %v5416_v19 = vpop.f32.mrf.mxu0  ;;  %1925 = vmatpush.bf16.msrb.mxu3 %v5174_v20  ;;  %1830 = vmatpush.bf16.msrb.mxu0 %v5183_v21  ;;  %v1624_v20 = vunpack.c.l.b16 %v204_v0  ;;  %v4837_v0 = vld [vmem:[%s4994_s23 + $0x9c] sm:$0xff] }
 0x102   : > { %6627 = vst [vmem:[#allocation16_spill] sm:$0xff] %v5414_v18  ;;  %v4874_v18 = vld [vmem:[%s4994_s23 + $0x24] sm:$0xff] }
 0x103   : > { %6628 = vst [vmem:[#allocation17_spill] sm:$0xff] %v5416_v19  ;;  %v5421_v29 = vpop.f32.mrf.mxu1  ;;  %1862 = vmatpush.bf16.msrb.mxu1 %v5183_v21  ;;  %v5425_v34 = vpop.f32.mrf.mxu3  ;;  %1894 = vmatpush.bf16.msrb.mxu2 %v5183_v21  ;;  %v1626_v54 = vpack.c.b16 %v1624_v20, %v1624_v20  ;;  %v5470_v20 = vld [vmem:[%s6610_s1 + $0x58] sm:$0xff] }
 0x104   : > { %6629 = vst [vmem:[#allocation18_spill] sm:$0xff] %v5421_v29  ;;  %v4872_v29 = vld [vmem:[%s4994_s23 + $0xc] sm:$0xff] }
 0x105   : > { %6630 = vst [vmem:[#allocation19_spill] sm:$0xff] %v5425_v34  ;;  %1926 = vmatpush.bf16.msrb.mxu3 %v5183_v21  ;;  %1831 = vmatpush.bf16.msrb.mxu0 %v5210_v48 }
 0x107   : > { %1863 = vmatpush.bf16.msrb.mxu1 %v5210_v48  ;;  %1895 = vmatpush.bf16.msrb.mxu2 %v5210_v48 }
 0x109   : > { %v5434_v2 = vpop.f32.mrf.mxu2  ;;  %v5436_v51 = vpop.f32.mrf.mxu0  ;;  %1927 = vmatpush.bf16.msrb.mxu3 %v5210_v48  ;;  %1832 = vmatpush.bf16.msrb.mxu0 %v5224_v57 }
 0x10a   : > { %6631 = vst [vmem:[#allocation20_spill] sm:$0xff] %v5434_v2 }
 0x10b   : > { %6632 = vst [vmem:[#allocation21_spill] sm:$0xff] %v5436_v51  ;;  %v5440_v21 = vpop.f32.mrf.mxu1  ;;  %1864 = vmatpush.bf16.msrb.mxu1 %v5224_v57  ;;  %v5443_v60 = vpop.f32.mrf.mxu3  ;;  %1896 = vmatpush.bf16.msrb.mxu2 %v5224_v57 }
 0x10c   : > { %6633 = vst [vmem:[#allocation22_spill] sm:$0xff] %v5440_v21  ;;  %4347 = vmatmul.msk.bf16.gmra.mxu0 %vm357_vm1, %v1562_v41 }
 0x10d   : > { %6634 = vst [vmem:[#allocation23_spill] sm:$0xff] %v5443_v60  ;;  %1928 = vmatpush.bf16.msrb.mxu3 %v5224_v57  ;;  %v4838_v57 = vld [vmem:[%s4994_s23 + $0xa8] sm:$0xff] }
 0x10e   : > { %4353 = vmatmul.msk.bf16.gmra.mxu1 %vm357_vm1, %v1594_v53  ;;  %4359 = vmatmul.msk.bf16.gmra.mxu2 %vm357_vm1, %v1626_v54  ;;  %v210_v53 = vld [vmem:[%s4994_s23 + $0x98] sm:$0x3] }
 0x110   : > { %4365 = vmatmul.msk.bf16.gmra.mxu3 %vm357_vm1, %v1658_v62  ;;  %v213_v62 = vld [vmem:[%s4994_s23 + $0xa4] sm:$0x3] }
 0x111   : > { %v5451_v48 = vpop.f32.mrf.mxu2  ;;  %v944_v4 = vpop.f32.mrf.mxu0 }
 0x112   : > { %6635 = vst [vmem:[#allocation24_spill] sm:$0xff] %v5451_v48 }
 0x113   : > { %v991_v7 = vpop.f32.mrf.mxu1  ;;  %v5453_v10 = vpop.f32.mrf.mxu3 }
 0x114   : > { %6636 = vst [vmem:[#allocation25_spill] sm:$0xff] %v5453_v10  ;;  %v216_v7 = vld [vmem:[%s4994_s23 + $0xb0] sm:$0x3] }
 0x119   : > { %v1038_v24 = vpop.f32.mrf.mxu2  ;;  %v5456_v33 = vpop.f32.mrf.mxu0 }
 0x11a   : > { %6637 = vst [vmem:[#allocation26_spill] sm:$0xff] %v5456_v33  ;;  %v5490_v24 = vld [vmem:[%s6610_s1 + $0x50] sm:$0xff]  ;;  %v231_v33 = vld [vmem:[%s4994_s23 + $0xec] sm:$0x3] }
 0x11b   : > { %v5459_v36 = vpop.f32.mrf.mxu1  ;;  %v1085_v38 = vpop.f32.mrf.mxu3  ;;  %v1912_v21 = vunpack.c.l.b16 %v231_v33 }
 0x11c   : > { %6638 = vst [vmem:[#allocation27_spill] sm:$0xff] %v5459_v36  ;;  %4370 = vmatmul.msk.bf16.vlgmr.msra.gmra.mxu0 %vm357_vm1, %v4836_v12  ;;  %v1688_v12 = vunpack.c.l.b16 %v210_v53  ;;  %v1752_v38 = vunpack.c.l.b16 %v216_v7 }
 0x11d   : > { %2051 = vmatpush.bf16.msra.mxu0 %v5470_v20  ;;  %v1914_v33 = vpack.c.b16 %v1912_v21, %v1912_v21  ;;  %v4873_v21 = vld [vmem:[%s4994_s23 + $0x18] sm:$0xff] }
 0x11e   : > { %4376 = vmatmul.msk.bf16.vlgmr.msra.gmra.mxu1 %vm357_vm1, %v4837_v0  ;;  %4382 = vmatmul.msk.bf16.vlgmr.msra.gmra.mxu2 %vm357_vm1, %v4838_v57  ;;  %v1720_v0 = vunpack.c.l.b16 %v213_v62  ;;  %v219_v57 = vld [vmem:[%s4994_s23 + $0xbc] sm:$0x3]  ;;  %v1754_v62 = vpack.c.b16 %v1752_v38, %v1752_v38 }
 0x11f   : > { %2115 = vmatpush.bf16.msra.mxu2 %v5470_v20  ;;  %2083 = vmatpush.bf16.msra.mxu1 %v5470_v20 }
 0x120   : > { %4388 = vmatmul.msk.bf16.vlgmr.msra.gmra.mxu3 %vm357_vm1, %v4839_v40  ;;  %v1690_v40 = vpack.c.b16 %v1688_v12, %v1688_v12  ;;  %v5512_v12 = vld [vmem:[%s6610_s1 + $0x48] sm:$0xff] }
 0x121   : > { %v5472_v41 = vpop.f32.mrf.mxu2  ;;  %v5474_v46 = vpop.f32.mrf.mxu0  ;;  %2147 = vmatpush.bf16.msra.mxu3 %v5470_v20  ;;  %2052 = vmatpush.bf16.msra.mxu0 %v5490_v24 }
 0x122   : > { %6639 = vst [vmem:[#allocation28_spill] sm:$0xff] %v5472_v41 }
 0x123   : > { %6640 = vst [vmem:[#allocation29_spill] sm:$0xff] %v5474_v46  ;;  %v5477_v54 = vpop.f32.mrf.mxu1  ;;  %v5482_v4 = vpop.f32.mrf.mxu3  ;;  %2116 = vmatpush.bf16.msra.mxu2 %v5490_v24  ;;  %2084 = vmatpush.bf16.msra.mxu1 %v5490_v24  ;;  %v1722_v46 = vpack.c.b16 %v1720_v0, %v1720_v0 }
 0x124   : > { %6641 = vst [vmem:[#allocation30_spill] sm:$0xff] %v5477_v54 }
 0x125   : > { %6642 = vst [vmem:[#allocation31_spill] sm:$0xff] %v5482_v4  ;;  %2148 = vmatpush.bf16.msra.mxu3 %v5490_v24  ;;  %v1784_v4 = vunpack.c.l.b16 %v219_v57  ;;  %2053 = vmatpush.bf16.msra.mxu0 %v5512_v12 }
 0x127   : > { %v1786_v7 = vpack.c.b16 %v1784_v4, %v1784_v4  ;;  %2117 = vmatpush.bf16.msra.mxu2 %v5512_v12  ;;  %2085 = vmatpush.bf16.msra.mxu1 %v5512_v12  ;;  %v5525_v4 = vld [vmem:[%s6610_s1 + $0x40] sm:$0xff] }
 0x129   : > { %v5497_v54 = vpop.f32.mrf.mxu2  ;;  %v5499_v53 = vpop.f32.mrf.mxu0  ;;  %2149 = vmatpush.bf16.msra.mxu3 %v5512_v12  ;;  %2054 = vmatpush.bf16.msra.mxu0 %v5525_v4 }
 0x12a   : > { %6643 = vst [vmem:[#allocation32_spill] sm:$0xff] %v5497_v54 }
 0x12b   : > { %6644 = vst [vmem:[#allocation33_spill] sm:$0xff] %v5499_v53  ;;  %v5501_v41 = vpop.f32.mrf.mxu1  ;;  %v5503_v36 = vpop.f32.mrf.mxu3  ;;  %2118 = vmatpush.bf16.msra.mxu2 %v5525_v4  ;;  %2086 = vmatpush.bf16.msra.mxu1 %v5525_v4  ;;  %v228_v53 = vld [vmem:[%s4994_s23 + $0xe0] sm:$0x3] }
 0x12c   : > { %6645 = vst [vmem:[#allocation34_spill] sm:$0xff] %v5501_v41  ;;  %4371 = vmatmul.msk.bf16.gmra.mxu0 %vm357_vm1, %v1690_v40  ;;  %v4840_v40 = vld [vmem:[%s4994_s23 + $0xc0] sm:$0xff]  ;;  %v1880_v10 = vunpack.c.l.b16 %v228_v53 }
 0x12d   : > { %6646 = vst [vmem:[#allocation35_spill] sm:$0xff] %v5503_v36  ;;  %2150 = vmatpush.bf16.msra.mxu3 %v5525_v4  ;;  %v4843_v41 = vld [vmem:[%s4994_s23 + $0xe4] sm:$0xff]  ;;  %v225_v36 = vld [vmem:[%s4994_s23 + $0xd4] sm:$0x3] }
 0x12e   : > { %4377 = vmatmul.msk.bf16.gmra.mxu1 %vm357_vm1, %v1722_v46  ;;  %4383 = vmatmul.msk.bf16.gmra.mxu2 %vm357_vm1, %v1754_v62  ;;  %v1848_v54 = vunpack.c.l.b16 %v225_v36 }
 0x130   : > { %4389 = vmatmul.msk.bf16.gmra.mxu3 %vm357_vm1, %v1786_v7  ;;  %v1850_v2 = vpack.c.b16 %v1848_v54, %v1848_v54 }
 0x131   : > { %v5514_v0 = vpop.f32.mrf.mxu2  ;;  %v1132_v57 = vpop.f32.mrf.mxu0 }
 0x132   : > { %6647 = vst [vmem:[#allocation36_spill] sm:$0xff] %v5514_v0  ;;  %v4841_v57 = vld [vmem:[%s4994_s23 + $0xcc] sm:$0xff] }
 0x133   : > { %v1179_v38 = vpop.f32.mrf.mxu1  ;;  %v5518_v46 = vpop.f32.mrf.mxu3 }
 0x134   : > { %6648 = vst [vmem:[#allocation37_spill] sm:$0xff] %v5518_v46  ;;  %v4842_v46 = vld [vmem:[%s4994_s23 + $0xd8] sm:$0xff] }
 0x139   : > { %v1226_v62 = vpop.f32.mrf.mxu2  ;;  %v5532_v7 = vpop.f32.mrf.mxu0 }
 0x13b   : > { %v5535_v38 = vpop.f32.mrf.mxu1  ;;  %v1273_v0 = vpop.f32.mrf.mxu3 }
 0x13c   : > { %4394 = vmatmul.msk.bf16.vlgmr.msrb.gmra.mxu0 %vm357_vm1, %v4840_v40  ;;  %v222_v40 = vld [vmem:[%s4994_s23 + $0xc8] sm:$0x3] }
 0x13d   : > { %2179 = vmatpush.bf16.msrb.mxu0 %v5470_v20 }
 0x13e   : > { %4400 = vmatmul.msk.bf16.vlgmr.msrb.gmra.mxu1 %vm357_vm1, %v4841_v57  ;;  %4406 = vmatmul.msk.bf16.vlgmr.msrb.gmra.mxu2 %vm357_vm1, %v4842_v46 }
 0x13f   : > { %2211 = vmatpush.bf16.msrb.mxu1 %v5470_v20  ;;  %2243 = vmatpush.bf16.msrb.mxu2 %v5470_v20 }
 0x140   : > { %4412 = vmatmul.msk.bf16.vlgmr.msrb.gmra.mxu3 %vm357_vm1, %v4843_v41  ;;  %v1816_v41 = vunpack.c.l.b16 %v222_v40  ;;  %v1882_v40 = vpack.c.b16 %v1880_v10, %v1880_v10 }
 0x141   : > { %v5546_v62 = vpop.f32.mrf.mxu2  ;;  %v5548_v0 = vpop.f32.mrf.mxu0  ;;  %2275 = vmatpush.bf16.msrb.mxu3 %v5470_v20  ;;  %2180 = vmatpush.bf16.msrb.mxu0 %v5490_v24 }
 0x142   : > { %v1818_v48 = vpack.c.b16 %v1816_v41, %v1816_v41 }
 0x143   : > { %v5553_v57 = vpop.f32.mrf.mxu1  ;;  %2212 = vmatpush.bf16.msrb.mxu1 %v5490_v24  ;;  %v5557_v46 = vpop.f32.mrf.mxu3  ;;  %2244 = vmatpush.bf16.msrb.mxu2 %v5490_v24 }
 0x145   : > { %2276 = vmatpush.bf16.msrb.mxu3 %v5490_v24  ;;  %2181 = vmatpush.bf16.msrb.mxu0 %v5512_v12 }
 0x147   : > { %2213 = vmatpush.bf16.msrb.mxu1 %v5512_v12  ;;  %2245 = vmatpush.bf16.msrb.mxu2 %v5512_v12 }
 0x149   : > { %v5566_v60 = vpop.f32.mrf.mxu2  ;;  %v5568_v51 = vpop.f32.mrf.mxu0  ;;  %2277 = vmatpush.bf16.msrb.mxu3 %v5512_v12  ;;  %2182 = vmatpush.bf16.msrb.mxu0 %v5525_v4 }
 0x14b   : > { %v5572_v36 = vpop.f32.mrf.mxu1  ;;  %2214 = vmatpush.bf16.msrb.mxu1 %v5525_v4  ;;  %v5575_v53 = vpop.f32.mrf.mxu3  ;;  %2246 = vmatpush.bf16.msrb.mxu2 %v5525_v4 }
 0x14c   : > { %4395 = vmatmul.msk.bf16.gmra.mxu0 %vm357_vm1, %v1818_v48 }
 0x14d   : > { %2278 = vmatpush.bf16.msrb.mxu3 %v5525_v4 }
 0x14e   : > { %4401 = vmatmul.msk.bf16.gmra.mxu1 %vm357_vm1, %v1850_v2  ;;  %4407 = vmatmul.msk.bf16.gmra.mxu2 %vm357_vm1, %v1882_v40  ;;  %v4875_v40 = vld [vmem:[%s4994_s23 + $0x30] sm:$0xff] }
 0x150   : > { %4413 = vmatmul.msk.bf16.gmra.mxu3 %vm357_vm1, %v1914_v33 }
 0x151   : > { %v5583_v10 = vpop.f32.mrf.mxu2  ;;  %v1329_v54 = vpop.f32.mrf.mxu0 }
 0x152   : > { %v4419_v54 = vld [vmem:[%s4994_s23 + $0x20] sm:$0x3] }
 0x153   : > { %v1361_v41 = vpop.f32.mrf.mxu1  ;;  %v5585_v34 = vpop.f32.mrf.mxu3 }
 0x154   : > { %v4422_v41 = vld [vmem:[%s4994_s23 + $0x2c] sm:$0x3] }
 0x155   : > { %v2102_v58 = vunpack.c.l.b16 %v4422_v41 }
 0x159   : > { %v1393_v19 = vpop.f32.mrf.mxu2  ;;  %v5588_v48 = vpop.f32.mrf.mxu0 }
 0x15b   : > { %v5591_v2 = vpop.f32.mrf.mxu1  ;;  %v1425_v6 = vpop.f32.mrf.mxu3 }
 0x15c   : > { %4502 = vmatmul.msk.bf16.vlgmr.msra.gmra.mxu0 %vm357_vm1, %v4872_v29  ;;  %v4416_v29 = vld [vmem:[%s4994_s23 + $0x14] sm:$0x3] }
 0x15d   : > { %2307 = vmatpush.bf16.msra.mxu0 %v5470_v20 }
 0x15e   : > { %4508 = vmatmul.msk.bf16.vlgmr.msra.gmra.mxu1 %vm357_vm1, %v4873_v21  ;;  %4514 = vmatmul.msk.bf16.vlgmr.msra.gmra.mxu2 %vm357_vm1, %v4874_v18  ;;  %v2014_v21 = vunpack.c.l.b16 %v4416_v29 }
 0x15f   : > { %2339 = vmatpush.bf16.msra.mxu1 %v5470_v20  ;;  %2371 = vmatpush.bf16.msra.mxu2 %v5470_v20 }
 0x160   : > { %4520 = vmatmul.msk.bf16.vlgmr.msra.gmra.mxu3 %vm357_vm1, %v4875_v40  ;;  %v2070_v40 = vunpack.c.l.b16 %v4419_v54  ;;  %v2016_v52 = vpack.c.b16 %v2014_v21, %v2014_v21  ;;  %v2104_v54 = vpack.c.b16 %v2102_v58, %v2102_v58 }
 0x161   : > { %v5602_v19 = vpop.f32.mrf.mxu2  ;;  %v5604_v6 = vpop.f32.mrf.mxu0  ;;  %2403 = vmatpush.bf16.msra.mxu3 %v5470_v20  ;;  %2308 = vmatpush.bf16.msra.mxu0 %v5490_v24 }
 0x162   : > { %v2072_v1 = vpack.c.b16 %v2070_v40, %v2070_v40 }
 0x163   : > { %v5609_v33 = vpop.f32.mrf.mxu1  ;;  %2340 = vmatpush.bf16.msra.mxu1 %v5490_v24  ;;  %v5613_v18 = vpop.f32.mrf.mxu3  ;;  %2372 = vmatpush.bf16.msra.mxu2 %v5490_v24 }
 0x165   : > { %2404 = vmatpush.bf16.msra.mxu3 %v5490_v24  ;;  %2309 = vmatpush.bf16.msra.mxu0 %v5512_v12 }
 0x167   : > { %2341 = vmatpush.bf16.msra.mxu1 %v5512_v12  ;;  %2373 = vmatpush.bf16.msra.mxu2 %v5512_v12 }
 0x169   : > { %v5622_v50 = vpop.f32.mrf.mxu2  ;;  %v5624_v44 = vpop.f32.mrf.mxu0  ;;  %2405 = vmatpush.bf16.msra.mxu3 %v5512_v12  ;;  %2310 = vmatpush.bf16.msra.mxu0 %v5525_v4 }
 0x16b   : > { %v5628_v29 = vpop.f32.mrf.mxu1  ;;  %2342 = vmatpush.bf16.msra.mxu1 %v5525_v4  ;;  %v5631_v41 = vpop.f32.mrf.mxu3  ;;  %2374 = vmatpush.bf16.msra.mxu2 %v5525_v4 }
 0x16c   : > { %4503 = vmatmul.msk.bf16.gmra.mxu0 %vm357_vm1, %v2016_v52 }
 0x16d   : > { %2406 = vmatpush.bf16.msra.mxu3 %v5525_v4 }
 0x16e   : > { %4509 = vmatmul.msk.bf16.gmra.mxu1 %vm357_vm1, %v2072_v1  ;;  %4515 = vmatmul.msk.bf16.gmra.mxu2 %vm357_vm1, %v2104_v54  ;;  %v4879_v54 = vld [vmem:[%s4994_s23 + $0x60] sm:$0xff] }
 0x170   : > { %4521 = vmatmul.msk.bf16.gmra.mxu3 %vm357_vm1, %v2136_v3 }
 0x171   : > { %v5639_v58 = vpop.f32.mrf.mxu2  ;;  %v1457_v21 = vpop.f32.mrf.mxu0 }
 0x172   : > { %v4431_v21 = vld [vmem:[%s4994_s23 + $0x50] sm:$0x3] }
 0x173   : > { %v1489_v40 = vpop.f32.mrf.mxu1  ;;  %v5641_v31 = vpop.f32.mrf.mxu3 }
 0x174   : > { %6649 = vst [vmem:[#allocation38_spill] sm:$0xff] %v5641_v31  ;;  %v4434_v40 = vld [vmem:[%s4994_s23 + $0x5c] sm:$0x3] }
 0x179   : > { %v1521_v23 = vpop.f32.mrf.mxu2  ;;  %v5644_v52 = vpop.f32.mrf.mxu0 }
 0x17a   : > { %6650 = vst [vmem:[#allocation39_spill] sm:$0xff] %v5644_v52 }
 0x17b   : > { %v5647_v1 = vpop.f32.mrf.mxu1  ;;  %v1553_v11 = vpop.f32.mrf.mxu3 }
 0x17c   : > { %6651 = vst [vmem:[#allocation40_spill] sm:$0xff] %v5647_v1  ;;  %4526 = vmatmul.msk.bf16.vlgmr.msrb.gmra.mxu0 %vm357_vm1, %v4876_v27  ;;  %v4428_v27 = vld [vmem:[%s4994_s23 + $0x44] sm:$0x3] }
 0x17d   : > { %2435 = vmatpush.bf16.msrb.mxu0 %v5470_v20 }
 0x17e   : > { %4532 = vmatmul.msk.bf16.vlgmr.msrb.gmra.mxu1 %vm357_vm1, %v4877_v49  ;;  %4538 = vmatmul.msk.bf16.vlgmr.msrb.gmra.mxu2 %vm357_vm1, %v4878_v22  ;;  %v2166_v49 = vunpack.c.l.b16 %v4428_v27 }
 0x17f   : > { %2467 = vmatpush.bf16.msrb.mxu1 %v5470_v20  ;;  %2499 = vmatpush.bf16.msrb.mxu2 %v5470_v20 }
 0x180   : > { %4544 = vmatmul.msk.bf16.vlgmr.msrb.gmra.mxu3 %vm357_vm1, %v4879_v54  ;;  %v2198_v54 = vunpack.c.l.b16 %v4431_v21 }
 0x181   : > { %v5658_v23 = vpop.f32.mrf.mxu2  ;;  %v5660_v11 = vpop.f32.mrf.mxu0  ;;  %2531 = vmatpush.bf16.msrb.mxu3 %v5470_v20  ;;  %2436 = vmatpush.bf16.msrb.mxu0 %v5490_v24 }
 0x182   : > { %6652 = vst [vmem:[#allocation41_spill] sm:$0xff] %v5658_v23  ;;  %v4437_v23 = vld [vmem:[%s4994_s23 + $0x68] sm:$0x3]  ;;  %v2200_v8 = vpack.c.b16 %v2198_v54, %v2198_v54 }
 0x183   : > { %6653 = vst [vmem:[#allocation42_spill] sm:$0xff] %v5660_v11  ;;  %v5665_v3 = vpop.f32.mrf.mxu1  ;;  %2468 = vmatpush.bf16.msrb.mxu1 %v5490_v24  ;;  %v5669_v22 = vpop.f32.mrf.mxu3  ;;  %2500 = vmatpush.bf16.msrb.mxu2 %v5490_v24  ;;  %v2230_v11 = vunpack.c.l.b16 %v4434_v40  ;;  %v2262_v1 = vunpack.c.l.b16 %v4437_v23 }
 0x184   : > { %6654 = vst [vmem:[#allocation43_spill] sm:$0xff] %v5665_v3  ;;  %v2168_v3 = vpack.c.b16 %v2166_v49, %v2166_v49 }
 0x185   : > { %6655 = vst [vmem:[#allocation44_spill] sm:$0xff] %v5669_v22  ;;  %2532 = vmatpush.bf16.msrb.mxu3 %v5490_v24  ;;  %2437 = vmatpush.bf16.msrb.mxu0 %v5512_v12  ;;  %v2232_v21 = vpack.c.b16 %v2230_v11, %v2230_v11  ;;  %v2264_v23 = vpack.c.b16 %v2262_v1, %v2262_v1  ;;  %v4881_v1 = vld [vmem:[%s4994_s23 + $0x78] sm:$0xff] }
 0x187   : > { %2469 = vmatpush.bf16.msrb.mxu1 %v5512_v12  ;;  %2501 = vmatpush.bf16.msrb.mxu2 %v5512_v12 }
 0x189   : > { %v5678_v52 = vpop.f32.mrf.mxu2  ;;  %v5680_v22 = vpop.f32.mrf.mxu0  ;;  %2533 = vmatpush.bf16.msrb.mxu3 %v5512_v12  ;;  %2438 = vmatpush.bf16.msrb.mxu0 %v5525_v4 }
 0x18a   : > { %6656 = vst [vmem:[#allocation45_spill] sm:$0xff] %v5678_v52  ;;  %v4882_v52 = vld [vmem:[%s4994_s23 + $0x84] sm:$0xff] }
 0x18b   : > { %6657 = vst [vmem:[#allocation46_spill] sm:$0xff] %v5680_v22  ;;  %v5684_v27 = vpop.f32.mrf.mxu1  ;;  %2470 = vmatpush.bf16.msrb.mxu1 %v5525_v4  ;;  %v5687_v40 = vpop.f32.mrf.mxu3  ;;  %2502 = vmatpush.bf16.msrb.mxu2 %v5525_v4 }
 0x18c   : > { %6658 = vst [vmem:[#allocation47_spill] sm:$0xff] %v5684_v27  ;;  %4527 = vmatmul.msk.bf16.gmra.mxu0 %vm357_vm1, %v2168_v3 }
 0x18d   : > { %6659 = vst [vmem:[#allocation48_spill] sm:$0xff] %v5687_v40  ;;  %2534 = vmatpush.bf16.msrb.mxu3 %v5525_v4  ;;  %v4880_v40 = vld [vmem:[%s4994_s23 + $0x6c] sm:$0xff] }
 0x18e   : > { %4533 = vmatmul.msk.bf16.gmra.mxu1 %vm357_vm1, %v2200_v8  ;;  %4539 = vmatmul.msk.bf16.gmra.mxu2 %vm357_vm1, %v2232_v21  ;;  %v4883_v21 = vld [vmem:[%s4994_s23 + $0x90] sm:$0xff] }
 0x190   : > { %4545 = vmatmul.msk.bf16.gmra.mxu3 %vm357_vm1, %v2264_v23 }
 0x191   : > { %v5695_v11 = vpop.f32.mrf.mxu2  ;;  %v1585_v49 = vpop.f32.mrf.mxu0 }
 0x192   : > { %v4443_v49 = vld [vmem:[%s4994_s23 + $0x80] sm:$0x3] }
 0x193   : > { %v1617_v54 = vpop.f32.mrf.mxu1  ;;  %v5697_v27 = vpop.f32.mrf.mxu3 }
 0x194   : > { %6660 = vst [vmem:[#allocation49_spill] sm:$0xff] %v5697_v27  ;;  %v4446_v54 = vld [vmem:[%s4994_s23 + $0x8c] sm:$0x3]  ;;  %v4891_v27 = vld [vmem:[%s4994_s23 + $0xf0] sm:$0xff] }
 0x199   : > { %v1649_v22 = vpop.f32.mrf.mxu2  ;;  %v5700_v3 = vpop.f32.mrf.mxu0 }
 0x19a   : > { %6661 = vst [vmem:[#allocation50_spill] sm:$0xff] %v5700_v3 }
 0x19b   : > { %v5703_v8 = vpop.f32.mrf.mxu1  ;;  %v1681_v31 = vpop.f32.mrf.mxu3 }
 0x19c   : > { %6662 = vst [vmem:[#allocation51_spill] sm:$0xff] %v5703_v8  ;;  %4550 = vmatmul.msk.bf16.vlgmr.msra.gmra.mxu0 %vm357_vm1, %v4880_v40  ;;  %v4440_v40 = vld [vmem:[%s4994_s23 + $0x74] sm:$0x3] }
 0x19d   : > { %2563 = vmatpush.bf16.msra.mxu0 %v5470_v20 }
 0x19e   : > { %4556 = vmatmul.msk.bf16.vlgmr.msra.gmra.mxu1 %vm357_vm1, %v4881_v1  ;;  %4562 = vmatmul.msk.bf16.vlgmr.msra.gmra.mxu2 %vm357_vm1, %v4882_v52  ;;  %v2294_v1 = vunpack.c.l.b16 %v4440_v40 }
 0x19f   : > { %2595 = vmatpush.bf16.msra.mxu1 %v5470_v20  ;;  %2627 = vmatpush.bf16.msra.mxu2 %v5470_v20 }
 0x1a0   : > { %4568 = vmatmul.msk.bf16.vlgmr.msra.gmra.mxu3 %vm357_vm1, %v4883_v21  ;;  %v2326_v21 = vunpack.c.l.b16 %v4443_v49 }
 0x1a1   : > { %v5714_v22 = vpop.f32.mrf.mxu2  ;;  %v5716_v31 = vpop.f32.mrf.mxu0  ;;  %2659 = vmatpush.bf16.msra.mxu3 %v5470_v20  ;;  %2564 = vmatpush.bf16.msra.mxu0 %v5490_v24  ;;  %v2358_v20 = vunpack.c.l.b16 %v4446_v54 }
 0x1a2   : > { %6663 = vst [vmem:[#allocation52_spill] sm:$0xff] %v5714_v22  ;;  %v4449_v22 = vld [vmem:[%s4994_s23 + $0x98] sm:$0x3]  ;;  %v2328_v3 = vpack.c.b16 %v2326_v21, %v2326_v21 }
 0x1a3   : > { %6664 = vst [vmem:[#allocation53_spill] sm:$0xff] %v5716_v31  ;;  %v5721_v23 = vpop.f32.mrf.mxu1  ;;  %2596 = vmatpush.bf16.msra.mxu1 %v5490_v24  ;;  %v5725_v52 = vpop.f32.mrf.mxu3  ;;  %2628 = vmatpush.bf16.msra.mxu2 %v5490_v24  ;;  %v2390_v31 = vunpack.c.l.b16 %v4449_v22  ;;  %v2360_v40 = vpack.c.b16 %v2358_v20, %v2358_v20  ;;  %v4884_v20 = vld [vmem:[%s4994_s23 + $0x9c] sm:$0xff] }
 0x1a4   : > { %6665 = vst [vmem:[#allocation54_spill] sm:$0xff] %v5721_v23  ;;  %v2296_v23 = vpack.c.b16 %v2294_v1, %v2294_v1 }
 0x1a5   : > { %6666 = vst [vmem:[#allocation55_spill] sm:$0xff] %v5725_v52  ;;  %2660 = vmatpush.bf16.msra.mxu3 %v5490_v24  ;;  %2565 = vmatpush.bf16.msra.mxu0 %v5512_v12  ;;  %v2392_v22 = vpack.c.b16 %v2390_v31, %v2390_v31 }
 0x1a7   : > { %2597 = vmatpush.bf16.msra.mxu1 %v5512_v12  ;;  %2629 = vmatpush.bf16.msra.mxu2 %v5512_v12 }
 0x1a9   : > { %v5734_v8 = vpop.f32.mrf.mxu2  ;;  %v5736_v52 = vpop.f32.mrf.mxu0  ;;  %2661 = vmatpush.bf16.msra.mxu3 %v5512_v12  ;;  %2566 = vmatpush.bf16.msra.mxu0 %v5525_v4 }
 0x1aa   : > { %6667 = vst [vmem:[#allocation56_spill] sm:$0xff] %v5734_v8 }
 0x1ab   : > { %6668 = vst [vmem:[#allocation57_spill] sm:$0xff] %v5736_v52  ;;  %v5740_v24 = vpop.f32.mrf.mxu1  ;;  %2598 = vmatpush.bf16.msra.mxu1 %v5525_v4  ;;  %v5743_v49 = vpop.f32.mrf.mxu3  ;;  %2630 = vmatpush.bf16.msra.mxu2 %v5525_v4 }
 0x1ac   : > { %6669 = vst [vmem:[#allocation58_spill] sm:$0xff] %v5740_v24  ;;  %4551 = vmatmul.msk.bf16.gmra.mxu0 %vm357_vm1, %v2296_v23 }
 0x1ad   : > { %6670 = vst [vmem:[#allocation59_spill] sm:$0xff] %v5743_v49  ;;  %2662 = vmatpush.bf16.msra.mxu3 %v5525_v4  ;;  %v4886_v4 = vld [vmem:[%s4994_s23 + $0xb4] sm:$0xff] }
 0x1ae   : > { %4557 = vmatmul.msk.bf16.gmra.mxu1 %vm357_vm1, %v2328_v3  ;;  %4563 = vmatmul.msk.bf16.gmra.mxu2 %vm357_vm1, %v2360_v40  ;;  %v4885_v3 = vld [vmem:[%s4994_s23 + $0xa8] sm:$0xff] }
 0x1b0   : > { %4569 = vmatmul.msk.bf16.gmra.mxu3 %vm357_vm1, %v2392_v22  ;;  %v4887_v22 = vld [vmem:[%s4994_s23 + $0xc0] sm:$0xff] }
 0x1b1   : > { %v5751_v12 = vpop.f32.mrf.mxu2  ;;  %v1713_v54 = vpop.f32.mrf.mxu0 }
 0x1b2   : > { %6671 = vst [vmem:[#allocation60_spill] sm:$0xff] %v5751_v12 }
 0x1b3   : > { %v1745_v1 = vpop.f32.mrf.mxu1  ;;  %v5753_v21 = vpop.f32.mrf.mxu3 }
 0x1b4   : > { %6672 = vst [vmem:[#allocation61_spill] sm:$0xff] %v5753_v21 }
 0x1b9   : > { %v1777_v24 = vpop.f32.mrf.mxu2  ;;  %v5756_v31 = vpop.f32.mrf.mxu0 }
 0x1ba   : > { %6673 = vst [vmem:[#allocation62_spill] sm:$0xff] %v5756_v31  ;;  %v5770_v24 = vld [vmem:[%s6610_s1 + $0x78] sm:$0xff] }
 0x1bb   : > { %v5759_v23 = vpop.f32.mrf.mxu1  ;;  %v1809_v40 = vpop.f32.mrf.mxu3 }
 0x1bc   : > { %6674 = vst [vmem:[#allocation63_spill] sm:$0xff] %v5759_v23  ;;  %4574 = vmatmul.msk.bf16.vlgmr.msrb.gmra.mxu0 %vm357_vm1, %v4884_v20  ;;  %v4452_v40 = vld [vmem:[%s4994_s23 + $0xa4] sm:$0x3]  ;;  %v4455_v20 = vld [vmem:[%s4994_s23 + $0xb0] sm:$0x3] }
 0x1bd   : > { %2859 = vmatpush.bf16.msrb.mxu0 %v5770_v24 }
 0x1be   : > { %4580 = vmatmul.msk.bf16.vlgmr.msrb.gmra.mxu1 %vm357_vm1, %v4885_v3  ;;  %4586 = vmatmul.msk.bf16.vlgmr.msrb.gmra.mxu2 %vm357_vm1, %v4886_v4  ;;  %v4458_v4 = vld [vmem:[%s4994_s23 + $0xbc] sm:$0x3] }
 0x1bf   : > { %2953 = vmatpush.bf16.msrb.mxu2 %v5770_v24  ;;  %2906 = vmatpush.bf16.msrb.mxu1 %v5770_v24  ;;  %v2486_v31 = vunpack.c.l.b16 %v4458_v4 }
 0x1c0   : > { %4592 = vmatmul.msk.bf16.vlgmr.msrb.gmra.mxu3 %vm357_vm1, %v4887_v22  ;;  %v2422_v22 = vunpack.c.l.b16 %v4452_v40 }
 0x1c1   : > { %v5772_v54 = vpop.f32.mrf.mxu2  ;;  %v5774_v1 = vpop.f32.mrf.mxu0  ;;  %3000 = vmatpush.bf16.msrb.mxu3 %v5770_v24 }
 0x1c2   : > { %6675 = vst [vmem:[#allocation64_spill] sm:$0xff] %v5772_v54  ;;  %v2454_v54 = vunpack.c.l.b16 %v4455_v20  ;;  %v2488_v20 = vpack.c.b16 %v2486_v31, %v2486_v31 }
 0x1c3   : > { %6676 = vst [vmem:[#allocation65_spill] sm:$0xff] %v5774_v1  ;;  %v5777_v23 = vpop.f32.mrf.mxu1  ;;  %v5782_v3 = vpop.f32.mrf.mxu3  ;;  %v5790_v1 = vld [vmem:[%s6610_s1 + $0x70] sm:$0xff] }
 0x1c4   : > { %6677 = vst [vmem:[#allocation66_spill] sm:$0xff] %v5777_v23  ;;  %v4461_v23 = vld [vmem:[%s4994_s23 + $0xc8] sm:$0x3]  ;;  %2954 = vmatpush.bf16.msrb.mxu2 %v5790_v1  ;;  %2860 = vmatpush.bf16.msrb.mxu0 %v5790_v1  ;;  %v2456_v49 = vpack.c.b16 %v2454_v54, %v2454_v54 }
 0x1c5   : > { %6678 = vst [vmem:[#allocation67_spill] sm:$0xff] %v5782_v3  ;;  %3001 = vmatpush.bf16.msrb.mxu3 %v5790_v1  ;;  %2907 = vmatpush.bf16.msrb.mxu1 %v5790_v1  ;;  %v2424_v3 = vpack.c.b16 %v2422_v22, %v2422_v22  ;;  %v2518_v21 = vunpack.c.l.b16 %v4461_v23  ;;  %v5812_v23 = vld [vmem:[%s6610_s1 + $0x68] sm:$0xff] }
 0x1c7   : > { %v2520_v4 = vpack.c.b16 %v2518_v21, %v2518_v21  ;;  %v5825_v21 = vld [vmem:[%s6610_s1 + $0x60] sm:$0xff] }
 0x1c8   : > { %2955 = vmatpush.bf16.msrb.mxu2 %v5812_v23  ;;  %2861 = vmatpush.bf16.msrb.mxu0 %v5812_v23 }
 0x1c9   : > { %v5797_v12 = vpop.f32.mrf.mxu2  ;;  %v5799_v40 = vpop.f32.mrf.mxu0  ;;  %3002 = vmatpush.bf16.msrb.mxu3 %v5812_v23  ;;  %2908 = vmatpush.bf16.msrb.mxu1 %v5812_v23 }
 0x1ca   : > { %6679 = vst [vmem:[#allocation68_spill] sm:$0xff] %v5797_v12 }
 0x1cb   : > { %6680 = vst [vmem:[#allocation69_spill] sm:$0xff] %v5799_v40  ;;  %v5801_v52 = vpop.f32.mrf.mxu1  ;;  %v5803_v8 = vpop.f32.mrf.mxu3 }
 0x1cc   : > { %6681 = vst [vmem:[#allocation70_spill] sm:$0xff] %v5801_v52  ;;  %4575 = vmatmul.msk.bf16.gmra.mxu0 %vm357_vm1, %v2424_v3  ;;  %2956 = vmatpush.bf16.msrb.mxu2 %v5825_v21  ;;  %v1323_v3 = vadd.f32 %v5532_v7, %v5231_v5  ;;  %v1387_v5 = vadd.f32 %v5546_v62, %v5246_v13 }
 0x1cd   : > { %6682 = vst [vmem:[#allocation71_spill] sm:$0xff] %v5803_v8  ;;  %3003 = vmatpush.bf16.msrb.mxu3 %v5825_v21  ;;  %2862 = vmatpush.bf16.msrb.mxu0 %v5825_v21  ;;  %v4890_v8 = vld [vmem:[%s4994_s23 + $0xe4] sm:$0xff]  ;;  %v1357_v7 = vadd.f32 %v5553_v57, %v5252_v16  ;;  %v1419_v13 = vadd.f32 %v5557_v46, %v5255_v17 }
 0x1ce   : > { %4581 = vmatmul.msk.bf16.gmra.mxu1 %vm357_vm1, %v2456_v49  ;;  %4587 = vmatmul.msk.bf16.gmra.mxu2 %vm357_vm1, %v2488_v20  ;;  %v4888_v20 = vld [vmem:[%s4994_s23 + $0xcc] sm:$0xff] }
 0x1cf   : > { %2909 = vmatpush.bf16.msrb.mxu1 %v5825_v21 }
 0x1d0   : > { %4593 = vmatmul.msk.bf16.gmra.mxu3 %vm357_vm1, %v2520_v4  ;;  %v1355_v4 = vadd.f32 %v5535_v38, %v5234_v9  ;;  %v1325_v9 = vadd.f32 %v5548_v0, %v5248_v14 }
 0x1d1   : > { %v5814_v54 = vpop.f32.mrf.mxu2  ;;  %v1841_v31 = vpop.f32.mrf.mxu0 }
 0x1d2   : > { %6683 = vst [vmem:[#allocation72_spill] sm:$0xff] %v5814_v54 }
 0x1d3   : > { %v1873_v22 = vpop.f32.mrf.mxu1  ;;  %v5818_v49 = vpop.f32.mrf.mxu3 }
 0x1d4   : > { %6684 = vst [vmem:[#allocation73_spill] sm:$0xff] %v5818_v49  ;;  %v4889_v49 = vld [vmem:[%s4994_s23 + $0xd8] sm:$0xff] }
 0x1d9   : > { %v1905_v31 = vpop.f32.mrf.mxu2  ;;  %v2056_v22 = vpop.f32.mrf.mxu0 }
 0x1da   : > { %v5837_v54 = vadd.f32 %v2056_v22, %v1323_v3  ;;  %v4473_v3 = vld [vmem:[%s4994_s23 + $0xf8] sm:$0x3]  ;;  %v4623_v31 = vld [vmem:[%s4994_s23 + $0x20] sm:$0x7]  ;;  %v1389_v22 = vadd.f32 %v5566_v60, %v5266_v25 }
 0x1db   : > { %v2088_v52 = vpop.f32.mrf.mxu1  ;;  %v1937_v40 = vpop.f32.mrf.mxu3 }
 0x1dc   : > { %v5840_v12 = vadd.f32 %v2088_v52, %v1355_v4  ;;  %4598 = vmatmul.msk.bf16.vlgmr.msra.gmra.mxu0 %vm357_vm1, %v4888_v20  ;;  %v4470_v40 = vld [vmem:[%s4994_s23 + $0xec] sm:$0x3]  ;;  %v4620_v4 = vld [vmem:[%s4994_s23 + $0x14] sm:$0x7] }
 0x1dd   : > { %3047 = vmatpush.bf16.msra.mxu0 %v5770_v24  ;;  %v2614_v20 = vunpack.c.l.b16 %v4470_v40  ;;  %v2807_v25 = vunpack.c.l.b16 %v4620_v4 }
 0x1de   : > { %4604 = vmatmul.msk.bf16.vlgmr.msra.gmra.mxu1 %vm357_vm1, %v4889_v49  ;;  %4610 = vmatmul.msk.bf16.vlgmr.msra.gmra.mxu2 %vm357_vm1, %v4890_v8  ;;  %v4464_v8 = vld [vmem:[%s4994_s23 + $0xd4] sm:$0x3] }
 0x1df   : > { %3094 = vmatpush.bf16.msra.mxu1 %v5770_v24  ;;  %3141 = vmatpush.bf16.msra.mxu2 %v5770_v24  ;;  %v2550_v17 = vunpack.c.l.b16 %v4464_v8  ;;  %v1421_v8 = vadd.f32 %v5575_v53, %v5275_v30  ;;  %v2616_v40 = vpack.c.b16 %v2614_v20, %v2614_v20  ;;  %v4897_v30 = vld [vmem:[%s4994_s23 + $0x18] sm:$0xff]  ;;  %v2878_v53 = vunpack.c.l.b16 %v4623_v31  ;;  %v4899_v31 = vld [vmem:[%s4994_s23 + $0x30] sm:$0xff] }
 0x1e0   : > { %4616 = vmatmul.msk.bf16.vlgmr.msra.gmra.mxu3 %vm357_vm1, %v4891_v27  ;;  %v4467_v27 = vld [vmem:[%s4994_s23 + $0xe0] sm:$0x3]  ;;  %v5907_v20 = vpack.c.b16 %v2807_v25, %v2807_v25  ;;  %v1424_v25 = vadd.f32 %v5585_v34, %v5285_v35 }
 0x1e1   : > { %v2120_v38 = vpop.f32.mrf.mxu2  ;;  %v2058_v52 = vpop.f32.mrf.mxu0  ;;  %3188 = vmatpush.bf16.msra.mxu3 %v5770_v24  ;;  %3048 = vmatpush.bf16.msra.mxu0 %v5790_v1  ;;  %v2582_v46 = vunpack.c.l.b16 %v4467_v27 }
 0x1e2   : > { %v5861_v62 = vadd.f32 %v2120_v38, %v1387_v5  ;;  %v5863_v14 = vadd.f32 %v2058_v52, %v1325_v9  ;;  %v1328_v5 = vadd.f32 %v5568_v51, %v5268_v26  ;;  %v2552_v9 = vpack.c.b16 %v2550_v17, %v2550_v17  ;;  %v4896_v38 = vld [vmem:[%s4994_s23 + $0xc] sm:$0xff]  ;;  %v4629_v17 = vld [vmem:[%s4994_s23 + $0x38] sm:$0x7] }
 0x1e3   : > { %v2090_v0 = vpop.f32.mrf.mxu1  ;;  %3095 = vmatpush.bf16.msra.mxu1 %v5790_v1  ;;  %v2152_v16 = vpop.f32.mrf.mxu3  ;;  %3142 = vmatpush.bf16.msra.mxu2 %v5790_v1  ;;  %v4626_v52 = vld [vmem:[%s4994_s23 + $0x2c] sm:$0x7] }
 0x1e4   : > { %v5867_v57 = vadd.f32 %v2090_v0, %v1357_v7  ;;  %v5871_v49 = vadd.f32 %v2152_v16, %v1419_v13  ;;  %v2646_v7 = vunpack.c.l.b16 %v4473_v3  ;;  %v1360_v13 = vadd.f32 %v5572_v36, %v5272_v28 }
 0x1e5   : > { %3189 = vmatpush.bf16.msra.mxu3 %v5790_v1  ;;  %3049 = vmatpush.bf16.msra.mxu0 %v5812_v23  ;;  %v2584_v16 = vpack.c.b16 %v2582_v46, %v2582_v46  ;;  %v4898_v46 = vld [vmem:[%s4994_s23 + $0x24] sm:$0xff]  ;;  %v2925_v3 = vunpack.c.l.b16 %v4626_v52  ;;  %v2884_v52 = vshll.u32 %v4897_v30, 16 }
 0x1e6   : > { %6685 = vst [vmem:[#allocation74_spill] sm:$0xff] %v5871_v49 }
 0x1e7   : > { %3096 = vmatpush.bf16.msra.mxu1 %v5812_v23  ;;  %3143 = vmatpush.bf16.msra.mxu2 %v5812_v23 }
 0x1e9   : > { %v2122_v0 = vpop.f32.mrf.mxu2  ;;  %v2061_v27 = vpop.f32.mrf.mxu0  ;;  %3190 = vmatpush.bf16.msra.mxu3 %v5812_v23  ;;  %3050 = vmatpush.bf16.msra.mxu0 %v5825_v21 }
 0x1ea   : > { %v5892_v26 = vadd.f32 %v2122_v0, %v1389_v22  ;;  %v5894_v51 = vadd.f32 %v2061_v27, %v1328_v5  ;;  %v2648_v22 = vpack.c.b16 %v2646_v7, %v2646_v7  ;;  %v2813_v5 = vshll.u32 %v4896_v38, 16 }
 0x1eb   : > { %v2093_v60 = vpop.f32.mrf.mxu1  ;;  %3097 = vmatpush.bf16.msra.mxu1 %v5825_v21  ;;  %v2154_v28 = vpop.f32.mrf.mxu3  ;;  %3144 = vmatpush.bf16.msra.mxu2 %v5825_v21  ;;  %v2972_v0 = vunpack.c.l.b16 %v4629_v17  ;;  %v5914_v27 = vpack.c.b16 %v2925_v3, %v2925_v3  ;;  %v2811_v7 = vshrl.u32 %v4896_v38, 16  ;;  %v2929_v38 = vshrl.u32 %v4898_v46, 16 }
 0x1ec   : > { %6686 = vst [vmem:[#allocation75_spill] sm:$0xff] %v5892_v26  ;;  %v5899_v36 = vadd.f32 %v2093_v60, %v1360_v13  ;;  %v5903_v4 = vadd.f32 %v2154_v28, %v1421_v8  ;;  %4599 = vmatmul.msk.bf16.gmra.mxu0 %vm357_vm1, %v2552_v9  ;;  %v5912_v13 = vpack.c.b16 %v2878_v53, %v2878_v53  ;;  %v2931_v8 = vshll.u32 %v4898_v46, 16 }
 0x1ed   : > { %6687 = vst [vmem:[#allocation76_spill] sm:$0xff] %v5894_v51  ;;  %3191 = vmatpush.bf16.msra.mxu3 %v5825_v21  ;;  %v1392_v9 = vadd.f32 %v5583_v10, %v5283_v32  ;;  %v5922_v53 = vpack.c.b16 %v2972_v0, %v2972_v0  ;;  %v2978_v28 = vshll.u32 %v4899_v31, 16  ;;  %v2886_v51 = vrot.slane %v2884_v52, 1 }
 0x1ee   : > { %6688 = vst [vmem:[#allocation77_spill] sm:$0xff] %v5899_v36  ;;  %4605 = vmatmul.msk.bf16.gmra.mxu1 %vm357_vm1, %v2584_v16  ;;  %4611 = vmatmul.msk.bf16.gmra.mxu2 %vm357_vm1, %v2616_v40  ;;  %v2815_v16 = vrot.slane %v2813_v5, 1  ;;  %v2818_v40 = vshll.u32 %v5907_v20, 16  ;;  %v2882_v36 = vshrl.u32 %v4897_v30, 16  ;;  %v2889_v32 = vshll.u32 %v5912_v13, 16 }
 0x1ef   : > { %6689 = vst [vmem:[#allocation78_spill] sm:$0xff] %v5903_v4  ;;  %v2936_v5 = vshll.u32 %v5914_v27, 16  ;;  %v2976_v26 = vshrl.u32 %v4899_v31, 16  ;;  %v2980_v0 = vrot.slane %v2978_v28, 1  ;;  %v2983_v49 = vshll.u32 %v5922_v53, 16 }
 0x1f0   : > { %4617 = vmatmul.msk.bf16.gmra.mxu3 %vm357_vm1, %v2648_v22  ;;  %v2933_v22 = vrot.slane %v2931_v8, 1  ;;  %v2816_v34 = vor.u32 %v2815_v16, %v2811_v7  ;;  %v1451_v52 = vadd.f32 %v5588_v48, %v5288_v37  ;;  %v1483_v46 = vadd.f32 %v5591_v2, %v5291_v39 }
 0x1f1   : > { %v2125_v60 = vpop.f32.mrf.mxu2  ;;  %v2063_v17 = vpop.f32.mrf.mxu0  ;;  %v5931_v30 = vrot.slane %v2936_v5, 1  ;;  %v2981_v16 = vor.u32 %v2980_v0, %v2976_v26  ;;  %v5938_v31 = vrot.slane %v2983_v49, 1  ;;  %v1515_v48 = vadd.f32 %v5602_v19, %v5302_v42  ;;  %v4632_v5 = vld [vmem:[%s4994_s23 + $0x44] sm:$0x7] }
 0x1f2   : > { %v5924_v3 = vadd.f32 %v2125_v60, %v1392_v9  ;;  %v2820_v17 = vrot.slane %v2818_v40, 1  ;;  %v2887_v9 = vor.u32 %v2886_v51, %v2882_v36  ;;  %v2891_v60 = vrot.slane %v2889_v32, 1 }
 0x1f3   : > { %v2095_v4 = vpop.f32.mrf.mxu1  ;;  %v2157_v10 = vpop.f32.mrf.mxu3  ;;  %v2986_v39 = vsel %vm317_vm0, %v2981_v16, %v5938_v31  ;;  %v1453_v2 = vadd.f32 %v5604_v6, %v5304_v43  ;;  %v1485_v49 = vadd.f32 %v5609_v33, %v5309_v45  ;;  %v1517_v0 = vadd.f32 %v5622_v50, %v5322_v55 }
 0x1f4   : > { %v5928_v35 = vadd.f32 %v2157_v10, %v1424_v25  ;;  %v2934_v4 = vor.u32 %v2933_v22, %v2929_v38  ;;  %v2821_v7 = vsel %vm317_vm0, %v2816_v34, %v2820_v17  ;;  %v2892_v36 = vsel %vm317_vm0, %v2887_v9, %v2891_v60  ;;  %v4635_v34 = vld [vmem:[%s4994_s23 + $0x50] sm:$0x7] }
 0x1f5   : > { %v1547_v38 = vadd.f32 %v5613_v18, %v5313_v47  ;;  %v2822_v22 = vshrl.u32 %v5907_v20, 16  ;;  %v2893_v47 = vshrl.u32 %v5912_v13, 16  ;;  %v2940_v18 = vshrl.u32 %v5914_v27, 16 }
 0x1f6   : > { %v2939_v37 = vsel %vm317_vm0, %v2934_v4, %v5931_v30  ;;  %v1456_v20 = vadd.f32 %v5624_v44, %v5324_v56  ;;  %v2987_v13 = vshrl.u32 %v5922_v53, 16  ;;  %v4900_v4 = vld [vmem:[%s4994_s23 + $0x3c] sm:$0xff]  ;;  %v1549_v27 = vadd.f32 %v5631_v41, %v5331_v61  ;;  %v4901_v61 = vld [vmem:[%s4994_s23 + $0x48] sm:$0xff] }
 0x1f7   : > { %v2824_v9 = vor.u32 %v2822_v22, %v2820_v17  ;;  %v2895_v55 = vor.u32 %v2893_v47, %v2891_v60  ;;  %v3019_v50 = vunpack.c.l.b16 %v4632_v5  ;;  %v2942_v17 = vor.u32 %v2940_v18, %v5931_v30 }
 0x1f8   : > { %v3066_v41 = vunpack.c.l.b16 %v4635_v34  ;;  %v3025_v30 = vshll.u32 %v4900_v4, 16 }
 0x1f9   : > { %v2127_v8 = vpop.f32.mrf.mxu2  ;;  %v2184_v25 = vpop.f32.mrf.mxu0 }
 0x1fa   : > { %v5940_v40 = vadd.f32 %v2184_v25, %v1451_v52  ;;  %v4638_v52 = vld [vmem:[%s4994_s23 + $0x5c] sm:$0x7] }
 0x1fb   : > { %v2216_v51 = vpop.f32.mrf.mxu1  ;;  %v2159_v28 = vpop.f32.mrf.mxu3  ;;  %v3113_v16 = vunpack.c.l.b16 %v4638_v52 }
 0x1fc   : > { %v5943_v32 = vadd.f32 %v2216_v51, %v1483_v46  ;;  %4706 = vmatmul.msk.bf16.vlgmr.msrb.gmra.mxu0 %vm357_vm1, %v2821_v7  ;;  %v1488_v46 = vadd.f32 %v5628_v29, %v5328_v59  ;;  %v4641_v59 = vld [vmem:[%s4994_s23 + $0x68] sm:$0x7]  ;;  %v4902_v7 = vld [vmem:[%s4994_s23 + $0x54] sm:$0xff]  ;;  %v6015_v28 = vpack.c.b16 %v3019_v50, %v3019_v50 }
 0x1fd   : > { %3235 = vmatpush.bf16.msrb.mxu0 %v5770_v24 }
 0x1fe   : > { %4712 = vmatmul.msk.bf16.vlgmr.msrb.gmra.mxu1 %vm357_vm1, %v2892_v36  ;;  %4718 = vmatmul.msk.bf16.vlgmr.msrb.gmra.mxu2 %vm357_vm1, %v2939_v37  ;;  %v2989_v36 = vor.u32 %v2987_v13, %v5938_v31  ;;  %v4903_v37 = vld [vmem:[%s4994_s23 + $0x60] sm:$0xff]  ;;  %v1520_v31 = vadd.f32 %v5639_v58, %v5339_v63  ;;  %v3030_v18 = vshll.u32 %v6015_v28, 16 }
 0x1ff   : > { %3282 = vmatpush.bf16.msrb.mxu1 %v5770_v24  ;;  %3329 = vmatpush.bf16.msrb.mxu2 %v5770_v24  ;;  %v3166_v34 = vshll.u32 %v4903_v37, 16 }
 0x200   : > { %4724 = vmatmul.msk.bf16.vlgmr.msrb.gmra.mxu3 %vm357_vm1, %v2986_v39  ;;  %v3160_v39 = vunpack.c.l.b16 %v4641_v59  ;;  %v6691_v59 = vld [vmem:[#allocation2_spill] sm:$0xff] }
 0x201   : > { %v2248_v26 = vpop.f32.mrf.mxu2  ;;  %v2186_v10 = vpop.f32.mrf.mxu0  ;;  %3376 = vmatpush.bf16.msrb.mxu3 %v5770_v24  ;;  %3236 = vmatpush.bf16.msrb.mxu0 %v5790_v1 }
 0x202   : > { %v5966_v42 = vadd.f32 %v2248_v26, %v1515_v48  ;;  %v5968_v19 = vadd.f32 %v2186_v10, %v1453_v2  ;;  %v6020_v48 = vpack.c.b16 %v3066_v41, %v3066_v41  ;;  %v3072_v2 = vshll.u32 %v4901_v61, 16 }
 0x203   : > { %v2218_v43 = vpop.f32.mrf.mxu1  ;;  %3283 = vmatpush.bf16.msrb.mxu1 %v5790_v1  ;;  %v2280_v6 = vpop.f32.mrf.mxu3  ;;  %3330 = vmatpush.bf16.msrb.mxu2 %v5790_v1  ;;  %v3119_v26 = vshll.u32 %v4902_v7, 16  ;;  %v3023_v10 = vshrl.u32 %v4900_v4, 16  ;;  %v6030_v5 = vpack.c.b16 %v3160_v39, %v3160_v39  ;;  %v3117_v4 = vshrl.u32 %v4902_v7, 16  ;;  %v6693_v7 = vld [vmem:[#allocation3_spill] sm:$0xff] }
 0x204   : > { %v5971_v45 = vadd.f32 %v2218_v43, %v1485_v49  ;;  %v5974_v33 = vadd.f32 %v2280_v6, %v1547_v38  ;;  %v6022_v49 = vpack.c.b16 %v3113_v16, %v3113_v16  ;;  %v3027_v38 = vrot.slane %v3025_v30, 1  ;;  %v6690_v43 = vld [vmem:[#allocation38_spill] sm:$0xff] }
 0x205   : > { %3377 = vmatpush.bf16.msrb.mxu3 %v5790_v1  ;;  %3237 = vmatpush.bf16.msrb.mxu0 %v5812_v23  ;;  %v1552_v6 = vadd.f32 %v6690_v43, %v5341_v15  ;;  %v3074_v13 = vrot.slane %v3072_v2, 1  ;;  %v3077_v63 = vshll.u32 %v6020_v48, 16  ;;  %v3121_v52 = vrot.slane %v3119_v26, 1 }
 0x206   : > { %v3171_v50 = vshll.u32 %v6030_v5, 16 }
 0x207   : > { %3284 = vmatpush.bf16.msrb.mxu1 %v5812_v23  ;;  %3331 = vmatpush.bf16.msrb.mxu2 %v5812_v23  ;;  %v3122_v41 = vor.u32 %v3121_v52, %v3117_v4  ;;  %v6699_v4 = vld [vmem:[#allocation6_spill] sm:$0xff]  ;;  %v6700_v52 = vld [vmem:[#allocation43_spill] sm:$0xff] }
 0x209   : > { %v2250_v8 = vpop.f32.mrf.mxu2  ;;  %v2189_v25 = vpop.f32.mrf.mxu0  ;;  %3378 = vmatpush.bf16.msrb.mxu3 %v5812_v23  ;;  %3238 = vmatpush.bf16.msrb.mxu0 %v5825_v21 }
 0x20a   : > { %v5998_v56 = vadd.f32 %v2250_v8, %v1517_v0  ;;  %v6000_v44 = vadd.f32 %v2189_v25, %v1456_v20  ;;  %v3032_v8 = vrot.slane %v3030_v18, 1  ;;  %v3164_v25 = vshrl.u32 %v4903_v37, 16 }
 0x20b   : > { %v2221_v53 = vpop.f32.mrf.mxu1  ;;  %3285 = vmatpush.bf16.msrb.mxu1 %v5825_v21  ;;  %v2282_v29 = vpop.f32.mrf.mxu3  ;;  %3332 = vmatpush.bf16.msrb.mxu2 %v5825_v21  ;;  %v6046_v37 = vrot.slane %v3171_v50, 1  ;;  %v6702_v50 = vld [vmem:[#allocation44_spill] sm:$0xff] }
 0x20c   : > { %v6006_v60 = vadd.f32 %v2221_v53, %v1488_v46  ;;  %v6010_v51 = vadd.f32 %v2282_v29, %v1549_v27  ;;  %4707 = vmatmul.msk.bf16.gmra.mxu0 %vm357_vm1, %v2824_v9  ;;  %v3070_v9 = vshrl.u32 %v4901_v61, 16  ;;  %v3124_v27 = vshll.u32 %v6022_v49, 16  ;;  %v6692_v29 = vld [vmem:[#allocation39_spill] sm:$0xff] }
 0x20d   : > { %3379 = vmatpush.bf16.msrb.mxu3 %v5825_v21  ;;  %v3028_v46 = vor.u32 %v3027_v38, %v3023_v10  ;;  %v1579_v16 = vadd.f32 %v6692_v29, %v6691_v59 }
 0x20e   : > { %4713 = vmatmul.msk.bf16.gmra.mxu1 %vm357_vm1, %v2895_v55  ;;  %4719 = vmatmul.msk.bf16.gmra.mxu2 %vm357_vm1, %v2942_v17  ;;  %v3168_v55 = vrot.slane %v3166_v34, 1  ;;  %v3075_v53 = vor.u32 %v3074_v13, %v3070_v9  ;;  %v3079_v17 = vrot.slane %v3077_v63, 1  ;;  %v6039_v61 = vrot.slane %v3124_v27, 1  ;;  %v6695_v34 = vld [vmem:[#allocation4_spill] sm:$0xff]  ;;  %v6697_v13 = vld [vmem:[#allocation5_spill] sm:$0xff]  ;;  %v6698_v63 = vld [vmem:[#allocation42_spill] sm:$0xff] }
 0x20f   : > { %v3033_v26 = vsel %vm317_vm0, %v3028_v46, %v3032_v8  ;;  %v1613_v27 = vadd.f32 %v6700_v52, %v6699_v4  ;;  %v6710_v4 = vld [vmem:[#allocation47_spill] sm:$0xff] }
 0x210   : > { %4725 = vmatmul.msk.bf16.gmra.mxu3 %vm357_vm1, %v2989_v36  ;;  %v6694_v36 = vld [vmem:[#allocation40_spill] sm:$0xff]  ;;  %v3080_v43 = vsel %vm317_vm0, %v3075_v53, %v3079_v17 }
 0x211   : > { %v2253_v22 = vpop.f32.mrf.mxu2  ;;  %v2191_v47 = vpop.f32.mrf.mxu0  ;;  %v1611_v30 = vadd.f32 %v6694_v36, %v6693_v7 }
 0x212   : > { %v6032_v0 = vadd.f32 %v2253_v22, %v1520_v31  ;;  %v3169_v31 = vor.u32 %v3168_v55, %v3164_v25  ;;  %v3127_v47 = vsel %vm317_vm0, %v3122_v41, %v6039_v61  ;;  %v6701_v55 = vld [vmem:[#allocation7_spill] sm:$0xff] }
 0x213   : > { %v2223_v20 = vpop.f32.mrf.mxu1  ;;  %v2285_v58 = vpop.f32.mrf.mxu3  ;;  %v1675_v53 = vadd.f32 %v6702_v50, %v6701_v55 }
 0x214   : > { %v6036_v15 = vadd.f32 %v2285_v58, %v1552_v6  ;;  %v3174_v18 = vsel %vm317_vm0, %v3169_v31, %v6046_v37  ;;  %v6696_v20 = vld [vmem:[#allocation41_spill] sm:$0xff]  ;;  %v1581_v58 = vadd.f32 %v6698_v63, %v6697_v13  ;;  %v4647_v31 = vld [vmem:[%s4994_s23 + $0x80] sm:$0x7]  ;;  %v6708_v13 = vld [vmem:[#allocation48_spill] sm:$0xff] }
 0x215   : > { %v1643_v9 = vadd.f32 %v6696_v20, %v6695_v34  ;;  %v4904_v20 = vld [vmem:[%s4994_s23 + $0x6c] sm:$0xff] }
 0x219   : > { %v2255_v39 = vpop.f32.mrf.mxu2  ;;  %v2312_v2 = vpop.f32.mrf.mxu0 }
 0x21a   : > { %v6048_v10 = vadd.f32 %v2312_v2, %v1579_v16  ;;  %v3081_v39 = vshrl.u32 %v6020_v48, 16  ;;  %v3128_v2 = vshrl.u32 %v6022_v49, 16  ;;  %v3175_v48 = vshrl.u32 %v6030_v5, 16  ;;  %v6707_v49 = vld [vmem:[#allocation11_spill] sm:$0xff] }
 0x21b   : > { %v2344_v38 = vpop.f32.mrf.mxu1  ;;  %v2287_v6 = vpop.f32.mrf.mxu3  ;;  %v1677_v63 = vadd.f32 %v6708_v13, %v6707_v49 }
 0x21c   : > { %v6051_v22 = vadd.f32 %v2344_v38, %v1611_v30  ;;  %4730 = vmatmul.msk.bf16.vlgmr.msra.gmra.mxu0 %vm357_vm1, %v3033_v26  ;;  %v3034_v30 = vshrl.u32 %v6015_v28, 16  ;;  %v4644_v26 = vld [vmem:[%s4994_s23 + $0x74] sm:$0x7] }
 0x21d   : > { %3423 = vmatpush.bf16.msra.mxu0 %v5770_v24  ;;  %v6703_v38 = vld [vmem:[#allocation8_spill] sm:$0xff]  ;;  %v3207_v55 = vunpack.c.l.b16 %v4644_v26 }
 0x21e   : > { %4736 = vmatmul.msk.bf16.vlgmr.msra.gmra.mxu1 %vm357_vm1, %v3080_v43  ;;  %4742 = vmatmul.msk.bf16.vlgmr.msra.gmra.mxu2 %vm357_vm1, %v3127_v47  ;;  %v6704_v43 = vld [vmem:[#allocation45_spill] sm:$0xff]  ;;  %v3036_v34 = vor.u32 %v3034_v30, %v3032_v8 }
 0x21f   : > { %3470 = vmatpush.bf16.msra.mxu1 %v5770_v24  ;;  %3517 = vmatpush.bf16.msra.mxu2 %v5770_v24  ;;  %v1645_v6 = vadd.f32 %v6704_v43, %v6703_v38  ;;  %v6705_v47 = vld [vmem:[#allocation9_spill] sm:$0xff] }
 0x220   : > { %4748 = vmatmul.msk.bf16.vlgmr.msra.gmra.mxu3 %vm357_vm1, %v3174_v18  ;;  %v6706_v18 = vld [vmem:[#allocation46_spill] sm:$0xff]  ;;  %v4653_v30 = vld [vmem:[%s4994_s23 + $0x98] sm:$0x7] }
 0x221   : > { %v2376_v46 = vpop.f32.mrf.mxu2  ;;  %v2314_v25 = vpop.f32.mrf.mxu0  ;;  %3564 = vmatpush.bf16.msra.mxu3 %v5770_v24  ;;  %3424 = vmatpush.bf16.msra.mxu0 %v5790_v1  ;;  %v1584_v28 = vadd.f32 %v6706_v18, %v6705_v47  ;;  %v3348_v47 = vunpack.c.l.b16 %v4653_v30 }
 0x222   : > { %v6074_v41 = vadd.f32 %v2376_v46, %v1643_v9  ;;  %v6076_v59 = vadd.f32 %v2314_v25, %v1581_v58  ;;  %v4650_v9 = vld [vmem:[%s4994_s23 + $0x8c] sm:$0x7]  ;;  %v6709_v58 = vld [vmem:[#allocation10_spill] sm:$0xff]  ;;  %v3083_v25 = vor.u32 %v3081_v39, %v3079_v17 }
 0x223   : > { %v2346_v29 = vpop.f32.mrf.mxu1  ;;  %3471 = vmatpush.bf16.msra.mxu1 %v5790_v1  ;;  %v2408_v16 = vpop.f32.mrf.mxu3  ;;  %3518 = vmatpush.bf16.msra.mxu2 %v5790_v1  ;;  %v1616_v52 = vadd.f32 %v6710_v4, %v6709_v58  ;;  %v4906_v39 = vld [vmem:[%s4994_s23 + $0x84] sm:$0xff]  ;;  %v3301_v26 = vunpack.c.l.b16 %v4650_v9  ;;  %v6716_v58 = vld [vmem:[#allocation49_spill] sm:$0xff] }
 0x224   : > { %v6079_v7 = vadd.f32 %v2346_v29, %v1613_v27  ;;  %v6082_v36 = vadd.f32 %v2408_v16, %v1675_v53  ;;  %v3130_v53 = vor.u32 %v3128_v2, %v6039_v61  ;;  %v4905_v29 = vld [vmem:[%s4994_s23 + $0x78] sm:$0xff]  ;;  %v3254_v16 = vunpack.c.l.b16 %v4647_v31  ;;  %v4907_v31 = vld [vmem:[%s4994_s23 + $0x90] sm:$0xff] }
 0x225   : > { %3565 = vmatpush.bf16.msra.mxu3 %v5790_v1  ;;  %3425 = vmatpush.bf16.msra.mxu0 %v5812_v23  ;;  %v3213_v61 = vshll.u32 %v4904_v20, 16  ;;  %v6123_v2 = vpack.c.b16 %v3207_v55, %v3207_v55  ;;  %v6130_v9 = vpack.c.b16 %v3301_v26, %v3301_v26  ;;  %v3307_v49 = vshll.u32 %v4906_v39, 16 }
 0x226   : > { %v6128_v18 = vpack.c.b16 %v3254_v16, %v3254_v16  ;;  %v3354_v55 = vshll.u32 %v4907_v31, 16  ;;  %v3258_v16 = vshrl.u32 %v4905_v29, 16 }
 0x227   : > { %3472 = vmatpush.bf16.msra.mxu1 %v5812_v23  ;;  %3519 = vmatpush.bf16.msra.mxu2 %v5812_v23  ;;  %v3215_v13 = vrot.slane %v3213_v61, 1  ;;  %v3309_v26 = vrot.slane %v3307_v49, 1  ;;  %v6721_v49 = vld [vmem:[#allocation51_spill] sm:$0xff] }
 0x229   : > { %v2378_v27 = vpop.f32.mrf.mxu2  ;;  %v2317_v46 = vpop.f32.mrf.mxu0  ;;  %3566 = vmatpush.bf16.msra.mxu3 %v5812_v23  ;;  %3426 = vmatpush.bf16.msra.mxu0 %v5825_v21 }
 0x22a   : > { %v6106_v8 = vadd.f32 %v2378_v27, %v1645_v6  ;;  %v6108_v5 = vadd.f32 %v2317_v46, %v1584_v28  ;;  %v3177_v6 = vor.u32 %v3175_v48, %v6046_v37  ;;  %v3260_v28 = vshll.u32 %v4905_v29, 16 }
 0x22b   : > { %v2349_v50 = vpop.f32.mrf.mxu1  ;;  %3473 = vmatpush.bf16.msra.mxu1 %v5825_v21  ;;  %v2410_v38 = vpop.f32.mrf.mxu3  ;;  %3520 = vmatpush.bf16.msra.mxu2 %v5825_v21  ;;  %v3211_v48 = vshrl.u32 %v4904_v20, 16  ;;  %v3218_v46 = vshll.u32 %v6123_v2, 16  ;;  %v3305_v20 = vshrl.u32 %v4906_v39, 16  ;;  %v6720_v39 = vld [vmem:[#allocation15_spill] sm:$0xff] }
 0x22c   : > { %6711 = vst [vmem:[#allocation38_spill] sm:$0xff] %v6108_v5  ;;  %v6114_v17 = vadd.f32 %v2349_v50, %v1616_v52  ;;  %v6118_v43 = vadd.f32 %v2410_v38, %v1677_v63  ;;  %4731 = vmatmul.msk.bf16.gmra.mxu0 %vm357_vm1, %v3036_v34  ;;  %v6714_v34 = vld [vmem:[#allocation12_spill] sm:$0xff]  ;;  %v6715_v63 = vld [vmem:[#allocation13_spill] sm:$0xff]  ;;  %v3262_v30 = vrot.slane %v3260_v28, 1  ;;  %v6718_v28 = vld [vmem:[#allocation14_spill] sm:$0xff] }
 0x22d   : > { %3567 = vmatpush.bf16.msra.mxu3 %v5825_v21  ;;  %v1648_v37 = vadd.f32 %v5695_v11, %v6714_v34  ;;  %v1680_v4 = vadd.f32 %v6716_v58, %v6715_v63  ;;  %v3265_v11 = vshll.u32 %v6128_v18, 16  ;;  %v3216_v34 = vor.u32 %v3215_v13, %v3211_v48 }
 0x22e   : > { %6712 = vst [vmem:[#allocation2_spill] sm:$0xff] %v6114_v17  ;;  %4737 = vmatmul.msk.bf16.gmra.mxu1 %vm357_vm1, %v3083_v25  ;;  %4743 = vmatmul.msk.bf16.gmra.mxu2 %vm357_vm1, %v3130_v53  ;;  %v6138_v25 = vpack.c.b16 %v3348_v47, %v3348_v47  ;;  %v3220_v63 = vrot.slane %v3218_v46, 1  ;;  %v3352_v58 = vshrl.u32 %v4907_v31, 16  ;;  %v3356_v47 = vrot.slane %v3354_v55, 1 }
 0x22f   : > { %6713 = vst [vmem:[#allocation39_spill] sm:$0xff] %v6118_v43  ;;  %v1739_v17 = vadd.f32 %v6721_v49, %v6720_v39 }
 0x230   : > { %4749 = vmatmul.msk.bf16.gmra.mxu3 %vm357_vm1, %v3177_v6  ;;  %v3312_v6 = vshll.u32 %v6130_v9, 16  ;;  %v3221_v48 = vsel %vm317_vm0, %v3216_v34, %v3220_v63  ;;  %v3357_v13 = vor.u32 %v3356_v47, %v3352_v58  ;;  %v6726_v34 = vld [vmem:[#allocation18_spill] sm:$0xff] }
 0x231   : > { %v2381_v52 = vpop.f32.mrf.mxu2  ;;  %v2319_v27 = vpop.f32.mrf.mxu0  ;;  %v6727_v58 = vld [vmem:[#allocation54_spill] sm:$0xff] }
 0x232   : > { %v6140_v50 = vadd.f32 %v2381_v52, %v1648_v37  ;;  %v3359_v27 = vshll.u32 %v6138_v25, 16  ;;  %v3263_v37 = vor.u32 %v3262_v30, %v3258_v16  ;;  %v3267_v52 = vrot.slane %v3265_v11, 1 }
 0x233   : > { %v2351_v53 = vpop.f32.mrf.mxu1  ;;  %v2413_v38 = vpop.f32.mrf.mxu3  ;;  %v6147_v29 = vrot.slane %v3312_v6, 1  ;;  %v1741_v47 = vadd.f32 %v6727_v58, %v6726_v34  ;;  %v4662_v58 = vld [vmem:[%s4994_s23 + $0xbc] sm:$0x7] }
 0x234   : > { %6717 = vst [vmem:[#allocation3_spill] sm:$0xff] %v6140_v50  ;;  %v6144_v61 = vadd.f32 %v2413_v38, %v1680_v4  ;;  %v3310_v53 = vor.u32 %v3309_v26, %v3305_v20  ;;  %v6719_v50 = vld [vmem:[#allocation50_spill] sm:$0xff]  ;;  %v6154_v31 = vrot.slane %v3359_v27, 1  ;;  %v3268_v16 = vsel %vm317_vm0, %v3263_v37, %v3267_v52  ;;  %v6724_v20 = vld [vmem:[#allocation17_spill] sm:$0xff] }
 0x235   : > { %v1707_v43 = vadd.f32 %v6719_v50, %v6718_v28  ;;  %v6725_v26 = vld [vmem:[#allocation53_spill] sm:$0xff]  ;;  %v6729_v28 = vld [vmem:[#allocation55_spill] sm:$0xff] }
 0x236   : > { %v3315_v50 = vsel %vm317_vm0, %v3310_v53, %v6147_v29  ;;  %v1709_v6 = vadd.f32 %v6725_v26, %v6724_v20  ;;  %v6728_v53 = vld [vmem:[#allocation19_spill] sm:$0xff]  ;;  %v6736_v26 = vld [vmem:[#allocation21_spill] sm:$0xff] }
 0x237   : > { %v1803_v39 = vadd.f32 %v6729_v28, %v6728_v53  ;;  %v6741_v53 = vld [vmem:[#allocation58_spill] sm:$0xff] }
 0x239   : > { %v2383_v5 = vpop.f32.mrf.mxu2  ;;  %v2440_v4 = vpop.f32.mrf.mxu0 }
 0x23a   : > { %v6156_v46 = vadd.f32 %v2440_v4, %v1707_v43  ;;  %v3362_v5 = vsel %vm317_vm0, %v3357_v13, %v6154_v31  ;;  %v6723_v43 = vld [vmem:[#allocation52_spill] sm:$0xff] }
 0x23b   : > { %v2472_v55 = vpop.f32.mrf.mxu1  ;;  %v2415_v30 = vpop.f32.mrf.mxu3 }
 0x23c   : > { %v6159_v11 = vadd.f32 %v2472_v55, %v1739_v17  ;;  %4754 = vmatmul.msk.bf16.vlgmr.msrb.gmra.mxu0 %vm357_vm1, %v3221_v48  ;;  %v6722_v17 = vld [vmem:[#allocation16_spill] sm:$0xff]  ;;  %v3269_v30 = vshrl.u32 %v6128_v18, 16  ;;  %v4908_v18 = vld [vmem:[%s4994_s23 + $0x9c] sm:$0xff] }
 0x23d   : > { %3611 = vmatpush.bf16.msrb.mxu0 %v5770_v24  ;;  %v1771_v38 = vadd.f32 %v6723_v43, %v6722_v17  ;;  %v4659_v17 = vld [vmem:[%s4994_s23 + $0xb0] sm:$0x7] }
 0x23e   : > { %4760 = vmatmul.msk.bf16.vlgmr.msrb.gmra.mxu1 %vm357_vm1, %v3268_v16  ;;  %4766 = vmatmul.msk.bf16.vlgmr.msrb.gmra.mxu2 %vm357_vm1, %v3315_v50  ;;  %v3222_v16 = vshrl.u32 %v6123_v2, 16  ;;  %v3316_v50 = vshrl.u32 %v6130_v9, 16  ;;  %v6734_v43 = vld [vmem:[#allocation20_spill] sm:$0xff]  ;;  %v6738_v9 = vld [vmem:[#allocation23_spill] sm:$0xff] }
 0x23f   : > { %3658 = vmatpush.bf16.msrb.mxu1 %v5770_v24  ;;  %3705 = vmatpush.bf16.msrb.mxu2 %v5770_v24 }
 0x240   : > { %4772 = vmatmul.msk.bf16.vlgmr.msrb.gmra.mxu3 %vm357_vm1, %v3362_v5  ;;  %v4656_v5 = vld [vmem:[%s4994_s23 + $0xa4] sm:$0x7]  ;;  %v3224_v34 = vor.u32 %v3222_v16, %v3220_v63 }
 0x241   : > { %v2504_v27 = vpop.f32.mrf.mxu2  ;;  %v2442_v37 = vpop.f32.mrf.mxu0  ;;  %3752 = vmatpush.bf16.msrb.mxu3 %v5770_v24  ;;  %3612 = vmatpush.bf16.msrb.mxu0 %v5790_v1 }
 0x242   : > { %v6182_v49 = vadd.f32 %v2504_v27, %v1771_v38  ;;  %v6184_v4 = vadd.f32 %v2442_v37, %v1709_v6  ;;  %v6735_v38 = vld [vmem:[#allocation56_spill] sm:$0xff]  ;;  %v6737_v6 = vld [vmem:[#allocation57_spill] sm:$0xff]  ;;  %v6740_v37 = vld [vmem:[#allocation22_spill] sm:$0xff] }
 0x243   : > { %v2474_v48 = vpop.f32.mrf.mxu1  ;;  %3659 = vmatpush.bf16.msrb.mxu1 %v5790_v1  ;;  %v2536_v13 = vpop.f32.mrf.mxu3  ;;  %3706 = vmatpush.bf16.msrb.mxu2 %v5790_v1  ;;  %v1773_v20 = vadd.f32 %v6735_v38, %v6734_v43  ;;  %v1712_v2 = vadd.f32 %v6737_v6, %v6736_v26  ;;  %v1744_v28 = vadd.f32 %v6741_v53, %v6740_v37  ;;  %v3395_v43 = vunpack.c.l.b16 %v4656_v5  ;;  %v4909_v26 = vld [vmem:[%s4994_s23 + $0xa8] sm:$0xff] }
 0x244   : > { %6730 = vst [vmem:[#allocation40_spill] sm:$0xff] %v6182_v49  ;;  %v6187_v55 = vadd.f32 %v2474_v48, %v1741_v47  ;;  %v6190_v24 = vadd.f32 %v2536_v13, %v1803_v39  ;;  %v6739_v47 = vld [vmem:[#allocation59_spill] sm:$0xff]  ;;  %v3271_v13 = vor.u32 %v3269_v30, %v3267_v52  ;;  %v3318_v38 = vor.u32 %v3316_v50, %v6147_v29  ;;  %v4910_v30 = vld [vmem:[%s4994_s23 + $0xb4] sm:$0xff] }
 0x245   : > { %6731 = vst [vmem:[#allocation4_spill] sm:$0xff] %v6184_v4  ;;  %3753 = vmatpush.bf16.msrb.mxu3 %v5790_v1  ;;  %3613 = vmatpush.bf16.msrb.mxu0 %v5812_v23  ;;  %v3363_v1 = vshrl.u32 %v6138_v25, 16  ;;  %v1805_v27 = vadd.f32 %v6739_v47, %v6738_v9  ;;  %v3442_v6 = vunpack.c.l.b16 %v4659_v17  ;;  %v4665_v9 = vld [vmem:[%s4994_s23 + $0xc8] sm:$0x7]  ;;  %v3401_v29 = vshll.u32 %v4908_v18, 16  ;;  %v4911_v17 = vld [vmem:[%s4994_s23 + $0xc0] sm:$0xff] }
 0x246   : > { %6732 = vst [vmem:[#allocation41_spill] sm:$0xff] %v6187_v55  ;;  %v6231_v50 = vpack.c.b16 %v3395_v43, %v3395_v43  ;;  %v3448_v37 = vshll.u32 %v4909_v26, 16  ;;  %v3495_v53 = vshll.u32 %v4910_v30, 16  ;;  %v6753_v55 = vld [vmem:[#allocation27_spill] sm:$0xff] }
 0x247   : > { %6733 = vst [vmem:[#allocation5_spill] sm:$0xff] %v6190_v24  ;;  %3660 = vmatpush.bf16.msrb.mxu1 %v5812_v23  ;;  %3707 = vmatpush.bf16.msrb.mxu2 %v5812_v23 }
 0x249   : > { %v2506_v39 = vpop.f32.mrf.mxu2  ;;  %v2445_v48 = vpop.f32.mrf.mxu0  ;;  %3754 = vmatpush.bf16.msrb.mxu3 %v5812_v23  ;;  %3614 = vmatpush.bf16.msrb.mxu0 %v5825_v21  ;;  %v3489_v23 = vunpack.c.l.b16 %v4662_v58  ;;  %v6236_v58 = vpack.c.b16 %v3442_v6, %v3442_v6 }
 0x24a   : > { %v6214_v63 = vadd.f32 %v2506_v39, %v1773_v20  ;;  %v6216_v25 = vadd.f32 %v2445_v48, %v1712_v2  ;;  %v3365_v20 = vor.u32 %v3363_v1, %v6154_v31  ;;  %v3536_v2 = vunpack.c.l.b16 %v4665_v9  ;;  %v6748_v48 = vld [vmem:[#allocation25_spill] sm:$0xff] }
 0x24b   : > { %v2477_v16 = vpop.f32.mrf.mxu1  ;;  %3661 = vmatpush.bf16.msrb.mxu1 %v5825_v21  ;;  %v2538_v47 = vpop.f32.mrf.mxu3  ;;  %3708 = vmatpush.bf16.msrb.mxu2 %v5825_v21  ;;  %v3399_v1 = vshrl.u32 %v4908_v18, 16  ;;  %v3403_v39 = vrot.slane %v3401_v29, 1  ;;  %v3542_v9 = vshll.u32 %v4911_v17, 16  ;;  %v3493_v18 = vshrl.u32 %v4910_v30, 16  ;;  %v6754_v30 = vld [vmem:[#allocation63_spill] sm:$0xff] }
 0x24c   : > { %6742 = vst [vmem:[#allocation42_spill] sm:$0xff] %v6214_v63  ;;  %v6222_v52 = vadd.f32 %v2477_v16, %v1744_v28  ;;  %v6226_v5 = vadd.f32 %v2538_v47, %v1805_v27  ;;  %4755 = vmatmul.msk.bf16.gmra.mxu0 %vm357_vm1, %v3224_v34  ;;  %v6238_v27 = vpack.c.b16 %v3489_v23, %v3489_v23  ;;  %v6746_v34 = vld [vmem:[#allocation24_spill] sm:$0xff]  ;;  %v3497_v29 = vrot.slane %v3495_v53, 1 }
 0x24d   : > { %6743 = vst [vmem:[#allocation6_spill] sm:$0xff] %v6216_v25  ;;  %3755 = vmatpush.bf16.msrb.mxu3 %v5825_v21  ;;  %v6747_v28 = vld [vmem:[#allocation60_spill] sm:$0xff]  ;;  %v6246_v6 = vpack.c.b16 %v3536_v2, %v3536_v2  ;;  %v3540_v25 = vshrl.u32 %v4911_v17, 16  ;;  %v3544_v2 = vrot.slane %v3542_v9, 1  ;;  %v1867_v53 = vadd.f32 %v6754_v30, %v6753_v55 }
 0x24e   : > { %6744 = vst [vmem:[#allocation43_spill] sm:$0xff] %v6222_v52  ;;  %4761 = vmatmul.msk.bf16.gmra.mxu1 %vm357_vm1, %v3271_v13  ;;  %4767 = vmatmul.msk.bf16.gmra.mxu2 %vm357_vm1, %v3318_v38  ;;  %v1776_v31 = vadd.f32 %v6747_v28, %v6746_v34  ;;  %v6749_v13 = vld [vmem:[#allocation61_spill] sm:$0xff]  ;;  %v3406_v38 = vshll.u32 %v6231_v50, 16  ;;  %v3450_v52 = vrot.slane %v3448_v37, 1  ;;  %v3453_v34 = vshll.u32 %v6236_v58, 16  ;;  %v6751_v37 = vld [vmem:[#allocation26_spill] sm:$0xff] }
 0x24f   : > { %6745 = vst [vmem:[#allocation7_spill] sm:$0xff] %v6226_v5  ;;  %v1808_v43 = vadd.f32 %v6749_v13, %v6748_v48  ;;  %v3446_v5 = vshrl.u32 %v4909_v26, 16  ;;  %v3500_v28 = vshll.u32 %v6238_v27, 16  ;;  %v3404_v13 = vor.u32 %v3403_v39, %v3399_v1  ;;  %v6755_v55 = vld [vmem:[#allocation28_spill] sm:$0xff] }
 0x250   : > { %4773 = vmatmul.msk.bf16.gmra.mxu3 %vm357_vm1, %v3365_v20  ;;  %v3547_v63 = vshll.u32 %v6246_v6, 16  ;;  %v3545_v1 = vor.u32 %v3544_v2, %v3540_v25  ;;  %v6758_v25 = vld [vmem:[#allocation65_spill] sm:$0xff]  ;;  %v6761_v2 = vld [vmem:[#allocation31_spill] sm:$0xff] }
 0x251   : > { %v2509_v16 = vpop.f32.mrf.mxu2  ;;  %v2447_v21 = vpop.f32.mrf.mxu0  ;;  %v3502_v26 = vrot.slane %v3500_v28, 1 }
 0x252   : > { %v6248_v47 = vadd.f32 %v2509_v16, %v1776_v31  ;;  %v3408_v21 = vrot.slane %v3406_v38, 1  ;;  %v3451_v31 = vor.u32 %v3450_v52, %v3446_v5  ;;  %v3455_v16 = vrot.slane %v3453_v34, 1 }
 0x253   : > { %v2479_v23 = vpop.f32.mrf.mxu1  ;;  %v2541_v20 = vpop.f32.mrf.mxu3  ;;  %v3549_v39 = vrot.slane %v3547_v63, 1  ;;  %v6756_v63 = vld [vmem:[#allocation64_spill] sm:$0xff] }
 0x254   : > { %6750 = vst [vmem:[#allocation44_spill] sm:$0xff] %v6248_v47  ;;  %v6252_v48 = vadd.f32 %v2541_v20, %v1808_v43  ;;  %v3498_v23 = vor.u32 %v3497_v29, %v3493_v18  ;;  %v6752_v47 = vld [vmem:[#allocation62_spill] sm:$0xff]  ;;  %v3409_v43 = vsel %vm317_vm0, %v3404_v13, %v3408_v21  ;;  %v3456_v52 = vsel %vm317_vm0, %v3451_v31, %v3455_v16  ;;  %v6762_v31 = vld [vmem:[#allocation67_spill] sm:$0xff] }
 0x255   : > { %v1835_v24 = vadd.f32 %v6752_v47, %v6751_v37  ;;  %v6759_v20 = vld [vmem:[#allocation30_spill] sm:$0xff] }
 0x256   : > { %v3503_v34 = vsel %vm317_vm0, %v3498_v23, %v3502_v26  ;;  %v6760_v18 = vld [vmem:[#allocation66_spill] sm:$0xff]  ;;  %v1931_v23 = vadd.f32 %v6762_v31, %v6761_v2  ;;  %v6772_v2 = vld [vmem:[#allocation71_spill] sm:$0xff] }
 0x257   : > { %v1869_v29 = vadd.f32 %v6760_v18, %v6759_v20  ;;  %v6774_v31 = vld [vmem:[#allocation70_spill] sm:$0xff] }
 0x259   : > { %v2511_v4 = vpop.f32.mrf.mxu2  ;;  %v2568_v49 = vpop.f32.mrf.mxu0 }
 0x25a   : > { %v6260_v17 = vadd.f32 %v2568_v49, %v1835_v24  ;;  %v3550_v4 = vsel %vm317_vm0, %v3545_v1, %v3549_v39  ;;  %v1899_v49 = vadd.f32 %v6756_v63, %v6755_v55  ;;  %v6757_v24 = vld [vmem:[#allocation29_spill] sm:$0xff]  ;;  %v4671_v55 = vld [vmem:[%s4994_s23 + $0xe0] sm:$0x7]  ;;  %v6767_v63 = vld [vmem:[#allocation32_spill] sm:$0xff] }
 0x25b   : > { %v2600_v38 = vpop.f32.mrf.mxu1  ;;  %v2543_v5 = vpop.f32.mrf.mxu3  ;;  %v1837_v47 = vadd.f32 %v6758_v25, %v6757_v24  ;;  %v6769_v25 = vld [vmem:[#allocation33_spill] sm:$0xff] }
 0x25c   : > { %v6263_v9 = vadd.f32 %v2600_v38, %v1867_v53  ;;  %4778 = vmatmul.msk.bf16.vlgmr.msra.gmra.mxu0 %vm357_vm1, %v3409_v43  ;;  %v3457_v5 = vshrl.u32 %v6236_v58, 16 }
 0x25e   : > { %4784 = vmatmul.msk.bf16.vlgmr.msra.gmra.mxu1 %vm357_vm1, %v3456_v52  ;;  %4790 = vmatmul.msk.bf16.vlgmr.msra.gmra.mxu2 %vm357_vm1, %v3503_v34  ;;  %v3410_v52 = vshrl.u32 %v6231_v50, 16  ;;  %v3504_v34 = vshrl.u32 %v6238_v27, 16  ;;  %v6771_v50 = vld [vmem:[#allocation35_spill] sm:$0xff]  ;;  %v6773_v27 = vld [vmem:[#allocation34_spill] sm:$0xff] }
 0x25f   : > { %v1933_v58 = vadd.f32 %v6772_v2, %v6771_v50  ;;  %v4914_v50 = vld [vmem:[%s4994_s23 + $0xe4] sm:$0xff] }
 0x260   : > { %4796 = vmatmul.msk.bf16.vlgmr.msra.gmra.mxu3 %vm357_vm1, %v3550_v4  ;;  %v4668_v4 = vld [vmem:[%s4994_s23 + $0xd4] sm:$0x7]  ;;  %v3412_v18 = vor.u32 %v3410_v52, %v3408_v21  ;;  %v4913_v52 = vld [vmem:[%s4994_s23 + $0xd8] sm:$0xff] }
 0x261   : > { %v2632_v28 = vpop.f32.mrf.mxu2  ;;  %v2570_v13 = vpop.f32.mrf.mxu0 }
 0x262   : > { %v6279_v37 = vadd.f32 %v2632_v28, %v1899_v49  ;;  %v6281_v30 = vadd.f32 %v2570_v13, %v1837_v47  ;;  %v6768_v49 = vld [vmem:[#allocation68_spill] sm:$0xff]  ;;  %v6770_v47 = vld [vmem:[#allocation69_spill] sm:$0xff]  ;;  %v4674_v13 = vld [vmem:[%s4994_s23 + $0xec] sm:$0x7] }
 0x263   : > { %v2602_v53 = vpop.f32.mrf.mxu1  ;;  %v2664_v43 = vpop.f32.mrf.mxu3  ;;  %v1901_v24 = vadd.f32 %v6768_v49, %v6767_v63  ;;  %v1840_v20 = vadd.f32 %v6770_v47, %v6769_v25  ;;  %v4912_v28 = vld [vmem:[%s4994_s23 + $0xcc] sm:$0xff]  ;;  %v3459_v63 = vor.u32 %v3457_v5, %v3455_v16  ;;  %v3583_v49 = vunpack.c.l.b16 %v4668_v4 }
 0x264   : > { %6763 = vst [vmem:[#allocation8_spill] sm:$0xff] %v6279_v37  ;;  %v6283_v1 = vadd.f32 %v2602_v53, %v1869_v29  ;;  %v6285_v38 = vadd.f32 %v2664_v43, %v1931_v23  ;;  %v3551_v29 = vshrl.u32 %v6246_v6, 16  ;;  %v1872_v23 = vadd.f32 %v6774_v31, %v6773_v27 }
 0x265   : > { %6764 = vst [vmem:[#allocation45_spill] sm:$0xff] %v6281_v30  ;;  %v3506_v6 = vor.u32 %v3504_v34, %v3502_v26  ;;  %v3630_v47 = vunpack.c.l.b16 %v4671_v55  ;;  %v3677_v2 = vunpack.c.l.b16 %v4674_v13  ;;  %v3589_v5 = vshll.u32 %v4912_v28, 16 }
 0x266   : > { %6765 = vst [vmem:[#allocation9_spill] sm:$0xff] %v6283_v1  ;;  %v4677_v1 = vld [vmem:[%s4994_s23 + $0xf8] sm:$0x7]  ;;  %v3553_v16 = vor.u32 %v3551_v29, %v3549_v39  ;;  %v6316_v4 = vpack.c.b16 %v3583_v49, %v3583_v49  ;;  %v3636_v55 = vshll.u32 %v4913_v52, 16  ;;  %v3683_v13 = vshll.u32 %v4914_v50, 16 }
 0x267   : > { %6766 = vst [vmem:[#allocation46_spill] sm:$0xff] %v6285_v38  ;;  %v3724_v26 = vunpack.c.l.b16 %v4677_v1  ;;  %v6320_v34 = vpack.c.b16 %v3630_v47, %v3630_v47  ;;  %v3587_v39 = vshrl.u32 %v4912_v28, 16  ;;  %v6779_v29 = vld [vmem:[#allocation37_spill] sm:$0xff]  ;;  %v3681_v28 = vshrl.u32 %v4914_v50, 16  ;;  %v6342_v50 = vld [vmem:[%s6611_s2] ss:$0 sm:$0xff] }
 0x269   : > { %v2634_v53 = vpop.f32.mrf.mxu2  ;;  %v2573_v43 = vpop.f32.mrf.mxu0  ;;  %v6330_v49 = vpack.c.b16 %v3724_v26, %v3724_v26 }
 0x26a   : > { %v6303_v38 = vadd.f32 %v2634_v53, %v1901_v24  ;;  %v6305_v25 = vadd.f32 %v2573_v43, %v1840_v20  ;;  %v4915_v24 = vld [vmem:[%s4994_s23 + $0xf0] sm:$0xff]  ;;  %v6322_v20 = vpack.c.b16 %v3677_v2, %v3677_v2  ;;  %v3634_v2 = vshrl.u32 %v4913_v52, 16 }
 0x26b   : > { %v2605_v21 = vpop.f32.mrf.mxu1  ;;  %v2666_v30 = vpop.f32.mrf.mxu3 }
 0x26c   : > { %v6309_v37 = vadd.f32 %v2605_v21, %v1872_v23  ;;  %v6312_v27 = vadd.f32 %v2666_v30, %v1933_v58  ;;  %4779 = vmatmul.msk.bf16.gmra.mxu0 %vm357_vm1, %v3412_v18  ;;  %v6777_v30 = vld [vmem:[#allocation36_spill] sm:$0xff]  ;;  %v3591_v18 = vrot.slane %v3589_v5, 1  ;;  %v6780_v23 = vld [vmem:[#allocation73_spill] sm:$0xff]  ;;  %v3730_v21 = vshll.u32 %v4915_v24, 16 }
 0x26d   : > { %v6778_v58 = vld [vmem:[#allocation72_spill] sm:$0xff]  ;;  %v1936_v53 = vadd.f32 %v6780_v23, %v6779_v29  ;;  %v3685_v5 = vrot.slane %v3683_v13, 1 }
 0x26e   : > { %6775 = vst [vmem:[#allocation11_spill] sm:$0xff] %v6309_v37  ;;  %4785 = vmatmul.msk.bf16.gmra.mxu1 %vm357_vm1, %v3459_v63  ;;  %4791 = vmatmul.msk.bf16.gmra.mxu2 %vm357_vm1, %v3506_v6  ;;  %v1904_v31 = vadd.f32 %v6778_v58, %v6777_v30  ;;  %v3594_v63 = vshll.u32 %v6316_v4, 16  ;;  %v3641_v30 = vshll.u32 %v6320_v34, 16  ;;  %v3688_v58 = vshll.u32 %v6322_v20, 16 }
 0x26f   : > { %6776 = vst [vmem:[#allocation48_spill] sm:$0xff] %v6312_v27  ;;  %v3638_v27 = vrot.slane %v3636_v55, 1  ;;  %v3592_v23 = vor.u32 %v3591_v18, %v3587_v39  ;;  %v3728_v37 = vshrl.u32 %v4915_v24, 16  ;;  %v3732_v26 = vrot.slane %v3730_v21, 1 }
 0x270   : > { %4797 = vmatmul.msk.bf16.gmra.mxu3 %vm357_vm1, %v3553_v16  ;;  %v3686_v52 = vor.u32 %v3685_v5, %v3681_v28  ;;  %v3690_v55 = vrot.slane %v3688_v58, 1 }
 0x271   : > { %v2637_v43 = vpop.f32.mrf.mxu2  ;;  %v2575_v1 = vpop.f32.mrf.mxu0  ;;  %v3733_v39 = vor.u32 %v3732_v26, %v3728_v37 }
 0x272   : > { %v6332_v6 = vadd.f32 %v2637_v43, %v1904_v31  ;;  %v3596_v1 = vrot.slane %v3594_v63, 1  ;;  %v3735_v31 = vshll.u32 %v6330_v49, 16  ;;  %v3639_v43 = vor.u32 %v3638_v27, %v3634_v2 }
 0x273   : > { %v2607_v47 = vpop.f32.mrf.mxu1  ;;  %v2669_v16 = vpop.f32.mrf.mxu3 }
 0x274   : > { %6781 = vst [vmem:[#allocation10_spill] sm:$0xff] %v6332_v6  ;;  %v6336_v29 = vadd.f32 %v2669_v16, %v1936_v53  ;;  %v3643_v47 = vrot.slane %v3641_v30, 1  ;;  %v3597_v53 = vsel %vm317_vm0, %v3592_v23, %v3596_v1  ;;  %v3737_v18 = vrot.slane %v3735_v31, 1 }
 0x275   : > { %v3691_v30 = vsel %vm317_vm0, %v3686_v52, %v3690_v55 }
 0x276   : > { %v3644_v21 = vsel %vm317_vm0, %v3639_v43, %v3643_v47  ;;  %v3738_v37 = vsel %vm317_vm0, %v3733_v39, %v3737_v18  ;;  %v6782_v39 = vld [vmem:[#allocation74_spill] sm:$0xff] }
 0x279   : > { %v2639_v13 = vpop.f32.mrf.mxu2  ;;  %v2864_v6 = vpop.f32.mrf.mxu0 }
 0x27a   : > { %v3766_v24 = vadd.f32 %v2864_v6, %v5837_v54 }
 0x27b   : > { %v2911_v63 = vpop.f32.mrf.mxu1  ;;  %v2671_v27 = vpop.f32.mrf.mxu3 }
 0x27c   : > { %v3769_v2 = vadd.f32 %v2911_v63, %v5840_v12  ;;  %v3830_v16 = vadd.f32 %v6342_v50, %v3766_v24  ;;  %4802 = vmatmul.msk.bf16.vlgmr.msrb.gmra.mxu0 %vm357_vm1, %v3597_v53 }
 0x27e   : > { %v3833_v28 = vadd.f32 %v6342_v50, %v3769_v2  ;;  %4808 = vmatmul.msk.bf16.vlgmr.msrb.gmra.mxu1 %vm357_vm1, %v3644_v21  ;;  %v3890_v54 = vmax.f32 %v3830_v16, 0.0  ;;  %4814 = vmatmul.msk.bf16.vlgmr.msrb.gmra.mxu2 %vm357_vm1, %v3691_v30  ;;  %v3598_v21 = vshrl.u32 %v6316_v4, 16  ;;  %v3692_v16 = vshrl.u32 %v6322_v20, 16  ;;  %v6784_v20 = vld [vmem:[#allocation76_spill] sm:$0xff] }
 0x280   : > { %v3893_v12 = vmax.f32 %v3833_v28, 0.0  ;;  %v3950_v6 = vpack.c.bf16 %v3890_v54, %v3890_v54  ;;  %4820 = vmatmul.msk.bf16.vlgmr.msrb.gmra.mxu3 %vm357_vm1, %v3738_v37  ;;  %v3739_v28 = vshrl.u32 %v6330_v49, 16  ;;  %v3600_v4 = vor.u32 %v3598_v21, %v3596_v1 }
 0x281   : > { %v2958_v58 = vpop.f32.mrf.mxu2  ;;  %v2866_v23 = vpop.f32.mrf.mxu0 }
 0x282   : > { %v3953_v5 = vpack.c.bf16 %v3893_v12, %v3893_v12  ;;  %4011 = vst.msk [vmem:[%s6359_s13] sm:$0xf] %vm4010_vm2, %v3950_v6  ;;  %v3772_v26 = vadd.f32 %v2958_v58, %v5861_v62  ;;  %v3767_v31 = vadd.f32 %v2866_v23, %v5863_v14  ;;  %v3645_v62 = vshrl.u32 %v6320_v34, 16 }
 0x283   : > { %v2913_v43 = vpop.f32.mrf.mxu1  ;;  %v3005_v52 = vpop.f32.mrf.mxu3  ;;  %v3741_v1 = vor.u32 %v3739_v28, %v3737_v18 }
 0x284   : > { %4015 = vst.msk [vmem:[%s6359_s13 + $0xc] sm:$0xf] %vm4010_vm2, %v3953_v5  ;;  %v3770_v13 = vadd.f32 %v2913_v43, %v5867_v57  ;;  %v3836_v53 = vadd.f32 %v6342_v50, %v3772_v26  ;;  %v3775_v24 = vadd.f32 %v3005_v52, %v6782_v39  ;;  %v3831_v63 = vadd.f32 %v6342_v50, %v3767_v31  ;;  %v6783_v26 = vld [vmem:[#allocation75_spill] sm:$0xff] }
 0x285   : > { %v3647_v23 = vor.u32 %v3645_v62, %v3643_v47 }
 0x286   : > { %v3834_v27 = vadd.f32 %v6342_v50, %v3770_v13  ;;  %v3896_v14 = vmax.f32 %v3836_v53, 0.0  ;;  %v3839_v2 = vadd.f32 %v6342_v50, %v3775_v24  ;;  %v3891_v30 = vmax.f32 %v3831_v63, 0.0  ;;  %v6785_v53 = vld [vmem:[#allocation77_spill] sm:$0xff]  ;;  %v6786_v24 = vld [vmem:[#allocation78_spill] sm:$0xff] }
 0x287   : > { %v3694_v13 = vor.u32 %v3692_v16, %v3690_v55 }
 0x288   : > { %v3894_v57 = vmax.f32 %v3834_v27, 0.0  ;;  %v3956_v37 = vpack.c.bf16 %v3896_v14, %v3896_v14  ;;  %v3899_v54 = vmax.f32 %v3839_v2, 0.0  ;;  %v3951_v12 = vpack.c.bf16 %v3891_v30, %v3891_v30 }
 0x289   : > { %v2960_v5 = vpop.f32.mrf.mxu2  ;;  %v2869_v58 = vpop.f32.mrf.mxu0 }
 0x28a   : > { %v3954_v6 = vpack.c.bf16 %v3894_v57, %v3894_v57  ;;  %4018 = vst.msk [vmem:[%s6359_s13 + $0x18] sm:$0xf] %vm4010_vm2, %v3956_v37  ;;  %v3959_v34 = vpack.c.bf16 %v3899_v54, %v3899_v54  ;;  %v3773_v31 = vadd.f32 %v2960_v5, %v6783_v26  ;;  %v3768_v43 = vadd.f32 %v2869_v58, %v6784_v20 }
 0x28b   : > { %v2916_v52 = vpop.f32.mrf.mxu1  ;;  %4012 = vst.msk [vmem:[%s6359_s13 + $0x4] sm:$0xf] %vm4010_vm2, %v3951_v12  ;;  %v3007_v49 = vpop.f32.mrf.mxu3 }
 0x28c   : > { %v3771_v39 = vadd.f32 %v2916_v52, %v6785_v53  ;;  %4021 = vst.msk [vmem:[%s6359_s13 + $0x24] sm:$0xf] %vm4010_vm2, %v3959_v34  ;;  %v3837_v47 = vadd.f32 %v6342_v50, %v3773_v31  ;;  %v3776_v63 = vadd.f32 %v3007_v49, %v6786_v24  ;;  %v3832_v21 = vadd.f32 %v6342_v50, %v3768_v43 }
 0x28d   : > { %4803 = vmatmul.msk.bf16.gmra.mxu0 %vm357_vm1, %v3600_v4  ;;  %4016 = vst.msk [vmem:[%s6359_s13 + $0x10] sm:$0xf] %vm4010_vm2, %v3954_v6 }
 0x28e   : > { %v3835_v55 = vadd.f32 %v6342_v50, %v3771_v39  ;;  %4809 = vmatmul.msk.bf16.gmra.mxu1 %vm357_vm1, %v3647_v23  ;;  %v3897_v27 = vmax.f32 %v3837_v47, 0.0  ;;  %v3840_v18 = vadd.f32 %v6342_v50, %v3776_v63  ;;  %v3892_v62 = vmax.f32 %v3832_v21, 0.0  ;;  %4815 = vmatmul.msk.bf16.gmra.mxu2 %vm357_vm1, %v3694_v13 }
 0x290   : > { %v3895_v14 = vmax.f32 %v3835_v55, 0.0  ;;  %v3957_v2 = vpack.c.bf16 %v3897_v27, %v3897_v27  ;;  %v3900_v30 = vmax.f32 %v3840_v18, 0.0  ;;  %v3952_v16 = vpack.c.bf16 %v3892_v62, %v3892_v62  ;;  %4821 = vmatmul.msk.bf16.gmra.mxu3 %vm357_vm1, %v3741_v1 }
 0x291   : > { %v2963_v28 = vpop.f32.mrf.mxu2  ;;  %v2871_v37 = vpop.f32.mrf.mxu0 }
 0x292   : > { %v3955_v57 = vpack.c.bf16 %v3895_v14, %v3895_v14  ;;  %4019 = vst.msk [vmem:[%s6359_s13 + $0x1c] sm:$0xf] %vm4010_vm2, %v3957_v2  ;;  %v3960_v54 = vpack.c.bf16 %v3900_v30, %v3900_v30  ;;  %v3774_v12 = vadd.f32 %v2963_v28, %v5924_v3 }
 0x293   : > { %v2918_v4 = vpop.f32.mrf.mxu1  ;;  %4014 = vst.msk [vmem:[%s6359_s13 + $0x8] sm:$0x3] %vm4013_vm3, %v3952_v16  ;;  %v3010_v6 = vpop.f32.mrf.mxu3 }
 0x294   : > { %4022 = vst.msk [vmem:[%s6359_s13 + $0x28] sm:$0xf] %vm4010_vm2, %v3960_v54  ;;  %v3838_v5 = vadd.f32 %v6342_v50, %v3774_v12  ;;  %v3777_v58 = vadd.f32 %v3010_v6, %v5928_v35 }
 0x295   : > { %4017 = vst.msk [vmem:[%s6359_s13 + $0x14] sm:$0x3] %vm4013_vm3, %v3955_v57 }
 0x296   : > { %v3898_v23 = vmax.f32 %v3838_v5, 0.0  ;;  %v3841_v34 = vadd.f32 %v6342_v50, %v3777_v58 }
 0x298   : > { %v3958_v26 = vpack.c.bf16 %v3898_v23, %v3898_v23  ;;  %v3901_v31 = vmax.f32 %v3841_v34, 0.0 }
 0x299   : > { %v2965_v20 = vpop.f32.mrf.mxu2  ;;  %v3052_v3 = vpop.f32.mrf.mxu0 }
 0x29a   : > { %4020 = vst.msk [vmem:[%s6359_s13 + $0x20] sm:$0x3] %vm4013_vm3, %v3958_v26  ;;  %v3961_v43 = vpack.c.bf16 %v3901_v31, %v3901_v31  ;;  %v3778_v52 = vadd.f32 %v3052_v3, %v5940_v40 }
 0x29b   : > { %v3099_v13 = vpop.f32.mrf.mxu1  ;;  %v3012_v49 = vpop.f32.mrf.mxu3 }
 0x29c   : > { %v3781_v35 = vadd.f32 %v3099_v13, %v5943_v32  ;;  %4023 = vst.msk [vmem:[%s6359_s13 + $0x2c] sm:$0x3] %vm4013_vm3, %v3961_v43  ;;  %v3842_v53 = vadd.f32 %v6342_v50, %v3778_v52 }
 0x29e   : > { %v3845_v39 = vadd.f32 %v6342_v50, %v3781_v35  ;;  %v3902_v1 = vmax.f32 %v3842_v53, 0.0 }
 0x2a0   : > { %v3905_v47 = vmax.f32 %v3845_v39, 0.0  ;;  %v3962_v24 = vpack.c.bf16 %v3902_v1, %v3902_v1 }
 0x2a1   : > { %v3146_v21 = vpop.f32.mrf.mxu2  ;;  %v3054_v55 = vpop.f32.mrf.mxu0 }
 0x2a2   : > { %v3965_v63 = vpack.c.bf16 %v3905_v47, %v3905_v47  ;;  %4024 = vst.msk [vmem:[%s6359_s13 + $0x30] sm:$0xf] %vm4010_vm2, %v3962_v24  ;;  %v3784_v40 = vadd.f32 %v3146_v21, %v5966_v42  ;;  %v3779_v27 = vadd.f32 %v3054_v55, %v5968_v19 }
 0x2a3   : > { %v3101_v18 = vpop.f32.mrf.mxu1  ;;  %v3193_v32 = vpop.f32.mrf.mxu3 }
 0x2a4   : > { %4027 = vst.msk [vmem:[%s6359_s13 + $0x3c] sm:$0xf] %vm4010_vm2, %v3965_v63  ;;  %v3782_v62 = vadd.f32 %v3101_v18, %v5971_v45  ;;  %v3848_v14 = vadd.f32 %v6342_v50, %v3784_v40  ;;  %v3787_v2 = vadd.f32 %v3193_v32, %v5974_v33  ;;  %v3843_v30 = vadd.f32 %v6342_v50, %v3779_v27 }
 0x2a6   : > { %v3846_v16 = vadd.f32 %v6342_v50, %v3782_v62  ;;  %v3908_v57 = vmax.f32 %v3848_v14, 0.0  ;;  %v3851_v42 = vadd.f32 %v6342_v50, %v3787_v2  ;;  %v3903_v19 = vmax.f32 %v3843_v30, 0.0 }
 0x2a8   : > { %v3906_v28 = vmax.f32 %v3846_v16, 0.0  ;;  %v3968_v37 = vpack.c.bf16 %v3908_v57, %v3908_v57  ;;  %v3911_v54 = vmax.f32 %v3851_v42, 0.0  ;;  %v3963_v12 = vpack.c.bf16 %v3903_v19, %v3903_v19 }
 0x2a9   : > { %v3148_v4 = vpop.f32.mrf.mxu2  ;;  %v3057_v6 = vpop.f32.mrf.mxu0 }
 0x2aa   : > { %v3966_v45 = vpack.c.bf16 %v3906_v28, %v3906_v28  ;;  %4030 = vst.msk [vmem:[%s6359_s13 + $0x48] sm:$0xf] %vm4010_vm2, %v3968_v37  ;;  %v3971_v33 = vpack.c.bf16 %v3911_v54, %v3911_v54  ;;  %v3785_v5 = vadd.f32 %v3148_v4, %v5998_v56  ;;  %v3780_v58 = vadd.f32 %v3057_v6, %v6000_v44 }
 0x2ab   : > { %v3104_v23 = vpop.f32.mrf.mxu1  ;;  %4025 = vst.msk [vmem:[%s6359_s13 + $0x34] sm:$0xf] %vm4010_vm2, %v3963_v12  ;;  %v3195_v34 = vpop.f32.mrf.mxu3 }
 0x2ac   : > { %v3783_v26 = vadd.f32 %v3104_v23, %v6006_v60  ;;  %4033 = vst.msk [vmem:[%s6359_s13 + $0x54] sm:$0xf] %vm4010_vm2, %v3971_v33  ;;  %v3849_v31 = vadd.f32 %v6342_v50, %v3785_v5  ;;  %v3788_v20 = vadd.f32 %v3195_v34, %v6010_v51  ;;  %v3844_v3 = vadd.f32 %v6342_v50, %v3780_v58 }
 0x2ad   : > { %4028 = vst.msk [vmem:[%s6359_s13 + $0x40] sm:$0xf] %vm4010_vm2, %v3966_v45 }
 0x2ae   : > { %v3847_v56 = vadd.f32 %v6342_v50, %v3783_v26  ;;  %v3909_v44 = vmax.f32 %v3849_v31, 0.0  ;;  %v3852_v43 = vadd.f32 %v6342_v50, %v3788_v20  ;;  %v3904_v52 = vmax.f32 %v3844_v3, 0.0 }
 0x2b0   : > { %v3907_v60 = vmax.f32 %v3847_v56, 0.0  ;;  %v3969_v13 = vpack.c.bf16 %v3909_v44, %v3909_v44  ;;  %v3912_v49 = vmax.f32 %v3852_v43, 0.0  ;;  %v3964_v35 = vpack.c.bf16 %v3904_v52, %v3904_v52 }
 0x2b1   : > { %v3151_v39 = vpop.f32.mrf.mxu2  ;;  %v3059_v51 = vpop.f32.mrf.mxu0 }
 0x2b2   : > { %v3967_v53 = vpack.c.bf16 %v3907_v60, %v3907_v60  ;;  %4031 = vst.msk [vmem:[%s6359_s13 + $0x4c] sm:$0xf] %vm4010_vm2, %v3969_v13  ;;  %v3972_v1 = vpack.c.bf16 %v3912_v49, %v3912_v49  ;;  %v3786_v47 = vadd.f32 %v3151_v39, %v6032_v0  ;;  %v6787_v60 = vld [vmem:[#allocation38_spill] sm:$0xff] }
 0x2b3   : > { %v3106_v24 = vpop.f32.mrf.mxu1  ;;  %4026 = vst.msk [vmem:[%s6359_s13 + $0x38] sm:$0x3] %vm4013_vm3, %v3964_v35  ;;  %v3198_v63 = vpop.f32.mrf.mxu3 }
 0x2b4   : > { %4034 = vst.msk [vmem:[%s6359_s13 + $0x58] sm:$0xf] %vm4010_vm2, %v3972_v1  ;;  %v3850_v21 = vadd.f32 %v6342_v50, %v3786_v47  ;;  %v3789_v55 = vadd.f32 %v3198_v63, %v6036_v15  ;;  %v6789_v1 = vld [vmem:[#allocation39_spill] sm:$0xff] }
 0x2b5   : > { %4029 = vst.msk [vmem:[%s6359_s13 + $0x44] sm:$0x3] %vm4013_vm3, %v3967_v53  ;;  %v6788_v53 = vld [vmem:[#allocation2_spill] sm:$0xff] }
 0x2b6   : > { %v3910_v40 = vmax.f32 %v3850_v21, 0.0  ;;  %v3853_v27 = vadd.f32 %v6342_v50, %v3789_v55 }
 0x2b8   : > { %v3970_v18 = vpack.c.bf16 %v3910_v40, %v3910_v40  ;;  %v3913_v32 = vmax.f32 %v3853_v27, 0.0 }
 0x2b9   : > { %v3153_v62 = vpop.f32.mrf.mxu2  ;;  %v3240_v0 = vpop.f32.mrf.mxu0 }
 0x2ba   : > { %4032 = vst.msk [vmem:[%s6359_s13 + $0x50] sm:$0x3] %vm4013_vm3, %v3970_v18  ;;  %v3973_v14 = vpack.c.bf16 %v3913_v32, %v3913_v32  ;;  %v3790_v2 = vadd.f32 %v3240_v0, %v6048_v10 }
 0x2bb   : > { %v3287_v30 = vpop.f32.mrf.mxu1  ;;  %v3200_v16 = vpop.f32.mrf.mxu3 }
 0x2bc   : > { %v3793_v15 = vadd.f32 %v3287_v30, %v6051_v22  ;;  %4035 = vst.msk [vmem:[%s6359_s13 + $0x5c] sm:$0x3] %vm4013_vm3, %v3973_v14  ;;  %v3854_v57 = vadd.f32 %v6342_v50, %v3790_v2  ;;  %v6790_v30 = vld [vmem:[#allocation3_spill] sm:$0xff] }
 0x2be   : > { %v3857_v42 = vadd.f32 %v6342_v50, %v3793_v15  ;;  %v3914_v19 = vmax.f32 %v3854_v57, 0.0 }
 0x2c0   : > { %v3917_v28 = vmax.f32 %v3857_v42, 0.0  ;;  %v3974_v37 = vpack.c.bf16 %v3914_v19, %v3914_v19 }
 0x2c1   : > { %v3334_v12 = vpop.f32.mrf.mxu2  ;;  %v3242_v45 = vpop.f32.mrf.mxu0 }
 0x2c2   : > { %v3977_v54 = vpack.c.bf16 %v3917_v28, %v3917_v28  ;;  %4036 = vst.msk [vmem:[%s6359_s13 + $0x60] sm:$0xf] %vm4010_vm2, %v3974_v37  ;;  %v3796_v10 = vadd.f32 %v3334_v12, %v6074_v41  ;;  %v3791_v4 = vadd.f32 %v3242_v45, %v6076_v59 }
 0x2c3   : > { %v3289_v6 = vpop.f32.mrf.mxu1  ;;  %v3381_v22 = vpop.f32.mrf.mxu3 }
 0x2c4   : > { %4039 = vst.msk [vmem:[%s6359_s13 + $0x6c] sm:$0xf] %vm4010_vm2, %v3977_v54  ;;  %v3794_v33 = vadd.f32 %v3289_v6, %v6079_v7  ;;  %v3860_v5 = vadd.f32 %v6342_v50, %v3796_v10  ;;  %v3799_v58 = vadd.f32 %v3381_v22, %v6082_v36  ;;  %v3855_v23 = vadd.f32 %v6342_v50, %v3791_v4 }
 0x2c6   : > { %v3858_v34 = vadd.f32 %v6342_v50, %v3794_v33  ;;  %v3920_v26 = vmax.f32 %v3860_v5, 0.0  ;;  %v3863_v41 = vadd.f32 %v6342_v50, %v3799_v58  ;;  %v3915_v59 = vmax.f32 %v3855_v23, 0.0 }
 0x2c8   : > { %v3918_v31 = vmax.f32 %v3858_v34, 0.0  ;;  %v3980_v20 = vpack.c.bf16 %v3920_v26, %v3920_v26  ;;  %v3923_v3 = vmax.f32 %v3863_v41, 0.0  ;;  %v3975_v56 = vpack.c.bf16 %v3915_v59, %v3915_v59 }
 0x2c9   : > { %v3336_v44 = vpop.f32.mrf.mxu2  ;;  %v3245_v43 = vpop.f32.mrf.mxu0 }
 0x2ca   : > { %v3978_v7 = vpack.c.bf16 %v3918_v31, %v3918_v31  ;;  %4042 = vst.msk [vmem:[%s6359_s13 + $0x78] sm:$0xf] %vm4010_vm2, %v3980_v20  ;;  %v3983_v36 = vpack.c.bf16 %v3923_v3, %v3923_v3  ;;  %v3797_v52 = vadd.f32 %v3336_v44, %v6106_v8  ;;  %v3792_v13 = vadd.f32 %v3245_v43, %v6787_v60  ;;  %v6792_v3 = vld [vmem:[#allocation4_spill] sm:$0xff]  ;;  %v6793_v44 = vld [vmem:[#allocation41_spill] sm:$0xff] }
 0x2cb   : > { %v3292_v49 = vpop.f32.mrf.mxu1  ;;  %4037 = vst.msk [vmem:[%s6359_s13 + $0x64] sm:$0xf] %vm4010_vm2, %v3975_v56  ;;  %v3383_v35 = vpop.f32.mrf.mxu3 }
 0x2cc   : > { %v3795_v39 = vadd.f32 %v3292_v49, %v6788_v53  ;;  %4045 = vst.msk [vmem:[%s6359_s13 + $0x84] sm:$0xf] %vm4010_vm2, %v3983_v36  ;;  %v3861_v51 = vadd.f32 %v6342_v50, %v3797_v52  ;;  %v3800_v47 = vadd.f32 %v3383_v35, %v6789_v1  ;;  %v3856_v24 = vadd.f32 %v6342_v50, %v3792_v13  ;;  %v6794_v52 = vld [vmem:[#allocation5_spill] sm:$0xff] }
 0x2cd   : > { %4040 = vst.msk [vmem:[%s6359_s13 + $0x70] sm:$0xf] %vm4010_vm2, %v3978_v7 }
 0x2ce   : > { %v3859_v8 = vadd.f32 %v6342_v50, %v3795_v39  ;;  %v3921_v63 = vmax.f32 %v3861_v51, 0.0  ;;  %v3864_v21 = vadd.f32 %v6342_v50, %v3800_v47  ;;  %v3916_v55 = vmax.f32 %v3856_v24, 0.0 }
 0x2d0   : > { %v3919_v40 = vmax.f32 %v3859_v8, 0.0  ;;  %v3981_v27 = vpack.c.bf16 %v3921_v63, %v3921_v63  ;;  %v3924_v18 = vmax.f32 %v3864_v21, 0.0  ;;  %v3976_v32 = vpack.c.bf16 %v3916_v55, %v3916_v55 }
 0x2d1   : > { %v3339_v0 = vpop.f32.mrf.mxu2  ;;  %v3247_v14 = vpop.f32.mrf.mxu0 }
 0x2d2   : > { %v3979_v62 = vpack.c.bf16 %v3919_v40, %v3919_v40  ;;  %4043 = vst.msk [vmem:[%s6359_s13 + $0x7c] sm:$0xf] %vm4010_vm2, %v3981_v27  ;;  %v3984_v2 = vpack.c.bf16 %v3924_v18, %v3924_v18  ;;  %v3798_v16 = vadd.f32 %v3339_v0, %v6790_v30  ;;  %v6795_v40 = vld [vmem:[#allocation42_spill] sm:$0xff]  ;;  %v6797_v14 = vld [vmem:[#allocation43_spill] sm:$0xff] }
 0x2d3   : > { %v3294_v15 = vpop.f32.mrf.mxu1  ;;  %4038 = vst.msk [vmem:[%s6359_s13 + $0x68] sm:$0x3] %vm4013_vm3, %v3976_v32  ;;  %v3386_v57 = vpop.f32.mrf.mxu3  ;;  %v6796_v18 = vld [vmem:[#allocation6_spill] sm:$0xff] }
 0x2d4   : > { %4046 = vst.msk [vmem:[%s6359_s13 + $0x88] sm:$0xf] %vm4010_vm2, %v3984_v2  ;;  %v3862_v42 = vadd.f32 %v6342_v50, %v3798_v16  ;;  %v3801_v19 = vadd.f32 %v3386_v57, %v6144_v61  ;;  %v6798_v16 = vld [vmem:[#allocation7_spill] sm:$0xff] }
 0x2d5   : > { %4041 = vst.msk [vmem:[%s6359_s13 + $0x74] sm:$0x3] %vm4013_vm3, %v3979_v62 }
 0x2d6   : > { %v3922_v28 = vmax.f32 %v3862_v42, 0.0  ;;  %v3865_v37 = vadd.f32 %v6342_v50, %v3801_v19 }
 0x2d8   : > { %v3982_v54 = vpack.c.bf16 %v3922_v28, %v3922_v28  ;;  %v3925_v12 = vmax.f32 %v3865_v37, 0.0 }
 0x2d9   : > { %v3341_v45 = vpop.f32.mrf.mxu2  ;;  %v3428_v10 = vpop.f32.mrf.mxu0 }
 0x2da   : > { %4044 = vst.msk [vmem:[%s6359_s13 + $0x80] sm:$0x3] %vm4013_vm3, %v3982_v54  ;;  %v3985_v4 = vpack.c.bf16 %v3925_v12, %v3925_v12  ;;  %v3802_v6 = vadd.f32 %v3428_v10, %v6156_v46  ;;  %v6791_v46 = vld [vmem:[#allocation40_spill] sm:$0xff] }
 0x2db   : > { %v3475_v22 = vpop.f32.mrf.mxu1  ;;  %v3388_v33 = vpop.f32.mrf.mxu3 }
 0x2dc   : > { %v3805_v61 = vadd.f32 %v3475_v22, %v6159_v11  ;;  %4047 = vst.msk [vmem:[%s6359_s13 + $0x8c] sm:$0x3] %vm4013_vm3, %v3985_v4  ;;  %v3866_v5 = vadd.f32 %v6342_v50, %v3802_v6 }
 0x2de   : > { %v3869_v58 = vadd.f32 %v6342_v50, %v3805_v61  ;;  %v3926_v23 = vmax.f32 %v3866_v5, 0.0  ;;  %v6799_v61 = vld [vmem:[#allocation44_spill] sm:$0xff] }
 0x2e0   : > { %v3929_v34 = vmax.f32 %v3869_v58, 0.0  ;;  %v3986_v26 = vpack.c.bf16 %v3926_v23, %v3926_v23 }
 0x2e1   : > { %v3522_v59 = vpop.f32.mrf.mxu2  ;;  %v3430_v31 = vpop.f32.mrf.mxu0 }
 0x2e2   : > { %v3989_v41 = vpack.c.bf16 %v3929_v34, %v3929_v34  ;;  %4048 = vst.msk [vmem:[%s6359_s13 + $0x90] sm:$0xf] %vm4010_vm2, %v3986_v26  ;;  %v3808_v20 = vadd.f32 %v3522_v59, %v6791_v46  ;;  %v3803_v56 = vadd.f32 %v3430_v31, %v6792_v3 }
 0x2e3   : > { %v3477_v7 = vpop.f32.mrf.mxu1  ;;  %v3569_v11 = vpop.f32.mrf.mxu3 }
 0x2e4   : > { %4051 = vst.msk [vmem:[%s6359_s13 + $0x9c] sm:$0xf] %vm4010_vm2, %v3989_v41  ;;  %v3806_v43 = vadd.f32 %v3477_v7, %v6793_v44  ;;  %v3872_v36 = vadd.f32 %v6342_v50, %v3808_v20  ;;  %v3811_v60 = vadd.f32 %v3569_v11, %v6794_v52  ;;  %v3867_v13 = vadd.f32 %v6342_v50, %v3803_v56 }
 0x2e6   : > { %v3870_v49 = vadd.f32 %v6342_v50, %v3806_v43  ;;  %v3932_v35 = vmax.f32 %v3872_v36, 0.0  ;;  %v3875_v53 = vadd.f32 %v6342_v50, %v3811_v60  ;;  %v3927_v39 = vmax.f32 %v3867_v13, 0.0 }
 0x2e8   : > { %v3930_v51 = vmax.f32 %v3870_v49, 0.0  ;;  %v3992_v1 = vpack.c.bf16 %v3932_v35, %v3932_v35  ;;  %v3935_v47 = vmax.f32 %v3875_v53, 0.0  ;;  %v3987_v24 = vpack.c.bf16 %v3927_v39, %v3927_v39 }
 0x2e9   : > { %v3524_v63 = vpop.f32.mrf.mxu2  ;;  %v3433_v21 = vpop.f32.mrf.mxu0 }
 0x2ea   : > { %v3990_v8 = vpack.c.bf16 %v3930_v51, %v3930_v51  ;;  %4054 = vst.msk [vmem:[%s6359_s13 + $0xa8] sm:$0xf] %vm4010_vm2, %v3992_v1  ;;  %v3995_v55 = vpack.c.bf16 %v3935_v47, %v3935_v47  ;;  %v3809_v27 = vadd.f32 %v3524_v63, %v6795_v40  ;;  %v3804_v32 = vadd.f32 %v3433_v21, %v6796_v18  ;;  %v6801_v51 = vld [vmem:[#allocation45_spill] sm:$0xff]  ;;  %v6803_v21 = vld [vmem:[#allocation46_spill] sm:$0xff] }
 0x2eb   : > { %v3480_v62 = vpop.f32.mrf.mxu1  ;;  %4049 = vst.msk [vmem:[%s6359_s13 + $0x94] sm:$0xf] %vm4010_vm2, %v3987_v24  ;;  %v3571_v0 = vpop.f32.mrf.mxu3  ;;  %v6802_v24 = vld [vmem:[#allocation9_spill] sm:$0xff] }
 0x2ec   : > { %v3807_v2 = vadd.f32 %v3480_v62, %v6797_v14  ;;  %4057 = vst.msk [vmem:[%s6359_s13 + $0xb4] sm:$0xf] %vm4010_vm2, %v3995_v55  ;;  %v3873_v30 = vadd.f32 %v6342_v50, %v3809_v27  ;;  %v3812_v15 = vadd.f32 %v3571_v0, %v6798_v16  ;;  %v3868_v57 = vadd.f32 %v6342_v50, %v3804_v32 }
 0x2ed   : > { %4052 = vst.msk [vmem:[%s6359_s13 + $0xa0] sm:$0xf] %vm4010_vm2, %v3990_v8 }
 0x2ee   : > { %v3871_v42 = vadd.f32 %v6342_v50, %v3807_v2  ;;  %v3933_v19 = vmax.f32 %v3873_v30, 0.0  ;;  %v3876_v28 = vadd.f32 %v6342_v50, %v3812_v15  ;;  %v3928_v37 = vmax.f32 %v3868_v57, 0.0 }
 0x2f0   : > { %v3931_v54 = vmax.f32 %v3871_v42, 0.0  ;;  %v3993_v12 = vpack.c.bf16 %v3933_v19, %v3933_v19  ;;  %v3936_v45 = vmax.f32 %v3876_v28, 0.0  ;;  %v3988_v10 = vpack.c.bf16 %v3928_v37, %v3928_v37 }
 0x2f1   : > { %v3527_v6 = vpop.f32.mrf.mxu2  ;;  %v3435_v22 = vpop.f32.mrf.mxu0 }
 0x2f2   : > { %v3991_v4 = vpack.c.bf16 %v3931_v54, %v3931_v54  ;;  %4055 = vst.msk [vmem:[%s6359_s13 + $0xac] sm:$0xf] %vm4010_vm2, %v3993_v12  ;;  %v3996_v33 = vpack.c.bf16 %v3936_v45, %v3936_v45  ;;  %v3810_v5 = vadd.f32 %v3527_v6, %v6799_v61  ;;  %v6804_v12 = vld [vmem:[#allocation11_spill] sm:$0xff] }
 0x2f3   : > { %v3482_v58 = vpop.f32.mrf.mxu1  ;;  %4050 = vst.msk [vmem:[%s6359_s13 + $0x98] sm:$0x3] %vm4013_vm3, %v3988_v10  ;;  %v3574_v23 = vpop.f32.mrf.mxu3 }
 0x2f4   : > { %4058 = vst.msk [vmem:[%s6359_s13 + $0xb8] sm:$0xf] %vm4010_vm2, %v3996_v33  ;;  %v3874_v34 = vadd.f32 %v6342_v50, %v3810_v5  ;;  %v3813_v26 = vadd.f32 %v3574_v23, %v6252_v48 }
 0x2f5   : > { %4053 = vst.msk [vmem:[%s6359_s13 + $0xa4] sm:$0x3] %vm4013_vm3, %v3991_v4  ;;  %v6805_v4 = vld [vmem:[#allocation48_spill] sm:$0xff] }
 0x2f6   : > { %v3934_v41 = vmax.f32 %v3874_v34, 0.0  ;;  %v3877_v59 = vadd.f32 %v6342_v50, %v3813_v26 }
 0x2f8   : > { %v3994_v31 = vpack.c.bf16 %v3934_v41, %v3934_v41  ;;  %v3937_v46 = vmax.f32 %v3877_v59, 0.0 }
 0x2f9   : > { %v3529_v20 = vpop.f32.mrf.mxu2  ;;  %v3616_v3 = vpop.f32.mrf.mxu0 }
 0x2fa   : > { %4056 = vst.msk [vmem:[%s6359_s13 + $0xb0] sm:$0x3] %vm4013_vm3, %v3994_v31  ;;  %v3997_v56 = vpack.c.bf16 %v3937_v46, %v3937_v46  ;;  %v3814_v7 = vadd.f32 %v3616_v3, %v6260_v17  ;;  %v6800_v17 = vld [vmem:[#allocation8_spill] sm:$0xff]  ;;  %v6806_v46 = vld [vmem:[#allocation10_spill] sm:$0xff] }
 0x2fb   : > { %v3663_v11 = vpop.f32.mrf.mxu1  ;;  %v3576_v44 = vpop.f32.mrf.mxu3 }
 0x2fc   : > { %v3817_v48 = vadd.f32 %v3663_v11, %v6263_v9  ;;  %4059 = vst.msk [vmem:[%s6359_s13 + $0xbc] sm:$0x3] %vm4013_vm3, %v3997_v56  ;;  %v3878_v43 = vadd.f32 %v6342_v50, %v3814_v7 }
 0x2fe   : > { %v3881_v36 = vadd.f32 %v6342_v50, %v3817_v48  ;;  %v3938_v52 = vmax.f32 %v3878_v43, 0.0 }
 0x300   : > { %v3941_v60 = vmax.f32 %v3881_v36, 0.0  ;;  %v3998_v13 = vpack.c.bf16 %v3938_v52, %v3938_v52 }
 0x301   : > { %v3710_v35 = vpop.f32.mrf.mxu2  ;;  %v3618_v53 = vpop.f32.mrf.mxu0 }
 0x302   : > { %v4001_v49 = vpack.c.bf16 %v3941_v60, %v3941_v60  ;;  %4060 = vst.msk [vmem:[%s6359_s13 + $0xc0] sm:$0xf] %vm4010_vm2, %v3998_v13  ;;  %v3820_v39 = vadd.f32 %v3710_v35, %v6800_v17  ;;  %v3815_v1 = vadd.f32 %v3618_v53, %v6801_v51 }
 0x303   : > { %v3665_v47 = vpop.f32.mrf.mxu1  ;;  %v3757_v9 = vpop.f32.mrf.mxu3 }
 0x304   : > { %4063 = vst.msk [vmem:[%s6359_s13 + $0xcc] sm:$0xf] %vm4010_vm2, %v4001_v49  ;;  %v3818_v8 = vadd.f32 %v3665_v47, %v6802_v24  ;;  %v3884_v63 = vadd.f32 %v6342_v50, %v3820_v39  ;;  %v3823_v55 = vadd.f32 %v3757_v9, %v6803_v21  ;;  %v3879_v40 = vadd.f32 %v6342_v50, %v3815_v1 }
 0x306   : > { %v3882_v27 = vadd.f32 %v6342_v50, %v3818_v8  ;;  %v3944_v18 = vmax.f32 %v3884_v63, 0.0  ;;  %v3887_v32 = vadd.f32 %v6342_v50, %v3823_v55  ;;  %v3939_v62 = vmax.f32 %v3879_v40, 0.0 }
 0x308   : > { %v3942_v0 = vmax.f32 %v3882_v27, 0.0  ;;  %v4004_v14 = vpack.c.bf16 %v3944_v18, %v3944_v18  ;;  %v3947_v2 = vmax.f32 %v3887_v32, 0.0  ;;  %v3999_v30 = vpack.c.bf16 %v3939_v62, %v3939_v62 }
 0x309   : > { %v3712_v15 = vpop.f32.mrf.mxu2 }
 0x30a   : > { %v4002_v16 = vpack.c.bf16 %v3942_v0, %v3942_v0  ;;  %v3621_v57 = vpop.f32.mrf.mxu0  ;;  %4066 = vst.msk [vmem:[%s6359_s13 + $0xd8] sm:$0xf] %vm4010_vm2, %v4004_v14  ;;  %v4007_v42 = vpack.c.bf16 %v3947_v2, %v3947_v2  ;;  %v3821_v19 = vadd.f32 %v3712_v15, %v6303_v38 }
 0x30b   : > { %v3816_v28 = vadd.f32 %v3621_v57, %v6305_v25  ;;  %v3668_v37 = vpop.f32.mrf.mxu1  ;;  %4061 = vst.msk [vmem:[%s6359_s13 + $0xc4] sm:$0xf] %vm4010_vm2, %v3999_v30  ;;  %v3759_v54 = vpop.f32.mrf.mxu3 }
 0x30c   : > { %v3819_v45 = vadd.f32 %v3668_v37, %v6804_v12  ;;  %4069 = vst.msk [vmem:[%s6359_s13 + $0xe4] sm:$0xf] %vm4010_vm2, %v4007_v42  ;;  %v3885_v10 = vadd.f32 %v6342_v50, %v3821_v19  ;;  %v3824_v6 = vadd.f32 %v3759_v54, %v6805_v4 }
 0x30d   : > { %v3880_v22 = vadd.f32 %v6342_v50, %v3816_v28  ;;  %4064 = vst.msk [vmem:[%s6359_s13 + $0xd0] sm:$0xf] %vm4010_vm2, %v4002_v16 }
 0x30e   : > { %v3883_v38 = vadd.f32 %v6342_v50, %v3819_v45  ;;  %v3945_v25 = vmax.f32 %v3885_v10, 0.0  ;;  %v3888_v33 = vadd.f32 %v6342_v50, %v3824_v6 }
 0x30f   : > { %v3940_v61 = vmax.f32 %v3880_v22, 0.0 }
 0x310   : > { %v3943_v5 = vmax.f32 %v3883_v38, 0.0  ;;  %v4005_v58 = vpack.c.bf16 %v3945_v25, %v3945_v25  ;;  %v3948_v23 = vmax.f32 %v3888_v33, 0.0 }
 0x311   : > { %v4000_v34 = vpack.c.bf16 %v3940_v61, %v3940_v61  ;;  %v3715_v41 = vpop.f32.mrf.mxu2 }
 0x312   : > { %v4003_v26 = vpack.c.bf16 %v3943_v5, %v3943_v5  ;;  %v3623_v59 = vpop.f32.mrf.mxu0  ;;  %4067 = vst.msk [vmem:[%s6359_s13 + $0xdc] sm:$0xf] %vm4010_vm2, %v4005_v58  ;;  %v4008_v31 = vpack.c.bf16 %v3948_v23, %v3948_v23  ;;  %v3822_v20 = vadd.f32 %v3715_v41, %v6806_v46 }
 0x313   : > { %v3670_v3 = vpop.f32.mrf.mxu1  ;;  %4062 = vst.msk [vmem:[%s6359_s13 + $0xc8] sm:$0x3] %vm4013_vm3, %v4000_v34  ;;  %v3762_v56 = vpop.f32.mrf.mxu3 }
 0x314   : > { %4070 = vst.msk [vmem:[%s6359_s13 + $0xe8] sm:$0xf] %vm4010_vm2, %v4008_v31  ;;  %v3886_v7 = vadd.f32 %v6342_v50, %v3822_v20  ;;  %v3825_v11 = vadd.f32 %v3762_v56, %v6336_v29 }
 0x315   : > { %4065 = vst.msk [vmem:[%s6359_s13 + $0xd4] sm:$0x3] %vm4013_vm3, %v4003_v26 }
 0x316   : > { %v3946_v44 = vmax.f32 %v3886_v7, 0.0  ;;  %v3889_v48 = vadd.f32 %v6342_v50, %v3825_v11 }
 0x318   : > { %v4006_v43 = vpack.c.bf16 %v3946_v44, %v3946_v44  ;;  %v3949_v36 = vmax.f32 %v3889_v48, 0.0 }
 0x319   : > { %v3717_v52 = vpop.f32.mrf.mxu2 }
 0x31a   : > { %4068 = vst.msk [vmem:[%s6359_s13 + $0xe0] sm:$0x3] %vm4013_vm3, %v4006_v43  ;;  %v4009_v60 = vpack.c.bf16 %v3949_v36, %v3949_v36 }
 0x31b   : > { %v3764_v13 = vpop.f32.mrf.mxu3 }
 0x31c   : > { %4071 = vst.msk [vmem:[%s6359_s13 + $0xec] sm:$0x3] %vm4013_vm3, %v4009_v60 }
 0x31d PF: > { %s13_s12 = sadd.s32 1, %s4937_s12  }
 0x31e   : > { %p10_p4 = scmp.ge.s32.totalorder %s13_s12, 4  }
 0x320   :  { %12 = sbr.rel (!%p10_p4) target bundleno = 1 (0x1), region = 66 }

// kernel: critic_net_forward.6
= control target key start
LH: loop header
LB: loop body
LE: loop exit
PB: predicated region body
PF: predicated region fallthrough
CT: control target
= control target key end

     0   :  { %s2568_s12 = smov 0   ;;  %s3219_s0 = inlined_call_operand.vmem [shape: bf16[2,9,9,64], index: 0, kind: input, shape index: {}]   ;;  %s3220_s1 = inlined_call_operand.vmem [shape: bf16[3,3,64,64], index: 1, kind: input, shape index: {}]   ;;  %s3221_s2 = inlined_call_operand.vmem [shape: f32[1,64], index: 2, kind: input, shape index: {}]   ;;  %s3222_s3 = inlined_call_operand.vmem [shape: bf16[2,7,7,64], index: 3, kind: output, shape index: {}]  }
   0x1 LB: > { %s2052_s13 = sadd.s32 4294967295, %s2546_s12   ;;  %p2056_p0 = scmp.ge.s32.totalorder %s2546_s12, 1  ;;  %s2546_s12 = sphi %s2568_s12, %s13_s12  }
   0x2   : > { %p137_p1 = scmp.lt.s32.totalorder %s2546_s12, 3 }
   0x4   : > { %p138_p2 = pnand %p2056_p0, %p137_p1 }
   0x5   : > { %p161_p3 = scmp.lt.s32.totalorder (!%p138_p2), %s2052_s13, 1 }
   0x6   : > { %141 = sbr.rel (%p138_p2) target bundleno = 412 (0x19c), region = 32 }
   0xb   : > { %v2479_v0 = vld [vmem:[%s3220_s1 + $0x38] sm:$0xff]  ;;  %v2582_v1 = vld [vmem:[%s3220_s1 + $0x30] sm:$0xff]  ;;  %s3226_s13 = smov (!%p161_p3, %s2052_s13), 1  ;;  %v2592_v2 = vld [vmem:[%s3220_s1 + $0x28] sm:$0xff]  ;;  %vm237_vm0 = vcmask 523264   ;;  %vm1973_vm1 = vcmask 519168  }
   0xc   : > { %245 = vmatpush.bf16.msra.mxu0 %v2479_v0  ;;  %271 = vmatpush.bf16.msra.mxu1 %v2479_v0  ;;  %s2529_s18 = smul.u32 72, %s3226_s13  ;;  %v2610_v11 = vld [vmem:[%s3220_s1 + $0x20] sm:$0xff]  ;;  %v2620_v27 = vld [vmem:[%s3220_s1 + $0x18] sm:$0xff]  ;;  %v2630_v39 = vld [vmem:[%s3220_s1 + $0x10] sm:$0xff]  ;;  %vm1974_vm2 = vsmask.f32 3328 }
   0xd   : > { %297 = vmatpush.bf16.msra.mxu2 %v2479_v0  ;;  %323 = vmatpush.bf16.msra.mxu3 %v2479_v0  ;;  %v2643_v43 = vld [vmem:[%s3220_s1 + $0x8] sm:$0xff]  ;;  %v2652_v47 = vld [vmem:[%s3220_s1] sm:$0xff]  ;;  %v2678_v58 = vld [vmem:[%s3220_s1 + $0x58] sm:$0xff] }
   0xe   : > { %s2597_s23 = scalar_lea.vmem %s3219_s0, %s2529_s18  ;;  %v2695_v63 = vld [vmem:[%s3220_s1 + $0x50] sm:$0xff]  ;;  %vm3174_vm3 = vmand %vm1973_vm1, %vm1974_vm2 }
   0xf   : > { %v187_v3 = vld [vmem:[%s2597_s23] sm:$0xf]  ;;  %v188_v4 = vld [vmem:[%s2597_s23 + $0x8] sm:$0xf]  ;;  %v189_v5 = vld [vmem:[%s2597_s23 + $0x10] sm:$0xf] }
  0x10   : > { %246 = vmatpush.bf16.msra.mxu0 %v2582_v1  ;;  %272 = vmatpush.bf16.msra.mxu1 %v2582_v1  ;;  %v204_v6 = vunpack.c.l.b16 %v187_v3  ;;  %v255_v7 = vunpack.c.l.b16 %v188_v4  ;;  %v281_v8 = vunpack.c.l.b16 %v189_v5  ;;  %v190_v9 = vld [vmem:[%s2597_s23 + $0x18] sm:$0xf]  ;;  %v191_v16 = vld [vmem:[%s2597_s23 + $0x20] sm:$0xf]  ;;  %v192_v17 = vld [vmem:[%s2597_s23 + $0x28] sm:$0xf] }
  0x11   : > { %298 = vmatpush.bf16.msra.mxu2 %v2582_v1  ;;  %324 = vmatpush.bf16.msra.mxu3 %v2582_v1  ;;  %v307_v10 = vunpack.c.l.b16 %v190_v9  ;;  %v193_v22 = vld [vmem:[%s2597_s23 + $0x30] sm:$0xf]  ;;  %v333_v30 = vunpack.c.l.b16 %v191_v16  ;;  %v359_v31 = vunpack.c.l.b16 %v192_v17  ;;  %v172_v57 = vld [vmem:[%s2597_s23] sm:$0xf]  ;;  %v173_v59 = vld [vmem:[%s2597_s23 + $0x8] sm:$0xf] }
  0x12   : > { %v205_v12 = vpack.c.b16 %v204_v6, %v204_v6  ;;  %v256_v13 = vpack.c.b16 %v255_v7, %v255_v7  ;;  %v282_v14 = vpack.c.b16 %v281_v8, %v281_v8  ;;  %v385_v34 = vunpack.c.l.b16 %v193_v22  ;;  %v174_v60 = vld [vmem:[%s2597_s23 + $0x10] sm:$0xf]  ;;  %v175_v61 = vld [vmem:[%s2597_s23 + $0x18] sm:$0xf]  ;;  %v176_v62 = vld [vmem:[%s2597_s23 + $0x20] sm:$0xf] }
  0x13   : > { %v308_v15 = vpack.c.b16 %v307_v10, %v307_v10  ;;  %v334_v40 = vpack.c.b16 %v333_v30, %v333_v30  ;;  %v360_v41 = vpack.c.b16 %v359_v31, %v359_v31  ;;  %v2480_v3 = vld [vmem:[%s2597_s23] sm:$0x10]  ;;  %v2144_v4 = vld [vmem:[%s2597_s23 + $0x8] sm:$0xe]  ;;  %v2481_v5 = vld [vmem:[%s2597_s23 + $0x8] sm:$0x10] }
  0x14   : > { %247 = vmatpush.bf16.msra.mxu0 %v2592_v2  ;;  %273 = vmatpush.bf16.msra.mxu1 %v2592_v2  ;;  %v207_v18 = vshrl.u32 %v205_v12, 16  ;;  %v209_v19 = vshll.u32 %v205_v12, 16  ;;  %v258_v20 = vshrl.u32 %v256_v13, 16  ;;  %v260_v21 = vshll.u32 %v256_v13, 16  ;;  %v177_v8 = vld [vmem:[%s2597_s23 + $0x28] sm:$0xf] }
  0x15   : > { %299 = vmatpush.bf16.msra.mxu2 %v2592_v2  ;;  %325 = vmatpush.bf16.msra.mxu3 %v2592_v2  ;;  %v284_v23 = vshrl.u32 %v282_v14, 16  ;;  %v286_v24 = vshll.u32 %v282_v14, 16  ;;  %v310_v25 = vshrl.u32 %v308_v15, 16  ;;  %v312_v26 = vshll.u32 %v308_v15, 16  ;;  %v178_v9 = vld [vmem:[%s2597_s23 + $0x30] sm:$0xf] }
  0x16   : > { %v211_v28 = vrot.slane %v209_v19, 1  ;;  %v262_v29 = vrot.slane %v260_v21, 1  ;;  %v386_v42 = vpack.c.b16 %v385_v34, %v385_v34  ;;  %v338_v44 = vshll.u32 %v334_v40, 16  ;;  %v2149_v12 = vld [vmem:[%s2597_s23 + $0x10] sm:$0xe]  ;;  %v2494_v22 = vld [vmem:[%s3220_s1 + $0x78] sm:$0xff] }
  0x17   : > { %v288_v32 = vrot.slane %v286_v24, 1  ;;  %v314_v33 = vrot.slane %v312_v26, 1  ;;  %v364_v45 = vshll.u32 %v360_v41, 16  ;;  %v336_v48 = vshrl.u32 %v334_v40, 16  ;;  %v2482_v13 = vld [vmem:[%s2597_s23 + $0x10] sm:$0x10] }
  0x18   : > { %248 = vmatpush.bf16.msra.mxu0 %v2610_v11  ;;  %274 = vmatpush.bf16.msra.mxu1 %v2610_v11  ;;  %v212_v35 = vor.u32 %v211_v28, %v207_v18  ;;  %v263_v36 = vor.u32 %v262_v29, %v258_v20  ;;  %v390_v46 = vshll.u32 %v386_v42, 16  ;;  %v340_v49 = vrot.slane %v338_v44, 1  ;;  %v2154_v14 = vld [vmem:[%s2597_s23 + $0x18] sm:$0xe]  ;;  %v2483_v15 = vld [vmem:[%s2597_s23 + $0x18] sm:$0x10] }
  0x19   : > { %300 = vmatpush.bf16.msra.mxu2 %v2610_v11  ;;  %326 = vmatpush.bf16.msra.mxu3 %v2610_v11  ;;  %v289_v37 = vor.u32 %v288_v32, %v284_v23  ;;  %v315_v38 = vor.u32 %v314_v33, %v310_v25  ;;  %v362_v50 = vshrl.u32 %v360_v41, 16  ;;  %v366_v51 = vrot.slane %v364_v45, 1  ;;  %v2159_v16 = vld [vmem:[%s2597_s23 + $0x20] sm:$0xe]  ;;  %v2484_v17 = vld [vmem:[%s2597_s23 + $0x20] sm:$0x10] }
  0x1a   : > { %v388_v52 = vshrl.u32 %v386_v42, 16  ;;  %v392_v53 = vrot.slane %v390_v46, 1  ;;  %v341_v54 = vor.u32 %v340_v49, %v336_v48  ;;  %v2145_v7 = vor.u32 %v2481_v5, %v2144_v4  ;;  %v2164_v18 = vld [vmem:[%s2597_s23 + $0x28] sm:$0xe]  ;;  %v2485_v19 = vld [vmem:[%s2597_s23 + $0x28] sm:$0x10] }
  0x1b   : > { %2083 = vmatmul.msk.bf16.vlgmr.msra.gmra.mxu0 %vm237_vm0, %v212_v35  ;;  %2084 = vmatmul.msk.bf16.vlgmr.msra.gmra.mxu1 %vm237_vm0, %v263_v36  ;;  %v367_v55 = vor.u32 %v366_v51, %v362_v50  ;;  %v2150_v20 = vor.u32 %v2482_v13, %v2149_v12  ;;  %v2155_v21 = vor.u32 %v2483_v15, %v2154_v14  ;;  %v2493_v29 = vld [vmem:[%s3220_s1 + $0x70] sm:$0xff]  ;;  %v2492_v30 = vld [vmem:[%s3220_s1 + $0x68] sm:$0xff]  ;;  %v2491_v33 = vld [vmem:[%s3220_s1 + $0x60] sm:$0xff] }
  0x1c   : > { %349 = vmatpush.bf16.msrb.mxu0 %v2479_v0  ;;  %375 = vmatpush.bf16.msrb.mxu1 %v2479_v0  ;;  %v393_v56 = vor.u32 %v392_v53, %v388_v52  ;;  %v2160_v23 = vor.u32 %v2484_v17, %v2159_v16  ;;  %v2165_v24 = vor.u32 %v2485_v19, %v2164_v18  ;;  %v2169_v31 = vld [vmem:[%s2597_s23 + $0x30] sm:$0xe]  ;;  %v2486_v32 = vld [vmem:[%s2597_s23 + $0x30] sm:$0x10]  ;;  %v2172_v36 = vld [vmem:[%s2597_s23 + $0x8] sm:$0xf] }
  0x1d   : > { %401 = vmatpush.bf16.msrb.mxu2 %v2479_v0  ;;  %441 = vmatpush.bf16.msrb.mxu3 %v2620_v27  ;;  %v2706_v0 = vld [vmem:[%s3220_s1 + $0x48] sm:$0xff]  ;;  %v642_v25 = vrot.slane %v2150_v20, 1  ;;  %v664_v26 = vrot.slane %v2155_v21, 1  ;;  %v2170_v34 = vor.u32 %v2486_v32, %v2169_v31  ;;  %v2211_v41 = vld [vmem:[%s2597_s23 + $0x10] sm:$0xf] }
  0x1e   : > { %2085 = vmatmul.msk.bf16.vlgmr.msra.gmra.mxu2 %vm237_vm0, %v289_v37  ;;  %2086 = vmatmul.msk.bf16.vlgmr.msra.gmra.mxu3 %vm237_vm0, %v315_v38  ;;  %v708_v28 = vrot.slane %v2165_v24, 1  ;;  %v2173_v37 = vld [vmem:[%s2597_s23 + $0x10] sm:$0xf]  ;;  %v2174_v38 = vld [vmem:[%s2597_s23 + $0x18] sm:$0xf]  ;;  %v981_v45 = vunpack.c.l.b16 %v2211_v41 }
  0x1f   : > { %v730_v35 = vrot.slane %v2170_v34, 1  ;;  %v2210_v40 = vld [vmem:[%s2597_s23 + $0x8] sm:$0xf]  ;;  %v2212_v42 = vld [vmem:[%s2597_s23 + $0x18] sm:$0xf]  ;;  %v2497_v52 = vld [vmem:[%s3220_s1 + $0x90] sm:$0xff] }
  0x20   : > { %350 = vmatpush.bf16.msrb.mxu0 %v2582_v1  ;;  %376 = vmatpush.bf16.msrb.mxu1 %v2582_v1  ;;  %v931_v44 = vunpack.c.l.b16 %v2210_v40  ;;  %v1007_v46 = vunpack.c.l.b16 %v2212_v42  ;;  %v2176_v48 = vld [vmem:[%s2597_s23 + $0x28] sm:$0xf]  ;;  %v2177_v50 = vld [vmem:[%s2597_s23 + $0x30] sm:$0xf]  ;;  %v2178_v51 = vld [vmem:[%s2597_s23 + $0x38] sm:$0xf] }
  0x21   : > { %402 = vmatpush.bf16.msrb.mxu2 %v2582_v1  ;;  %442 = vmatpush.bf16.msrb.mxu3 %v2630_v39  ;;  %v2713_v1 = vld [vmem:[%s3220_s1 + $0x40] sm:$0xff]  ;;  %v2831_v18 = vld [vmem:[%s3220_s1 + $0xb0] sm:$0xff] }
  0x22   : > { %v932_v53 = vpack.c.b16 %v931_v44, %v931_v44  ;;  %v2293_v44 = vld [vmem:[%s2597_s23 + $0x10] sm:$0xe] }
  0x24   : > { %351 = vmatpush.bf16.msrb.mxu0 %v2592_v2  ;;  %377 = vmatpush.bf16.msrb.mxu1 %v2592_v2 }
  0x25   : > { %403 = vmatpush.bf16.msrb.mxu2 %v2592_v2  ;;  %443 = vmatpush.bf16.msrb.mxu3 %v2643_v43  ;;  %v2123_v2 = vld [vmem:[%s2597_s23] sm:$0xe] }
  0x26   : > { %v2124_v6 = vor.u32 %v2480_v3, %v2123_v2 }
  0x28   : > { %352 = vmatpush.bf16.msrb.mxu0 %v2610_v11  ;;  %378 = vmatpush.bf16.msrb.mxu1 %v2610_v11  ;;  %v574_v10 = vrot.slane %v2124_v6, 1 }
  0x29   : > { %404 = vmatpush.bf16.msrb.mxu2 %v2610_v11  ;;  %444 = vmatpush.bf16.msrb.mxu3 %v2652_v47  ;;  %v620_v11 = vrot.slane %v2145_v7, 1  ;;  %v2819_v7 = vld [vmem:[%s3220_s1 + $0xb8] sm:$0xff] }
  0x2b   : > { %2087 = vmatmul.msk.bf16.vlgmr.msrb.gmra.mxu0 %vm237_vm0, %v341_v54  ;;  %2088 = vmatmul.msk.bf16.vlgmr.msrb.gmra.mxu1 %vm237_vm0, %v367_v55  ;;  %v982_v54 = vpack.c.b16 %v981_v45, %v981_v45  ;;  %v1008_v55 = vpack.c.b16 %v1007_v46, %v1007_v46  ;;  %v2500_v45 = vld [vmem:[%s2597_s23 + $0x10] sm:$0x10] }
  0x2c   : > { %457 = vmatpush.bf16.msra.mxu0 %v2620_v27  ;;  %473 = vmatpush.bf16.msra.mxu1 %v2620_v27 }
  0x2d   : > { %489 = vmatpush.bf16.msra.mxu2 %v2620_v27  ;;  %505 = vmatpush.bf16.msra.mxu3 %v2620_v27  ;;  %v1010_v3 = vshrl.u32 %v1008_v55, 16 }
  0x2e   : > { %2089 = vmatmul.msk.bf16.vlgmr.msrb.gmra.mxu2 %vm237_vm0, %v393_v56  ;;  %2106 = vmatmul.msk.bf16.vlgmr.msrb.gmra.mxu3 %vm237_vm0, %v172_v57  ;;  %v2496_v57 = vld [vmem:[%s3220_s1 + $0x88] sm:$0xff] }
  0x30   : > { %458 = vmatpush.bf16.msra.mxu0 %v2630_v39  ;;  %474 = vmatpush.bf16.msra.mxu1 %v2630_v39 }
  0x31   : > { %490 = vmatpush.bf16.msra.mxu2 %v2630_v39  ;;  %506 = vmatpush.bf16.msra.mxu3 %v2630_v39 }
  0x34   : > { %459 = vmatpush.bf16.msra.mxu0 %v2643_v43  ;;  %475 = vmatpush.bf16.msra.mxu1 %v2643_v43 }
  0x35   : > { %491 = vmatpush.bf16.msra.mxu2 %v2643_v43  ;;  %507 = vmatpush.bf16.msra.mxu3 %v2643_v43 }
  0x38   : > { %460 = vmatpush.bf16.msra.mxu0 %v2652_v47  ;;  %476 = vmatpush.bf16.msra.mxu1 %v2652_v47 }
  0x39   : > { %492 = vmatpush.bf16.msra.mxu2 %v2652_v47  ;;  %508 = vmatpush.bf16.msra.mxu3 %v2652_v47 }
  0x3b   : > { %2107 = vmatmul.msk.bf16.vlgmr.msra.gmra.mxu0 %vm237_vm0, %v173_v59  ;;  %2108 = vmatmul.msk.bf16.vlgmr.msra.gmra.mxu1 %vm237_vm0, %v174_v60  ;;  %v986_v59 = vshll.u32 %v982_v54, 16  ;;  %v1012_v60 = vshll.u32 %v1008_v55, 16 }
  0x3c   : > { %521 = vmatpush.bf16.msrb.mxu0 %v2620_v27  ;;  %537 = vmatpush.bf16.msrb.mxu1 %v2620_v27  ;;  %v686_v27 = vrot.slane %v2160_v23, 1 }
  0x3d   : > { %606 = vmatpush.bf16.msrb.mxu2 %v2678_v58  ;;  %628 = vmatpush.bf16.msrb.mxu3 %v2678_v58  ;;  %v988_v2 = vrot.slane %v986_v59, 1  ;;  %v1014_v4 = vrot.slane %v1012_v60, 1 }
  0x3e   : > { %2109 = vmatmul.msk.bf16.vlgmr.msra.gmra.mxu2 %vm237_vm0, %v175_v61  ;;  %2110 = vmatmul.msk.bf16.vlgmr.msra.gmra.mxu3 %vm237_vm0, %v176_v62  ;;  %v2495_v62 = vld [vmem:[%s3220_s1 + $0x80] sm:$0xff] }
  0x3f   : > { %v1015_v15 = vor.u32 %v1014_v4, %v1010_v3  ;;  %v2902_v3 = vld [vmem:[%s3220_s1 + $0xd0] sm:$0xff]  ;;  %v2913_v4 = vld [vmem:[%s3220_s1 + $0xc8] sm:$0xff] }
  0x40   : > { %522 = vmatpush.bf16.msrb.mxu0 %v2630_v39  ;;  %538 = vmatpush.bf16.msrb.mxu1 %v2630_v39  ;;  %v2789_v39 = vld [vmem:[%s3220_s1 + $0x98] sm:$0xff] }
  0x41   : > { %607 = vmatpush.bf16.msrb.mxu2 %v2695_v63  ;;  %629 = vmatpush.bf16.msrb.mxu3 %v2695_v63 }
  0x44   : > { %523 = vmatpush.bf16.msrb.mxu0 %v2643_v43  ;;  %539 = vmatpush.bf16.msrb.mxu1 %v2643_v43  ;;  %v2213_v43 = vld [vmem:[%s2597_s23 + $0x20] sm:$0xf] }
  0x45   : > { %608 = vmatpush.bf16.msrb.mxu2 %v2706_v0  ;;  %630 = vmatpush.bf16.msrb.mxu3 %v2706_v0  ;;  %v1033_v49 = vunpack.c.l.b16 %v2213_v43 }
  0x47   : > { %v1034_v56 = vpack.c.b16 %v1033_v49, %v1033_v49  ;;  %v2501_v49 = vld [vmem:[%s2597_s23 + $0x18] sm:$0x10] }
  0x48   : > { %524 = vmatpush.bf16.msrb.mxu0 %v2652_v47  ;;  %540 = vmatpush.bf16.msrb.mxu1 %v2652_v47  ;;  %v2175_v47 = vld [vmem:[%s2597_s23 + $0x20] sm:$0xf] }
  0x49   : > { %609 = vmatpush.bf16.msrb.mxu2 %v2713_v1  ;;  %631 = vmatpush.bf16.msrb.mxu3 %v2713_v1  ;;  %v1038_v61 = vshll.u32 %v1034_v56, 16  ;;  %v1036_v5 = vshrl.u32 %v1034_v56, 16  ;;  %v2887_v56 = vld [vmem:[%s3220_s1 + $0xd8] sm:$0xff] }
  0x4b   : > { %2111 = vmatmul.msk.bf16.vlgmr.msrb.gmra.mxu0 %vm237_vm0, %v177_v8  ;;  %2112 = vmatmul.msk.bf16.vlgmr.msrb.gmra.mxu1 %vm237_vm0, %v178_v9  ;;  %v1040_v6 = vrot.slane %v1038_v61, 1  ;;  %v2214_v8 = vld [vmem:[%s2597_s23 + $0x28] sm:$0xf]  ;;  %v2215_v9 = vld [vmem:[%s2597_s23 + $0x30] sm:$0xf] }
  0x4c   : > { %650 = vmatpush.bf16.msra.mxu0 %v2678_v58  ;;  %672 = vmatpush.bf16.msra.mxu1 %v2678_v58  ;;  %v1059_v13 = vunpack.c.l.b16 %v2214_v8  ;;  %v1085_v14 = vunpack.c.l.b16 %v2215_v9 }
  0x4d   : > { %694 = vmatpush.bf16.msra.mxu2 %v2678_v58  ;;  %716 = vmatpush.bf16.msra.mxu3 %v2678_v58  ;;  %v1041_v16 = vor.u32 %v1040_v6, %v1036_v5 }
  0x4e   : > { %2141 = vmatmul.msk.bf16.vlgmr.msrb.gmra.mxu2 %vm237_vm0, %v574_v10  ;;  %2146 = vmatmul.msk.bf16.vlgmr.msrb.gmra.mxu3 %vm237_vm0, %v620_v11  ;;  %v2216_v10 = vld [vmem:[%s2597_s23 + $0x38] sm:$0xf]  ;;  %v1060_v19 = vpack.c.b16 %v1059_v13, %v1059_v13  ;;  %v1086_v20 = vpack.c.b16 %v1085_v14, %v1085_v14  ;;  %v2505_v13 = vld [vmem:[%s2597_s23 + $0x38] sm:$0x10]  ;;  %v2931_v14 = vld [vmem:[%s3220_s1 + $0xc0] sm:$0xff] }
  0x4f   : > { %v1111_v17 = vunpack.c.l.b16 %v2216_v10 }
  0x50   : > { %651 = vmatpush.bf16.msra.mxu0 %v2695_v63  ;;  %673 = vmatpush.bf16.msra.mxu1 %v2695_v63  ;;  %v1064_v23 = vshll.u32 %v1060_v19, 16  ;;  %v1090_v24 = vshll.u32 %v1086_v20, 16  ;;  %v1088_v31 = vshrl.u32 %v1086_v20, 16 }
  0x51   : > { %695 = vmatpush.bf16.msra.mxu2 %v2695_v63  ;;  %717 = vmatpush.bf16.msra.mxu3 %v2695_v63  ;;  %v1112_v21 = vpack.c.b16 %v1111_v17, %v1111_v17 }
  0x52   : > { %v1092_v32 = vrot.slane %v1090_v24, 1 }
  0x54   : > { %652 = vmatpush.bf16.msra.mxu0 %v2706_v0  ;;  %674 = vmatpush.bf16.msra.mxu1 %v2706_v0 }
  0x55   : > { %696 = vmatpush.bf16.msra.mxu2 %v2706_v0  ;;  %718 = vmatpush.bf16.msra.mxu3 %v2706_v0 }
  0x58   : > { %653 = vmatpush.bf16.msra.mxu0 %v2713_v1  ;;  %675 = vmatpush.bf16.msra.mxu1 %v2713_v1 }
  0x59   : > { %697 = vmatpush.bf16.msra.mxu2 %v2713_v1  ;;  %719 = vmatpush.bf16.msra.mxu3 %v2713_v1 }
  0x5b   : > { %2151 = vmatmul.msk.bf16.vlgmr.msra.gmra.mxu0 %vm237_vm0, %v642_v25  ;;  %2156 = vmatmul.msk.bf16.vlgmr.msra.gmra.mxu1 %vm237_vm0, %v664_v26  ;;  %v1116_v25 = vshll.u32 %v1112_v21, 16  ;;  %v2272_v26 = vld [vmem:[%s2597_s23 + $0x8] sm:$0xe] }
  0x5c   : > { %738 = vmatpush.bf16.msrb.mxu0 %v2678_v58  ;;  %802 = vmatpush.bf16.msrb.mxu1 %v2494_v22  ;;  %v936_v58 = vshll.u32 %v932_v53, 16 }
  0x5d   : > { %818 = vmatpush.bf16.msrb.mxu2 %v2494_v22  ;;  %834 = vmatpush.bf16.msrb.mxu3 %v2494_v22  ;;  %v1118_v34 = vrot.slane %v1116_v25, 1  ;;  %v2321_v25 = vld [vmem:[%s2597_s23 + $0x10] sm:$0xf] }
  0x5e   : > { %2161 = vmatmul.msk.bf16.vlgmr.msra.gmra.mxu2 %vm237_vm0, %v686_v27  ;;  %2166 = vmatmul.msk.bf16.vlgmr.msra.gmra.mxu3 %vm237_vm0, %v708_v28  ;;  %v2499_v27 = vld [vmem:[%s2597_s23 + $0x8] sm:$0x10]  ;;  %v2849_v28 = vld [vmem:[%s3220_s1 + $0xa0] sm:$0xff] }
  0x60   : > { %739 = vmatpush.bf16.msrb.mxu0 %v2695_v63  ;;  %803 = vmatpush.bf16.msrb.mxu1 %v2493_v29  ;;  %v934_v63 = vshrl.u32 %v932_v53, 16  ;;  %v2503_v53 = vld [vmem:[%s2597_s23 + $0x28] sm:$0x10] }
  0x61   : > { %819 = vmatpush.bf16.msrb.mxu2 %v2493_v29  ;;  %835 = vmatpush.bf16.msrb.mxu3 %v2493_v29 }
  0x64   : > { %740 = vmatpush.bf16.msrb.mxu0 %v2706_v0  ;;  %804 = vmatpush.bf16.msrb.mxu1 %v2492_v30  ;;  %v938_v0 = vrot.slane %v936_v58, 1 }
  0x65   : > { %820 = vmatpush.bf16.msrb.mxu2 %v2492_v30  ;;  %836 = vmatpush.bf16.msrb.mxu3 %v2492_v30 }
  0x66   : > { %v939_v11 = vor.u32 %v938_v0, %v934_v63 }
  0x68   : > { %741 = vmatpush.bf16.msrb.mxu0 %v2713_v1  ;;  %805 = vmatpush.bf16.msrb.mxu1 %v2491_v33  ;;  %v984_v1 = vshrl.u32 %v982_v54, 16  ;;  %v2294_v54 = vor.u32 %v2500_v45, %v2293_v44  ;;  %v2324_v44 = vld [vmem:[%s2597_s23 + $0x28] sm:$0xf] }
  0x69   : > { %821 = vmatpush.bf16.msrb.mxu2 %v2491_v33  ;;  %837 = vmatpush.bf16.msrb.mxu3 %v2491_v33 }
  0x6a   : > { %v989_v12 = vor.u32 %v988_v2, %v984_v1  ;;  %v1217_v61 = vrot.slane %v2294_v54, 1  ;;  %v3008_v54 = vld [vmem:[%s3220_s1 + $0xe8] sm:$0xff] }
  0x6b   : > { %2171 = vmatmul.msk.bf16.vlgmr.msrb.gmra.mxu0 %vm237_vm0, %v730_v35  ;;  %2203 = vmatmul.msk.bf16.vlgmr.msrb.gmra.mxu1 %vm237_vm0, %v2172_v36  ;;  %v2273_v35 = vor.u32 %v2499_v27, %v2272_v26  ;;  %v2322_v26 = vld [vmem:[%s2597_s23 + $0x18] sm:$0xf] }
  0x6c   : > { %850 = vmatpush.bf16.msra.mxu0 %v2494_v22  ;;  %866 = vmatpush.bf16.msra.mxu1 %v2494_v22 }
  0x6d   : > { %882 = vmatpush.bf16.msra.mxu2 %v2494_v22  ;;  %898 = vmatpush.bf16.msra.mxu3 %v2494_v22  ;;  %v2841_v22 = vld [vmem:[%s3220_s1 + $0xa8] sm:$0xff]  ;;  %v1171_v41 = vrot.slane %v2273_v35, 1  ;;  %v2360_v35 = vld [vmem:[%s2597_s23 + $0x18] sm:$0xf] }
  0x6e   : > { %2204 = vmatmul.msk.bf16.vlgmr.msrb.gmra.mxu2 %vm237_vm0, %v2173_v37  ;;  %2205 = vmatmul.msk.bf16.vlgmr.msrb.gmra.mxu3 %vm237_vm0, %v2174_v38  ;;  %v1093_v37 = vor.u32 %v1092_v32, %v1088_v31 }
  0x70   : > { %851 = vmatpush.bf16.msra.mxu0 %v2493_v29  ;;  %867 = vmatpush.bf16.msra.mxu1 %v2493_v29 }
  0x71   : > { %883 = vmatpush.bf16.msra.mxu2 %v2493_v29  ;;  %899 = vmatpush.bf16.msra.mxu3 %v2493_v29  ;;  %v1062_v29 = vshrl.u32 %v1060_v19, 16 }
  0x74   : > { %852 = vmatpush.bf16.msra.mxu0 %v2492_v30  ;;  %868 = vmatpush.bf16.msra.mxu1 %v2492_v30 }
  0x75   : > { %884 = vmatpush.bf16.msra.mxu2 %v2492_v30  ;;  %900 = vmatpush.bf16.msra.mxu3 %v2492_v30  ;;  %v1066_v30 = vrot.slane %v1064_v23, 1 }
  0x77   : > { %v1067_v36 = vor.u32 %v1066_v30, %v1062_v29 }
  0x78   : > { %853 = vmatpush.bf16.msra.mxu0 %v2491_v33  ;;  %869 = vmatpush.bf16.msra.mxu1 %v2491_v33 }
  0x79   : > { %885 = vmatpush.bf16.msra.mxu2 %v2491_v33  ;;  %901 = vmatpush.bf16.msra.mxu3 %v2491_v33  ;;  %v1114_v33 = vshrl.u32 %v1112_v21, 16 }
  0x7b   : > { %2206 = vmatmul.msk.bf16.vlgmr.msra.gmra.mxu0 %vm237_vm0, %v2175_v47  ;;  %2207 = vmatmul.msk.bf16.vlgmr.msra.gmra.mxu1 %vm237_vm0, %v2176_v48  ;;  %v1119_v40 = vor.u32 %v1118_v34, %v1114_v33  ;;  %v2298_v48 = vld [vmem:[%s2597_s23 + $0x18] sm:$0xe]  ;;  %v2359_v34 = vld [vmem:[%s2597_s23 + $0x10] sm:$0xf] }
  0x7c   : > { %971 = vmatpush.bf16.msrb.mxu0 %v2789_v39  ;;  %997 = vmatpush.bf16.msrb.mxu1 %v2789_v39  ;;  %v2299_v55 = vor.u32 %v2501_v49, %v2298_v48  ;;  %v2971_v33 = vld [vmem:[%s3220_s1 + $0xf8] sm:$0xff]  ;;  %v2325_v48 = vld [vmem:[%s2597_s23 + $0x30] sm:$0xf] }
  0x7d   : > { %1023 = vmatpush.bf16.msrb.mxu2 %v2789_v39  ;;  %1049 = vmatpush.bf16.msrb.mxu3 %v2789_v39  ;;  %v2326_v49 = vld [vmem:[%s2597_s23 + $0x38] sm:$0xf] }
  0x7e   : > { %2208 = vmatmul.msk.bf16.vlgmr.msra.gmra.mxu2 %vm237_vm0, %v2177_v50  ;;  %2209 = vmatmul.msk.bf16.vlgmr.msra.gmra.mxu3 %vm237_vm0, %v2178_v51  ;;  %v2303_v50 = vld [vmem:[%s2597_s23 + $0x20] sm:$0xe]  ;;  %v2502_v51 = vld [vmem:[%s2597_s23 + $0x20] sm:$0x10] }
  0x80   : > { %972 = vmatpush.bf16.msrb.mxu0 %v2497_v52  ;;  %998 = vmatpush.bf16.msrb.mxu1 %v2497_v52 }
  0x81   : > { %1024 = vmatpush.bf16.msrb.mxu2 %v2497_v52  ;;  %1050 = vmatpush.bf16.msrb.mxu3 %v2497_v52 }
  0x84   : > { %973 = vmatpush.bf16.msrb.mxu0 %v2496_v57  ;;  %999 = vmatpush.bf16.msrb.mxu1 %v2496_v57 }
  0x85   : > { %1025 = vmatpush.bf16.msrb.mxu2 %v2496_v57  ;;  %1051 = vmatpush.bf16.msrb.mxu3 %v2496_v57 }
  0x88   : > { %974 = vmatpush.bf16.msrb.mxu0 %v2495_v62  ;;  %1000 = vmatpush.bf16.msrb.mxu1 %v2495_v62 }
  0x89   : > { %1026 = vmatpush.bf16.msrb.mxu2 %v2495_v62  ;;  %1052 = vmatpush.bf16.msrb.mxu3 %v2495_v62 }
  0x8b   : > { %2241 = vmatmul.msk.bf16.vlgmr.msrb.gmra.mxu0 %vm237_vm0, %v939_v11  ;;  %2242 = vmatmul.msk.bf16.vlgmr.msrb.gmra.mxu1 %vm237_vm0, %v989_v12  ;;  %v2504_v11 = vld [vmem:[%s2597_s23 + $0x30] sm:$0x10]  ;;  %v2318_v12 = vld [vmem:[%s2597_s23 + $0x38] sm:$0xe] }
  0x8c   : > { %1075 = vmatpush.bf16.msra.mxu0 %v2789_v39  ;;  %1101 = vmatpush.bf16.msra.mxu1 %v2789_v39 }
  0x8d   : > { %1127 = vmatpush.bf16.msra.mxu2 %v2789_v39  ;;  %1203 = vmatpush.bf16.msra.mxu3 %v2819_v7 }
  0x8e   : > { %2243 = vmatmul.msk.bf16.vlgmr.msrb.gmra.mxu2 %vm237_vm0, %v1015_v15  ;;  %2244 = vmatmul.msk.bf16.vlgmr.msrb.gmra.mxu3 %vm237_vm0, %v1041_v16  ;;  %v2319_v16 = vor.u32 %v2505_v13, %v2318_v12 }
  0x90   : > { %1076 = vmatpush.bf16.msra.mxu0 %v2497_v52  ;;  %1102 = vmatpush.bf16.msra.mxu1 %v2497_v52  ;;  %v1327_v20 = vrot.slane %v2319_v16, 1 }
  0x91   : > { %1128 = vmatpush.bf16.msra.mxu2 %v2497_v52  ;;  %1204 = vmatpush.bf16.msra.mxu3 %v2831_v18  ;;  %v2308_v52 = vld [vmem:[%s2597_s23 + $0x28] sm:$0xe] }
  0x92   : > { %v2309_v58 = vor.u32 %v2503_v53, %v2308_v52 }
  0x94   : > { %1077 = vmatpush.bf16.msra.mxu0 %v2496_v57  ;;  %1103 = vmatpush.bf16.msra.mxu1 %v2496_v57  ;;  %v1283_v2 = vrot.slane %v2309_v58, 1 }
  0x95   : > { %1129 = vmatpush.bf16.msra.mxu2 %v2496_v57  ;;  %1205 = vmatpush.bf16.msra.mxu3 %v2841_v22  ;;  %v2304_v57 = vor.u32 %v2502_v51, %v2303_v50  ;;  %v2997_v50 = vld [vmem:[%s3220_s1 + $0xf0] sm:$0xff] }
  0x97   : > { %v1261_v1 = vrot.slane %v2304_v57, 1 }
  0x98   : > { %1078 = vmatpush.bf16.msra.mxu0 %v2495_v62  ;;  %1104 = vmatpush.bf16.msra.mxu1 %v2495_v62  ;;  %v2854_v38 = vpop.f32.mrf.mxu0  ;;  %v2856_v39 = vpop.f32.mrf.mxu1 }
  0x99   : > { %1130 = vmatpush.bf16.msra.mxu2 %v2495_v62  ;;  %1206 = vmatpush.bf16.msra.mxu3 %v2849_v28  ;;  %v1239_v62 = vrot.slane %v2299_v55, 1 }
  0x9b   : > { %2245 = vmatmul.msk.bf16.vlgmr.msra.gmra.mxu0 %vm237_vm0, %v1067_v36  ;;  %2246 = vmatmul.msk.bf16.vlgmr.msra.gmra.mxu1 %vm237_vm0, %v1093_v37  ;;  %v2361_v36 = vld [vmem:[%s2597_s23 + $0x20] sm:$0xf] }
  0x9c   : > { %1225 = vmatpush.bf16.msrb.mxu0 %v2819_v7  ;;  %1247 = vmatpush.bf16.msrb.mxu1 %v2819_v7  ;;  %v1604_v45 = vunpack.c.l.b16 %v2361_v36 }
  0x9d   : > { %1269 = vmatpush.bf16.msrb.mxu2 %v2819_v7  ;;  %1291 = vmatpush.bf16.msrb.mxu3 %v2819_v7 }
  0x9e   : > { %2247 = vmatmul.msk.bf16.vlgmr.msra.gmra.mxu2 %vm237_vm0, %v1119_v40  ;;  %2290 = vmatmul.msk.bf16.vlgmr.msra.gmra.mxu3 %vm237_vm0, %v1171_v41  ;;  %v1578_v40 = vunpack.c.l.b16 %v2360_v35  ;;  %v1605_v53 = vpack.c.b16 %v1604_v45, %v1604_v45 }
  0xa0   : > { %1226 = vmatpush.bf16.msrb.mxu0 %v2831_v18  ;;  %1248 = vmatpush.bf16.msrb.mxu1 %v2831_v18  ;;  %v252_v46 = vpop.f32.mrf.mxu0  ;;  %v278_v47 = vpop.f32.mrf.mxu1  ;;  %v1579_v52 = vpack.c.b16 %v1578_v40, %v1578_v40 }
  0xa1   : > { %1270 = vmatpush.bf16.msrb.mxu2 %v2831_v18  ;;  %1292 = vmatpush.bf16.msrb.mxu3 %v2831_v18  ;;  %v2868_v42 = vpop.f32.mrf.mxu2  ;;  %v2870_v43 = vpop.f32.mrf.mxu3 }
  0xa2   : > { %v1583_v58 = vshll.u32 %v1579_v52, 16 }
  0xa4   : > { %1227 = vmatpush.bf16.msrb.mxu0 %v2841_v22  ;;  %1249 = vmatpush.bf16.msrb.mxu1 %v2841_v22 }
  0xa5   : > { %1271 = vmatpush.bf16.msrb.mxu2 %v2841_v22  ;;  %1293 = vmatpush.bf16.msrb.mxu3 %v2841_v22 }
  0xa8   : > { %1228 = vmatpush.bf16.msrb.mxu0 %v2849_v28  ;;  %1250 = vmatpush.bf16.msrb.mxu1 %v2849_v28  ;;  %v354_v63 = vpop.f32.mrf.mxu0  ;;  %v2895_v0 = vpop.f32.mrf.mxu1 }
  0xa9   : > { %1272 = vmatpush.bf16.msrb.mxu2 %v2849_v28  ;;  %1294 = vmatpush.bf16.msrb.mxu3 %v2849_v28  ;;  %v304_v59 = vpop.f32.mrf.mxu2  ;;  %v330_v60 = vpop.f32.mrf.mxu3 }
  0xab   : > { %2295 = vmatmul.msk.bf16.vlgmr.msrb.gmra.mxu0 %vm237_vm0, %v1217_v61  ;;  %2300 = vmatmul.msk.bf16.vlgmr.msrb.gmra.mxu1 %vm237_vm0, %v1239_v62 }
  0xac   : > { %1313 = vmatpush.bf16.msra.mxu0 %v2819_v7  ;;  %1335 = vmatpush.bf16.msra.mxu1 %v2819_v7  ;;  %v2313_v7 = vld [vmem:[%s2597_s23 + $0x30] sm:$0xe] }
  0xad   : > { %1399 = vmatpush.bf16.msra.mxu2 %v2887_v56  ;;  %1415 = vmatpush.bf16.msra.mxu3 %v2887_v56  ;;  %v2314_v15 = vor.u32 %v2504_v11, %v2313_v7 }
  0xae   : > { %2305 = vmatmul.msk.bf16.vlgmr.msrb.gmra.mxu2 %vm237_vm0, %v1261_v1  ;;  %2310 = vmatmul.msk.bf16.vlgmr.msrb.gmra.mxu3 %vm237_vm0, %v1283_v2 }
  0xaf   : > { %v1305_v19 = vrot.slane %v2314_v15, 1 }
  0xb0   : > { %1314 = vmatpush.bf16.msra.mxu0 %v2831_v18  ;;  %1336 = vmatpush.bf16.msra.mxu1 %v2831_v18  ;;  %v356_v9 = vpop.f32.mrf.mxu0  ;;  %v382_v10 = vpop.f32.mrf.mxu1 }
  0xb1   : > { %1400 = vmatpush.bf16.msra.mxu2 %v2902_v3  ;;  %1416 = vmatpush.bf16.msra.mxu3 %v2902_v3  ;;  %v2917_v5 = vpop.f32.mrf.mxu2  ;;  %v446_v6 = vpop.f32.mrf.mxu3  ;;  %v2363_v9 = vld [vmem:[%s2597_s23 + $0x30] sm:$0xf]  ;;  %v2365_v10 = vld [vmem:[%s2597_s23 + $0x40] sm:$0xf] }
  0xb2   : > { %v2921_v8 = vadd.f32 %v446_v6, %v2854_v38  ;;  %v1607_v6 = vshrl.u32 %v1605_v53, 16  ;;  %v1656_v16 = vunpack.c.l.b16 %v2363_v9  ;;  %v2447_v9 = vld [vmem:[%s2597_s23 + $0x20] sm:$0xe] }
  0xb4   : > { %1315 = vmatpush.bf16.msra.mxu0 %v2841_v22  ;;  %1337 = vmatpush.bf16.msra.mxu1 %v2841_v22 }
  0xb5   : > { %1401 = vmatpush.bf16.msra.mxu2 %v2913_v4  ;;  %1417 = vmatpush.bf16.msra.mxu3 %v2913_v4 }
  0xb8   : > { %1316 = vmatpush.bf16.msra.mxu0 %v2849_v28  ;;  %1338 = vmatpush.bf16.msra.mxu1 %v2849_v28  ;;  %v462_v21 = vpop.f32.mrf.mxu0  ;;  %v478_v22 = vpop.f32.mrf.mxu1 }
  0xb9   : > { %1402 = vmatpush.bf16.msra.mxu2 %v2931_v14  ;;  %1418 = vmatpush.bf16.msra.mxu3 %v2931_v14  ;;  %v408_v17 = vpop.f32.mrf.mxu2  ;;  %v448_v18 = vpop.f32.mrf.mxu3  ;;  %v2944_v23 = vadd.f32 %v462_v21, %v2856_v39  ;;  %v2947_v24 = vadd.f32 %v478_v22, %v2868_v42  ;;  %v1528_v39 = vunpack.c.l.b16 %v2359_v34  ;;  %v1708_v22 = vunpack.c.l.b16 %v2365_v10  ;;  %v2452_v10 = vld [vmem:[%s2597_s23 + $0x28] sm:$0xe] }
  0xbb   : > { %2315 = vmatmul.msk.bf16.vlgmr.msra.gmra.mxu0 %vm237_vm0, %v1305_v19  ;;  %2320 = vmatmul.msk.bf16.vlgmr.msra.gmra.mxu1 %vm237_vm0, %v1327_v20  ;;  %v1529_v51 = vpack.c.b16 %v1528_v39, %v1528_v39  ;;  %v2327_v19 = vld [vmem:[%s2597_s23 + $0x40] sm:$0xf] }
  0xbc   : > { %1431 = vmatpush.bf16.msrb.mxu0 %v2887_v56  ;;  %1447 = vmatpush.bf16.msrb.mxu1 %v2887_v56 }
  0xbd   : > { %1463 = vmatpush.bf16.msrb.mxu2 %v2887_v56  ;;  %1479 = vmatpush.bf16.msrb.mxu3 %v2887_v56  ;;  %v1533_v57 = vshll.u32 %v1529_v51, 16  ;;  %v1531_v1 = vshrl.u32 %v1529_v51, 16 }
  0xbe   : > { %2352 = vmatmul.msk.bf16.vlgmr.msra.gmra.mxu2 %vm237_vm0, %v2321_v25  ;;  %2353 = vmatmul.msk.bf16.vlgmr.msra.gmra.mxu3 %vm237_vm0, %v2322_v26 }
  0xbf   : > { %v1535_v2 = vrot.slane %v1533_v57, 1 }
  0xc0   : > { %1432 = vmatpush.bf16.msrb.mxu0 %v2902_v3  ;;  %1448 = vmatpush.bf16.msrb.mxu1 %v2902_v3  ;;  %v464_v31 = vpop.f32.mrf.mxu0  ;;  %v480_v32 = vpop.f32.mrf.mxu1 }
  0xc1   : > { %1464 = vmatpush.bf16.msrb.mxu2 %v2902_v3  ;;  %1480 = vmatpush.bf16.msrb.mxu3 %v2902_v3  ;;  %v494_v27 = vpop.f32.mrf.mxu2  ;;  %v510_v28 = vpop.f32.mrf.mxu3  ;;  %v1536_v13 = vor.u32 %v1535_v2, %v1531_v1  ;;  %v1709_v31 = vpack.c.b16 %v1708_v22, %v1708_v22  ;;  %v2518_v1 = vld [vmem:[%s2597_s23 + $0x10] sm:$0x10] }
  0xc2   : > { %v2960_v29 = vadd.f32 %v494_v27, %v2870_v43  ;;  %v2962_v30 = vadd.f32 %v510_v28, %v354_v63  ;;  %v2323_v43 = vld [vmem:[%s2597_s23 + $0x20] sm:$0xf]  ;;  %v1609_v63 = vshll.u32 %v1605_v53, 16  ;;  %v1657_v27 = vpack.c.b16 %v1656_v16, %v1656_v16 }
  0xc3   : > { %v1713_v39 = vshll.u32 %v1709_v31, 16 }
  0xc4   : > { %1433 = vmatpush.bf16.msrb.mxu0 %v2913_v4  ;;  %1449 = vmatpush.bf16.msrb.mxu1 %v2913_v4  ;;  %v1611_v7 = vrot.slane %v1609_v63, 1  ;;  %v3098_v63 = vld [vmem:[%s3220_s1 + $0x100] sm:$0xff] }
  0xc5   : > { %1465 = vmatpush.bf16.msrb.mxu2 %v2913_v4  ;;  %1481 = vmatpush.bf16.msrb.mxu3 %v2913_v4 }
  0xc8   : > { %1434 = vmatpush.bf16.msrb.mxu0 %v2931_v14  ;;  %1450 = vmatpush.bf16.msrb.mxu1 %v2931_v14  ;;  %v526_v41 = vpop.f32.mrf.mxu0  ;;  %v542_v42 = vpop.f32.mrf.mxu1 }
  0xc9   : > { %1466 = vmatpush.bf16.msrb.mxu2 %v2931_v14  ;;  %1482 = vmatpush.bf16.msrb.mxu3 %v2931_v14  ;;  %v496_v37 = vpop.f32.mrf.mxu2  ;;  %v512_v38 = vpop.f32.mrf.mxu3  ;;  %v2987_v46 = vadd.f32 %v526_v41, %v2895_v0  ;;  %v2990_v47 = vadd.f32 %v542_v42, %v2917_v5  ;;  %v3023_v0 = vld [vmem:[%s3220_s1 + $0xe0] sm:$0xff]  ;;  %v1585_v5 = vrot.slane %v1583_v58, 1  ;;  %v1659_v42 = vshrl.u32 %v1657_v27, 16 }
  0xcb   : > { %2354 = vmatmul.msk.bf16.vlgmr.msrb.gmra.mxu0 %vm237_vm0, %v2323_v43  ;;  %2355 = vmatmul.msk.bf16.vlgmr.msrb.gmra.mxu1 %vm237_vm0, %v2324_v44  ;;  %v3067_v43 = vld [vmem:[%s3220_s1 + $0x118] sm:$0xff] }
  0xcc   : > { %1495 = vmatpush.bf16.msra.mxu0 %v2887_v56  ;;  %1568 = vmatpush.bf16.msra.mxu1 %v2971_v33 }
  0xcd   : > { %1594 = vmatpush.bf16.msra.mxu2 %v2971_v33  ;;  %1620 = vmatpush.bf16.msra.mxu3 %v2971_v33 }
  0xce   : > { %2356 = vmatmul.msk.bf16.vlgmr.msrb.gmra.mxu2 %vm237_vm0, %v2325_v48  ;;  %2357 = vmatmul.msk.bf16.vlgmr.msrb.gmra.mxu3 %vm237_vm0, %v2326_v49  ;;  %v1715_v48 = vrot.slane %v1713_v39, 1 }
  0xd0   : > { %1496 = vmatpush.bf16.msra.mxu0 %v2902_v3  ;;  %1569 = vmatpush.bf16.msra.mxu1 %v2997_v50  ;;  %v528_v61 = vpop.f32.mrf.mxu0  ;;  %v544_v62 = vpop.f32.mrf.mxu1  ;;  %v1581_v3 = vshrl.u32 %v1579_v52, 16 }
  0xd1   : > { %1595 = vmatpush.bf16.msra.mxu2 %v2997_v50  ;;  %1621 = vmatpush.bf16.msra.mxu3 %v2997_v50  ;;  %v611_v55 = vpop.f32.mrf.mxu2  ;;  %v633_v56 = vpop.f32.mrf.mxu3  ;;  %v2527_v61 = vld [vmem:[%s3220_s1 + $0x110] sm:$0xff] }
  0xd2   : > { %v3013_v59 = vadd.f32 %v611_v55, %v2921_v8  ;;  %v3016_v60 = vadd.f32 %v633_v56, %v2944_v23  ;;  %v2362_v8 = vld [vmem:[%s2597_s23 + $0x28] sm:$0xf]  ;;  %v1586_v20 = vor.u32 %v1585_v5, %v1581_v3 }
  0xd3   : > { %v1630_v15 = vunpack.c.l.b16 %v2362_v8  ;;  %v2519_v8 = vld [vmem:[%s2597_s23 + $0x18] sm:$0x10] }
  0xd4   : > { %1497 = vmatpush.bf16.msra.mxu0 %v2913_v4  ;;  %1570 = vmatpush.bf16.msra.mxu1 %v3008_v54  ;;  %v2364_v4 = vld [vmem:[%s2597_s23 + $0x38] sm:$0xf] }
  0xd5   : > { %1596 = vmatpush.bf16.msra.mxu2 %v3008_v54  ;;  %1622 = vmatpush.bf16.msra.mxu3 %v3008_v54  ;;  %v1682_v21 = vunpack.c.l.b16 %v2364_v4  ;;  %v1631_v26 = vpack.c.b16 %v1630_v15, %v1630_v15  ;;  %v2520_v4 = vld [vmem:[%s2597_s23 + $0x20] sm:$0x10] }
  0xd7   : > { %v1683_v28 = vpack.c.b16 %v1682_v21, %v1682_v21  ;;  %v1635_v32 = vshll.u32 %v1631_v26, 16  ;;  %v1633_v40 = vshrl.u32 %v1631_v26, 16 }
  0xd8   : > { %1498 = vmatpush.bf16.msra.mxu0 %v2931_v14  ;;  %1571 = vmatpush.bf16.msra.mxu1 %v3023_v0  ;;  %v655_v17 = vpop.f32.mrf.mxu0  ;;  %v677_v18 = vpop.f32.mrf.mxu1  ;;  %v1612_v14 = vor.u32 %v1611_v7, %v1607_v6  ;;  %v2442_v7 = vld [vmem:[%s2597_s23 + $0x18] sm:$0xe] }
  0xd9   : > { %1597 = vmatpush.bf16.msra.mxu2 %v3023_v0  ;;  %1623 = vmatpush.bf16.msra.mxu3 %v3023_v0  ;;  %v613_v11 = vpop.f32.mrf.mxu2  ;;  %v635_v12 = vpop.f32.mrf.mxu3  ;;  %v3041_v23 = vadd.f32 %v655_v17, %v2947_v24  ;;  %v3044_v25 = vadd.f32 %v677_v18, %v2960_v29  ;;  %v1687_v38 = vshll.u32 %v1683_v28, 16  ;;  %v1637_v41 = vrot.slane %v1635_v32, 1 }
  0xda   : > { %v1685_v44 = vshrl.u32 %v1683_v28, 16  ;;  %v2521_v11 = vld [vmem:[%s2597_s23 + $0x28] sm:$0x10]  ;;  %v2443_v12 = vor.u32 %v2519_v8, %v2442_v7  ;;  %v2457_v28 = vld [vmem:[%s2597_s23 + $0x30] sm:$0xe] }
  0xdb   : > { %2358 = vmatmul.msk.bf16.vlgmr.msra.gmra.mxu0 %vm237_vm0, %v2327_v19  ;;  %2390 = vmatmul.msk.bf16.vlgmr.msra.gmra.mxu1 %vm237_vm0, %v1536_v13  ;;  %v1689_v45 = vrot.slane %v1687_v38, 1  ;;  %v1638_v51 = vor.u32 %v1637_v41, %v1633_v40  ;;  %v2448_v13 = vor.u32 %v2520_v4, %v2447_v9  ;;  %v2453_v15 = vor.u32 %v2521_v11, %v2452_v10  ;;  %v2524_v38 = vld [vmem:[%s2597_s23 + $0x40] sm:$0x10] }
  0xdc   : > { %1646 = vmatpush.bf16.msrb.mxu0 %v2971_v33  ;;  %1672 = vmatpush.bf16.msrb.mxu1 %v2971_v33  ;;  %v1814_v19 = vrot.slane %v2443_v12, 1 }
  0xdd   : > { %1698 = vmatpush.bf16.msrb.mxu2 %v2971_v33  ;;  %1724 = vmatpush.bf16.msrb.mxu3 %v2971_v33  ;;  %v1661_v33 = vshll.u32 %v1657_v27, 16  ;;  %v1690_v55 = vor.u32 %v1689_v45, %v1685_v44  ;;  %v1836_v21 = vrot.slane %v2448_v13, 1  ;;  %v1858_v22 = vrot.slane %v2453_v15, 1 }
  0xde   : > { %2391 = vmatmul.msk.bf16.vlgmr.msra.gmra.mxu2 %vm237_vm0, %v1586_v20  ;;  %2392 = vmatmul.msk.bf16.vlgmr.msra.gmra.mxu3 %vm237_vm0, %v1612_v14 }
  0xe0   : > { %1647 = vmatpush.bf16.msrb.mxu0 %v2997_v50  ;;  %1673 = vmatpush.bf16.msrb.mxu1 %v2997_v50  ;;  %v657_v36 = vpop.f32.mrf.mxu0  ;;  %v679_v37 = vpop.f32.mrf.mxu1 }
  0xe1   : > { %1699 = vmatpush.bf16.msrb.mxu2 %v2997_v50  ;;  %1725 = vmatpush.bf16.msrb.mxu3 %v2997_v50  ;;  %v699_v24 = vpop.f32.mrf.mxu2  ;;  %v721_v29 = vpop.f32.mrf.mxu3  ;;  %v2523_v36 = vld [vmem:[%s2597_s23 + $0x38] sm:$0x10]  ;;  %v2467_v37 = vld [vmem:[%s2597_s23 + $0x40] sm:$0xe] }
  0xe2   : > { %v3055_v34 = vadd.f32 %v699_v24, %v2962_v30  ;;  %v3058_v35 = vadd.f32 %v721_v29, %v2987_v46  ;;  %v1663_v30 = vrot.slane %v1661_v33, 1  ;;  %v1711_v46 = vshrl.u32 %v1709_v31, 16  ;;  %v2522_v33 = vld [vmem:[%s2597_s23 + $0x30] sm:$0x10] }
  0xe3   : > { %v2458_v39 = vor.u32 %v2522_v33, %v2457_v28  ;;  %v2468_v41 = vor.u32 %v2524_v38, %v2467_v37 }
  0xe4   : > { %1648 = vmatpush.bf16.msrb.mxu0 %v3008_v54  ;;  %1674 = vmatpush.bf16.msrb.mxu1 %v3008_v54  ;;  %v1664_v52 = vor.u32 %v1663_v30, %v1659_v42  ;;  %v1716_v56 = vor.u32 %v1715_v48, %v1711_v46 }
  0xe5   : > { %1700 = vmatpush.bf16.msrb.mxu2 %v3008_v54  ;;  %1726 = vmatpush.bf16.msrb.mxu3 %v3008_v54  ;;  %v1880_v30 = vrot.slane %v2458_v39, 1  ;;  %v1924_v46 = vrot.slane %v2468_v41, 1 }
  0xe8   : > { %1649 = vmatpush.bf16.msrb.mxu0 %v3023_v0  ;;  %1675 = vmatpush.bf16.msrb.mxu1 %v3023_v0  ;;  %v743_v53 = vpop.f32.mrf.mxu0  ;;  %v807_v54 = vpop.f32.mrf.mxu1 }
  0xe9   : > { %1701 = vmatpush.bf16.msrb.mxu2 %v3023_v0  ;;  %1727 = vmatpush.bf16.msrb.mxu3 %v3023_v0  ;;  %v701_v49 = vpop.f32.mrf.mxu2  ;;  %v723_v50 = vpop.f32.mrf.mxu3  ;;  %v3078_v57 = vadd.f32 %v743_v53, %v2990_v47  ;;  %v3081_v58 = vadd.f32 %v807_v54, %v3013_v59  ;;  %v3093_v47 = vld [vmem:[%s3220_s1 + $0x108] sm:$0xff]  ;;  %v2421_v0 = vld [vmem:[%s2597_s23 + $0x10] sm:$0xe] }
  0xeb   : > { %2393 = vmatmul.msk.bf16.vlgmr.msrb.gmra.mxu0 %vm237_vm0, %v1638_v51  ;;  %2394 = vmatmul.msk.bf16.vlgmr.msrb.gmra.mxu1 %vm237_vm0, %v1664_v52 }
  0xec   : > { %1800 = vmatpush.bf16.msra.mxu0 %v3067_v43  ;;  %1822 = vmatpush.bf16.msra.mxu1 %v3067_v43 }
  0xed   : > { %1844 = vmatpush.bf16.msra.mxu2 %v3067_v43  ;;  %1866 = vmatpush.bf16.msra.mxu3 %v3067_v43 }
  0xee   : > { %2395 = vmatmul.msk.bf16.vlgmr.msrb.gmra.mxu2 %vm237_vm0, %v1690_v55  ;;  %2396 = vmatmul.msk.bf16.vlgmr.msrb.gmra.mxu3 %vm237_vm0, %v1716_v56 }
  0xf0   : > { %1801 = vmatpush.bf16.msra.mxu0 %v2527_v61  ;;  %1823 = vmatpush.bf16.msra.mxu1 %v2527_v61  ;;  %v745_v5 = vpop.f32.mrf.mxu0  ;;  %v809_v6 = vpop.f32.mrf.mxu1 }
  0xf1   : > { %1845 = vmatpush.bf16.msra.mxu2 %v2527_v61  ;;  %1867 = vmatpush.bf16.msra.mxu3 %v2527_v61  ;;  %v823_v59 = vpop.f32.mrf.mxu2  ;;  %v839_v62 = vpop.f32.mrf.mxu3 }
  0xf2   : > { %v3103_v2 = vadd.f32 %v823_v59, %v3016_v60  ;;  %v3106_v3 = vadd.f32 %v839_v62, %v3041_v23  ;;  %v2422_v60 = vor.u32 %v2518_v1, %v2421_v0 }
  0xf4   : > { %1802 = vmatpush.bf16.msra.mxu0 %v3093_v47  ;;  %1824 = vmatpush.bf16.msra.mxu1 %v3093_v47  ;;  %v1768_v18 = vrot.slane %v2422_v60, 1 }
  0xf5   : > { %1846 = vmatpush.bf16.msra.mxu2 %v3093_v47  ;;  %1868 = vmatpush.bf16.msra.mxu3 %v3093_v47 }
  0xf8   : > { %1803 = vmatpush.bf16.msra.mxu0 %v3098_v63  ;;  %1825 = vmatpush.bf16.msra.mxu1 %v3098_v63  ;;  %v855_v20 = vpop.f32.mrf.mxu0  ;;  %v871_v14 = vpop.f32.mrf.mxu1 }
  0xf9   : > { %1847 = vmatpush.bf16.msra.mxu2 %v3098_v63  ;;  %1869 = vmatpush.bf16.msra.mxu3 %v3098_v63  ;;  %v825_v16 = vpop.f32.mrf.mxu2  ;;  %v841_v17 = vpop.f32.mrf.mxu3  ;;  %v910_v23 = vadd.f32 %v855_v20, %v3044_v25  ;;  %v911_v26 = vadd.f32 %v871_v14, %v3055_v34  ;;  %v2462_v34 = vld [vmem:[%s2597_s23 + $0x38] sm:$0xe]  ;;  %s2530_s23 = smul.u32 28, %s3226_s13 }
  0xfa   : > { %v2463_v40 = vor.u32 %v2523_v36, %v2462_v34 }
  0xfb   : > { %2439 = vmatmul.msk.bf16.vlgmr.msra.gmra.mxu0 %vm237_vm0, %v1768_v18  ;;  %2444 = vmatmul.msk.bf16.vlgmr.msra.gmra.mxu1 %vm237_vm0, %v1814_v19  ;;  %s3170_s21 = scalar_lea.vmem %s3222_s3, %s2530_s23 }
  0xfc   : > { %1888 = vmatpush.bf16.msrb.mxu0 %v3067_v43  ;;  %1910 = vmatpush.bf16.msrb.mxu1 %v3067_v43 }
  0xfd   : > { %1932 = vmatpush.bf16.msrb.mxu2 %v3067_v43  ;;  %v1902_v43 = vrot.slane %v2463_v40, 1 }
  0xfe   : > { %2449 = vmatmul.msk.bf16.vlgmr.msra.gmra.mxu2 %vm237_vm0, %v1836_v21  ;;  %2454 = vmatmul.msk.bf16.vlgmr.msra.gmra.mxu3 %vm237_vm0, %v1858_v22 }
 0x100   : > { %1889 = vmatpush.bf16.msrb.mxu0 %v2527_v61  ;;  %1911 = vmatpush.bf16.msrb.mxu1 %v2527_v61  ;;  %v857_v29 = vpop.f32.mrf.mxu0  ;;  %v873_v32 = vpop.f32.mrf.mxu1 }
 0x101   : > { %1933 = vmatpush.bf16.msrb.mxu2 %v2527_v61  ;;  %v887_v27 = vpop.f32.mrf.mxu2  ;;  %v903_v25 = vpop.f32.mrf.mxu3 }
 0x102   : > { %v912_v31 = vadd.f32 %v887_v27, %v3058_v35  ;;  %v913_v24 = vadd.f32 %v903_v25, %v3078_v57 }
 0x104   : > { %1890 = vmatpush.bf16.msrb.mxu0 %v3093_v47  ;;  %1912 = vmatpush.bf16.msrb.mxu1 %v3093_v47 }
 0x105   : > { %1934 = vmatpush.bf16.msrb.mxu2 %v3093_v47 }
 0x108   : > { %1891 = vmatpush.bf16.msrb.mxu0 %v3098_v63  ;;  %1913 = vmatpush.bf16.msrb.mxu1 %v3098_v63  ;;  %v976_v44 = vpop.f32.mrf.mxu0  ;;  %v1002_v45 = vpop.f32.mrf.mxu1 }
 0x109   : > { %1935 = vmatpush.bf16.msrb.mxu2 %v3098_v63  ;;  %v889_v35 = vpop.f32.mrf.mxu2  ;;  %v905_v42 = vpop.f32.mrf.mxu3  ;;  %v1136_v48 = vadd.f32 %v976_v44, %v3081_v58  ;;  %v1137_v49 = vadd.f32 %v1002_v45, %v3103_v2 }
 0x10b   : > { %2459 = vmatmul.msk.bf16.vlgmr.msrb.gmra.mxu0 %vm237_vm0, %v1880_v30  ;;  %2464 = vmatmul.msk.bf16.vlgmr.msrb.gmra.mxu1 %vm237_vm0, %v1902_v43 }
 0x10e   : > { %2469 = vmatmul.msk.bf16.vlgmr.msrb.gmra.mxu2 %vm237_vm0, %v1924_v46 }
 0x110   : > { %v978_v54 = vpop.f32.mrf.mxu0  ;;  %v1004_v55 = vpop.f32.mrf.mxu1 }
 0x111   : > { %v1028_v50 = vpop.f32.mrf.mxu2  ;;  %v1054_v51 = vpop.f32.mrf.mxu3 }
 0x112   : > { %v1138_v52 = vadd.f32 %v1028_v50, %v3106_v3  ;;  %v1139_v53 = vadd.f32 %v1054_v51, %v910_v23 }
 0x118   : > { %v1080_v61 = vpop.f32.mrf.mxu0  ;;  %v1106_v47 = vpop.f32.mrf.mxu1 }
 0x119   : > { %v1030_v56 = vpop.f32.mrf.mxu2  ;;  %v1056_v57 = vpop.f32.mrf.mxu3  ;;  %v1140_v58 = vadd.f32 %v1080_v61, %v911_v26  ;;  %v1141_v59 = vadd.f32 %v1106_v47, %v912_v31 }
 0x11a   : > { %v3165_v56 = vld [vmem:[%s3221_s2] ss:$0 sm:$0xff] }
 0x120   : > { %v1082_v2 = vpop.f32.mrf.mxu0  ;;  %v1108_v5 = vpop.f32.mrf.mxu1 }
 0x121   : > { %v1132_v62 = vpop.f32.mrf.mxu2  ;;  %v1208_v63 = vpop.f32.mrf.mxu3 }
 0x122   : > { %v1142_v0 = vadd.f32 %v1132_v62, %v913_v24  ;;  %v1344_v1 = vadd.f32 %v1208_v63, %v1136_v48 }
 0x128   : > { %v1230_v8 = vpop.f32.mrf.mxu0  ;;  %v1252_v9 = vpop.f32.mrf.mxu1 }
 0x129   : > { %v1134_v6 = vpop.f32.mrf.mxu2  ;;  %v1210_v7 = vpop.f32.mrf.mxu3  ;;  %v1345_v3 = vadd.f32 %v1230_v8, %v1137_v49  ;;  %v1346_v4 = vadd.f32 %v1252_v9, %v1138_v52  ;;  %v1976_v8 = vld [vmem:[%s3170_s21] sm:$0xf]  ;;  %v1979_v9 = vld [vmem:[%s3170_s21 + $0x4] sm:$0xf] }
 0x130   : > { %v1232_v13 = vpop.f32.mrf.mxu0  ;;  %v1254_v15 = vpop.f32.mrf.mxu1 }
 0x131   : > { %v1274_v10 = vpop.f32.mrf.mxu2  ;;  %v1296_v11 = vpop.f32.mrf.mxu3 }
 0x132   : > { %v1347_v60 = vadd.f32 %v1274_v10, %v1139_v53  ;;  %v3151_v12 = vadd.f32 %v1296_v11, %v1140_v58 }
 0x138   : > { %v1318_v18 = vpop.f32.mrf.mxu0  ;;  %v1340_v19 = vpop.f32.mrf.mxu1 }
 0x139   : > { %v1276_v16 = vpop.f32.mrf.mxu2  ;;  %v1298_v17 = vpop.f32.mrf.mxu3  ;;  %v3153_v20 = vadd.f32 %v1318_v18, %v1141_v59  ;;  %v3155_v14 = vadd.f32 %v1340_v19, %v1142_v0 }
 0x140   : > { %v1320_v23 = vpop.f32.mrf.mxu0  ;;  %v1342_v26 = vpop.f32.mrf.mxu1 }
 0x141   : > { %v1404_v21 = vpop.f32.mrf.mxu2  ;;  %v1420_v22 = vpop.f32.mrf.mxu3 }
 0x142   : > { %v1504_v50 = vadd.f32 %v1404_v21, %v1344_v1  ;;  %v1505_v51 = vadd.f32 %v1420_v22, %v1345_v3 }
 0x148   : > { %v1436_v28 = vpop.f32.mrf.mxu0  ;;  %v1452_v31 = vpop.f32.mrf.mxu1 }
 0x149   : > { %v1406_v27 = vpop.f32.mrf.mxu2  ;;  %v1422_v25 = vpop.f32.mrf.mxu3  ;;  %v1506_v63 = vadd.f32 %v1436_v28, %v1346_v4  ;;  %v1507_v0 = vadd.f32 %v1452_v31, %v1347_v60  ;;  %v1985_v28 = vld [vmem:[%s3170_s21 + $0xc] sm:$0xf] }
 0x14a   : > { %v1982_v25 = vld [vmem:[%s3170_s21 + $0x8] sm:$0xf] }
 0x150   : > { %v1438_v32 = vpop.f32.mrf.mxu0  ;;  %v1454_v33 = vpop.f32.mrf.mxu1 }
 0x151   : > { %v1468_v24 = vpop.f32.mrf.mxu2  ;;  %v1484_v29 = vpop.f32.mrf.mxu3 }
 0x152   : > { %v1508_v26 = vadd.f32 %v1468_v24, %v3151_v12  ;;  %v1509_v27 = vadd.f32 %v1484_v29, %v3153_v20 }
 0x158   : > { %v3157_v37 = vpop.f32.mrf.mxu0  ;;  %v1573_v38 = vpop.f32.mrf.mxu1 }
 0x159   : > { %v1470_v34 = vpop.f32.mrf.mxu2  ;;  %v1486_v36 = vpop.f32.mrf.mxu3  ;;  %v1733_v52 = vadd.f32 %v1573_v38, %v1504_v50 }
 0x160   : > { %v1502_v41 = vpop.f32.mrf.mxu0  ;;  %v1575_v35 = vpop.f32.mrf.mxu1 }
 0x161   : > { %v1599_v39 = vpop.f32.mrf.mxu2  ;;  %v1625_v40 = vpop.f32.mrf.mxu3 }
 0x162   : > { %v1734_v53 = vadd.f32 %v1599_v39, %v1505_v51  ;;  %v1735_v5 = vadd.f32 %v1625_v40, %v1506_v63 }
 0x168   : > { %v1651_v43 = vpop.f32.mrf.mxu0  ;;  %v1677_v44 = vpop.f32.mrf.mxu1 }
 0x169   : > { %v1601_v42 = vpop.f32.mrf.mxu2  ;;  %v1627_v30 = vpop.f32.mrf.mxu3  ;;  %v1736_v6 = vadd.f32 %v1651_v43, %v1507_v0  ;;  %v1737_v33 = vadd.f32 %v1677_v44, %v1508_v26 }
 0x16a   : > { %v1510_v42 = vadd.f32 %v3157_v37, %v3155_v14 }
 0x170   : > { %v1653_v48 = vpop.f32.mrf.mxu0  ;;  %v1679_v49 = vpop.f32.mrf.mxu1 }
 0x171   : > { %v1703_v45 = vpop.f32.mrf.mxu2  ;;  %v3159_v46 = vpop.f32.mrf.mxu3  ;;  %v1991_v48 = vld [vmem:[%s3170_s21 + $0x14] sm:$0xf] }
 0x172   : > { %v1738_v34 = vadd.f32 %v1703_v45, %v1509_v27  ;;  %v1739_v44 = vadd.f32 %v3159_v46, %v1510_v42  ;;  %v1988_v45 = vld [vmem:[%s3170_s21 + $0x10] sm:$0xf] }
 0x178   : > { %v1805_v57 = vpop.f32.mrf.mxu0  ;;  %v1827_v61 = vpop.f32.mrf.mxu1 }
 0x179   : > { %v1705_v54 = vpop.f32.mrf.mxu2  ;;  %v1731_v55 = vpop.f32.mrf.mxu3  ;;  %v1941_v47 = vadd.f32 %v1805_v57, %v1733_v52  ;;  %v1942_v58 = vadd.f32 %v1827_v61, %v1734_v53  ;;  %v1994_v57 = vld [vmem:[%s3170_s21 + $0x18] sm:$0xf] }
 0x17b   : > { %v1952_v59 = vadd.f32 %v3165_v56, %v1941_v47  ;;  %v1953_v62 = vadd.f32 %v3165_v56, %v1942_v58 }
 0x17d   : > { %v1959_v1 = vmax.f32 %v1952_v59, 0.0  ;;  %v1960_v2 = vmax.f32 %v1953_v62, 0.0 }
 0x17f   : > { %v1966_v3 = vpack.c.bf16 %v1959_v1, %v1959_v1  ;;  %v1967_v10 = vpack.c.bf16 %v1960_v2, %v1960_v2 }
 0x180   : > { %v1807_v15 = vpop.f32.mrf.mxu0  ;;  %v1829_v16 = vpop.f32.mrf.mxu1 }
 0x181   : > { %v1849_v11 = vpop.f32.mrf.mxu2  ;;  %v1871_v13 = vpop.f32.mrf.mxu3  ;;  %v1977_v17 = vsel %vm3174_vm3, %v1966_v3, %v1976_v8  ;;  %v1980_v18 = vsel %vm3174_vm3, %v1967_v10, %v1979_v9 }
 0x182   : > { %v1943_v4 = vadd.f32 %v1849_v11, %v1735_v5  ;;  %v1944_v60 = vadd.f32 %v1871_v13, %v1736_v6  ;;  %1978 = vst [vmem:[%s3170_s21] sm:$0xf] %v1977_v17 }
 0x183   : > { %1981 = vst [vmem:[%s3170_s21 + $0x4] sm:$0xf] %v1980_v18 }
 0x184   : > { %v1954_v19 = vadd.f32 %v3165_v56, %v1943_v4  ;;  %v1955_v21 = vadd.f32 %v3165_v56, %v1944_v60 }
 0x186   : > { %v1961_v22 = vmax.f32 %v1954_v19, 0.0  ;;  %v1962_v23 = vmax.f32 %v1955_v21, 0.0 }
 0x188   : > { %v1968_v31 = vpack.c.bf16 %v1961_v22, %v1961_v22  ;;  %v1969_v32 = vpack.c.bf16 %v1962_v23, %v1962_v23  ;;  %v1893_v12 = vpop.f32.mrf.mxu0  ;;  %v1915_v24 = vpop.f32.mrf.mxu1 }
 0x189   : > { %v1851_v36 = vpop.f32.mrf.mxu2  ;;  %v1873_v38 = vpop.f32.mrf.mxu3  ;;  %v1945_v20 = vadd.f32 %v1893_v12, %v1737_v33  ;;  %v1946_v29 = vadd.f32 %v1915_v24, %v1738_v34 }
 0x18a   : > { %v1983_v39 = vsel %vm3174_vm3, %v1968_v31, %v1982_v25  ;;  %v1986_v40 = vsel %vm3174_vm3, %v1969_v32, %v1985_v28 }
 0x18b   : > { %1984 = vst [vmem:[%s3170_s21 + $0x8] sm:$0xf] %v1983_v39  ;;  %v1956_v41 = vadd.f32 %v3165_v56, %v1945_v20  ;;  %v1957_v35 = vadd.f32 %v3165_v56, %v1946_v29 }
 0x18c   : > { %1987 = vst [vmem:[%s3170_s21 + $0xc] sm:$0xf] %v1986_v40 }
 0x18d   : > { %v1963_v30 = vmax.f32 %v1956_v41, 0.0  ;;  %v1964_v43 = vmax.f32 %v1957_v35, 0.0 }
 0x18f   : > { %v1970_v49 = vpack.c.bf16 %v1963_v30, %v1963_v30  ;;  %v1971_v50 = vpack.c.bf16 %v1964_v43, %v1964_v43 }
 0x190   : > { %v1895_v53 = vpop.f32.mrf.mxu0  ;;  %v1917_v54 = vpop.f32.mrf.mxu1 }
 0x191   : > { %v1937_v51 = vpop.f32.mrf.mxu2  ;;  %v1989_v55 = vsel %vm3174_vm3, %v1970_v49, %v1988_v45  ;;  %v1992_v14 = vsel %vm3174_vm3, %v1971_v50, %v1991_v48 }
 0x192   : > { %v1947_v52 = vadd.f32 %v1937_v51, %v1739_v44  ;;  %1990 = vst [vmem:[%s3170_s21 + $0x10] sm:$0xf] %v1989_v55 }
 0x193   : > { %1993 = vst [vmem:[%s3170_s21 + $0x14] sm:$0xf] %v1992_v14 }
 0x194   : > { %v1958_v37 = vadd.f32 %v3165_v56, %v1947_v52 }
 0x196   : > { %v1965_v46 = vmax.f32 %v1958_v37, 0.0 }
 0x198   : > { %v1972_v61 = vpack.c.bf16 %v1965_v46, %v1965_v46 }
 0x199   : > { %v1939_v47 = vpop.f32.mrf.mxu2 }
 0x19a   : > { %v1995_v58 = vsel %vm3174_vm3, %v1972_v61, %v1994_v57 }
 0x19b   : > { %1996 = vst [vmem:[%s3170_s21 + $0x18] sm:$0xf] %v1995_v58 }
 0x19c PF: > { %s13_s12 = sadd.s32 1, %s2546_s12  }
 0x19d   : > { %p10_p4 = scmp.ge.s32.totalorder %s13_s12, 4  }
 0x19f   :  { %12 = sbr.rel (!%p10_p4) target bundleno = 1 (0x1), region = 72 }

// kernel: critic_net_forward.5
= control target key start
LH: loop header
LB: loop body
LE: loop exit
PB: predicated region body
PF: predicated region fallthrough
CT: control target
= control target key end

     0   :  { %s2010_s12 = smov 0   ;;  %s2765_s0 = inlined_call_operand.vmem [shape: bf16[2,10,10,128], index: 0, kind: input, shape index: {}]   ;;  %s2766_s1 = inlined_call_operand.vmem [shape: bf16[2,2,128,64], index: 1, kind: input, shape index: {}]   ;;  %s2767_s2 = inlined_call_operand.vmem [shape: f32[1,64], index: 2, kind: input, shape index: {}]   ;;  %s2768_s3 = inlined_call_operand.vmem [shape: bf16[2,9,9,64], index: 3, kind: output, shape index: {}]  }
   0x1 LB: > { %s1538_s13 = sadd.s32 4294967295, %s1988_s12   ;;  %p1542_p0 = scmp.ge.s32.totalorder %s1988_s12, 1  ;;  %s1988_s12 = sphi %s2010_s12, %s13_s12  }
   0x2   : > { %p137_p1 = scmp.lt.s32.totalorder %s1988_s12, 3 }
   0x4   : > { %p138_p2 = pnand %p1542_p0, %p137_p1 }
   0x5   : > { %p161_p3 = scmp.lt.s32.totalorder (!%p138_p2), %s1538_s13, 1 }
   0x6   : > { %141 = sbr.rel (%p138_p2) target bundleno = 451 (0x1c3), region = 32 }
   0xb   : > { %v2021_v0 = vld [vmem:[%s2766_s1 + $0x78] sm:$0xff]  ;;  %v2028_v1 = vld [vmem:[%s2766_s1 + $0x70] sm:$0xff]  ;;  %s2772_s13 = smov (!%p161_p3, %s1538_s13), 1  ;;  %v2039_v2 = vld [vmem:[%s2766_s1 + $0x68] sm:$0xff]  ;;  %vm1443_vm0 = vcmask 519168   ;;  %vm1445_vm1 = vcmask 516096  }
   0xc   : > { %301 = vmatpush.bf16.msra.mxu0 %v2021_v0  ;;  %328 = vmatpush.bf16.msra.mxu1 %v2021_v0  ;;  %s1971_s20 = smul.u32 80, %s2772_s13  ;;  %v2049_v3 = vld [vmem:[%s2766_s1 + $0x60] sm:$0xff]  ;;  %v2063_v4 = vld [vmem:[%s2766_s1 + $0x58] sm:$0xff]  ;;  %v2076_v9 = vld [vmem:[%s2766_s1 + $0x50] sm:$0xff]  ;;  %vm1446_vm2 = vsmask.f32 256 }
   0xd   : > { %355 = vmatpush.bf16.msra.mxu2 %v2021_v0  ;;  %382 = vmatpush.bf16.msra.mxu3 %v2021_v0  ;;  %v2089_v18 = vld [vmem:[%s2766_s1 + $0x48] sm:$0xff]  ;;  %v2098_v23 = vld [vmem:[%s2766_s1 + $0x40] sm:$0xff]  ;;  %v2145_v60 = vld [vmem:[%s2766_s1 + $0x38] sm:$0xff]  ;;  %s1972_s8 = smul.u32 72, %s2772_s13 }
   0xe   : > { %s2056_s25 = scalar_lea.vmem %s2765_s0, %s1971_s20  ;;  %vm2659_vm3 = vmand %vm1445_vm1, %vm1446_vm2 }
   0xf   : > { %v1603_v5 = vld [vmem:[%s2056_s25 + $0x10] sm:$0xf]  ;;  %v1922_v6 = vld [vmem:[%s2056_s25 + $0x10] sm:$0x10]  ;;  %v1607_v7 = vld [vmem:[%s2056_s25 + $0x18] sm:$0xf]  ;;  %s2652_s11 = scalar_lea.vmem %s2768_s3, %s1972_s8 }
  0x10   : > { %302 = vmatpush.bf16.msra.mxu0 %v2028_v1  ;;  %329 = vmatpush.bf16.msra.mxu1 %v2028_v1  ;;  %v1923_v8 = vld [vmem:[%s2056_s25 + $0x18] sm:$0x10]  ;;  %v1604_v10 = vor.u32 %v1922_v6, %v1603_v5  ;;  %v1563_v12 = vld [vmem:[%s2056_s25] sm:$0xf]  ;;  %v1920_v13 = vld [vmem:[%s2056_s25] sm:$0x10] }
  0x11   : > { %356 = vmatpush.bf16.msra.mxu2 %v2028_v1  ;;  %383 = vmatpush.bf16.msra.mxu3 %v2028_v1  ;;  %v1608_v11 = vor.u32 %v1923_v8, %v1607_v7  ;;  %v1564_v14 = vor.u32 %v1920_v13, %v1563_v12  ;;  %v1599_v15 = vld [vmem:[%s2056_s25 + $0x8] sm:$0xf]  ;;  %v1921_v16 = vld [vmem:[%s2056_s25 + $0x8] sm:$0x10]  ;;  %v1619_v38 = vld [vmem:[%s2056_s25 + $0x30] sm:$0xf] }
  0x12   : > { %v1600_v17 = vor.u32 %v1921_v16, %v1599_v15  ;;  %v350_v19 = vshll.u32 %v1604_v10, 16  ;;  %v348_v24 = vshrl.u32 %v1604_v10, 16  ;;  %v1615_v36 = vld [vmem:[%s2056_s25 + $0x28] sm:$0xf]  ;;  %v1925_v37 = vld [vmem:[%s2056_s25 + $0x28] sm:$0x10] }
  0x13   : > { %v377_v20 = vshll.u32 %v1608_v11, 16  ;;  %v248_v21 = vshll.u32 %v1564_v14, 16  ;;  %v375_v26 = vshrl.u32 %v1608_v11, 16  ;;  %v246_v28 = vshrl.u32 %v1564_v14, 16  ;;  %v1926_v39 = vld [vmem:[%s2056_s25 + $0x30] sm:$0x10] }
  0x14   : > { %303 = vmatpush.bf16.msra.mxu0 %v2039_v2  ;;  %330 = vmatpush.bf16.msra.mxu1 %v2039_v2  ;;  %v323_v22 = vshll.u32 %v1600_v17, 16  ;;  %v352_v25 = vrot.slane %v350_v19, 1  ;;  %v321_v30 = vshrl.u32 %v1600_v17, 16  ;;  %v1623_v40 = vld [vmem:[%s2056_s25 + $0x38] sm:$0xf]  ;;  %v1616_v42 = vor.u32 %v1925_v37, %v1615_v36  ;;  %v2156_v6 = vld [vmem:[%s2766_s1 + $0x30] sm:$0xff] }
  0x15   : > { %357 = vmatpush.bf16.msra.mxu2 %v2039_v2  ;;  %384 = vmatpush.bf16.msra.mxu3 %v2039_v2  ;;  %v379_v27 = vrot.slane %v377_v20, 1  ;;  %v250_v29 = vrot.slane %v248_v21, 1  ;;  %v1927_v41 = vld [vmem:[%s2056_s25 + $0x38] sm:$0x10]  ;;  %v1620_v43 = vor.u32 %v1926_v39, %v1619_v38  ;;  %v1611_v45 = vld [vmem:[%s2056_s25 + $0x20] sm:$0xf] }
  0x16   : > { %v325_v31 = vrot.slane %v323_v22, 1  ;;  %v353_v32 = vor.u32 %v352_v25, %v348_v24  ;;  %v1624_v44 = vor.u32 %v1927_v41, %v1623_v40  ;;  %v1924_v46 = vld [vmem:[%s2056_s25 + $0x20] sm:$0x10]  ;;  %v431_v48 = vshll.u32 %v1616_v42, 16  ;;  %v2183_v7 = vld [vmem:[%s2766_s1 + $0x18] sm:$0xff]  ;;  %v2278_v37 = vld [vmem:[%s2766_s1 + $0xb0] sm:$0xff] }
  0x17   : > { %v380_v33 = vor.u32 %v379_v27, %v375_v26  ;;  %v251_v34 = vor.u32 %v250_v29, %v246_v28  ;;  %v1612_v47 = vor.u32 %v1924_v46, %v1611_v45  ;;  %v458_v49 = vshll.u32 %v1620_v43, 16  ;;  %v1928_v8 = vld [vmem:[%s2056_s25 + $0x40] sm:$0x10]  ;;  %v1631_v12 = vld [vmem:[%s2056_s25] sm:$0xf]  ;;  %v2287_v38 = vld [vmem:[%s2766_s1 + $0xa8] sm:$0xff] }
  0x18   : > { %304 = vmatpush.bf16.msra.mxu0 %v2049_v3  ;;  %331 = vmatpush.bf16.msra.mxu1 %v2049_v3  ;;  %v326_v35 = vor.u32 %v325_v31, %v321_v30  ;;  %v485_v50 = vshll.u32 %v1624_v44, 16  ;;  %v429_v52 = vshrl.u32 %v1616_v42, 16  ;;  %v433_v53 = vrot.slane %v431_v48, 1  ;;  %v1903_v13 = vld [vmem:[%s2056_s25] sm:$0x10]  ;;  %v2305_v40 = vld [vmem:[%s2766_s1 + $0x98] sm:$0xff] }
  0x19   : > { %358 = vmatpush.bf16.msra.mxu2 %v2049_v3  ;;  %385 = vmatpush.bf16.msra.mxu3 %v2049_v3  ;;  %v404_v51 = vshll.u32 %v1612_v47, 16  ;;  %v456_v54 = vshrl.u32 %v1620_v43, 16  ;;  %v460_v55 = vrot.slane %v458_v49, 1  ;;  %v483_v56 = vshrl.u32 %v1624_v44, 16  ;;  %v1667_v14 = vld [vmem:[%s2056_s25 + $0x8] sm:$0xf] }
  0x1a   : > { %v487_v57 = vrot.slane %v485_v50, 1  ;;  %v402_v58 = vshrl.u32 %v1612_v47, 16  ;;  %v434_v61 = vor.u32 %v433_v53, %v429_v52  ;;  %v1904_v15 = vld [vmem:[%s2056_s25 + $0x8] sm:$0x10]  ;;  %v1671_v19 = vld [vmem:[%s2056_s25 + $0x10] sm:$0xf] }
  0x1b   : > { %v406_v59 = vrot.slane %v404_v51, 1  ;;  %v461_v62 = vor.u32 %v460_v55, %v456_v54  ;;  %v1905_v20 = vld [vmem:[%s2056_s25 + $0x10] sm:$0x10]  ;;  %v1668_v21 = vor.u32 %v1904_v15, %v1667_v14  ;;  %v1906_v25 = vld [vmem:[%s2056_s25 + $0x18] sm:$0x10]  ;;  %v2296_v39 = vld [vmem:[%s2766_s1 + $0xa0] sm:$0xff] }
  0x1c   : > { %305 = vmatpush.bf16.msra.mxu0 %v2063_v4  ;;  %332 = vmatpush.bf16.msra.mxu1 %v2063_v4  ;;  %v488_v63 = vor.u32 %v487_v57, %v483_v56  ;;  %v1672_v22 = vor.u32 %v1905_v20, %v1671_v19  ;;  %v1679_v26 = vld [vmem:[%s2056_s25 + $0x20] sm:$0xf]  ;;  %v1907_v27 = vld [vmem:[%s2056_s25 + $0x20] sm:$0x10]  ;;  %v1683_v28 = vld [vmem:[%s2056_s25 + $0x28] sm:$0xf] }
  0x1d   : > { %359 = vmatpush.bf16.msra.mxu2 %v2063_v4  ;;  %386 = vmatpush.bf16.msra.mxu3 %v2063_v4  ;;  %v407_v5 = vor.u32 %v406_v59, %v402_v58  ;;  %v1908_v29 = vld [vmem:[%s2056_s25 + $0x28] sm:$0x10]  ;;  %v1687_v30 = vld [vmem:[%s2056_s25 + $0x30] sm:$0xf]  ;;  %v1909_v31 = vld [vmem:[%s2056_s25 + $0x30] sm:$0x10] }
  0x1e   : > { %v1688_v36 = vor.u32 %v1909_v31, %v1687_v30  ;;  %v2314_v41 = vld [vmem:[%s2766_s1 + $0x90] sm:$0xff]  ;;  %v2323_v42 = vld [vmem:[%s2766_s1 + $0x88] sm:$0xff]  ;;  %v2330_v43 = vld [vmem:[%s2766_s1 + $0x80] sm:$0xff] }
  0x1f   : > { %v1691_v44 = vld [vmem:[%s2056_s25 + $0x38] sm:$0xf]  ;;  %v1910_v45 = vld [vmem:[%s2056_s25 + $0x38] sm:$0x10]  ;;  %v1695_v46 = vld [vmem:[%s2056_s25 + $0x40] sm:$0xf] }
  0x20   : > { %306 = vmatpush.bf16.msra.mxu0 %v2076_v9  ;;  %333 = vmatpush.bf16.msra.mxu1 %v2076_v9  ;;  %v1911_v47 = vld [vmem:[%s2056_s25 + $0x40] sm:$0x10]  ;;  %v1733_v48 = vld [vmem:[%s2056_s25 + $0x8] sm:$0xf]  ;;  %v1937_v49 = vld [vmem:[%s2056_s25 + $0x8] sm:$0x10]  ;;  %v1692_v52 = vor.u32 %v1910_v45, %v1691_v44 }
  0x21   : > { %360 = vmatpush.bf16.msra.mxu2 %v2076_v9  ;;  %387 = vmatpush.bf16.msra.mxu3 %v2076_v9  ;;  %v1769_v50 = vld [vmem:[%s2056_s25 + $0x10] sm:$0xf]  ;;  %v1938_v51 = vld [vmem:[%s2056_s25 + $0x10] sm:$0x10]  ;;  %v1696_v53 = vor.u32 %v1911_v47, %v1695_v46  ;;  %v1734_v54 = vor.u32 %v1937_v49, %v1733_v48  ;;  %v1773_v56 = vld [vmem:[%s2056_s25 + $0x18] sm:$0xf] }
  0x22   : > { %v1770_v55 = vor.u32 %v1938_v51, %v1769_v50  ;;  %v1939_v57 = vld [vmem:[%s2056_s25 + $0x18] sm:$0x10]  ;;  %v1777_v58 = vld [vmem:[%s2056_s25 + $0x20] sm:$0xf]  ;;  %v1940_v59 = vld [vmem:[%s2056_s25 + $0x20] sm:$0x10] }
  0x23   : > { %v1954_v14 = vld [vmem:[%s2056_s25 + $0x8] sm:$0x10]  ;;  %v2448_v19 = vld [vmem:[%s2766_s1 + $0xd0] sm:$0xff]  ;;  %v1793_v30 = vld [vmem:[%s2056_s25 + $0x40] sm:$0xf] }
  0x24   : > { %307 = vmatpush.bf16.msra.mxu0 %v2089_v18  ;;  %334 = vmatpush.bf16.msra.mxu1 %v2089_v18  ;;  %v1944_v31 = vld [vmem:[%s2056_s25 + $0x40] sm:$0x10]  ;;  %v1871_v44 = vld [vmem:[%s2056_s25 + $0x10] sm:$0xf]  ;;  %v1955_v45 = vld [vmem:[%s2056_s25 + $0x10] sm:$0x10] }
  0x25   : > { %361 = vmatpush.bf16.msra.mxu2 %v2089_v18  ;;  %388 = vmatpush.bf16.msra.mxu3 %v2089_v18  ;;  %v1875_v47 = vld [vmem:[%s2056_s25 + $0x18] sm:$0xf]  ;;  %v1956_v48 = vld [vmem:[%s2056_s25 + $0x18] sm:$0x10]  ;;  %v1879_v49 = vld [vmem:[%s2056_s25 + $0x20] sm:$0xf] }
  0x28   : > { %308 = vmatpush.bf16.msra.mxu0 %v2098_v23  ;;  %335 = vmatpush.bf16.msra.mxu1 %v2098_v23 }
  0x29   : > { %362 = vmatpush.bf16.msra.mxu2 %v2098_v23  ;;  %389 = vmatpush.bf16.msra.mxu3 %v2098_v23 }
  0x2b   : > { %309 = vmatmul.bf16.vlgmr.msra.gmra.mxu0 %v251_v34  ;;  %336 = vmatmul.bf16.vlgmr.msra.gmra.mxu1 %v326_v35  ;;  %v1680_v34 = vor.u32 %v1907_v27, %v1679_v26  ;;  %v1684_v35 = vor.u32 %v1908_v29, %v1683_v28  ;;  %v1789_v26 = vld [vmem:[%s2056_s25 + $0x38] sm:$0xf]  ;;  %v1943_v29 = vld [vmem:[%s2056_s25 + $0x38] sm:$0x10] }
  0x2c   : > { %409 = vmatpush.bf16.msrb.mxu0 %v2021_v0  ;;  %436 = vmatpush.bf16.msrb.mxu1 %v2021_v0 }
  0x2d   : > { %463 = vmatpush.bf16.msrb.mxu2 %v2021_v0  ;;  %490 = vmatpush.bf16.msrb.mxu3 %v2021_v0 }
  0x2e   : > { %363 = vmatmul.bf16.vlgmr.msra.gmra.mxu2 %v353_v32  ;;  %390 = vmatmul.bf16.vlgmr.msra.gmra.mxu3 %v380_v33  ;;  %v2265_v32 = vld [vmem:[%s2766_s1 + $0xb8] sm:$0xff] }
  0x30   : > { %410 = vmatpush.bf16.msrb.mxu0 %v2028_v1  ;;  %437 = vmatpush.bf16.msrb.mxu1 %v2028_v1 }
  0x31   : > { %464 = vmatpush.bf16.msrb.mxu2 %v2028_v1  ;;  %491 = vmatpush.bf16.msrb.mxu3 %v2028_v1 }
  0x34   : > { %411 = vmatpush.bf16.msrb.mxu0 %v2039_v2  ;;  %438 = vmatpush.bf16.msrb.mxu1 %v2039_v2 }
  0x35   : > { %465 = vmatpush.bf16.msrb.mxu2 %v2039_v2  ;;  %492 = vmatpush.bf16.msrb.mxu3 %v2039_v2 }
  0x38   : > { %412 = vmatpush.bf16.msrb.mxu0 %v2049_v3  ;;  %439 = vmatpush.bf16.msrb.mxu1 %v2049_v3 }
  0x39   : > { %466 = vmatpush.bf16.msrb.mxu2 %v2049_v3  ;;  %493 = vmatpush.bf16.msrb.mxu3 %v2049_v3 }
  0x3c   : > { %413 = vmatpush.bf16.msrb.mxu0 %v2063_v4  ;;  %440 = vmatpush.bf16.msrb.mxu1 %v2063_v4 }
  0x3d   : > { %467 = vmatpush.bf16.msrb.mxu2 %v2063_v4  ;;  %494 = vmatpush.bf16.msrb.mxu3 %v2063_v4 }
  0x40   : > { %414 = vmatpush.bf16.msrb.mxu0 %v2076_v9  ;;  %441 = vmatpush.bf16.msrb.mxu1 %v2076_v9 }
  0x41   : > { %468 = vmatpush.bf16.msrb.mxu2 %v2076_v9  ;;  %495 = vmatpush.bf16.msrb.mxu3 %v2076_v9 }
  0x44   : > { %415 = vmatpush.bf16.msrb.mxu0 %v2089_v18  ;;  %442 = vmatpush.bf16.msrb.mxu1 %v2089_v18 }
  0x45   : > { %469 = vmatpush.bf16.msrb.mxu2 %v2089_v18  ;;  %496 = vmatpush.bf16.msrb.mxu3 %v2089_v18 }
  0x48   : > { %416 = vmatpush.bf16.msrb.mxu0 %v2098_v23  ;;  %443 = vmatpush.bf16.msrb.mxu1 %v2098_v23 }
  0x49   : > { %470 = vmatpush.bf16.msrb.mxu2 %v2098_v23  ;;  %497 = vmatpush.bf16.msrb.mxu3 %v2098_v23 }
  0x4b   : > { %444 = vmatmul.bf16.vlgmr.msrb.gmra.mxu1 %v434_v61  ;;  %417 = vmatmul.bf16.vlgmr.msrb.gmra.mxu0 %v407_v5  ;;  %v1941_v61 = vld [vmem:[%s2056_s25 + $0x28] sm:$0x10]  ;;  %v2385_v5 = vld [vmem:[%s2766_s1 + $0xf8] sm:$0xff] }
  0x4c   : > { %517 = vmatpush.bf16.msra.mxu0 %v2021_v0  ;;  %585 = vmatpush.bf16.msra.mxu1 %v2145_v60  ;;  %v2165_v0 = vld [vmem:[%s2766_s1 + $0x28] sm:$0xff] }
  0x4d   : > { %605 = vmatpush.bf16.msra.mxu2 %v2145_v60  ;;  %625 = vmatpush.bf16.msra.mxu3 %v2145_v60 }
  0x4e   : > { %471 = vmatmul.bf16.vlgmr.msrb.gmra.mxu2 %v461_v62  ;;  %498 = vmatmul.bf16.vlgmr.msrb.gmra.mxu3 %v488_v63  ;;  %v1785_v62 = vld [vmem:[%s2056_s25 + $0x30] sm:$0xf]  ;;  %v1942_v63 = vld [vmem:[%s2056_s25 + $0x30] sm:$0x10] }
  0x50   : > { %518 = vmatpush.bf16.msra.mxu0 %v2028_v1  ;;  %586 = vmatpush.bf16.msra.mxu1 %v2156_v6  ;;  %v2174_v1 = vld [vmem:[%s2766_s1 + $0x20] sm:$0xff] }
  0x51   : > { %606 = vmatpush.bf16.msra.mxu2 %v2156_v6  ;;  %626 = vmatpush.bf16.msra.mxu3 %v2156_v6 }
  0x54   : > { %519 = vmatpush.bf16.msra.mxu0 %v2039_v2  ;;  %587 = vmatpush.bf16.msra.mxu1 %v2165_v0  ;;  %v1627_v2 = vld [vmem:[%s2056_s25 + $0x40] sm:$0xf] }
  0x55   : > { %607 = vmatpush.bf16.msra.mxu2 %v2165_v0  ;;  %627 = vmatpush.bf16.msra.mxu3 %v2165_v0  ;;  %v1628_v10 = vor.u32 %v1928_v8, %v1627_v2  ;;  %v2398_v2 = vld [vmem:[%s2766_s1 + $0xf0] sm:$0xff] }
  0x57   : > { %v512_v11 = vshll.u32 %v1628_v10, 16  ;;  %v510_v16 = vshrl.u32 %v1628_v10, 16 }
  0x58   : > { %520 = vmatpush.bf16.msra.mxu0 %v2049_v3  ;;  %588 = vmatpush.bf16.msra.mxu1 %v2174_v1  ;;  %v2194_v3 = vld [vmem:[%s2766_s1 + $0x10] sm:$0xff] }
  0x59   : > { %608 = vmatpush.bf16.msra.mxu2 %v2174_v1  ;;  %628 = vmatpush.bf16.msra.mxu3 %v2174_v1  ;;  %v514_v17 = vrot.slane %v512_v11, 1 }
  0x5b   : > { %v515_v24 = vor.u32 %v514_v17, %v510_v16 }
  0x5c   : > { %521 = vmatpush.bf16.msra.mxu0 %v2063_v4  ;;  %589 = vmatpush.bf16.msra.mxu1 %v2183_v7  ;;  %v2203_v4 = vld [vmem:[%s2766_s1 + $0x8] sm:$0xff] }
  0x5d   : > { %609 = vmatpush.bf16.msra.mxu2 %v2183_v7  ;;  %629 = vmatpush.bf16.msra.mxu3 %v2183_v7 }
  0x60   : > { %522 = vmatpush.bf16.msra.mxu0 %v2076_v9  ;;  %590 = vmatpush.bf16.msra.mxu1 %v2194_v3  ;;  %v2212_v9 = vld [vmem:[%s2766_s1] sm:$0xff] }
  0x61   : > { %610 = vmatpush.bf16.msra.mxu2 %v2194_v3  ;;  %630 = vmatpush.bf16.msra.mxu3 %v2194_v3 }
  0x64   : > { %523 = vmatpush.bf16.msra.mxu0 %v2089_v18  ;;  %591 = vmatpush.bf16.msra.mxu1 %v2203_v4  ;;  %v1632_v18 = vor.u32 %v1903_v13, %v1631_v12  ;;  %v2433_v12 = vld [vmem:[%s2766_s1 + $0xd8] sm:$0xff]  ;;  %v1835_v13 = vld [vmem:[%s2056_s25 + $0x8] sm:$0xf] }
  0x65   : > { %611 = vmatpush.bf16.msra.mxu2 %v2203_v4  ;;  %631 = vmatpush.bf16.msra.mxu3 %v2203_v4  ;;  %v1836_v17 = vor.u32 %v1954_v14, %v1835_v13 }
  0x67   : > { %v1082_v27 = vshrl.u32 %v1836_v17, 16 }
  0x68   : > { %524 = vmatpush.bf16.msra.mxu0 %v2098_v23  ;;  %592 = vmatpush.bf16.msra.mxu1 %v2212_v9  ;;  %v1675_v23 = vld [vmem:[%s2056_s25 + $0x18] sm:$0xf] }
  0x69   : > { %612 = vmatpush.bf16.msra.mxu2 %v2212_v9  ;;  %632 = vmatpush.bf16.msra.mxu3 %v2212_v9  ;;  %v1676_v33 = vor.u32 %v1906_v25, %v1675_v23  ;;  %v2470_v23 = vld [vmem:[%s2766_s1 + $0xc0] sm:$0xff] }
  0x6b   : > { %593 = vmatmul.bf16.vlgmr.msra.gmra.mxu1 %v1632_v18  ;;  %525 = vmatmul.bf16.vlgmr.msra.gmra.mxu0 %v515_v24 }
  0x6c   : > { %645 = vmatpush.bf16.msrb.mxu0 %v2145_v60  ;;  %665 = vmatpush.bf16.msrb.mxu1 %v2145_v60 }
  0x6d   : > { %685 = vmatpush.bf16.msrb.mxu2 %v2145_v60  ;;  %705 = vmatpush.bf16.msrb.mxu3 %v2145_v60 }
  0x6e   : > { %613 = vmatmul.bf16.vlgmr.msra.gmra.mxu2 %v1668_v21  ;;  %633 = vmatmul.bf16.vlgmr.msra.gmra.mxu3 %v1672_v22  ;;  %v1084_v21 = vshll.u32 %v1836_v17, 16  ;;  %v2461_v22 = vld [vmem:[%s2766_s1 + $0xc8] sm:$0xff] }
  0x70   : > { %646 = vmatpush.bf16.msrb.mxu0 %v2156_v6  ;;  %666 = vmatpush.bf16.msrb.mxu1 %v2156_v6  ;;  %v1086_v28 = vrot.slane %v1084_v21, 1 }
  0x71   : > { %686 = vmatpush.bf16.msrb.mxu2 %v2156_v6  ;;  %706 = vmatpush.bf16.msrb.mxu3 %v2156_v6 }
  0x74   : > { %647 = vmatpush.bf16.msrb.mxu0 %v2165_v0  ;;  %667 = vmatpush.bf16.msrb.mxu1 %v2165_v0 }
  0x75   : > { %687 = vmatpush.bf16.msrb.mxu2 %v2165_v0  ;;  %707 = vmatpush.bf16.msrb.mxu3 %v2165_v0 }
  0x78   : > { %648 = vmatpush.bf16.msrb.mxu0 %v2174_v1  ;;  %668 = vmatpush.bf16.msrb.mxu1 %v2174_v1 }
  0x79   : > { %688 = vmatpush.bf16.msrb.mxu2 %v2174_v1  ;;  %708 = vmatpush.bf16.msrb.mxu3 %v2174_v1 }
  0x7c   : > { %649 = vmatpush.bf16.msrb.mxu0 %v2183_v7  ;;  %669 = vmatpush.bf16.msrb.mxu1 %v2183_v7 }
  0x7d   : > { %689 = vmatpush.bf16.msrb.mxu2 %v2183_v7  ;;  %709 = vmatpush.bf16.msrb.mxu3 %v2183_v7 }
  0x80   : > { %650 = vmatpush.bf16.msrb.mxu0 %v2194_v3  ;;  %670 = vmatpush.bf16.msrb.mxu1 %v2194_v3 }
  0x81   : > { %690 = vmatpush.bf16.msrb.mxu2 %v2194_v3  ;;  %710 = vmatpush.bf16.msrb.mxu3 %v2194_v3 }
  0x84   : > { %651 = vmatpush.bf16.msrb.mxu0 %v2203_v4  ;;  %671 = vmatpush.bf16.msrb.mxu1 %v2203_v4 }
  0x85   : > { %691 = vmatpush.bf16.msrb.mxu2 %v2203_v4  ;;  %711 = vmatpush.bf16.msrb.mxu3 %v2203_v4 }
  0x88   : > { %652 = vmatpush.bf16.msrb.mxu0 %v2212_v9  ;;  %672 = vmatpush.bf16.msrb.mxu1 %v2212_v9 }
  0x89   : > { %692 = vmatpush.bf16.msrb.mxu2 %v2212_v9  ;;  %712 = vmatpush.bf16.msrb.mxu3 %v2212_v9 }
  0x8b   : > { %653 = vmatmul.bf16.vlgmr.msrb.gmra.mxu0 %v1676_v33  ;;  %673 = vmatmul.bf16.vlgmr.msrb.gmra.mxu1 %v1680_v34  ;;  %v1945_v33 = vld [vmem:[%s2056_s25 + $0x48] sm:$0x10] }
  0x8c   : > { %725 = vmatpush.bf16.msra.mxu0 %v2145_v60  ;;  %745 = vmatpush.bf16.msra.mxu1 %v2145_v60  ;;  %v1781_v60 = vld [vmem:[%s2056_s25 + $0x28] sm:$0xf] }
  0x8d   : > { %849 = vmatpush.bf16.msra.mxu2 %v2265_v32  ;;  %869 = vmatpush.bf16.msra.mxu3 %v2265_v32 }
  0x8e   : > { %693 = vmatmul.bf16.vlgmr.msrb.gmra.mxu2 %v1684_v35  ;;  %713 = vmatmul.bf16.vlgmr.msrb.gmra.mxu3 %v1688_v36  ;;  %v1790_v35 = vor.u32 %v1943_v29, %v1789_v26  ;;  %v1794_v36 = vor.u32 %v1944_v31, %v1793_v30 }
  0x90   : > { %726 = vmatpush.bf16.msra.mxu0 %v2156_v6  ;;  %746 = vmatpush.bf16.msra.mxu1 %v2156_v6  ;;  %v1774_v6 = vor.u32 %v1939_v57, %v1773_v56  ;;  %v1872_v56 = vor.u32 %v1955_v45, %v1871_v44  ;;  %v1876_v57 = vor.u32 %v1956_v48, %v1875_v47  ;;  %v1891_v44 = vld [vmem:[%s2056_s25 + $0x38] sm:$0xf]  ;;  %v1895_v45 = vld [vmem:[%s2056_s25 + $0x40] sm:$0xf]  ;;  %v1962_v47 = vld [vmem:[%s2056_s25 + $0x48] sm:$0x10] }
  0x91   : > { %850 = vmatpush.bf16.msra.mxu2 %v2278_v37  ;;  %870 = vmatpush.bf16.msra.mxu3 %v2278_v37 }
  0x92   : > { %v1157_v13 = vshrl.u32 %v1872_v56, 16  ;;  %v1184_v17 = vshrl.u32 %v1876_v57, 16 }
  0x94   : > { %727 = vmatpush.bf16.msra.mxu0 %v2165_v0  ;;  %747 = vmatpush.bf16.msra.mxu1 %v2165_v0  ;;  %v1778_v0 = vor.u32 %v1940_v59, %v1777_v58 }
  0x95   : > { %851 = vmatpush.bf16.msra.mxu2 %v2287_v38  ;;  %871 = vmatpush.bf16.msra.mxu3 %v2287_v38 }
  0x98   : > { %728 = vmatpush.bf16.msra.mxu0 %v2174_v1  ;;  %748 = vmatpush.bf16.msra.mxu1 %v2174_v1  ;;  %v1782_v1 = vor.u32 %v1941_v61, %v1781_v60 }
  0x99   : > { %852 = vmatpush.bf16.msra.mxu2 %v2296_v39  ;;  %872 = vmatpush.bf16.msra.mxu3 %v2296_v39 }
  0x9c   : > { %729 = vmatpush.bf16.msra.mxu0 %v2183_v7  ;;  %749 = vmatpush.bf16.msra.mxu1 %v2183_v7  ;;  %v1786_v7 = vor.u32 %v1942_v63, %v1785_v62  ;;  %v1159_v62 = vshll.u32 %v1872_v56, 16  ;;  %v1186_v63 = vshll.u32 %v1876_v57, 16 }
  0x9d   : > { %853 = vmatpush.bf16.msra.mxu2 %v2305_v40  ;;  %873 = vmatpush.bf16.msra.mxu3 %v2305_v40 }
  0x9e   : > { %v1161_v14 = vrot.slane %v1159_v62, 1  ;;  %v1188_v21 = vrot.slane %v1186_v63, 1 }
  0xa0   : > { %730 = vmatpush.bf16.msra.mxu0 %v2194_v3  ;;  %750 = vmatpush.bf16.msra.mxu1 %v2194_v3  ;;  %v2409_v3 = vld [vmem:[%s2766_s1 + $0xe8] sm:$0xff]  ;;  %v1189_v30 = vor.u32 %v1188_v21, %v1184_v17 }
  0xa1   : > { %854 = vmatpush.bf16.msra.mxu2 %v2314_v41  ;;  %874 = vmatpush.bf16.msra.mxu3 %v2314_v41 }
  0xa4   : > { %731 = vmatpush.bf16.msra.mxu0 %v2203_v4  ;;  %751 = vmatpush.bf16.msra.mxu1 %v2203_v4 }
  0xa5   : > { %855 = vmatpush.bf16.msra.mxu2 %v2323_v42  ;;  %875 = vmatpush.bf16.msra.mxu3 %v2323_v42 }
  0xa8   : > { %732 = vmatpush.bf16.msra.mxu0 %v2212_v9  ;;  %752 = vmatpush.bf16.msra.mxu1 %v2212_v9  ;;  %v2415_v4 = vpop.f32.mrf.mxu0  ;;  %v2417_v11 = vpop.f32.mrf.mxu1  ;;  %v2424_v9 = vld [vmem:[%s2766_s1 + $0xe0] sm:$0xff] }
  0xa9   : > { %856 = vmatpush.bf16.msra.mxu2 %v2330_v43  ;;  %876 = vmatpush.bf16.msra.mxu3 %v2330_v43 }
  0xab   : > { %733 = vmatmul.bf16.vlgmr.msra.gmra.mxu0 %v1692_v52  ;;  %753 = vmatmul.bf16.vlgmr.msra.gmra.mxu1 %v1696_v53  ;;  %v1957_v52 = vld [vmem:[%s2056_s25 + $0x20] sm:$0x10]  ;;  %v1883_v53 = vld [vmem:[%s2056_s25 + $0x28] sm:$0xf] }
  0xac   : > { %889 = vmatpush.bf16.msrb.mxu0 %v2265_v32  ;;  %909 = vmatpush.bf16.msrb.mxu1 %v2265_v32  ;;  %v1880_v59 = vor.u32 %v1957_v52, %v1879_v49 }
  0xad   : > { %929 = vmatpush.bf16.msrb.mxu2 %v2265_v32  ;;  %949 = vmatpush.bf16.msrb.mxu3 %v2265_v32 }
  0xae   : > { %857 = vmatmul.bf16.vlgmr.msra.gmra.mxu2 %v1734_v54  ;;  %877 = vmatmul.bf16.vlgmr.msra.gmra.mxu3 %v1770_v55  ;;  %v1958_v54 = vld [vmem:[%s2056_s25 + $0x28] sm:$0x10]  ;;  %v1211_v26 = vshrl.u32 %v1880_v59, 16 }
  0xaf   : > { %v1884_v60 = vor.u32 %v1958_v54, %v1883_v53 }
  0xb0   : > { %890 = vmatpush.bf16.msrb.mxu0 %v2278_v37  ;;  %910 = vmatpush.bf16.msrb.mxu1 %v2278_v37  ;;  %v2450_v20 = vpop.f32.mrf.mxu0  ;;  %v2452_v18 = vpop.f32.mrf.mxu1 }
  0xb1   : > { %930 = vmatpush.bf16.msrb.mxu2 %v2278_v37  ;;  %950 = vmatpush.bf16.msrb.mxu3 %v2278_v37  ;;  %v2404_v8 = vpop.f32.mrf.mxu2  ;;  %v2411_v10 = vpop.f32.mrf.mxu3 }
  0xb4   : > { %891 = vmatpush.bf16.msrb.mxu0 %v2287_v38  ;;  %911 = vmatpush.bf16.msrb.mxu1 %v2287_v38 }
  0xb5   : > { %931 = vmatpush.bf16.msrb.mxu2 %v2287_v38  ;;  %951 = vmatpush.bf16.msrb.mxu3 %v2287_v38 }
  0xb8   : > { %892 = vmatpush.bf16.msrb.mxu0 %v2296_v39  ;;  %912 = vmatpush.bf16.msrb.mxu1 %v2296_v39 }
  0xb9   : > { %932 = vmatpush.bf16.msrb.mxu2 %v2296_v39  ;;  %952 = vmatpush.bf16.msrb.mxu3 %v2296_v39  ;;  %v2437_v15 = vpop.f32.mrf.mxu2  ;;  %v2439_v16 = vpop.f32.mrf.mxu3 }
  0xbc   : > { %893 = vmatpush.bf16.msrb.mxu0 %v2305_v40  ;;  %913 = vmatpush.bf16.msrb.mxu1 %v2305_v40 }
  0xbd   : > { %933 = vmatpush.bf16.msrb.mxu2 %v2305_v40  ;;  %953 = vmatpush.bf16.msrb.mxu3 %v2305_v40 }
  0xc0   : > { %894 = vmatpush.bf16.msrb.mxu0 %v2314_v41  ;;  %914 = vmatpush.bf16.msrb.mxu1 %v2314_v41 }
  0xc1   : > { %934 = vmatpush.bf16.msrb.mxu2 %v2314_v41  ;;  %954 = vmatpush.bf16.msrb.mxu3 %v2314_v41 }
  0xc4   : > { %895 = vmatpush.bf16.msrb.mxu0 %v2323_v42  ;;  %915 = vmatpush.bf16.msrb.mxu1 %v2323_v42 }
  0xc5   : > { %935 = vmatpush.bf16.msrb.mxu2 %v2323_v42  ;;  %955 = vmatpush.bf16.msrb.mxu3 %v2323_v42 }
  0xc8   : > { %896 = vmatpush.bf16.msrb.mxu0 %v2330_v43  ;;  %916 = vmatpush.bf16.msrb.mxu1 %v2330_v43  ;;  %v2482_v34 = vpop.f32.mrf.mxu0 }
  0xc9   : > { %936 = vmatpush.bf16.msrb.mxu2 %v2330_v43  ;;  %956 = vmatpush.bf16.msrb.mxu3 %v2330_v43 }
  0xcb   : > { %897 = vmatmul.bf16.vlgmr.msrb.gmra.mxu0 %v1774_v6  ;;  %917 = vmatmul.bf16.vlgmr.msrb.gmra.mxu1 %v1778_v0  ;;  %v1213_v0 = vshll.u32 %v1880_v59, 16 }
  0xcc   : > { %969 = vmatpush.bf16.msra.mxu0 %v2265_v32  ;;  %989 = vmatpush.bf16.msra.mxu1 %v2265_v32 }
  0xcd   : > { %1009 = vmatpush.bf16.msra.mxu2 %v2265_v32  ;;  %1137 = vmatpush.bf16.msra.mxu3 %v2385_v5  ;;  %v1797_v32 = vld [vmem:[%s2056_s25 + $0x48] sm:$0xf] }
  0xce   : > { %937 = vmatmul.bf16.vlgmr.msrb.gmra.mxu2 %v1782_v1  ;;  %957 = vmatmul.bf16.vlgmr.msrb.gmra.mxu3 %v1786_v7  ;;  %v1240_v1 = vshll.u32 %v1884_v60, 16 }
  0xd0   : > { %970 = vmatpush.bf16.msra.mxu0 %v2278_v37  ;;  %990 = vmatpush.bf16.msra.mxu1 %v2278_v37 }
  0xd1   : > { %1010 = vmatpush.bf16.msra.mxu2 %v2278_v37  ;;  %1138 = vmatpush.bf16.msra.mxu3 %v2398_v2  ;;  %v2463_v24 = vpop.f32.mrf.mxu2  ;;  %v2472_v25 = vpop.f32.mrf.mxu3 }
  0xd2   : > { %v2486_v37 = vpop.f32.mrf.mxu1 }
  0xd4   : > { %971 = vmatpush.bf16.msra.mxu0 %v2287_v38  ;;  %991 = vmatpush.bf16.msra.mxu1 %v2287_v38 }
  0xd5   : > { %1011 = vmatpush.bf16.msra.mxu2 %v2287_v38  ;;  %1139 = vmatpush.bf16.msra.mxu3 %v2409_v3  ;;  %v1798_v38 = vor.u32 %v1945_v33, %v1797_v32 }
  0xd8   : > { %972 = vmatpush.bf16.msra.mxu0 %v2296_v39  ;;  %992 = vmatpush.bf16.msra.mxu1 %v2296_v39 }
  0xd9   : > { %1012 = vmatpush.bf16.msra.mxu2 %v2296_v39  ;;  %1140 = vmatpush.bf16.msra.mxu3 %v2424_v9  ;;  %v1087_v39 = vor.u32 %v1086_v28, %v1082_v27  ;;  %v1215_v27 = vrot.slane %v1213_v0, 1  ;;  %v1242_v28 = vrot.slane %v1240_v1, 1 }
  0xdb   : > { %v1216_v32 = vor.u32 %v1215_v27, %v1211_v26 }
  0xdc   : > { %973 = vmatpush.bf16.msra.mxu0 %v2305_v40  ;;  %993 = vmatpush.bf16.msra.mxu1 %v2305_v40 }
  0xdd   : > { %1013 = vmatpush.bf16.msra.mxu2 %v2305_v40  ;;  %1141 = vmatpush.bf16.msra.mxu3 %v2433_v12  ;;  %v2494_v40 = vpop.f32.mrf.mxu2 }
  0xe0   : > { %974 = vmatpush.bf16.msra.mxu0 %v2314_v41  ;;  %994 = vmatpush.bf16.msra.mxu1 %v2314_v41 }
  0xe1   : > { %1014 = vmatpush.bf16.msra.mxu2 %v2314_v41  ;;  %1142 = vmatpush.bf16.msra.mxu3 %v2448_v19  ;;  %v2498_v41 = vpop.f32.mrf.mxu3 }
  0xe4   : > { %975 = vmatpush.bf16.msra.mxu0 %v2323_v42  ;;  %995 = vmatpush.bf16.msra.mxu1 %v2323_v42 }
  0xe5   : > { %1015 = vmatpush.bf16.msra.mxu2 %v2323_v42  ;;  %1143 = vmatpush.bf16.msra.mxu3 %v2461_v22  ;;  %v2502_v42 = vpop.f32.mrf.mxu0 }
  0xe8   : > { %976 = vmatpush.bf16.msra.mxu0 %v2330_v43  ;;  %996 = vmatpush.bf16.msra.mxu1 %v2330_v43 }
  0xe9   : > { %1016 = vmatpush.bf16.msra.mxu2 %v2330_v43  ;;  %1144 = vmatpush.bf16.msra.mxu3 %v2470_v23  ;;  %v2506_v43 = vpop.f32.mrf.mxu1 }
  0xeb   : > { %977 = vmatmul.bf16.vlgmr.msra.gmra.mxu0 %v1790_v35  ;;  %997 = vmatmul.bf16.vlgmr.msra.gmra.mxu1 %v1794_v36 }
  0xec   : > { %1164 = vmatpush.bf16.msrb.mxu0 %v2385_v5  ;;  %1191 = vmatpush.bf16.msrb.mxu1 %v2385_v5 }
  0xed   : > { %1218 = vmatpush.bf16.msrb.mxu2 %v2385_v5  ;;  %1245 = vmatpush.bf16.msrb.mxu3 %v2385_v5  ;;  %v2532_v58 = vpop.f32.mrf.mxu0 }
  0xee   : > { %1017 = vmatmul.bf16.vlgmr.msra.gmra.mxu2 %v1798_v38  ;;  %1145 = vmatmul.bf16.vlgmr.msra.gmra.mxu3 %v1087_v39  ;;  %v1887_v38 = vld [vmem:[%s2056_s25 + $0x30] sm:$0xf]  ;;  %v1959_v39 = vld [vmem:[%s2056_s25 + $0x30] sm:$0x10] }
  0xf0   : > { %1165 = vmatpush.bf16.msrb.mxu0 %v2398_v2  ;;  %1192 = vmatpush.bf16.msrb.mxu1 %v2398_v2 }
  0xf1   : > { %1219 = vmatpush.bf16.msrb.mxu2 %v2398_v2  ;;  %1246 = vmatpush.bf16.msrb.mxu3 %v2398_v2  ;;  %v614_v46 = vpop.f32.mrf.mxu2  ;;  %v634_v51 = vpop.f32.mrf.mxu3 }
  0xf2   : > { %v2520_v50 = vadd.f32 %v614_v46, %v2417_v11  ;;  %v2526_v55 = vadd.f32 %v634_v51, %v2404_v8  ;;  %v2534_v61 = vpop.f32.mrf.mxu1  ;;  %v1961_v46 = vld [vmem:[%s2056_s25 + $0x40] sm:$0x10]  ;;  %v1888_v51 = vor.u32 %v1959_v39, %v1887_v38 }
  0xf3   : > { %v1896_v57 = vor.u32 %v1961_v46, %v1895_v45 }
  0xf4   : > { %1166 = vmatpush.bf16.msrb.mxu0 %v2409_v3  ;;  %1193 = vmatpush.bf16.msrb.mxu1 %v2409_v3 }
  0xf5   : > { %1220 = vmatpush.bf16.msrb.mxu2 %v2409_v3  ;;  %1247 = vmatpush.bf16.msrb.mxu3 %v2409_v3  ;;  %v2550_v29 = vpop.f32.mrf.mxu0  ;;  %v1321_v62 = vshll.u32 %v1896_v57, 16 }
  0xf7   : > { %v1323_v17 = vrot.slane %v1321_v62, 1 }
  0xf8   : > { %1167 = vmatpush.bf16.msrb.mxu0 %v2424_v9  ;;  %1194 = vmatpush.bf16.msrb.mxu1 %v2424_v9 }
  0xf9   : > { %1221 = vmatpush.bf16.msrb.mxu2 %v2424_v9  ;;  %1248 = vmatpush.bf16.msrb.mxu3 %v2424_v9  ;;  %v616_v6 = vpop.f32.mrf.mxu2  ;;  %v636_v8 = vpop.f32.mrf.mxu3 }
  0xfa   : > { %v2541_v7 = vadd.f32 %v616_v6, %v2452_v18  ;;  %v2544_v11 = vadd.f32 %v636_v8, %v2437_v15  ;;  %v1238_v18 = vshrl.u32 %v1884_v60, 16  ;;  %v1162_v15 = vor.u32 %v1161_v14, %v1157_v13  ;;  %v2554_v31 = vpop.f32.mrf.mxu1 }
  0xfb   : > { %v1265_v6 = vshrl.u32 %v1888_v51, 16  ;;  %v1319_v14 = vshrl.u32 %v1896_v57, 16  ;;  %v597_v57 = vadd.f32 %v2554_v31, %v2450_v20 }
  0xfc   : > { %1168 = vmatpush.bf16.msrb.mxu0 %v2433_v12  ;;  %1195 = vmatpush.bf16.msrb.mxu1 %v2433_v12  ;;  %v1243_v33 = vor.u32 %v1242_v28, %v1238_v18 }
  0xfd   : > { %1222 = vmatpush.bf16.msrb.mxu2 %v2433_v12  ;;  %1249 = vmatpush.bf16.msrb.mxu3 %v2433_v12 }
 0x100   : > { %1169 = vmatpush.bf16.msrb.mxu0 %v2448_v19  ;;  %1196 = vmatpush.bf16.msrb.mxu1 %v2448_v19 }
 0x101   : > { %1223 = vmatpush.bf16.msrb.mxu2 %v2448_v19  ;;  %1250 = vmatpush.bf16.msrb.mxu3 %v2448_v19 }
 0x104   : > { %1170 = vmatpush.bf16.msrb.mxu0 %v2461_v22  ;;  %1197 = vmatpush.bf16.msrb.mxu1 %v2461_v22 }
 0x105   : > { %1224 = vmatpush.bf16.msrb.mxu2 %v2461_v22  ;;  %1251 = vmatpush.bf16.msrb.mxu3 %v2461_v22 }
 0x108   : > { %1171 = vmatpush.bf16.msrb.mxu0 %v2470_v23  ;;  %1198 = vmatpush.bf16.msrb.mxu1 %v2470_v23  ;;  %v2566_v35 = vpop.f32.mrf.mxu0 }
 0x109   : > { %1225 = vmatpush.bf16.msrb.mxu2 %v2470_v23  ;;  %1252 = vmatpush.bf16.msrb.mxu3 %v2470_v23 }
 0x10b   : > { %1172 = vmatmul.bf16.vlgmr.msrb.gmra.mxu0 %v1162_v15  ;;  %1199 = vmatmul.bf16.vlgmr.msrb.gmra.mxu1 %v1189_v30 }
 0x10c   : > { %1272 = vmatpush.bf16.msra.mxu0 %v2385_v5  ;;  %1299 = vmatpush.bf16.msra.mxu1 %v2385_v5 }
 0x10d   : > { %1326 = vmatpush.bf16.msra.mxu2 %v2385_v5  ;;  %1353 = vmatpush.bf16.msra.mxu3 %v2385_v5  ;;  %v674_v5 = vpop.f32.mrf.mxu1 }
 0x10e   : > { %1226 = vmatmul.bf16.vlgmr.msrb.gmra.mxu2 %v1216_v32  ;;  %1253 = vmatmul.bf16.vlgmr.msrb.gmra.mxu3 %v1243_v33  ;;  %v2571_v36 = vadd.f32 %v674_v5, %v2482_v34  ;;  %v1899_v34 = vld [vmem:[%s2056_s25 + $0x48] sm:$0xf] }
 0x10f   : > { %v1900_v60 = vor.u32 %v1962_v47, %v1899_v34 }
 0x110   : > { %1273 = vmatpush.bf16.msra.mxu0 %v2398_v2  ;;  %1300 = vmatpush.bf16.msra.mxu1 %v2398_v2  ;;  %v656_v53 = vpop.f32.mrf.mxu0 }
 0x111   : > { %1327 = vmatpush.bf16.msra.mxu2 %v2398_v2  ;;  %1354 = vmatpush.bf16.msra.mxu3 %v2398_v2  ;;  %v1960_v2 = vld [vmem:[%s2056_s25 + $0x38] sm:$0x10]  ;;  %v694_v48 = vpop.f32.mrf.mxu2  ;;  %v714_v49 = vpop.f32.mrf.mxu3  ;;  %v1348_v63 = vshll.u32 %v1900_v60, 16  ;;  %v1346_v21 = vshrl.u32 %v1900_v60, 16 }
 0x112   : > { %v2589_v52 = vadd.f32 %v714_v49, %v2463_v24  ;;  %v1892_v56 = vor.u32 %v1960_v2, %v1891_v44  ;;  %v1267_v24 = vshll.u32 %v1888_v51, 16  ;;  %v2639_v51 = vld [vmem:[%s2767_s2] ss:$0 sm:$0xff] }
 0x113   : > { %v1350_v26 = vrot.slane %v1348_v63, 1 }
 0x114   : > { %1274 = vmatpush.bf16.msra.mxu0 %v2409_v3  ;;  %1301 = vmatpush.bf16.msra.mxu1 %v2409_v3  ;;  %v1269_v0 = vrot.slane %v1267_v24, 1  ;;  %v1292_v8 = vshrl.u32 %v1892_v56, 16 }
 0x115   : > { %1328 = vmatpush.bf16.msra.mxu2 %v2409_v3  ;;  %1355 = vmatpush.bf16.msra.mxu3 %v2409_v3  ;;  %v695_v3 = vadd.f32 %v694_v48, %v2486_v37  ;;  %v676_v54 = vpop.f32.mrf.mxu1  ;;  %v1294_v37 = vshll.u32 %v1892_v56, 16 }
 0x116   : > { %v2597_v59 = vadd.f32 %v676_v54, %v2502_v42 }
 0x117   : > { %v1296_v13 = vrot.slane %v1294_v37, 1 }
 0x118   : > { %1275 = vmatpush.bf16.msra.mxu0 %v2424_v9  ;;  %1302 = vmatpush.bf16.msra.mxu1 %v2424_v9 }
 0x119   : > { %1329 = vmatpush.bf16.msra.mxu2 %v2424_v9  ;;  %1356 = vmatpush.bf16.msra.mxu3 %v2424_v9  ;;  %v2594_v9 = vadd.f32 %v656_v53, %v2439_v16  ;;  %v696_v16 = vpop.f32.mrf.mxu2  ;;  %v716_v42 = vpop.f32.mrf.mxu3  ;;  %v1297_v27 = vor.u32 %v1296_v13, %v1292_v8 }
 0x11a   : > { %v697_v1 = vadd.f32 %v696_v16, %v2506_v43  ;;  %v1351_v43 = vor.u32 %v1350_v26, %v1346_v21 }
 0x11c   : > { %1276 = vmatpush.bf16.msra.mxu0 %v2433_v12  ;;  %1303 = vmatpush.bf16.msra.mxu1 %v2433_v12 }
 0x11d   : > { %1330 = vmatpush.bf16.msra.mxu2 %v2433_v12  ;;  %1357 = vmatpush.bf16.msra.mxu3 %v2433_v12  ;;  %v2607_v12 = vadd.f32 %v716_v42, %v2494_v40  ;;  %v1324_v40 = vor.u32 %v1323_v17, %v1319_v14 }
 0x120   : > { %1277 = vmatpush.bf16.msra.mxu0 %v2448_v19  ;;  %1304 = vmatpush.bf16.msra.mxu1 %v2448_v19 }
 0x121   : > { %1331 = vmatpush.bf16.msra.mxu2 %v2448_v19  ;;  %1358 = vmatpush.bf16.msra.mxu3 %v2448_v19  ;;  %v1270_v19 = vor.u32 %v1269_v0, %v1265_v6  ;;  %v1448_v6 = vld [vmem:[%s2652_s11 + $0x4] sm:$0x1] }
 0x124   : > { %1278 = vmatpush.bf16.msra.mxu0 %v2461_v22  ;;  %1305 = vmatpush.bf16.msra.mxu1 %v2461_v22 }
 0x125   : > { %1332 = vmatpush.bf16.msra.mxu2 %v2461_v22  ;;  %1359 = vmatpush.bf16.msra.mxu3 %v2461_v22 }
 0x128   : > { %1279 = vmatpush.bf16.msra.mxu0 %v2470_v23  ;;  %1306 = vmatpush.bf16.msra.mxu1 %v2470_v23  ;;  %v2617_v18 = vpop.f32.mrf.mxu0  ;;  %v754_v28 = vpop.f32.mrf.mxu1 }
 0x129   : > { %1333 = vmatpush.bf16.msra.mxu2 %v2470_v23  ;;  %1360 = vmatpush.bf16.msra.mxu3 %v2470_v23  ;;  %v2620_v22 = vadd.f32 %v754_v28, %v2532_v58 }
 0x12b   : > { %1280 = vmatmul.bf16.vlgmr.msra.gmra.mxu0 %v1270_v19  ;;  %1307 = vmatmul.bf16.vlgmr.msra.gmra.mxu1 %v1297_v27 }
 0x12c   : > { %1334 = vmatmul.bf16.vlgmr.msra.gmra.mxu2 %v1324_v40  ;;  %1361 = vmatmul.bf16.vlgmr.msra.gmra.mxu3 %v1351_v43 }
 0x130   : > { %v736_v15 = vpop.f32.mrf.mxu0  ;;  %v756_v30 = vpop.f32.mrf.mxu1 }
 0x131   : > { %v2623_v32 = vadd.f32 %v736_v15, %v2498_v41  ;;  %v2626_v33 = vadd.f32 %v756_v30, %v2550_v29  ;;  %v878_v5 = vpop.f32.mrf.mxu3  ;;  %v858_v44 = vpop.f32.mrf.mxu2  ;;  %v595_v41 = vadd.f32 %v2534_v61, %v2415_v4  ;;  %v655_v15 = vadd.f32 %v2566_v35, %v2411_v10 }
 0x132   : > { %v1025_v14 = vadd.f32 %v878_v5, %v2520_v50 }
 0x133   : > { %v1023_v49 = vadd.f32 %v858_v44, %v595_v41 }
 0x139   : > { %v880_v23 = vpop.f32.mrf.mxu3  ;;  %v860_v58 = vpop.f32.mrf.mxu2 }
 0x13a   : > { %v1024_v24 = vadd.f32 %v860_v58, %v597_v57  ;;  %v1026_v5 = vadd.f32 %v880_v23, %v2541_v7 }
 0x148   : > { %v898_v46 = vpop.f32.mrf.mxu0  ;;  %v918_v34 = vpop.f32.mrf.mxu1 }
 0x149   : > { %v1027_v17 = vadd.f32 %v898_v46, %v2526_v55  ;;  %v1029_v50 = vadd.f32 %v918_v34, %v655_v15 }
 0x150   : > { %v900_v48 = vpop.f32.mrf.mxu0  ;;  %v2634_v29 = vpop.f32.mrf.mxu1 }
 0x151   : > { %v958_v38 = vpop.f32.mrf.mxu3  ;;  %v938_v47 = vpop.f32.mrf.mxu2  ;;  %v1028_v44 = vadd.f32 %v900_v48, %v2544_v11 }
 0x152   : > { %v2628_v39 = vadd.f32 %v958_v38, %v695_v3  ;;  %v1031_v55 = vadd.f32 %v938_v47, %v2571_v36 }
 0x159   : > { %v960_v2 = vpop.f32.mrf.mxu3  ;;  %v940_v56 = vpop.f32.mrf.mxu2 }
 0x15a   : > { %v2630_v45 = vadd.f32 %v960_v2, %v697_v1 }
 0x168   : > { %v2645_v60 = vpop.f32.mrf.mxu0  ;;  %v2647_v4 = vpop.f32.mrf.mxu1 }
 0x170   : > { %v2664_v0 = vpop.f32.mrf.mxu0  ;;  %v2666_v1 = vpop.f32.mrf.mxu1 }
 0x171   : > { %v1146_v3 = vpop.f32.mrf.mxu3  ;;  %v2657_v63 = vpop.f32.mrf.mxu2 }
 0x172   : > { %v1367_v53 = vadd.f32 %v1146_v3, %v1023_v49 }
 0x174   : > { %v1389_v54 = vadd.f32 %v2639_v51, %v1367_v53 }
 0x176   : > { %v1407_v61 = vmax.f32 %v1389_v54, 0.0 }
 0x178   : > { %v1425_v37 = vpack.c.bf16 %v1407_v61, %v1407_v61  ;;  %v1030_v61 = vadd.f32 %v2634_v29, %v2594_v9 }
 0x179   : > { %v1148_v62 = vpop.f32.mrf.mxu3  ;;  %v2673_v21 = vpop.f32.mrf.mxu2 }
 0x17a   : > { %1444 = vst.msk [vmem:[%s2652_s11] sm:$0xf] %vm1443_vm0, %v1425_v37  ;;  %v1368_v20 = vadd.f32 %v1148_v62, %v1024_v24  ;;  %v1032_v24 = vadd.f32 %v940_v56, %v2597_v59 }
 0x17c   : > { %v1390_v31 = vadd.f32 %v2639_v51, %v1368_v20  ;;  %v1452_v20 = vld [vmem:[%s2652_s11 + $0xc] sm:$0x1] }
 0x17e   : > { %v1408_v16 = vmax.f32 %v1390_v31, 0.0  ;;  %v1456_v31 = vld [vmem:[%s2652_s11 + $0x14] sm:$0x1] }
 0x180   : > { %v1426_v8 = vpack.c.bf16 %v1408_v16, %v1408_v16 }
 0x182   : > { %v1449_v13 = vsel %vm2659_vm3, %v1426_v8, %v1448_v6 }
 0x183   : > { %1450 = vst [vmem:[%s2652_s11 + $0x4] sm:$0x1] %v1449_v13 }
 0x188   : > { %v1173_v26 = vpop.f32.mrf.mxu0  ;;  %v1200_v19 = vpop.f32.mrf.mxu1 }
 0x189   : > { %v1369_v27 = vadd.f32 %v1173_v26, %v1025_v14  ;;  %v1371_v40 = vadd.f32 %v1200_v19, %v1027_v17 }
 0x18b   : > { %v1391_v43 = vadd.f32 %v2639_v51, %v1369_v27  ;;  %v1393_v28 = vadd.f32 %v2639_v51, %v1371_v40  ;;  %v1460_v27 = vld [vmem:[%s2652_s11 + $0x1c] sm:$0x1]  ;;  %v1464_v40 = vld [vmem:[%s2652_s11 + $0x24] sm:$0x1] }
 0x18d   : > { %v1409_v30 = vmax.f32 %v1391_v43, 0.0  ;;  %v1411_v38 = vmax.f32 %v1393_v28, 0.0 }
 0x18f   : > { %v1427_v2 = vpack.c.bf16 %v1409_v30, %v1409_v30  ;;  %v1429_v58 = vpack.c.bf16 %v1411_v38, %v1411_v38  ;;  %v1035_v38 = vadd.f32 %v2645_v60, %v2589_v52  ;;  %v1039_v52 = vadd.f32 %v2657_v63, %v2620_v22 }
 0x190   : > { %v1175_v53 = vpop.f32.mrf.mxu0  ;;  %v1202_v54 = vpop.f32.mrf.mxu1 }
 0x191   : > { %v1227_v46 = vpop.f32.mrf.mxu2  ;;  %v1254_v41 = vpop.f32.mrf.mxu3  ;;  %1451 = vst.msk [vmem:[%s2652_s11 + $0x8] sm:$0xf] %vm1443_vm0, %v1427_v2  ;;  %v1370_v10 = vadd.f32 %v1175_v53, %v1026_v5  ;;  %v1372_v35 = vadd.f32 %v1202_v54, %v1028_v44 }
 0x192   : > { %v1373_v49 = vadd.f32 %v1227_v46, %v1029_v50  ;;  %v1375_v3 = vadd.f32 %v1254_v41, %v1031_v55  ;;  %1455 = vst.msk [vmem:[%s2652_s11 + $0x10] sm:$0xf] %vm1443_vm0, %v1429_v58  ;;  %v735_v46 = vadd.f32 %v2617_v18, %v2472_v25 }
 0x193   : > { %v1392_v36 = vadd.f32 %v2639_v51, %v1370_v10  ;;  %v1394_v23 = vadd.f32 %v2639_v51, %v1372_v35 }
 0x194   : > { %v1395_v7 = vadd.f32 %v2639_v51, %v1373_v49  ;;  %v1397_v11 = vadd.f32 %v2639_v51, %v1375_v3  ;;  %v1037_v3 = vadd.f32 %v2647_v4, %v735_v46 }
 0x195   : > { %v1410_v48 = vmax.f32 %v1392_v36, 0.0  ;;  %v1412_v57 = vmax.f32 %v1394_v23, 0.0 }
 0x196   : > { %v1413_v34 = vmax.f32 %v1395_v7, 0.0  ;;  %v1415_v47 = vmax.f32 %v1397_v11, 0.0 }
 0x197   : > { %v1428_v16 = vpack.c.bf16 %v1410_v48, %v1410_v48  ;;  %v1430_v6 = vpack.c.bf16 %v1412_v57, %v1412_v57  ;;  %v1040_v48 = vadd.f32 %v2673_v21, %v2626_v33 }
 0x198   : > { %v1431_v37 = vpack.c.bf16 %v1413_v34, %v1413_v34  ;;  %v1433_v62 = vpack.c.bf16 %v1415_v47, %v1415_v47 }
 0x199   : > { %v1229_v8 = vpop.f32.mrf.mxu2  ;;  %v1256_v13 = vpop.f32.mrf.mxu3  ;;  %v1453_v9 = vsel %vm2659_vm3, %v1428_v16, %v1452_v20  ;;  %v1457_v59 = vsel %vm2659_vm3, %v1430_v6, %v1456_v31 }
 0x19a   : > { %1459 = vst.msk [vmem:[%s2652_s11 + $0x18] sm:$0xf] %vm1443_vm0, %v1431_v37  ;;  %v1374_v14 = vadd.f32 %v1229_v8, %v1030_v61  ;;  %v1376_v17 = vadd.f32 %v1256_v13, %v1032_v24  ;;  %v1468_v24 = vld [vmem:[%s2652_s11 + $0x2c] sm:$0x1]  ;;  %v1472_v37 = vld [vmem:[%s2652_s11 + $0x34] sm:$0x1] }
 0x19b   : > { %1463 = vst.msk [vmem:[%s2652_s11 + $0x20] sm:$0xf] %vm1443_vm0, %v1433_v62 }
 0x19c   : > { %1454 = vst [vmem:[%s2652_s11 + $0xc] sm:$0x1] %v1453_v9  ;;  %v1396_v29 = vadd.f32 %v2639_v51, %v1374_v14  ;;  %v1398_v56 = vadd.f32 %v2639_v51, %v1376_v17  ;;  %v1476_v17 = vld [vmem:[%s2652_s11 + $0x3c] sm:$0x1]  ;;  %v1480_v9 = vld [vmem:[%s2652_s11 + $0x44] sm:$0x1] }
 0x19d   : > { %1458 = vst [vmem:[%s2652_s11 + $0x14] sm:$0x1] %v1457_v59 }
 0x19e   : > { %v1414_v26 = vmax.f32 %v1396_v29, 0.0  ;;  %v1416_v19 = vmax.f32 %v1398_v56, 0.0 }
 0x1a0   : > { %v1432_v43 = vpack.c.bf16 %v1414_v26, %v1414_v26  ;;  %v1434_v28 = vpack.c.bf16 %v1416_v19, %v1416_v19 }
 0x1a2   : > { %v1461_v15 = vsel %vm2659_vm3, %v1432_v43, %v1460_v27  ;;  %v1465_v30 = vsel %vm2659_vm3, %v1434_v28, %v1464_v40 }
 0x1a3   : > { %1462 = vst [vmem:[%s2652_s11 + $0x1c] sm:$0x1] %v1461_v15 }
 0x1a4   : > { %1466 = vst [vmem:[%s2652_s11 + $0x24] sm:$0x1] %v1465_v30 }
 0x1a8   : > { %v1281_v50 = vpop.f32.mrf.mxu0  ;;  %v1308_v55 = vpop.f32.mrf.mxu1 }
 0x1a9   : > { %v1377_v5 = vadd.f32 %v1281_v50, %v2628_v39  ;;  %v1379_v44 = vadd.f32 %v1308_v55, %v1035_v38  ;;  %v1036_v39 = vadd.f32 %v2664_v0, %v2607_v12 }
 0x1ab   : > { %v1399_v2 = vadd.f32 %v2639_v51, %v1377_v5  ;;  %v1401_v58 = vadd.f32 %v2639_v51, %v1379_v44 }
 0x1ad   : > { %v1417_v41 = vmax.f32 %v1399_v2, 0.0  ;;  %v1419_v49 = vmax.f32 %v1401_v58, 0.0 }
 0x1af   : > { %v1435_v60 = vpack.c.bf16 %v1417_v41, %v1417_v41  ;;  %v1437_v53 = vpack.c.bf16 %v1419_v49, %v1419_v49  ;;  %v1335_v54 = vpop.f32.mrf.mxu2  ;;  %v1362_v10 = vpop.f32.mrf.mxu3 }
 0x1b0   : > { %v1381_v35 = vadd.f32 %v1335_v54, %v1037_v3  ;;  %v1383_v7 = vadd.f32 %v1362_v10, %v1039_v52  ;;  %v1283_v11 = vpop.f32.mrf.mxu0  ;;  %v1310_v36 = vpop.f32.mrf.mxu1 }
 0x1b1   : > { %1467 = vst.msk [vmem:[%s2652_s11 + $0x28] sm:$0xf] %vm1443_vm0, %v1435_v60  ;;  %v1378_v25 = vadd.f32 %v1283_v11, %v2630_v45  ;;  %v1380_v18 = vadd.f32 %v1310_v36, %v1036_v39  ;;  %v1038_v45 = vadd.f32 %v2666_v1, %v2623_v32 }
 0x1b2   : > { %1471 = vst.msk [vmem:[%s2652_s11 + $0x30] sm:$0xf] %vm1443_vm0, %v1437_v53  ;;  %v1403_v22 = vadd.f32 %v2639_v51, %v1381_v35  ;;  %v1405_v12 = vadd.f32 %v2639_v51, %v1383_v7 }
 0x1b3   : > { %v1400_v4 = vadd.f32 %v2639_v51, %v1378_v25  ;;  %v1402_v63 = vadd.f32 %v2639_v51, %v1380_v18 }
 0x1b4   : > { %v1421_v0 = vmax.f32 %v1403_v22, 0.0  ;;  %v1423_v23 = vmax.f32 %v1405_v12, 0.0 }
 0x1b5   : > { %v1418_v34 = vmax.f32 %v1400_v4, 0.0  ;;  %v1420_v47 = vmax.f32 %v1402_v63, 0.0 }
 0x1b6   : > { %v1439_v57 = vpack.c.bf16 %v1421_v0, %v1421_v0  ;;  %v1441_v61 = vpack.c.bf16 %v1423_v23, %v1423_v23 }
 0x1b7   : > { %v1436_v62 = vpack.c.bf16 %v1418_v34, %v1418_v34  ;;  %v1438_v20 = vpack.c.bf16 %v1420_v47, %v1420_v47  ;;  %v1337_v31 = vpop.f32.mrf.mxu2  ;;  %v1364_v16 = vpop.f32.mrf.mxu3 }
 0x1b8   : > { %1475 = vst.msk [vmem:[%s2652_s11 + $0x38] sm:$0xf] %vm1443_vm0, %v1439_v57  ;;  %v1382_v6 = vadd.f32 %v1337_v31, %v1038_v45  ;;  %v1384_v8 = vadd.f32 %v1364_v16, %v1040_v48 }
 0x1b9   : > { %1479 = vst.msk [vmem:[%s2652_s11 + $0x40] sm:$0xf] %vm1443_vm0, %v1441_v61  ;;  %v1469_v32 = vsel %vm2659_vm3, %v1436_v62, %v1468_v24  ;;  %v1473_v33 = vsel %vm2659_vm3, %v1438_v20, %v1472_v37 }
 0x1ba   : > { %1470 = vst [vmem:[%s2652_s11 + $0x2c] sm:$0x1] %v1469_v32  ;;  %v1404_v1 = vadd.f32 %v2639_v51, %v1382_v6  ;;  %v1406_v21 = vadd.f32 %v2639_v51, %v1384_v8 }
 0x1bb   : > { %1474 = vst [vmem:[%s2652_s11 + $0x34] sm:$0x1] %v1473_v33 }
 0x1bc   : > { %v1422_v13 = vmax.f32 %v1404_v1, 0.0  ;;  %v1424_v14 = vmax.f32 %v1406_v21, 0.0 }
 0x1be   : > { %v1440_v59 = vpack.c.bf16 %v1422_v13, %v1422_v13  ;;  %v1442_v29 = vpack.c.bf16 %v1424_v14, %v1424_v14 }
 0x1c0   : > { %v1477_v56 = vsel %vm2659_vm3, %v1440_v59, %v1476_v17  ;;  %v1481_v26 = vsel %vm2659_vm3, %v1442_v29, %v1480_v9 }
 0x1c1   : > { %1478 = vst [vmem:[%s2652_s11 + $0x3c] sm:$0x1] %v1477_v56 }
 0x1c2   : > { %1482 = vst [vmem:[%s2652_s11 + $0x44] sm:$0x1] %v1481_v26 }
 0x1c3 PF: > { %s13_s12 = sadd.s32 1, %s1988_s12  }
 0x1c4   : > { %p10_p4 = scmp.ge.s32.totalorder %s13_s12, 4  }
 0x1c6   :  { %12 = sbr.rel (!%p10_p4) target bundleno = 1 (0x1), region = 66 }

// kernel: critic_net_forward.7
= control target key start
LH: loop header
LB: loop body
LE: loop exit
PB: predicated region body
PF: predicated region fallthrough
CT: control target
= control target key end

     0   :  { %s2464_s20 = smov 0   ;;  %s2869_s0 = inlined_call_operand.vmem [shape: bf16[2,3200], index: 0, kind: input, shape index: {}]   ;;  %s2870_s1 = inlined_call_operand.vmem [shape: bf16[3200,512], index: 1, kind: input, shape index: {}]   ;;  %s2871_s2 = inlined_call_operand.vmem [shape: f32[1,512], index: 2, kind: input, shape index: {}]   ;;  %s2872_s3 = inlined_call_operand.vmem [shape: bf16[1,512], index: 3, kind: input, shape index: {}]   ;;  %s2873_s4 = inlined_call_operand.<no memory space> [shape: f32[1,1], index: 4, kind: input, shape index: {}]   ;;  %s2874_s5 = inlined_call_operand.vmem [shape: f32[2,1], index: 5, kind: output, shape index: {}]  }
   0x1   :  { %v10_v0 = vstv %s2873_s4 }
   0x2   :  { %11 = vst [vmem:[#allocation3] sm:$0x1] %v10_v0 }
   0x3 LB: > { %s2470_s21 = sadd.s32 4294967295, %s2428_s20   ;;  %p1604_p0 = scmp.ge.s32.totalorder %s2428_s20, 1  ;;  %s2428_s20 = sphi %s2464_s20, %s17_s20  }
   0x4   : > { %p196_p1 = scmp.lt.s32.totalorder %s2428_s20, 6 }
   0x6   : > { %p197_p2 = pnand %p1604_p0, %p196_p1 }
   0x7   : > { %s224_s4 = smul.u32 (!%p197_p2), 5, %s2470_s21  ;;  %p1607_p5 = scmp.ne.s32.totalorder (!%p197_p2), %s2470_s21, 0 }
   0x8   : > { %200 = sbr.rel (%p197_p2) target bundleno = 479 (0x1df), region = 40 }
   0x9   : > { %s229_s22 = smul.u32 (!%p197_p2), 80, %s2470_s21  ;;  %p225_p3 = scmp.lt.s32.totalorder (!%p197_p2), %s224_s4, 24 }
   0xb   : > { %p230_p4 = scmp.lt.s32.totalorder (!%p197_p2), %s229_s22, 399 }
   0xd   : > { %s2876_s4 = smov (!%p225_p3, %s224_s4), 24  ;;  %s2878_s22 = smov (!%p230_p4, %s229_s22), 399 }
   0xe   : > { %s227_s25 = scalar_lea.vmem %s2869_s0, %s2876_s4  ;;  %s2251_s26 = sshll.u32 %s2878_s22, 4 }
   0xf   : > { %s2485_s29 = scalar_lea.vmem %s2870_s1, %s2251_s26  ;;  %239 = sbr.rel (%p1607_p5) target bundleno = 22 (0x16), region = 44 }
  0x14   : > { %v2430_v1 = vmov 0.0  }
  0x15   : > { %240 = vst [vmem:[#allocation2] sm:$0xff] %v2430_v1 }
  0x16 PF: > { %v1722_v2 = vld [vmem:[%s2485_s29 + $0xe0] sm:$0xf]  ;;  %v2282_v3 = vld [vmem:[%s2485_s29 + $0xec] sm:$0xf0]  ;;  %vm1482_vm0 = vcmask 1041408   ;;  %vm1484_vm1 = vcmask 1045508  }
  0x17   : > { %v1850_v4 = vld [vmem:[%s2485_s29 + $0x1e0] sm:$0xf]  ;;  %v1723_v5 = vor.u32 %v2282_v3, %v1722_v2  ;;  %v2314_v6 = vld [vmem:[%s2485_s29 + $0x1ec] sm:$0xf0]  ;;  %vm1486_vm2 = vcmask 1043456   ;;  %p2248_p6 = scmp.ne.s32.totalorder %s2470_s21, 4 }
  0x18   : > { %v1978_v7 = vld [vmem:[%s2485_s29 + $0x2e0] sm:$0xf]  ;;  %v2346_v8 = vld [vmem:[%s2485_s29 + $0x2ec] sm:$0xf0]  ;;  %v1851_v9 = vor.u32 %v2314_v6, %v1850_v4 }
  0x19   : > { %v1979_v10 = vor.u32 %v2346_v8, %v1978_v7  ;;  %v2106_v11 = vld [vmem:[%s2485_s29 + $0x3e0] sm:$0xf]  ;;  %v2378_v12 = vld [vmem:[%s2485_s29 + $0x3ec] sm:$0xf0]  ;;  %1215 = vmatpush.bf16.msra.mxu0 %v1723_v5 }
  0x1a   : > { %v1706_v13 = vld [vmem:[%s2485_s29 + $0xc0] sm:$0xf]  ;;  %v2107_v14 = vor.u32 %v2378_v12, %v2106_v11  ;;  %v2278_v15 = vld [vmem:[%s2485_s29 + $0xcc] sm:$0xf0]  ;;  %1228 = vmatpush.bf16.msra.mxu1 %v1851_v9 }
  0x1b   : > { %v1834_v16 = vld [vmem:[%s2485_s29 + $0x1c0] sm:$0xf]  ;;  %v2310_v17 = vld [vmem:[%s2485_s29 + $0x1cc] sm:$0xf0]  ;;  %1241 = vmatpush.bf16.msra.mxu2 %v1979_v10  ;;  %v1707_v18 = vor.u32 %v2278_v15, %v1706_v13 }
  0x1c   : > { %v1835_v19 = vor.u32 %v2310_v17, %v1834_v16  ;;  %v1962_v20 = vld [vmem:[%s2485_s29 + $0x2c0] sm:$0xf]  ;;  %v2342_v21 = vld [vmem:[%s2485_s29 + $0x2cc] sm:$0xf0]  ;;  %1254 = vmatpush.bf16.msra.mxu3 %v2107_v14 }
  0x1d   : > { %v2090_v22 = vld [vmem:[%s2485_s29 + $0x3c0] sm:$0xf]  ;;  %v1963_v23 = vor.u32 %v2342_v21, %v1962_v20  ;;  %v2374_v24 = vld [vmem:[%s2485_s29 + $0x3cc] sm:$0xf0]  ;;  %1216 = vmatpush.bf16.msra.mxu0 %v1707_v18 }
  0x1e   : > { %v1690_v25 = vld [vmem:[%s2485_s29 + $0xa0] sm:$0xf]  ;;  %v2274_v26 = vld [vmem:[%s2485_s29 + $0xac] sm:$0xf0]  ;;  %v2091_v27 = vor.u32 %v2374_v24, %v2090_v22  ;;  %1229 = vmatpush.bf16.msra.mxu1 %v1835_v19 }
  0x1f   : > { %v1818_v28 = vld [vmem:[%s2485_s29 + $0x1a0] sm:$0xf]  ;;  %v2306_v29 = vld [vmem:[%s2485_s29 + $0x1ac] sm:$0xf0]  ;;  %v1691_v31 = vor.u32 %v2274_v26, %v1690_v25  ;;  %1242 = vmatpush.bf16.msra.mxu2 %v1963_v23 }
  0x20   : > { %v1946_v30 = vld [vmem:[%s2485_s29 + $0x2a0] sm:$0xf]  ;;  %v2338_v32 = vld [vmem:[%s2485_s29 + $0x2ac] sm:$0xf0]  ;;  %v1819_v35 = vor.u32 %v2306_v29, %v1818_v28  ;;  %1255 = vmatpush.bf16.msra.mxu3 %v2091_v27 }
  0x21   : > { %v2074_v33 = vld [vmem:[%s2485_s29 + $0x3a0] sm:$0xf]  ;;  %v2370_v34 = vld [vmem:[%s2485_s29 + $0x3ac] sm:$0xf0]  ;;  %v1947_v36 = vor.u32 %v2338_v32, %v1946_v30  ;;  %1217 = vmatpush.bf16.msra.mxu0 %v1691_v31  ;;  %v2280_v32 = vld [vmem:[%s2485_s29 + $0xe4] sm:$0xf] }
  0x22   : > { %v1674_v37 = vld [vmem:[%s2485_s29 + $0x80] sm:$0xf]  ;;  %v2270_v38 = vld [vmem:[%s2485_s29 + $0x8c] sm:$0xf0]  ;;  %v2075_v40 = vor.u32 %v2370_v34, %v2074_v33  ;;  %1230 = vmatpush.bf16.msra.mxu1 %v1819_v35  ;;  %v1724_v34 = vld [vmem:[%s2485_s29 + $0xf0] sm:$0xf0] }
  0x23   : > { %v1802_v39 = vld [vmem:[%s2485_s29 + $0x180] sm:$0xf]  ;;  %v2302_v41 = vld [vmem:[%s2485_s29 + $0x18c] sm:$0xf0]  ;;  %v1675_v46 = vor.u32 %v2270_v38, %v1674_v37  ;;  %1243 = vmatpush.bf16.msra.mxu2 %v1947_v36  ;;  %v2312_v35 = vld [vmem:[%s2485_s29 + $0x1e4] sm:$0xf] }
  0x24   : > { %v1930_v42 = vld [vmem:[%s2485_s29 + $0x280] sm:$0xf]  ;;  %v2334_v43 = vld [vmem:[%s2485_s29 + $0x28c] sm:$0xf0]  ;;  %v1803_v47 = vor.u32 %v2302_v41, %v1802_v39  ;;  %1256 = vmatpush.bf16.msra.mxu3 %v2075_v40  ;;  %v1852_v36 = vld [vmem:[%s2485_s29 + $0x1f0] sm:$0xf0] }
  0x25   : > { %v2058_v44 = vld [vmem:[%s2485_s29 + $0x380] sm:$0xf]  ;;  %v2366_v45 = vld [vmem:[%s2485_s29 + $0x38c] sm:$0xf0]  ;;  %v1931_v48 = vor.u32 %v2334_v43, %v1930_v42  ;;  %1218 = vmatpush.bf16.msra.mxu0 %v1675_v46  ;;  %v2344_v39 = vld [vmem:[%s2485_s29 + $0x2e4] sm:$0xf]  ;;  %v1727_v43 = vor.u32 %v2280_v32, %v1724_v34 }
  0x26   : > { %v1658_v49 = vld [vmem:[%s2485_s29 + $0x60] sm:$0xf]  ;;  %v2266_v50 = vld [vmem:[%s2485_s29 + $0x6c] sm:$0xf0]  ;;  %v2059_v52 = vor.u32 %v2366_v45, %v2058_v44  ;;  %1231 = vmatpush.bf16.msra.mxu1 %v1803_v47  ;;  %v1980_v40 = vld [vmem:[%s2485_s29 + $0x2f0] sm:$0xf0]  ;;  %v1855_v44 = vor.u32 %v2312_v35, %v1852_v36 }
  0x27   : > { %v1786_v51 = vld [vmem:[%s2485_s29 + $0x160] sm:$0xf]  ;;  %v2298_v53 = vld [vmem:[%s2485_s29 + $0x16c] sm:$0xf0]  ;;  %v1659_v58 = vor.u32 %v2266_v50, %v1658_v49  ;;  %1244 = vmatpush.bf16.msra.mxu2 %v1931_v48  ;;  %v2276_v47 = vld [vmem:[%s2485_s29 + $0xc4] sm:$0xf]  ;;  %v1983_v48 = vor.u32 %v2344_v39, %v1980_v40 }
  0x28   : > { %v1914_v54 = vld [vmem:[%s2485_s29 + $0x260] sm:$0xf]  ;;  %v2330_v55 = vld [vmem:[%s2485_s29 + $0x26c] sm:$0xf0]  ;;  %v1787_v59 = vor.u32 %v2298_v53, %v1786_v51  ;;  %1257 = vmatpush.bf16.msra.mxu3 %v2059_v52  ;;  %v1708_v49 = vld [vmem:[%s2485_s29 + $0xd0] sm:$0xf0] }
  0x29   : > { %v2042_v56 = vld [vmem:[%s2485_s29 + $0x360] sm:$0xf]  ;;  %v2362_v57 = vld [vmem:[%s2485_s29 + $0x36c] sm:$0xf0]  ;;  %v1915_v60 = vor.u32 %v2330_v55, %v1914_v54  ;;  %1219 = vmatpush.bf16.msra.mxu0 %v1659_v58  ;;  %v2308_v50 = vld [vmem:[%s2485_s29 + $0x1c4] sm:$0xf]  ;;  %v1711_v55 = vor.u32 %v2276_v47, %v1708_v49 }
  0x2a   : > { %v1642_v61 = vld [vmem:[%s2485_s29 + $0x40] sm:$0xf]  ;;  %v2262_v62 = vld [vmem:[%s2485_s29 + $0x4c] sm:$0xf0]  ;;  %v2043_v0 = vor.u32 %v2362_v57, %v2042_v56  ;;  %1232 = vmatpush.bf16.msra.mxu1 %v1787_v59  ;;  %v1836_v51 = vld [vmem:[%s2485_s29 + $0x1d0] sm:$0xf0] }
  0x2b   : > { %v1770_v63 = vld [vmem:[%s2485_s29 + $0x140] sm:$0xf]  ;;  %v2294_v1 = vld [vmem:[%s2485_s29 + $0x14c] sm:$0xf0]  ;;  %v1643_v6 = vor.u32 %v2262_v62, %v1642_v61  ;;  %1245 = vmatpush.bf16.msra.mxu2 %v1915_v60  ;;  %v2340_v52 = vld [vmem:[%s2485_s29 + $0x2c4] sm:$0xf]  ;;  %v1839_v56 = vor.u32 %v2308_v50, %v1836_v51 }
  0x2c   : > { %v1898_v2 = vld [vmem:[%s2485_s29 + $0x240] sm:$0xf]  ;;  %v2326_v3 = vld [vmem:[%s2485_s29 + $0x24c] sm:$0xf0]  ;;  %v1771_v7 = vor.u32 %v2294_v1, %v1770_v63  ;;  %1258 = vmatpush.bf16.msra.mxu3 %v2043_v0  ;;  %v1964_v53 = vld [vmem:[%s2485_s29 + $0x2d0] sm:$0xf0] }
  0x2d   : > { %v2026_v4 = vld [vmem:[%s2485_s29 + $0x340] sm:$0xf]  ;;  %v2358_v5 = vld [vmem:[%s2485_s29 + $0x34c] sm:$0xf0]  ;;  %v1899_v8 = vor.u32 %v2326_v3, %v1898_v2  ;;  %1220 = vmatpush.bf16.msra.mxu0 %v1643_v6  ;;  %v2272_v59 = vld [vmem:[%s2485_s29 + $0xa4] sm:$0xf]  ;;  %v1967_v60 = vor.u32 %v2340_v52, %v1964_v53 }
  0x2e   : > { %v1626_v9 = vld [vmem:[%s2485_s29 + $0x20] sm:$0xf]  ;;  %v2258_v10 = vld [vmem:[%s2485_s29 + $0x2c] sm:$0xf0]  ;;  %v2027_v12 = vor.u32 %v2358_v5, %v2026_v4  ;;  %1233 = vmatpush.bf16.msra.mxu1 %v1771_v7  ;;  %v1692_v61 = vld [vmem:[%s2485_s29 + $0xb0] sm:$0xf0] }
  0x2f   : > { %v1754_v11 = vld [vmem:[%s2485_s29 + $0x120] sm:$0xf]  ;;  %v2290_v13 = vld [vmem:[%s2485_s29 + $0x12c] sm:$0xf0]  ;;  %v1627_v18 = vor.u32 %v2258_v10, %v1626_v9  ;;  %1246 = vmatpush.bf16.msra.mxu2 %v1899_v8  ;;  %v2304_v62 = vld [vmem:[%s2485_s29 + $0x1a4] sm:$0xf]  ;;  %v1695_v5 = vor.u32 %v2272_v59, %v1692_v61 }
  0x30   : > { %v1882_v14 = vld [vmem:[%s2485_s29 + $0x220] sm:$0xf]  ;;  %v2322_v15 = vld [vmem:[%s2485_s29 + $0x22c] sm:$0xf0]  ;;  %v1755_v21 = vor.u32 %v2290_v13, %v1754_v11  ;;  %1259 = vmatpush.bf16.msra.mxu3 %v2027_v12  ;;  %v1820_v63 = vld [vmem:[%s2485_s29 + $0x1b0] sm:$0xf0] }
  0x31   : > { %v2010_v16 = vld [vmem:[%s2485_s29 + $0x320] sm:$0xf]  ;;  %v2354_v17 = vld [vmem:[%s2485_s29 + $0x32c] sm:$0xf0]  ;;  %v1883_v22 = vor.u32 %v2322_v15, %v1882_v14  ;;  %1221 = vmatpush.bf16.msra.mxu0 %v1627_v18  ;;  %v2336_v0 = vld [vmem:[%s2485_s29 + $0x2a4] sm:$0xf]  ;;  %v1823_v6 = vor.u32 %v2304_v62, %v1820_v63 }
  0x32   : > { %v1610_v19 = vld [vmem:[%s2485_s29] sm:$0xf]  ;;  %v2254_v20 = vld [vmem:[%s2485_s29 + $0xc] sm:$0xf0]  ;;  %v2011_v26 = vor.u32 %v2354_v17, %v2010_v16  ;;  %1234 = vmatpush.bf16.msra.mxu1 %v1755_v21  ;;  %v1948_v1 = vld [vmem:[%s2485_s29 + $0x2b0] sm:$0xf0] }
  0x33   : > { %v1738_v23 = vld [vmem:[%s2485_s29 + $0x100] sm:$0xf]  ;;  %v2286_v24 = vld [vmem:[%s2485_s29 + $0x10c] sm:$0xf0]  ;;  %v1611_v33 = vor.u32 %v2254_v20, %v1610_v19  ;;  %1247 = vmatpush.bf16.msra.mxu2 %v1883_v22  ;;  %v2268_v8 = vld [vmem:[%s2485_s29 + $0x84] sm:$0xf]  ;;  %v1951_v9 = vor.u32 %v2336_v0, %v1948_v1 }
  0x34   : > { %v1866_v25 = vld [vmem:[%s2485_s29 + $0x200] sm:$0xf]  ;;  %v2318_v27 = vld [vmem:[%s2485_s29 + $0x20c] sm:$0xf0]  ;;  %v1739_v37 = vor.u32 %v2286_v24, %v1738_v23  ;;  %1260 = vmatpush.bf16.msra.mxu3 %v2011_v26  ;;  %v1676_v10 = vld [vmem:[%s2485_s29 + $0x90] sm:$0xf0] }
  0x35   : > { %v1994_v28 = vld [vmem:[%s2485_s29 + $0x300] sm:$0xf]  ;;  %v2350_v29 = vld [vmem:[%s2485_s29 + $0x30c] sm:$0xf0]  ;;  %v1867_v38 = vor.u32 %v2318_v27, %v1866_v25  ;;  %1222 = vmatpush.bf16.msra.mxu0 %v1611_v33  ;;  %v2300_v11 = vld [vmem:[%s2485_s29 + $0x184] sm:$0xf]  ;;  %v1679_v16 = vor.u32 %v2268_v8, %v1676_v10 }
  0x36   : > { %v2234_v30 = vld [vmem:[%s2485_s29 + $0x4e0] sm:$0xf]  ;;  %v2410_v31 = vld [vmem:[%s2485_s29 + $0x4ec] sm:$0xf0]  ;;  %v1995_v41 = vor.u32 %v2350_v29, %v1994_v28  ;;  %1235 = vmatpush.bf16.msra.mxu1 %v1739_v37  ;;  %v1804_v12 = vld [vmem:[%s2485_s29 + $0x190] sm:$0xf0] }
  0x37   : > { %v2235_v42 = vor.u32 %v2410_v31, %v2234_v30  ;;  %v2218_v45 = vld [vmem:[%s2485_s29 + $0x4c0] sm:$0xf]  ;;  %v2406_v46 = vld [vmem:[%s2485_s29 + $0x4cc] sm:$0xf0]  ;;  %1248 = vmatpush.bf16.msra.mxu2 %v1867_v38  ;;  %v2332_v13 = vld [vmem:[%s2485_s29 + $0x284] sm:$0xf]  ;;  %v1807_v17 = vor.u32 %v2300_v11, %v1804_v12 }
  0x38   : > { %1261 = vmatpush.bf16.msra.mxu3 %v1995_v41  ;;  %v2219_v54 = vor.u32 %v2406_v46, %v2218_v45  ;;  %v2202_v57 = vld [vmem:[%s2485_s29 + $0x4a0] sm:$0xf]  ;;  %v2402_v58 = vld [vmem:[%s2485_s29 + $0x4ac] sm:$0xf0]  ;;  %v1932_v14 = vld [vmem:[%s2485_s29 + $0x290] sm:$0xf0] }
  0x39   : > { %1267 = vmatpush.bf16.msrb.mxu0 %v2235_v42  ;;  %v2203_v2 = vor.u32 %v2402_v58, %v2202_v57  ;;  %v2186_v3 = vld [vmem:[%s2485_s29 + $0x480] sm:$0xf]  ;;  %v2398_v7 = vld [vmem:[%s2485_s29 + $0x48c] sm:$0xf0]  ;;  %v2264_v20 = vld [vmem:[%s2485_s29 + $0x64] sm:$0xf]  ;;  %v1935_v21 = vor.u32 %v2332_v13, %v1932_v14 }
  0x3a   : > { %1280 = vmatpush.bf16.msrb.mxu1 %v1727_v43  ;;  %v242_v4 = vld [vmem:[%s227_s25] sm:$0x1f]  ;;  %v2187_v15 = vor.u32 %v2398_v7, %v2186_v3  ;;  %v2394_v19 = vld [vmem:[%s2485_s29 + $0x46c] sm:$0xf0]  ;;  %v1660_v22 = vld [vmem:[%s2485_s29 + $0x70] sm:$0xf0] }
  0x3b   : > { %1293 = vmatpush.bf16.msrb.mxu2 %v1855_v44  ;;  %404 = vst [vmem:[#allocation1] ss:$9 sm:$0xff] %v242_v4  ;;  %v2170_v18 = vld [vmem:[%s2485_s29 + $0x460] sm:$0xf]  ;;  %v2296_v23 = vld [vmem:[%s2485_s29 + $0x164] sm:$0xf]  ;;  %v1663_v32 = vor.u32 %v2264_v20, %v1660_v22 }
  0x3c   : > { %1306 = vmatpush.bf16.msrb.mxu3 %v1983_v48  ;;  %v1788_v24 = vld [vmem:[%s2485_s29 + $0x170] sm:$0xf0]  ;;  %v2328_v25 = vld [vmem:[%s2485_s29 + $0x264] sm:$0xf]  ;;  %v2154_v27 = vld [vmem:[%s2485_s29 + $0x440] sm:$0xf]  ;;  %v2171_v28 = vor.u32 %v2394_v19, %v2170_v18 }
  0x3d   : > { %1268 = vmatpush.bf16.msrb.mxu0 %v2219_v54  ;;  %v1916_v26 = vld [vmem:[%s2485_s29 + $0x270] sm:$0xf0]  ;;  %v1791_v33 = vor.u32 %v2296_v23, %v1788_v24  ;;  %v2390_v34 = vld [vmem:[%s2485_s29 + $0x44c] sm:$0xf0]  ;;  %v2260_v35 = vld [vmem:[%s2485_s29 + $0x44] sm:$0xf] }
  0x3e   : > { %1281 = vmatpush.bf16.msrb.mxu1 %v1711_v55  ;;  %v1919_v37 = vor.u32 %v2328_v25, %v1916_v26  ;;  %v1644_v38 = vld [vmem:[%s2485_s29 + $0x50] sm:$0xf0]  ;;  %v2292_v39 = vld [vmem:[%s2485_s29 + $0x144] sm:$0xf]  ;;  %v2155_v43 = vor.u32 %v2390_v34, %v2154_v27  ;;  %v2138_v46 = vld [vmem:[%s2485_s29 + $0x420] sm:$0xf] }
  0x3f   : > { %1294 = vmatpush.bf16.msrb.mxu2 %v1839_v56  ;;  %v1772_v40 = vld [vmem:[%s2485_s29 + $0x150] sm:$0xf0]  ;;  %v2324_v41 = vld [vmem:[%s2485_s29 + $0x244] sm:$0xf]  ;;  %v1647_v44 = vor.u32 %v2260_v35, %v1644_v38  ;;  %v2386_v47 = vld [vmem:[%s2485_s29 + $0x42c] sm:$0xf0] }
  0x40   : > { %1307 = vmatpush.bf16.msrb.mxu3 %v1967_v60  ;;  %v1900_v42 = vld [vmem:[%s2485_s29 + $0x250] sm:$0xf0]  ;;  %v1775_v45 = vor.u32 %v2292_v39, %v1772_v40  ;;  %v2256_v48 = vld [vmem:[%s2485_s29 + $0x24] sm:$0xf]  ;;  %v2139_v55 = vor.u32 %v2386_v47, %v2138_v46  ;;  %v2122_v56 = vld [vmem:[%s2485_s29 + $0x400] sm:$0xf] }
  0x41   : > { %1269 = vmatpush.bf16.msrb.mxu0 %v2203_v2  ;;  %v1903_v49 = vor.u32 %v2324_v41, %v1900_v42  ;;  %v1628_v50 = vld [vmem:[%s2485_s29 + $0x30] sm:$0xf0]  ;;  %v2288_v51 = vld [vmem:[%s2485_s29 + $0x124] sm:$0xf]  ;;  %v2382_v57 = vld [vmem:[%s2485_s29 + $0x40c] sm:$0xf0] }
  0x42   : > { %1282 = vmatpush.bf16.msrb.mxu1 %v1695_v5  ;;  %v2598_v29 = vld [vmem:[#allocation1] sm:$0xff]  ;;  %v2600_v30 = vld [vmem:[#allocation1 + $0x12] sm:$0xff]  ;;  %v2606_v36 = vld [vmem:[#allocation1 + $0x9] sm:$0xff]  ;;  %v1631_v58 = vor.u32 %v2256_v48, %v1628_v50 }
  0x43   : > { %1295 = vmatpush.bf16.msrb.mxu2 %v1823_v6  ;;  %v2602_v31 = vld [vmem:[#allocation1 + $0x1b] sm:$0xff]  ;;  %1223 = vmatmul.bf16.vlgmr.msra.gmra.mxu0 %v2598_v29  ;;  %v1756_v52 = vld [vmem:[%s2485_s29 + $0x130] sm:$0xf0]  ;;  %v2320_v53 = vld [vmem:[%s2485_s29 + $0x224] sm:$0xf]  ;;  %v2123_v6 = vor.u32 %v2382_v57, %v2122_v56 }
  0x44   : > { %1308 = vmatpush.bf16.msrb.mxu3 %v1951_v9  ;;  %1249 = vmatmul.bf16.vlgmr.msra.gmra.mxu2 %v2600_v30  ;;  %v1884_v54 = vld [vmem:[%s2485_s29 + $0x230] sm:$0xf0]  ;;  %v1759_v59 = vor.u32 %v2288_v51, %v1756_v52  ;;  %v2252_v60 = vld [vmem:[%s2485_s29 + $0x4] sm:$0xf]  ;;  %v1730_v8 = vld [vmem:[%s2485_s29 + $0xe8] sm:$0xf] }
  0x45   : > { %1270 = vmatpush.bf16.msrb.mxu0 %v2187_v15  ;;  %1262 = vmatmul.bf16.vlgmr.msra.gmra.mxu3 %v2602_v31  ;;  %v1612_v61 = vld [vmem:[%s2485_s29 + $0x10] sm:$0xf0]  ;;  %v2284_v62 = vld [vmem:[%s2485_s29 + $0x104] sm:$0xf]  ;;  %v1887_v63 = vor.u32 %v2320_v53, %v1884_v54  ;;  %v2283_v9 = vld [vmem:[%s2485_s29 + $0xf4] sm:$0xf0] }
  0x46   : > { %1283 = vmatpush.bf16.msrb.mxu1 %v1679_v16  ;;  %v1740_v0 = vld [vmem:[%s2485_s29 + $0x110] sm:$0xf0]  ;;  %v2316_v1 = vld [vmem:[%s2485_s29 + $0x204] sm:$0xf]  ;;  %v1615_v10 = vor.u32 %v2252_v60, %v1612_v61  ;;  %v1858_v12 = vld [vmem:[%s2485_s29 + $0x1e8] sm:$0xf] }
  0x47   : > { %1296 = vmatpush.bf16.msrb.mxu2 %v1807_v17  ;;  %1236 = vmatmul.bf16.vlgmr.msra.gmra.mxu1 %v2606_v36  ;;  %v1868_v2 = vld [vmem:[%s2485_s29 + $0x210] sm:$0xf0]  ;;  %v2376_v3 = vld [vmem:[%s2485_s29 + $0x3e4] sm:$0xf]  ;;  %v1743_v11 = vor.u32 %v2284_v62, %v1740_v0  ;;  %v2315_v13 = vld [vmem:[%s2485_s29 + $0x1f4] sm:$0xf0]  ;;  %v1731_v17 = vor.u32 %v2283_v9, %v1730_v8 }
  0x48   : > { %1309 = vmatpush.bf16.msrb.mxu3 %v1935_v21  ;;  %v2108_v4 = vld [vmem:[%s2485_s29 + $0x3f0] sm:$0xf0]  ;;  %v2408_v5 = vld [vmem:[%s2485_s29 + $0x4e4] sm:$0xf]  ;;  %v1871_v14 = vor.u32 %v2316_v1, %v1868_v2  ;;  %v1859_v21 = vor.u32 %v2315_v13, %v1858_v12  ;;  %v1714_v23 = vld [vmem:[%s2485_s29 + $0xc8] sm:$0xf] }
  0x49   : > { %1271 = vmatpush.bf16.msrb.mxu0 %v2171_v28  ;;  %v2236_v7 = vld [vmem:[%s2485_s29 + $0x4f0] sm:$0xf0]  ;;  %v2111_v15 = vor.u32 %v2376_v3, %v2108_v4  ;;  %v2372_v18 = vld [vmem:[%s2485_s29 + $0x3c4] sm:$0xf]  ;;  %v2279_v24 = vld [vmem:[%s2485_s29 + $0xd4] sm:$0xf0] }
  0x4a   : > { %1284 = vmatpush.bf16.msrb.mxu1 %v1663_v32  ;;  %v2239_v16 = vor.u32 %v2408_v5, %v2236_v7  ;;  %v2092_v19 = vld [vmem:[%s2485_s29 + $0x3d0] sm:$0xf0]  ;;  %v2404_v20 = vld [vmem:[%s2485_s29 + $0x4c4] sm:$0xf]  ;;  %v1842_v25 = vld [vmem:[%s2485_s29 + $0x1c8] sm:$0xf] }
  0x4b   : > { %1297 = vmatpush.bf16.msrb.mxu2 %v1791_v33  ;;  %v2220_v22 = vld [vmem:[%s2485_s29 + $0x4d0] sm:$0xf0]  ;;  %v2311_v26 = vld [vmem:[%s2485_s29 + $0x1d4] sm:$0xf0]  ;;  %v2649_v27 = vld [vmem:[#allocation1 + $0x24] sm:$0xff]  ;;  %v2095_v28 = vor.u32 %v2372_v18, %v2092_v19  ;;  %v1715_v33 = vor.u32 %v2279_v24, %v1714_v23 }
  0x4c   : > { %1310 = vmatpush.bf16.msrb.mxu3 %v1919_v37  ;;  %v2223_v32 = vor.u32 %v2404_v20, %v2220_v22  ;;  %v2368_v34 = vld [vmem:[%s2485_s29 + $0x3a4] sm:$0xf]  ;;  %v2076_v35 = vld [vmem:[%s2485_s29 + $0x3b0] sm:$0xf0]  ;;  %v1843_v38 = vor.u32 %v2311_v26, %v1842_v25  ;;  %v1698_v40 = vld [vmem:[%s2485_s29 + $0xa8] sm:$0xf] }
  0x4d   : > { %1272 = vmatpush.bf16.msrb.mxu0 %v2155_v43  ;;  %v2400_v37 = vld [vmem:[%s2485_s29 + $0x4a4] sm:$0xf]  ;;  %v2204_v39 = vld [vmem:[%s2485_s29 + $0x4b0] sm:$0xf0]  ;;  %v2275_v41 = vld [vmem:[%s2485_s29 + $0xb4] sm:$0xf0] }
  0x4e   : > { %1285 = vmatpush.bf16.msrb.mxu1 %v1647_v44  ;;  %v1826_v42 = vld [vmem:[%s2485_s29 + $0x1a8] sm:$0xf]  ;;  %v2307_v43 = vld [vmem:[%s2485_s29 + $0x1b4] sm:$0xf0]  ;;  %v2079_v44 = vor.u32 %v2368_v34, %v2076_v35  ;;  %v1699_v46 = vor.u32 %v2275_v41, %v1698_v40  ;;  %v2364_v47 = vld [vmem:[%s2485_s29 + $0x384] sm:$0xf] }
  0x4f   : > { %1298 = vmatpush.bf16.msrb.mxu2 %v1775_v45  ;;  %v2207_v45 = vor.u32 %v2400_v37, %v2204_v39  ;;  %v2060_v48 = vld [vmem:[%s2485_s29 + $0x390] sm:$0xf0]  ;;  %v1827_v50 = vor.u32 %v2307_v43, %v1826_v42  ;;  %v1682_v52 = vld [vmem:[%s2485_s29 + $0x88] sm:$0xf]  ;;  %v2271_v53 = vld [vmem:[%s2485_s29 + $0x94] sm:$0xf0] }
  0x50   : > { %1311 = vmatpush.bf16.msrb.mxu3 %v1903_v49  ;;  %v2396_v49 = vld [vmem:[%s2485_s29 + $0x484] sm:$0xf]  ;;  %v2188_v51 = vld [vmem:[%s2485_s29 + $0x490] sm:$0xf0]  ;;  %v1810_v54 = vld [vmem:[%s2485_s29 + $0x188] sm:$0xf]  ;;  %v2063_v56 = vor.u32 %v2364_v47, %v2060_v48 }
  0x51   : > { %1273 = vmatpush.bf16.msrb.mxu0 %v2139_v55  ;;  %v2303_v55 = vld [vmem:[%s2485_s29 + $0x194] sm:$0xf0]  ;;  %v2191_v57 = vor.u32 %v2396_v49, %v2188_v51  ;;  %v2044_v60 = vld [vmem:[%s2485_s29 + $0x370] sm:$0xf0]  ;;  %v2392_v61 = vld [vmem:[%s2485_s29 + $0x464] sm:$0xf] }
  0x52   : > { %1286 = vmatpush.bf16.msrb.mxu1 %v1631_v58  ;;  %v1683_v58 = vor.u32 %v2271_v53, %v1682_v52  ;;  %v1811_v62 = vor.u32 %v2303_v55, %v1810_v54  ;;  %v1666_v0 = vld [vmem:[%s2485_s29 + $0x68] sm:$0xf]  ;;  %v2267_v1 = vld [vmem:[%s2485_s29 + $0x74] sm:$0xf0]  ;;  %v2356_v7 = vld [vmem:[%s2485_s29 + $0x344] sm:$0xf] }
  0x53   : > { %1299 = vmatpush.bf16.msrb.mxu2 %v1759_v59  ;;  %v2360_v59 = vld [vmem:[%s2485_s29 + $0x364] sm:$0xf]  ;;  %v1794_v2 = vld [vmem:[%s2485_s29 + $0x168] sm:$0xf]  ;;  %v2299_v3 = vld [vmem:[%s2485_s29 + $0x174] sm:$0xf0] }
  0x54   : > { %1312 = vmatpush.bf16.msrb.mxu3 %v1887_v63  ;;  %v2172_v63 = vld [vmem:[%s2485_s29 + $0x470] sm:$0xf0]  ;;  %v2047_v4 = vor.u32 %v2360_v59, %v2044_v60  ;;  %v2388_v9 = vld [vmem:[%s2485_s29 + $0x444] sm:$0xf]  ;;  %v1650_v12 = vld [vmem:[%s2485_s29 + $0x48] sm:$0xf] }
  0x55   : > { %1274 = vmatpush.bf16.msrb.mxu0 %v2123_v6  ;;  %v2175_v5 = vor.u32 %v2392_v61, %v2172_v63  ;;  %v1667_v6 = vor.u32 %v2267_v1, %v1666_v0  ;;  %v2028_v8 = vld [vmem:[%s2485_s29 + $0x350] sm:$0xf0]  ;;  %v2263_v13 = vld [vmem:[%s2485_s29 + $0x54] sm:$0xf0]  ;;  %v2352_v19 = vld [vmem:[%s2485_s29 + $0x324] sm:$0xf] }
  0x56   : > { %1287 = vmatpush.bf16.msrb.mxu1 %v1615_v10  ;;  %v1795_v10 = vor.u32 %v2299_v3, %v1794_v2  ;;  %v1651_v18 = vor.u32 %v2263_v13, %v1650_v12  ;;  %v2012_v20 = vld [vmem:[%s2485_s29 + $0x330] sm:$0xf0]  ;;  %v1634_v24 = vld [vmem:[%s2485_s29 + $0x28] sm:$0xf]  ;;  %v2259_v25 = vld [vmem:[%s2485_s29 + $0x34] sm:$0xf0] }
  0x57   : > { %1300 = vmatpush.bf16.msrb.mxu2 %v1743_v11  ;;  %v2156_v11 = vld [vmem:[%s2485_s29 + $0x450] sm:$0xf0]  ;;  %v1762_v26 = vld [vmem:[%s2485_s29 + $0x128] sm:$0xf]  ;;  %v1635_v37 = vor.u32 %v2259_v25, %v1634_v24  ;;  %v2255_v42 = vld [vmem:[%s2485_s29 + $0x14] sm:$0xf0] }
  0x58   : > { %1313 = vmatpush.bf16.msrb.mxu3 %v1871_v14  ;;  %1275 = vmatmul.bf16.vlgmr.msrb.gmra.mxu0 %v2649_v27  ;;  %v1778_v14 = vld [vmem:[%s2485_s29 + $0x148] sm:$0xf]  ;;  %v2140_v23 = vld [vmem:[%s2485_s29 + $0x430] sm:$0xf0]  ;;  %v2379_v49 = vld [vmem:[%s2485_s29 + $0x3f4] sm:$0xf0] }
  0x59   : > { %1319 = vmatpush.bf16.msra.mxu0 %v2111_v15  ;;  %1288 = vmatmul.bf16.vlgmr.msrb.gmra.mxu1 %v2598_v29  ;;  %v2295_v15 = vld [vmem:[%s2485_s29 + $0x154] sm:$0xf0]  ;;  %v1996_v34 = vld [vmem:[%s2485_s29 + $0x310] sm:$0xf0]  ;;  %v1618_v40 = vld [vmem:[%s2485_s29 + $0x8] sm:$0xf] }
  0x5a   : > { %1332 = vmatpush.bf16.msra.mxu1 %v2239_v16  ;;  %1301 = vmatmul.bf16.vlgmr.msrb.gmra.mxu2 %v2606_v36  ;;  %v2031_v16 = vor.u32 %v2356_v7, %v2028_v8  ;;  %v1779_v22 = vor.u32 %v2295_v15, %v1778_v14  ;;  %v2124_v39 = vld [vmem:[%s2485_s29 + $0x410] sm:$0xf0]  ;;  %v1746_v43 = vld [vmem:[%s2485_s29 + $0x108] sm:$0xf]  ;;  %v2411_v51 = vld [vmem:[%s2485_s29 + $0x4f4] sm:$0xf0]  ;;  %v1619_v53 = vor.u32 %v2255_v42, %v1618_v40 }
  0x5b   : > { %1345 = vmatpush.bf16.msra.mxu2 %v1731_v17  ;;  %1314 = vmatmul.bf16.vlgmr.msrb.gmra.mxu3 %v2600_v30  ;;  %v2159_v17 = vor.u32 %v2388_v9, %v2156_v11  ;;  %v2114_v47 = vld [vmem:[%s2485_s29 + $0x3e8] sm:$0xf]  ;;  %v2281_v54 = vld [vmem:[%s2485_s29 + $0xec] sm:$0xf]  ;;  %v1732_v55 = vld [vmem:[%s2485_s29 + $0xf8] sm:$0xf0] }
  0x5c   : > { %1358 = vmatpush.bf16.msra.mxu3 %v1859_v21  ;;  %v2384_v21 = vld [vmem:[%s2485_s29 + $0x424] sm:$0xf]  ;;  %v1970_v60 = vld [vmem:[%s2485_s29 + $0x2c8] sm:$0xf]  ;;  %v2343_v61 = vld [vmem:[%s2485_s29 + $0x2d4] sm:$0xf0]  ;;  %v1735_v63 = vor.u32 %v2281_v54, %v1732_v55 }
  0x5d   : > { %1320 = vmatpush.bf16.msra.mxu0 %v2095_v28  ;;  %v2291_v28 = vld [vmem:[%s2485_s29 + $0x134] sm:$0xf0]  ;;  %v2143_v35 = vor.u32 %v2384_v21, %v2140_v23  ;;  %v2226_v1 = vld [vmem:[%s2485_s29 + $0x4c8] sm:$0xf]  ;;  %v2277_v3 = vld [vmem:[%s2485_s29 + $0xcc] sm:$0xf] }
  0x5e   : > { %1333 = vmatpush.bf16.msra.mxu1 %v2223_v32  ;;  %v2015_v32 = vor.u32 %v2352_v19, %v2012_v20  ;;  %v1763_v41 = vor.u32 %v2291_v28, %v1762_v26  ;;  %v2375_v0 = vld [vmem:[%s2485_s29 + $0x3d4] sm:$0xf0]  ;;  %v1954_v8 = vld [vmem:[%s2485_s29 + $0x2a8] sm:$0xf]  ;;  %v2273_v15 = vld [vmem:[%s2485_s29 + $0xac] sm:$0xf] }
  0x5f   : > { %1346 = vmatpush.bf16.msra.mxu2 %v1715_v33  ;;  %v2348_v33 = vld [vmem:[%s2485_s29 + $0x304] sm:$0xf]  ;;  %v2407_v2 = vld [vmem:[%s2485_s29 + $0x4d4] sm:$0xf0]  ;;  %v2210_v13 = vld [vmem:[%s2485_s29 + $0x4a8] sm:$0xf] }
  0x60   : > { %1359 = vmatpush.bf16.msra.mxu3 %v1843_v38  ;;  %v2380_v38 = vld [vmem:[%s2485_s29 + $0x404] sm:$0xf]  ;;  %v1999_v48 = vor.u32 %v2348_v33, %v1996_v34  ;;  %v2227_v7 = vor.u32 %v2407_v2, %v2226_v1  ;;  %v2339_v9 = vld [vmem:[%s2485_s29 + $0x2b4] sm:$0xf0]  ;;  %v1938_v20 = vld [vmem:[%s2485_s29 + $0x288] sm:$0xf] }
  0x61   : > { %1321 = vmatpush.bf16.msra.mxu0 %v2079_v44  ;;  %v2287_v44 = vld [vmem:[%s2485_s29 + $0x114] sm:$0xf0]  ;;  %v2127_v52 = vor.u32 %v2380_v38, %v2124_v39  ;;  %v2194_v25 = vld [vmem:[%s2485_s29 + $0x488] sm:$0xf]  ;;  %v2269_v28 = vld [vmem:[%s2485_s29 + $0x8c] sm:$0xf] }
  0x62   : > { %1334 = vmatpush.bf16.msra.mxu1 %v2207_v45  ;;  %v1986_v45 = vld [vmem:[%s2485_s29 + $0x2e8] sm:$0xf]  ;;  %v2371_v12 = vld [vmem:[%s2485_s29 + $0x3b4] sm:$0xf0] }
  0x63   : > { %1347 = vmatpush.bf16.msra.mxu2 %v1699_v46  ;;  %v2347_v46 = vld [vmem:[%s2485_s29 + $0x2f4] sm:$0xf0]  ;;  %v2050_v39 = vld [vmem:[%s2485_s29 + $0x368] sm:$0xf] }
  0x64   : > { %1360 = vmatpush.bf16.msra.mxu3 %v1827_v50  ;;  %v2242_v50 = vld [vmem:[%s2485_s29 + $0x4e8] sm:$0xf]  ;;  %v2403_v14 = vld [vmem:[%s2485_s29 + $0x4b4] sm:$0xf0] }
  0x65   : > { %1322 = vmatpush.bf16.msra.mxu0 %v2063_v56  ;;  %v1747_v56 = vor.u32 %v2287_v44, %v1746_v43  ;;  %v2243_v59 = vor.u32 %v2411_v51, %v2242_v50  ;;  %v2211_v19 = vor.u32 %v2403_v14, %v2210_v13  ;;  %v2335_v21 = vld [vmem:[%s2485_s29 + $0x294] sm:$0xf0]  ;;  %v2178_v42 = vld [vmem:[%s2485_s29 + $0x468] sm:$0xf]  ;;  %v2265_v44 = vld [vmem:[%s2485_s29 + $0x6c] sm:$0xf] }
  0x66   : > { %1335 = vmatpush.bf16.msra.mxu1 %v2191_v57  ;;  %v1987_v57 = vor.u32 %v2347_v46, %v1986_v45  ;;  %v2367_v24 = vld [vmem:[%s2485_s29 + $0x394] sm:$0xf0]  ;;  %v1939_v33 = vor.u32 %v2335_v21, %v1938_v20  ;;  %v1668_v45 = vld [vmem:[%s2485_s29 + $0x78] sm:$0xf0]  ;;  %v2034_v51 = vld [vmem:[%s2485_s29 + $0x348] sm:$0xf] }
  0x67   : > { %1348 = vmatpush.bf16.msra.mxu2 %v1683_v58  ;;  %v2115_v58 = vor.u32 %v2379_v49, %v2114_v47  ;;  %v2399_v26 = vld [vmem:[%s2485_s29 + $0x494] sm:$0xf0]  ;;  %v1906_v49 = vld [vmem:[%s2485_s29 + $0x248] sm:$0xf]  ;;  %v2345_v20 = vld [vmem:[%s2485_s29 + $0x2ec] sm:$0xf] }
  0x68   : > { %1361 = vmatpush.bf16.msra.mxu3 %v1811_v62  ;;  %v2098_v62 = vld [vmem:[%s2485_s29 + $0x3c8] sm:$0xf]  ;;  %v2331_v38 = vld [vmem:[%s2485_s29 + $0x274] sm:$0xf0] }
  0x69   : > { %1323 = vmatpush.bf16.msra.mxu0 %v2047_v4  ;;  %v1716_v4 = vld [vmem:[%s2485_s29 + $0xd8] sm:$0xf0]  ;;  %v2395_v43 = vld [vmem:[%s2485_s29 + $0x474] sm:$0xf0]  ;;  %v2162_v54 = vld [vmem:[%s2485_s29 + $0x448] sm:$0xf] }
  0x6a   : > { %1336 = vmatpush.bf16.msra.mxu1 %v2175_v5  ;;  %v1971_v5 = vor.u32 %v2343_v61, %v1970_v60  ;;  %v1719_v11 = vor.u32 %v2277_v3, %v1716_v4  ;;  %v2327_v50 = vld [vmem:[%s2485_s29 + $0x254] sm:$0xf0]  ;;  %v1890_v61 = vld [vmem:[%s2485_s29 + $0x228] sm:$0xf]  ;;  %v2257_v4 = vld [vmem:[%s2485_s29 + $0x2c] sm:$0xf] }
  0x6b   : > { %1349 = vmatpush.bf16.msra.mxu2 %v1667_v6  ;;  %v2099_v6 = vor.u32 %v2375_v0, %v2098_v62  ;;  %v2391_v55 = vld [vmem:[%s2485_s29 + $0x454] sm:$0xf0]  ;;  %v2146_v2 = vld [vmem:[%s2485_s29 + $0x428] sm:$0xf] }
  0x6c   : > { %1362 = vmatpush.bf16.msra.mxu3 %v1795_v10  ;;  %v2082_v10 = vld [vmem:[%s2485_s29 + $0x3a8] sm:$0xf]  ;;  %v2163_v60 = vor.u32 %v2391_v55, %v2162_v54  ;;  %v2323_v62 = vld [vmem:[%s2485_s29 + $0x234] sm:$0xf0]  ;;  %v1956_v54 = vld [vmem:[%s2485_s29 + $0x2b8] sm:$0xf0] }
  0x6d   : > { %1324 = vmatpush.bf16.msra.mxu0 %v2031_v16  ;;  %v1700_v16 = vld [vmem:[%s2485_s29 + $0xb8] sm:$0xf0]  ;;  %v2355_v1 = vld [vmem:[%s2485_s29 + $0x334] sm:$0xf0]  ;;  %v2130_v13 = vld [vmem:[%s2485_s29 + $0x408] sm:$0xf] }
  0x6e   : > { %1337 = vmatpush.bf16.msra.mxu1 %v2159_v17  ;;  %v1955_v17 = vor.u32 %v2339_v9, %v1954_v8  ;;  %v1703_v23 = vor.u32 %v2273_v15, %v1700_v16  ;;  %v2387_v3 = vld [vmem:[%s2485_s29 + $0x434] sm:$0xf0]  ;;  %v2253_v16 = vld [vmem:[%s2485_s29 + $0xc] sm:$0xf] }
  0x6f   : > { %1350 = vmatpush.bf16.msra.mxu2 %v1651_v18  ;;  %v2083_v18 = vor.u32 %v2371_v12, %v2082_v10  ;;  %v2319_v8 = vld [vmem:[%s2485_s29 + $0x214] sm:$0xf0]  ;;  %v2147_v10 = vor.u32 %v2387_v3, %v2146_v2  ;;  %v2369_v55 = vld [vmem:[%s2485_s29 + $0x3ac] sm:$0xf]  ;;  %v1940_v2 = vld [vmem:[%s2485_s29 + $0x298] sm:$0xf0] }
  0x70   : > { %1363 = vmatpush.bf16.msra.mxu3 %v1779_v22  ;;  %v2066_v22 = vld [vmem:[%s2485_s29 + $0x388] sm:$0xf]  ;;  %v2351_v12 = vld [vmem:[%s2485_s29 + $0x314] sm:$0xf0]  ;;  %v2365_v3 = vld [vmem:[%s2485_s29 + $0x38c] sm:$0xf] }
  0x71   : > { %1325 = vmatpush.bf16.msra.mxu0 %v2015_v32  ;;  %v1684_v32 = vld [vmem:[%s2485_s29 + $0x98] sm:$0xf0]  ;;  %v2067_v34 = vor.u32 %v2367_v24, %v2066_v22  ;;  %v2383_v15 = vld [vmem:[%s2485_s29 + $0x414] sm:$0xf0] }
  0x72   : > { %1338 = vmatpush.bf16.msra.mxu1 %v2143_v35  ;;  %v2195_v35 = vor.u32 %v2399_v26, %v2194_v25  ;;  %v1687_v40 = vor.u32 %v2269_v28, %v1684_v32  ;;  %v1988_v22 = vld [vmem:[%s2485_s29 + $0x2f8] sm:$0xf0]  ;;  %v2131_v26 = vor.u32 %v2383_v15, %v2130_v13  ;;  %v2409_v28 = vld [vmem:[%s2485_s29 + $0x4ec] sm:$0xf] }
  0x73   : > { %1351 = vmatpush.bf16.msra.mxu2 %v1635_v37  ;;  %v1922_v37 = vld [vmem:[%s2485_s29 + $0x268] sm:$0xf]  ;;  %v2116_v24 = vld [vmem:[%s2485_s29 + $0x3f8] sm:$0xf0] }
  0x74   : > { %1364 = vmatpush.bf16.msra.mxu3 %v1763_v41  ;;  %v2363_v41 = vld [vmem:[%s2485_s29 + $0x374] sm:$0xf0]  ;;  %v1923_v46 = vor.u32 %v2331_v38, %v1922_v37  ;;  %v2244_v32 = vld [vmem:[%s2485_s29 + $0x4f8] sm:$0xf0]  ;;  %v2309_v38 = vld [vmem:[%s2485_s29 + $0x1cc] sm:$0xf] }
  0x75   : > { %1326 = vmatpush.bf16.msra.mxu0 %v1999_v48  ;;  %v2051_v47 = vor.u32 %v2363_v41, %v2050_v39  ;;  %v2179_v48 = vor.u32 %v2395_v43, %v2178_v42  ;;  %v1844_v39 = vld [vmem:[%s2485_s29 + $0x1d8] sm:$0xf0]  ;;  %v2247_v41 = vor.u32 %v2409_v28, %v2244_v32  ;;  %v2373_v43 = vld [vmem:[%s2485_s29 + $0x3cc] sm:$0xf] }
  0x76   : > { %1339 = vmatpush.bf16.msra.mxu1 %v2127_v52  ;;  %v1671_v52 = vor.u32 %v2265_v44, %v1668_v45  ;;  %v1972_v42 = vld [vmem:[%s2485_s29 + $0x2d8] sm:$0xf0]  ;;  %v2405_v45 = vld [vmem:[%s2485_s29 + $0x4cc] sm:$0xf] }
  0x77   : > { %1352 = vmatpush.bf16.msra.mxu2 %v1619_v53  ;;  %v2359_v53 = vld [vmem:[%s2485_s29 + $0x354] sm:$0xf0]  ;;  %v2100_v44 = vld [vmem:[%s2485_s29 + $0x3d8] sm:$0xf0]  ;;  %v2389_v32 = vld [vmem:[%s2485_s29 + $0x44c] sm:$0xf] }
  0x78   : > { %1365 = vmatpush.bf16.msra.mxu3 %v1747_v56  ;;  %1327 = vmatmul.bf16.vlgmr.msra.gmra.mxu0 %v2602_v31  ;;  %v2261_v56 = vld [vmem:[%s2485_s29 + $0x4c] sm:$0xf]  ;;  %v1924_v13 = vld [vmem:[%s2485_s29 + $0x278] sm:$0xf0] }
  0x79   : > { %1371 = vmatpush.bf16.msrb.mxu0 %v1987_v57  ;;  %1340 = vmatmul.bf16.vlgmr.msra.gmra.mxu1 %v2649_v27  ;;  %v1652_v57 = vld [vmem:[%s2485_s29 + $0x58] sm:$0xf0] }
  0x7a   : > { %1384 = vmatpush.bf16.msrb.mxu1 %v2115_v58  ;;  %1353 = vmatmul.bf16.vlgmr.msra.gmra.mxu2 %v2598_v29  ;;  %v1907_v58 = vor.u32 %v2327_v50, %v1906_v49  ;;  %v1655_v0 = vor.u32 %v2261_v56, %v1652_v57  ;;  %v2103_v49 = vor.u32 %v2373_v43, %v2100_v44  ;;  %v2305_v50 = vld [vmem:[%s2485_s29 + $0x1ac] sm:$0xf]  ;;  %v2084_v56 = vld [vmem:[%s2485_s29 + $0x3b8] sm:$0xf0] }
  0x7b   : > { %1397 = vmatpush.bf16.msrb.mxu2 %v2243_v59  ;;  %1366 = vmatmul.bf16.vlgmr.msra.gmra.mxu3 %v2606_v36  ;;  %v2035_v59 = vor.u32 %v2359_v53, %v2034_v51  ;;  %v1828_v51 = vld [vmem:[%s2485_s29 + $0x1b8] sm:$0xf0]  ;;  %v2401_v57 = vld [vmem:[%s2485_s29 + $0x4ac] sm:$0xf] }
  0x7c   : > { %1410 = vmatpush.bf16.msrb.mxu3 %v1735_v63  ;;  %v2018_v63 = vld [vmem:[%s2485_s29 + $0x328] sm:$0xf]  ;;  %v2052_v15 = vld [vmem:[%s2485_s29 + $0x378] sm:$0xf0]  ;;  %v2353_v43 = vld [vmem:[%s2485_s29 + $0x32c] sm:$0xf] }
  0x7d   : > { %1372 = vmatpush.bf16.msrb.mxu0 %v1971_v5  ;;  %v1636_v5 = vld [vmem:[%s2485_s29 + $0x38] sm:$0xf0]  ;;  %v2019_v9 = vor.u32 %v2355_v1, %v2018_v63 }
  0x7e   : > { %1385 = vmatpush.bf16.msrb.mxu1 %v2099_v6  ;;  %v1891_v6 = vor.u32 %v2323_v62, %v1890_v61  ;;  %v1639_v14 = vor.u32 %v2257_v4, %v1636_v5  ;;  %v2087_v61 = vor.u32 %v2369_v55, %v2084_v56  ;;  %v2301_v62 = vld [vmem:[%s2485_s29 + $0x18c] sm:$0xf]  ;;  %v1812_v63 = vld [vmem:[%s2485_s29 + $0x198] sm:$0xf0] }
  0x7f   : > { %1398 = vmatpush.bf16.msrb.mxu2 %v2227_v7  ;;  %v1874_v7 = vld [vmem:[%s2485_s29 + $0x208] sm:$0xf]  ;;  %v2068_v4 = vld [vmem:[%s2485_s29 + $0x398] sm:$0xf0]  ;;  %v2397_v5 = vld [vmem:[%s2485_s29 + $0x48c] sm:$0xf] }
  0x80   : > { %1411 = vmatpush.bf16.msrb.mxu3 %v1719_v11  ;;  %v2002_v11 = vld [vmem:[%s2485_s29 + $0x308] sm:$0xf]  ;;  %v1875_v21 = vor.u32 %v2319_v8, %v1874_v7  ;;  %v2071_v8 = vor.u32 %v2365_v3, %v2068_v4  ;;  %v2036_v28 = vld [vmem:[%s2485_s29 + $0x358] sm:$0xf0]  ;;  %v2349_v55 = vld [vmem:[%s2485_s29 + $0x30c] sm:$0xf] }
  0x81   : > { %1373 = vmatpush.bf16.msrb.mxu0 %v1955_v17  ;;  %v1620_v17 = vld [vmem:[%s2485_s29 + $0x18] sm:$0xf0]  ;;  %v2003_v25 = vor.u32 %v2351_v12, %v2002_v11  ;;  %v2329_v11 = vld [vmem:[%s2485_s29 + $0x26c] sm:$0xf] }
  0x82   : > { %1386 = vmatpush.bf16.msrb.mxu1 %v2083_v18  ;;  %v2313_v18 = vld [vmem:[%s2485_s29 + $0x1ec] sm:$0xf]  ;;  %v2020_v44 = vld [vmem:[%s2485_s29 + $0x338] sm:$0xf0] }
  0x83   : > { %1399 = vmatpush.bf16.msrb.mxu2 %v2211_v19  ;;  %v1860_v19 = vld [vmem:[%s2485_s29 + $0x1f8] sm:$0xf0] }
  0x84   : > { %1412 = vmatpush.bf16.msrb.mxu3 %v1703_v23  ;;  %v2377_v23 = vld [vmem:[%s2485_s29 + $0x3ec] sm:$0xf]  ;;  %v2004_v56 = vld [vmem:[%s2485_s29 + $0x318] sm:$0xf0] }
  0x85   : > { %1374 = vmatpush.bf16.msrb.mxu0 %v1939_v33  ;;  %v1623_v33 = vor.u32 %v2253_v16, %v1620_v17  ;;  %v2119_v37 = vor.u32 %v2377_v23, %v2116_v24  ;;  %v2393_v16 = vld [vmem:[%s2485_s29 + $0x46c] sm:$0xf]  ;;  %v2180_v17 = vld [vmem:[%s2485_s29 + $0x478] sm:$0xf0] }
  0x86   : > { %1387 = vmatpush.bf16.msrb.mxu1 %v2067_v34  ;;  %v1863_v34 = vor.u32 %v2313_v18, %v1860_v19  ;;  %v1927_v19 = vor.u32 %v2329_v11, %v1924_v13  ;;  %v2325_v23 = vld [vmem:[%s2485_s29 + $0x24c] sm:$0xf]  ;;  %v2183_v24 = vor.u32 %v2393_v16, %v2180_v17 }
  0x87   : > { %1400 = vmatpush.bf16.msrb.mxu2 %v2195_v35  ;;  %v1991_v35 = vor.u32 %v2345_v20, %v1988_v22  ;;  %v1780_v22 = vld [vmem:[%s2485_s29 + $0x158] sm:$0xf0] }
  0x88   : > { %1413 = vmatpush.bf16.msrb.mxu3 %v1687_v40  ;;  %v2341_v40 = vld [vmem:[%s2485_s29 + $0x2cc] sm:$0xf] }
  0x89   : > { %1375 = vmatpush.bf16.msrb.mxu0 %v1923_v46  ;;  %v2228_v46 = vld [vmem:[%s2485_s29 + $0x4d8] sm:$0xf0] }
  0x8a   : > { %1388 = vmatpush.bf16.msrb.mxu1 %v2051_v47  ;;  %v1847_v47 = vor.u32 %v2309_v38, %v1844_v39  ;;  %v2231_v53 = vor.u32 %v2405_v45, %v2228_v46  ;;  %v2289_v38 = vld [vmem:[%s2485_s29 + $0x12c] sm:$0xf]  ;;  %v1764_v39 = vld [vmem:[%s2485_s29 + $0x138] sm:$0xf0] }
  0x8b   : > { %1401 = vmatpush.bf16.msrb.mxu2 %v2179_v48  ;;  %v1975_v48 = vor.u32 %v2341_v40, %v1972_v42  ;;  %v2321_v40 = vld [vmem:[%s2485_s29 + $0x22c] sm:$0xf]  ;;  %v1892_v42 = vld [vmem:[%s2485_s29 + $0x238] sm:$0xf0] }
  0x8c   : > { %1414 = vmatpush.bf16.msrb.mxu3 %v1671_v52  ;;  %v2337_v52 = vld [vmem:[%s2485_s29 + $0x2ac] sm:$0xf]  ;;  %v2148_v46 = vld [vmem:[%s2485_s29 + $0x438] sm:$0xf0] }
  0x8d   : > { %1376 = vmatpush.bf16.msrb.mxu0 %v1907_v58  ;;  %v2212_v58 = vld [vmem:[%s2485_s29 + $0x4b8] sm:$0xf0]  ;;  %v2385_v45 = vld [vmem:[%s2485_s29 + $0x42c] sm:$0xf] }
  0x8e   : > { %1389 = vmatpush.bf16.msrb.mxu1 %v2035_v59  ;;  %v1831_v59 = vor.u32 %v2305_v50, %v1828_v51  ;;  %v2215_v1 = vor.u32 %v2401_v57, %v2212_v58  ;;  %v2285_v50 = vld [vmem:[%s2485_s29 + $0x10c] sm:$0xf]  ;;  %v1748_v51 = vld [vmem:[%s2485_s29 + $0x118] sm:$0xf0] }
  0x8f   : > { %1402 = vmatpush.bf16.msrb.mxu2 %v2163_v60  ;;  %v1959_v60 = vor.u32 %v2337_v52, %v1956_v54  ;;  %v2317_v52 = vld [vmem:[%s2485_s29 + $0x20c] sm:$0xf]  ;;  %v1876_v54 = vld [vmem:[%s2485_s29 + $0x218] sm:$0xf0] }
  0x90   : > { %1415 = vmatpush.bf16.msrb.mxu3 %v1655_v0  ;;  %v2333_v0 = vld [vmem:[%s2485_s29 + $0x28c] sm:$0xf]  ;;  %v2132_v58 = vld [vmem:[%s2485_s29 + $0x418] sm:$0xf0] }
  0x91   : > { %1377 = vmatpush.bf16.msrb.mxu0 %v1891_v6  ;;  %v1815_v6 = vor.u32 %v2301_v62, %v1812_v63  ;;  %v1943_v7 = vor.u32 %v2333_v0, %v1940_v2  ;;  %v2381_v57 = vld [vmem:[%s2485_s29 + $0x40c] sm:$0xf] }
  0x92   : > { %1390 = vmatpush.bf16.msrb.mxu1 %v2019_v9  ;;  %v2297_v9 = vld [vmem:[%s2485_s29 + $0x16c] sm:$0xf]  ;;  %v2135_v62 = vor.u32 %v2381_v57, %v2132_v58 }
  0x93   : > { %1403 = vmatpush.bf16.msrb.mxu2 %v2147_v10  ;;  %v1796_v10 = vld [vmem:[%s2485_s29 + $0x178] sm:$0xf0]  ;;  %v241_v57 = vld [vmem:[#allocation2] sm:$0xff] }
  0x94   : > { %1416 = vmatpush.bf16.msrb.mxu3 %v1639_v14  ;;  %v2361_v14 = vld [vmem:[%s2485_s29 + $0x36c] sm:$0xf]  ;;  %v1799_v18 = vor.u32 %v2297_v9, %v1796_v10 }
  0x95   : > { %1378 = vmatpush.bf16.msrb.mxu0 %v1875_v21  ;;  %v2055_v20 = vor.u32 %v2361_v14, %v2052_v15  ;;  %v2293_v21 = vld [vmem:[%s2485_s29 + $0x14c] sm:$0xf] }
  0x96   : > { %1391 = vmatpush.bf16.msrb.mxu1 %v2003_v25  ;;  %v1908_v25 = vld [vmem:[%s2485_s29 + $0x258] sm:$0xf0] }
  0x97   : > { %1404 = vmatpush.bf16.msrb.mxu2 %v2131_v26  ;;  %v2357_v26 = vld [vmem:[%s2485_s29 + $0x34c] sm:$0xf] }
  0x98   : > { %1417 = vmatpush.bf16.msrb.mxu3 %v1623_v33  ;;  %1379 = vmatmul.bf16.vlgmr.msrb.gmra.mxu0 %v2600_v30  ;;  %v2164_v33 = vld [vmem:[%s2485_s29 + $0x458] sm:$0xf0] }
  0x99   : > { %1423 = vmatpush.bf16.msra.mxu0 %v1863_v34  ;;  %1392 = vmatmul.bf16.vlgmr.msrb.gmra.mxu1 %v2602_v31  ;;  %v1783_v34 = vor.u32 %v2293_v21, %v1780_v22 }
  0x9a   : > { %1436 = vmatpush.bf16.msra.mxu1 %v1991_v35  ;;  %1405 = vmatmul.bf16.vlgmr.msrb.gmra.mxu2 %v2649_v27  ;;  %v1911_v35 = vor.u32 %v2325_v23, %v1908_v25 }
  0x9b   : > { %1449 = vmatpush.bf16.msra.mxu2 %v2119_v37  ;;  %1418 = vmatmul.bf16.vlgmr.msrb.gmra.mxu3 %v2598_v29  ;;  %v2196_v29 = vld [vmem:[%s2485_s29 + $0x498] sm:$0xf0]  ;;  %v2039_v37 = vor.u32 %v2357_v26, %v2036_v28 }
  0x9c   : > { %1462 = vmatpush.bf16.msra.mxu3 %v2247_v41  ;;  %v2199_v12 = vor.u32 %v2397_v5, %v2196_v29  ;;  %v2167_v41 = vor.u32 %v2389_v32, %v2164_v33 }
  0x9d   : > { %1424 = vmatpush.bf16.msra.mxu0 %v1847_v47  ;;  %v1767_v47 = vor.u32 %v2289_v38, %v1764_v39 }
  0x9e   : > { %1437 = vmatpush.bf16.msra.mxu1 %v1975_v48  ;;  %v1895_v48 = vor.u32 %v2321_v40, %v1892_v42 }
  0x9f   : > { %1450 = vmatpush.bf16.msra.mxu2 %v2103_v49  ;;  %v2023_v49 = vor.u32 %v2353_v43, %v2020_v44 }
  0xa0   : > { %1463 = vmatpush.bf16.msra.mxu3 %v2231_v53  ;;  %v2151_v53 = vor.u32 %v2385_v45, %v2148_v46 }
  0xa1   : > { %1425 = vmatpush.bf16.msra.mxu0 %v1831_v59  ;;  %v1751_v59 = vor.u32 %v2285_v50, %v1748_v51 }
  0xa2   : > { %1438 = vmatpush.bf16.msra.mxu1 %v1959_v60  ;;  %v1879_v60 = vor.u32 %v2317_v52, %v1876_v54 }
  0xa3   : > { %1451 = vmatpush.bf16.msra.mxu2 %v2087_v61  ;;  %v2007_v61 = vor.u32 %v2349_v55, %v2004_v56 }
  0xa4   : > { %1464 = vmatpush.bf16.msra.mxu3 %v2215_v1 }
  0xa5   : > { %1426 = vmatpush.bf16.msra.mxu0 %v1815_v6 }
  0xa6   : > { %1439 = vmatpush.bf16.msra.mxu1 %v1943_v7 }
  0xa7   : > { %1452 = vmatpush.bf16.msra.mxu2 %v2071_v8 }
  0xa8   : > { %1465 = vmatpush.bf16.msra.mxu3 %v2199_v12 }
  0xa9   : > { %1427 = vmatpush.bf16.msra.mxu0 %v1799_v18 }
  0xaa   : > { %1440 = vmatpush.bf16.msra.mxu1 %v1927_v19 }
  0xab   : > { %1453 = vmatpush.bf16.msra.mxu2 %v2055_v20 }
  0xac   : > { %1466 = vmatpush.bf16.msra.mxu3 %v2183_v24 }
  0xad   : > { %1428 = vmatpush.bf16.msra.mxu0 %v1783_v34 }
  0xae   : > { %1441 = vmatpush.bf16.msra.mxu1 %v1911_v35 }
  0xaf   : > { %1454 = vmatpush.bf16.msra.mxu2 %v2039_v37 }
  0xb0   : > { %1467 = vmatpush.bf16.msra.mxu3 %v2167_v41 }
  0xb1   : > { %1429 = vmatpush.bf16.msra.mxu0 %v1767_v47 }
  0xb2   : > { %1442 = vmatpush.bf16.msra.mxu1 %v1895_v48 }
  0xb3   : > { %1455 = vmatpush.bf16.msra.mxu2 %v2023_v49 }
  0xb4   : > { %1468 = vmatpush.bf16.msra.mxu3 %v2151_v53 }
  0xb5   : > { %1430 = vmatpush.bf16.msra.mxu0 %v1751_v59 }
  0xb6   : > { %1443 = vmatpush.bf16.msra.mxu1 %v1879_v60 }
  0xb7   : > { %1456 = vmatpush.bf16.msra.mxu2 %v2007_v61 }
  0xb8   : > { %1469 = vmatpush.bf16.msra.mxu3 %v2135_v62  ;;  %1431 = vmatmul.bf16.vlgmr.msra.gmra.mxu0 %v2606_v36 }
  0xb9   : > { %1444 = vmatmul.bf16.vlgmr.msra.gmra.mxu1 %v2600_v30 }
  0xba   : > { %1457 = vmatmul.bf16.vlgmr.msra.gmra.mxu2 %v2602_v31 }
  0xbb   : > { %1470 = vmatmul.bf16.vlgmr.msra.gmra.mxu3 %v2649_v27 }
  0xc0   : > { %v1224_v63 = vpop.f32.mrf.mxu0 }
  0xc4   : > { %v1237_v0 = vpop.f32.mrf.mxu1 }
  0xc5   : > { %v1238_v1 = vadd.f32 %v1237_v0, %v1224_v63 }
  0xc7   : > { %v1250_v2 = vpop.f32.mrf.mxu2 }
  0xc8   : > { %v1263_v3 = vpop.f32.mrf.mxu3  ;;  %v1251_v4 = vadd.f32 %v1250_v2, %v1238_v1  ;;  %v1226_v5 = vpop.f32.mrf.mxu0 }
  0xca   : > { %v1264_v29 = vadd.f32 %v1263_v3, %v1251_v4 }
  0xcc   : > { %v1239_v6 = vpop.f32.mrf.mxu1 }
  0xcf   : > { %v1252_v7 = vpop.f32.mrf.mxu2 }
  0xd0   : > { %v1265_v8 = vpop.f32.mrf.mxu3 }
  0xd5   : > { %v1276_v9 = vpop.f32.mrf.mxu0 }
  0xd6   : > { %v1277_v10 = vadd.f32 %v1276_v9, %v1264_v29  ;;  %v1289_v36 = vpop.f32.mrf.mxu1 }
  0xdd   : > { %v1302_v11 = vpop.f32.mrf.mxu2  ;;  %v1278_v30 = vpop.f32.mrf.mxu0 }
  0xde   : > { %v1303_v12 = vadd.f32 %v1302_v11, %v1289_v36  ;;  %v1315_v31 = vpop.f32.mrf.mxu3  ;;  %v1291_v13 = vpop.f32.mrf.mxu1 }
  0xe0   : > { %v1316_v27 = vadd.f32 %v1315_v31, %v1303_v12 }
  0xe5   : > { %v1304_v14 = vpop.f32.mrf.mxu2 }
  0xe6   : > { %v1317_v15 = vpop.f32.mrf.mxu3 }
  0xf5   : > { %v1328_v16 = vpop.f32.mrf.mxu0 }
  0xf6   : > { %v1329_v17 = vadd.f32 %v1328_v16, %v1316_v27  ;;  %v1341_v18 = vpop.f32.mrf.mxu1 }
  0xf8   : > { %v1342_v19 = vadd.f32 %v1341_v18, %v1329_v17 }
  0xfa   : > { %v1479_v20 = vrot.slane %v1342_v19, 6 }
  0xfc   : > { %v1483_v21 = vsel %vm1482_vm0, %v1277_v10, %v1479_v20 }
  0xfd   : > { %v1354_v22 = vpop.f32.mrf.mxu2  ;;  %v1330_v23 = vpop.f32.mrf.mxu0 }
  0xfe   : > { %v1367_v24 = vpop.f32.mrf.mxu3  ;;  %v1343_v25 = vpop.f32.mrf.mxu1 }
  0xff   : > { %v1368_v41 = vadd.f32 %v1367_v24, %v1354_v22 }
 0x105   : > { %v1356_v26 = vpop.f32.mrf.mxu2 }
 0x106   : > { %v1369_v28 = vpop.f32.mrf.mxu3 }
 0x115   : > { %v1380_v32 = vpop.f32.mrf.mxu0 }
 0x116   : > { %v1393_v33 = vpop.f32.mrf.mxu1  ;;  %v1381_v42 = vadd.f32 %v1380_v32, %v1368_v41 }
 0x118   : > { %v1394_v46 = vadd.f32 %v1393_v33, %v1381_v42 }
 0x11d   : > { %v1406_v34 = vpop.f32.mrf.mxu2  ;;  %v1382_v37 = vpop.f32.mrf.mxu0 }
 0x11e   : > { %v1419_v35 = vpop.f32.mrf.mxu3  ;;  %v1395_v38 = vpop.f32.mrf.mxu1  ;;  %v1407_v49 = vadd.f32 %v1406_v34, %v1394_v46 }
 0x120   : > { %v1480_v55 = vrot.slane %v1407_v49, 4 }
 0x125   : > { %v1408_v39 = vpop.f32.mrf.mxu2 }
 0x126   : > { %v1421_v40 = vpop.f32.mrf.mxu3 }
 0x135   : > { %v1432_v43 = vpop.f32.mrf.mxu0 }
 0x136   : > { %v1445_v44 = vpop.f32.mrf.mxu1  ;;  %v1433_v45 = vadd.f32 %v1432_v43, %v1419_v35 }
 0x138   : > { %v1446_v47 = vadd.f32 %v1445_v44, %v1433_v45 }
 0x13d   : > { %v1458_v48 = vpop.f32.mrf.mxu2  ;;  %v1434_v52 = vpop.f32.mrf.mxu0 }
 0x13e   : > { %v1459_v50 = vadd.f32 %v1458_v48, %v1446_v47  ;;  %v1471_v51 = vpop.f32.mrf.mxu3  ;;  %v1447_v53 = vpop.f32.mrf.mxu1 }
 0x140   : > { %v1472_v54 = vadd.f32 %v1471_v51, %v1459_v50 }
 0x142   : > { %v1481_v56 = vrot.slane %v1472_v54, 2 }
 0x144   : > { %v1485_v58 = vsel %vm1484_vm1, %v1480_v55, %v1481_v56  ;;  %1494 = sbr.rel (%p2248_p6) target bundleno = 479 (0x1df), region = 48 }
 0x145   : > { %v1487_v59 = vsel %vm1486_vm2, %v1483_v21, %v1485_v58  ;;  %v1460_v60 = vpop.f32.mrf.mxu2 }
 0x146   : > { %v1489_v61 = vadd.f32 %v1487_v59, %v241_v57  ;;  %v1473_v62 = vpop.f32.mrf.mxu3 }
 0x148   : > { %1490 = vst [vmem:[#allocation2] sm:$0xff] %v1489_v61 }
 0x149   : > { %v1496_v63 = vld [vmem:[%s2871_s2] sm:$0xf]  ;;  %v2421_v41 = vld [vmem:[#allocation3] ss:$0 sm:$0xff]  ;;  %vm1562_vm3 = vcmask 1024  }
 0x14a   : > { %v1511_v0 = vld [vmem:[%s2872_s3] sm:$0xf]  ;;  %v1498_v1 = vperm.slane %v1496_v63, 0  ;;  %v1499_v2 = vperm.slane %v1496_v63, 1  ;;  %v1500_v3 = vperm.slane %v1496_v63, 2  ;;  %v1501_v4 = vperm.slane %v1496_v63, 3 }
 0x14b   : > { %v1512_v5 = vunpack.c.l.bf16 %v1511_v0 }
 0x14c   : > { %v1502_v29 = vrot.slane %v1499_v2, 6  ;;  %v1503_v6 = vrot.slane %v1500_v3, 4  ;;  %v1504_v7 = vrot.slane %v1501_v4, 2 }
 0x14d   : > { %v1514_v9 = vperm.slane %v1512_v5, 0  ;;  %v1515_v10 = vperm.slane %v1512_v5, 2  ;;  %v1516_v36 = vperm.slane %v1512_v5, 4  ;;  %v1517_v11 = vperm.slane %v1512_v5, 6 }
 0x14e   : > { %v1505_v30 = vsel %vm1482_vm0, %v1498_v1, %v1502_v29  ;;  %v1506_v12 = vsel %vm1484_vm1, %v1503_v6, %v1504_v7 }
 0x14f   : > { %v1495_v8 = vld [vmem:[#allocation2] sm:$0xff]  ;;  %v1507_v31 = vsel %vm1486_vm2, %v1505_v30, %v1506_v12  ;;  %v1522_v13 = vperm.slane %v1514_v9, 0  ;;  %v1523_v27 = vperm.slane %v1515_v10, 0  ;;  %v1524_v14 = vperm.slane %v1516_v36, 0 }
 0x150   : > { %v1509_v15 = vadd.f32 %v1507_v31, %v1495_v8  ;;  %v1525_v16 = vperm.slane %v1517_v11, 0 }
 0x151   : > { %v1530_v17 = vrot.slane %v1523_v27, 6  ;;  %v1531_v18 = vrot.slane %v1524_v14, 4 }
 0x152   : > { %v1510_v19 = vmax.f32 %v1509_v15, 0.0  ;;  %v1532_v20 = vrot.slane %v1525_v16, 2 }
 0x153   : > { %v1533_v21 = vsel %vm1482_vm0, %v1522_v13, %v1530_v17 }
 0x154   : > { %v1534_v22 = vsel %vm1484_vm1, %v1531_v18, %v1532_v20 }
 0x155   : > { %v1535_v23 = vsel %vm1486_vm2, %v1533_v21, %v1534_v22 }
 0x156   : > { %v1537_v24 = vmul.f32 %v1535_v23, %v1510_v19 }
 0x158   : > { %1539 = vst [vmem:[#allocation1] ss:$4 sm:$0xff] %v1537_v24 }
 0x15f   : > { %v1540_v25 = vld.sshfl [vmem:[#allocation1] sm:$0xff pattern:$0x73625140]  ;;  %v1541_v26 = vld.sshfl [vmem:[#allocation1 + $0x8] sm:$0xff pattern:$0x73625140] }
 0x160   : > { %v1542_v28 = vld.sshfl [vmem:[#allocation1 + $0x10] sm:$0xff pattern:$0x73625140]  ;;  %v1543_v32 = vld.sshfl [vmem:[#allocation1 + $0x18] sm:$0xff pattern:$0x73625140] }
 0x161   : > { %v1548_v33 = vsel %vm1482_vm0, %v1540_v25, 0.0  ;;  %v1549_v34 = vsel %vm1482_vm0, %v1541_v26, 0.0  ;;  %v1551_v35 = vsel %vm1482_vm0, %v1542_v28, 0.0  ;;  %v1553_v38 = vsel %vm1482_vm0, %v1543_v32, 0.0 }
 0x162   : > { %v1550_v37 = vadd.f32 %v1549_v34, %v1548_v33 }
 0x164   : > { %v1552_v39 = vadd.f32 %v1551_v35, %v1550_v37 }
 0x166   : > { %v1554_v40 = vadd.f32 %v1553_v38, %v1552_v39 }
 0x168   : > { %1555 = vadd.xlane.f32.xlu0 %v1554_v40 }
 0x1db   : > { %v1556_v42 = vpop.xlane.xlu0 %1555 }
 0x1dc   : > { %v1561_v43 = vadd.f32 %v2421_v41, %v1556_v42 }
 0x1de   : > { %1563 = vst.msk [vmem:[%s2874_s5] sm:$0x3] %vm1562_vm3, %v1561_v43 }
 0x1df PF: > { %s17_s20 = sadd.s32 1, %s2428_s20  }
 0x1e0   : > { %p14_p7 = scmp.ge.s32.totalorder %s17_s20, 7  }
 0x1e2   :  { %16 = sbr.rel (!%p14_p7) target bundleno = 3 (0x3), region = 77 }

</bundles_post_ra>
